<compile_context>
chip_gen: v5e
topology: v5e:2x2
jax: 0.10.0
libtpu: 0.0.40
codegen_flags: <defaults>
</compile_context>

<pallas_src>
import functools

import jax
import jax.numpy as jnp
from jax.experimental import pallas as pl
from jax.experimental.pallas import tpu as pltpu


# ----------------------------------------------------------------------------
# Fused 3x3 convolution kernel
#   (+ optional 2x nearest-neighbour upsample of the input along H,
#    + optional second input source = fused skip-concat,
#    + fused bias and activation)
# ----------------------------------------------------------------------------
def _conv3x3_kernel(*refs, n_src, th, wout, upsample, act):
    """One grid step computes a (1, th, wout, Cout) output row-block.

    refs layout:
      [main_0, halo0_0, halo1_0, ..., main_{S-1}, halo0_{S-1}, halo1_{S-1},
       w_0, ..., w_{S-1}, bias, out]
    """
    o_ref = refs[-1]
    b_ref = refs[-2]
    w_refs = refs[3 * n_src:4 * n_src]

    acc = None
    for s in range(n_src):
        main, halo0, halo1 = refs[3 * s], refs[3 * s + 1], refs[3 * s + 2]
        # Rows of the zero-padded NHWC activation needed by this output block.
        x = jnp.concatenate([main[...], halo0[...], halo1[...]], axis=1)
        if upsample:
            # Fused nearest-neighbour 2x upsample along H: virtual padded row i
            # maps to physical padded row (i + 1) // 2 (boundaries included).
            x = jnp.concatenate(
                [x[:, (i + 1) // 2:(i + 1) // 2 + 1] for i in range(th + 2)],
                axis=1)                                  # (1, th+2, Wp, Cin)
        cin = x.shape[-1]
        w_all = w_refs[s][...]                           # (3, 3*cin, cout) resident
        for kh in range(3):
            rows = x[:, kh:kh + th]                      # (1, th, Wp, cin)
            # im2col along W built in VMEM only: (1, th, wout, 3*cin)
            cols = jnp.concatenate(
                [rows[:, :, kw:kw + wout, :] for kw in range(3)], axis=-1)
            a = cols.reshape(th * wout, 3 * cin)
            y = jnp.dot(a, w_all[kh], preferred_element_type=jnp.float32)
            acc = y if acc is None else acc + y

    acc = acc + b_ref[...]                               # (1, cout) broadcasts
    if act == "relu":
        acc = jnp.maximum(acc, 0.0)
    elif act == "sigmoid":
        acc = jax.nn.sigmoid(acc)
    o_ref[...] = acc.reshape(o_ref.shape).astype(o_ref.dtype)


def _pick_row_block(hout, upsample, target):
    """Largest divisor of hout <= target (even when the input is upsampled)."""
    best = 1
    for t in range(1, min(hout, target) + 1):
        if hout % t:
            continue
        if upsample and t % 2:
            continue
        best = t
    assert (not upsample) or best % 2 == 0
    return best


def _vmem_limit_bytes():
    # v5e/v6e have 128 MiB of VMEM, v7x only 64 MiB per TensorCore: derive the
    # scoped limit from the chip so double buffering always fits.
    try:
        cap = int(pltpu.get_tpu_info().vmem_capacity_bytes)
        return int(min(96 * 1024 * 1024, cap * 3 // 4))
    except Exception:  # pragma: no cover - conservative fallback
        return 64 * 1024 * 1024


def conv3x3(xs, w4, b, *, act="none", upsample=False,
            out_dtype=jnp.bfloat16, row_block=8):
    """Fused 3x3 stride-1 convolution.

    xs  : list of NHWC bf16 activations sharing spatial dims; the channel
          concat of multiple sources (skip connections) is fused into the
          kernel as per-source tap loops into one accumulator.
    w4  : (3, 3, sum(Cin_s), Cout) bf16 weights,  b: (Cout,) f32 bias.
    upsample: fuse a 2x nearest-neighbour upsample of the (single) input.
    """
    assert w4.shape[0] == 3 and w4.shape[1] == 3
    cout = int(w4.shape[-1])
    cins = [int(x.shape[-1]) for x in xs]
    assert sum(cins) == w4.shape[2]

    if upsample:
        assert len(xs) == 1
        # TODO(synk): W direction still materialized by XLA (2x); the H
        # direction is fused into the kernel's read path.
        xs = [jnp.repeat(xs[0], 2, axis=2)]

    n, hin, win, _ = xs[0].shape
    hout = 2 * hin if upsample else hin
    wout = win
    th = _pick_row_block(hout, upsample, row_block)
    mh = th // 2 if upsample else th

    # Spatial zero-pad once (single cheap pass) so taps never need edge masks.
    xps = [jnp.pad(x, ((0, 0), (1, 1), (1, 1), (0, 0))) for x in xs]
    wp = wout + 2

    # Per-source weight slabs, rows ordered (kw, cin) to match the in-VMEM
    # im2col lane order.  Weights were pre-cast to bf16 at init.
    w_srcs, off = [], 0
    for cin in cins:
        w_srcs.append(w4[:, :, off:off + cin, :].reshape(3, 3 * cin, cout))
        off += cin
    bias = b.astype(jnp.float32).reshape(1, cout)

    n_src = len(xps)
    inputs, in_specs = [], []
    for xp, cin in zip(xps, cins):
        # Main row block + two 1-row halo views of the SAME padded array:
        # only the 2 halo rows per block are re-read (no 9x im2col in HBM).
        inputs += [xp, xp, xp]
        in_specs += [
            pl.BlockSpec((1, mh, wp, cin), lambda ni, rb: (ni, rb, 0, 0)),
            pl.BlockSpec((1, 1, wp, cin),
                         lambda ni, rb, mh=mh: (ni, (rb + 1) * mh, 0, 0)),
            pl.BlockSpec((1, 1, wp, cin),
                         lambda ni, rb, mh=mh: (ni, (rb + 1) * mh + 1, 0, 0)),
        ]
    for w_s, cin in zip(w_srcs, cins):
        inputs.append(w_s)
        # Constant index map -> DMA'd once, VMEM-resident for the whole grid.
        in_specs.append(
            pl.BlockSpec((3, 3 * cin, cout), lambda ni, rb: (0, 0, 0)))
    inputs.append(bias)
    in_specs.append(pl.BlockSpec((1, cout), lambda ni, rb: (0, 0)))

    grid = (n, hout // th)
    kernel = functools.partial(_conv3x3_kernel, n_src=n_src, th=th, wout=wout,
                               upsample=upsample, act=act)

    flops = 2 * n * hout * wout * cout * sum(9 * c for c in cins)
    bytes_accessed = (sum(int(x.size) * 2 for x in xps)
                      + sum(int(w.size) * 2 for w in w_srcs)
                      + n * hout * wout * cout * jnp.dtype(out_dtype).itemsize)
    transcendentals = n * hout * wout * cout if act == "sigmoid" else 0

    out = pl.pallas_call(
        kernel,
        out_shape=jax.ShapeDtypeStruct((n, hout, wout, cout), out_dtype),
        grid=grid,
        in_specs=in_specs,
        out_specs=pl.BlockSpec((1, th, wout, cout),
                               lambda ni, rb: (ni, rb, 0, 0)),
        compiler_params=pltpu.CompilerParams(
            dimension_semantics=("parallel", "parallel"),
            vmem_limit_bytes=_vmem_limit_bytes(),
        ),
        cost_estimate=pl.CostEstimate(
            flops=int(flops),
            transcendentals=int(transcendentals),
            bytes_accessed=int(bytes_accessed),
        ),
    )(*inputs)
    return out


# ----------------------------------------------------------------------------
# XLA glue (single cheap passes)
# ----------------------------------------------------------------------------
def maxpool2(x):
    n, h, w, c = x.shape
    return jnp.max(x.reshape(n, h // 2, 2, w // 2, 2, c), axis=(2, 4))


# ----------------------------------------------------------------------------
# Deterministic parameter init (weights pre-cast to bf16, HWIO layout)
# ----------------------------------------------------------------------------
def _init_conv(key, cin, cout):
    kw, kb = jax.random.split(key)
    w = jax.random.normal(kw, (3, 3, cin, cout), jnp.float32) * (2.0 / (9 * cin)) ** 0.5
    b = 0.05 * jax.random.normal(kb, (cout,), jnp.float32)
    return w.astype(jnp.bfloat16), b


def init_params(seed=0, in_ch=3, output_size=512):
    keys = jax.random.split(jax.random.PRNGKey(seed), 8)
    p = {}
    # Encoder: conv + 2x2 max-pool blocks, 512-channel bottleneck at H/8.
    p["e1"] = _init_conv(keys[0], in_ch, 32)
    p["e2"] = _init_conv(keys[1], 32, 64)
    p["e3"] = _init_conv(keys[2], 64, output_size)
    # Decoder: upsample + conv with skip concats, mirrored.
    p["d1"] = _init_conv(keys[3], output_size, 64)
    p["d2"] = _init_conv(keys[4], 64 + 64, 64)
    p["d3"] = _init_conv(keys[5], 64, 32)
    p["d4"] = _init_conv(keys[6], 32 + 32, 32)
    p["d5"] = _init_conv(keys[7], 32, in_ch)
    return p


# ----------------------------------------------------------------------------
# AE_Network forward (NHWC bf16 internally, NCHW f32 at the boundary)
# ----------------------------------------------------------------------------
def encode(params, x):
    a1 = conv3x3([x], *params["e1"], act="relu")           # (N, H,   W,   32)
    f1 = maxpool2(a1)                                      # (N, H/2, W/2, 32)
    a2 = conv3x3([f1], *params["e2"], act="relu")          # (N, H/2, W/2, 64)
    f2 = maxpool2(a2)                                      # (N, H/4, W/4, 64)
    a3 = conv3x3([f2], *params["e3"], act="relu")          # (N, H/4, W/4, 512)
    z = maxpool2(a3)                                       # (N, H/8, W/8, 512)
    return z, (f1, f2)


def decode(params, z, encoder_features):
    f1, f2 = encoder_features
    d = conv3x3([z], *params["d1"], act="relu", upsample=True)   # (N,H/4,W/4,64)
    d = conv3x3([d, f2], *params["d2"], act="relu")              # fused skip concat
    d = conv3x3([d], *params["d3"], act="relu", upsample=True)   # (N,H/2,W/2,32)
    d = conv3x3([d, f1], *params["d4"], act="relu")              # fused skip concat
    out = conv3x3([d], *params["d5"], act="sigmoid", upsample=True,
                  out_dtype=jnp.float32)                         # (N,H,W,in_ch) f32
    return out


def ae_network_forward(params, x_nchw):
    x = jnp.transpose(x_nchw, (0, 2, 3, 1)).astype(jnp.bfloat16)
    z, enc_feats = encode(params, x)
    y = decode(params, z, enc_feats)                             # NHWC f32
    return jnp.transpose(y, (0, 3, 1, 2))                        # back to NCHW


# ----------------------------------------------------------------------------
# Pure-XLA reference (same bf16 params / activations) for a correctness check
# ----------------------------------------------------------------------------
def _ref_conv(x, w4, b, act, out_dtype=jnp.bfloat16):
    y = jax.lax.conv_general_dilated(
        x, w4, window_strides=(1, 1), padding="SAME",
        dimension_numbers=("NHWC", "HWIO", "NHWC"),
        preferred_element_type=jnp.float32)
    y = y + b.astype(jnp.float32)
    if act == "relu":
        y = jnp.maximum(y, 0.0)
    elif act == "sigmoid":
        y = jax.nn.sigmoid(y)
    return y.astype(out_dtype)


def _ref_up(x):
    return jnp.repeat(jnp.repeat(x, 2, axis=1), 2, axis=2)


def reference_forward(params, x_nchw):
    x = jnp.transpose(x_nchw, (0, 2, 3, 1)).astype(jnp.bfloat16)
    f1 = maxpool2(_ref_conv(x, *params["e1"], "relu"))
    f2 = maxpool2(_ref_conv(f1, *params["e2"], "relu"))
    z = maxpool2(_ref_conv(f2, *params["e3"], "relu"))
    d = _ref_conv(_ref_up(z), *params["d1"], "relu")
    d = _ref_conv(jnp.concatenate([d, f2], axis=-1), *params["d2"], "relu")
    d = _ref_conv(_ref_up(d), *params["d3"], "relu")
    d = _ref_conv(jnp.concatenate([d, f1], axis=-1), *params["d4"], "relu")
    y = _ref_conv(_ref_up(d), *params["d5"], "sigmoid", out_dtype=jnp.float32)
    return jnp.transpose(y, (0, 3, 1, 2))


# ----------------------------------------------------------------------------
if __name__ == "__main__":
    N, C, H, W = 2, 3, 16, 16
    x = jax.random.normal(jax.random.PRNGKey(0), (N, C, H, W), jnp.float32)
    params = init_params(seed=0, in_ch=C, output_size=512)

    fwd = jax.jit(ae_network_forward)
    y = fwd(params, x)
    jax.block_until_ready(y)

    assert y.shape == (N, C, H, W), y.shape
    assert bool(jnp.all(jnp.isfinite(y)))

    # Cross-check the fused kernels against a pure-XLA reference that uses the
    # exact same bf16 parameters and activations.
    y_ref = jax.jit(reference_forward)(params, x)
    jax.block_until_ready(y_ref)
    max_err = float(jnp.max(jnp.abs(y - y_ref)))
    assert max_err < 5e-2, f"mismatch vs XLA reference: max abs err = {max_err}"

    print("KERNEL_OK")
</pallas_src>

<mosaic_0001>
module attributes {stable_mosaic.version = 11 : i64} {
  func.func @_conv3x3_kernel(%arg0: i32, %arg1: i32, %arg2: memref<1x8x18x3xbf16, #tpu.memory_space<vmem>>, %arg3: memref<1x1x18x3xbf16, #tpu.memory_space<vmem>>, %arg4: memref<1x1x18x3xbf16, #tpu.memory_space<vmem>>, %arg5: memref<3x9x32xbf16, #tpu.memory_space<vmem>>, %arg6: memref<1x32xf32, #tpu.memory_space<vmem>>, %arg7: memref<1x8x16x32xbf16, #tpu.memory_space<vmem>>) attributes {dimension_semantics = [#tpu.dimension_semantics<parallel>, #tpu.dimension_semantics<parallel>], iteration_bounds = array<i64: 2, 2>, scalar_prefetch = 0 : i64, scratch_operands = 0 : i64, tpu.core_type = #tpu.core_type<tc>, window_params = [{transform_indices = @transform_0, window_bounds = array<i64: 1, 8, 18, 3>}, {transform_indices = @transform_1, window_bounds = array<i64: 1, 1, 18, 3>}, {transform_indices = @transform_2, window_bounds = array<i64: 1, 1, 18, 3>}, {pipeline_mode = #tpu.pipeline_mode<synchronous>, transform_indices = @transform_3, window_bounds = array<i64: 3, 9, 32>}, {pipeline_mode = #tpu.pipeline_mode<synchronous>, transform_indices = @transform_4, window_bounds = array<i64: 1, 32>}, {transform_indices = @transform_5, window_bounds = array<i64: 1, 8, 16, 32>}]} {
    %c0 = arith.constant 0 : index
    %c0_0 = arith.constant 0 : index
    %c0_1 = arith.constant 0 : index
    %c0_2 = arith.constant 0 : index
    %0 = vector.load %arg2[%c0, %c0_0, %c0_1, %c0_2] : memref<1x8x18x3xbf16, #tpu.memory_space<vmem>>, vector<1x8x18x3xbf16>
    %c0_3 = arith.constant 0 : index
    %c0_4 = arith.constant 0 : index
    %c0_5 = arith.constant 0 : index
    %c0_6 = arith.constant 0 : index
    %1 = vector.load %arg3[%c0_3, %c0_4, %c0_5, %c0_6] : memref<1x1x18x3xbf16, #tpu.memory_space<vmem>>, vector<1x1x18x3xbf16>
    %c0_7 = arith.constant 0 : index
    %c0_8 = arith.constant 0 : index
    %c0_9 = arith.constant 0 : index
    %c0_10 = arith.constant 0 : index
    %2 = vector.load %arg4[%c0_7, %c0_8, %c0_9, %c0_10] : memref<1x1x18x3xbf16, #tpu.memory_space<vmem>>, vector<1x1x18x3xbf16>
    %3 = tpu.concatenate %0, %1, %2 in 1 : vector<1x8x18x3xbf16>, vector<1x1x18x3xbf16>, vector<1x1x18x3xbf16> -> vector<1x10x18x3xbf16>
    %c0_11 = arith.constant 0 : index
    %c0_12 = arith.constant 0 : index
    %c0_13 = arith.constant 0 : index
    %4 = vector.load %arg5[%c0_11, %c0_12, %c0_13] : memref<3x9x32xbf16, #tpu.memory_space<vmem>>, vector<3x9x32xbf16>
    %5 = vector.extract_strided_slice %3 {offsets = [0, 0, 0, 0], sizes = [1, 8, 18, 3], strides = [1, 1, 1, 1]} : vector<1x10x18x3xbf16> to vector<1x8x18x3xbf16>
    %6 = vector.extract_strided_slice %5 {offsets = [0, 0, 0, 0], sizes = [1, 8, 16, 3], strides = [1, 1, 1, 1]} : vector<1x8x18x3xbf16> to vector<1x8x16x3xbf16>
    %7 = vector.extract_strided_slice %5 {offsets = [0, 0, 1, 0], sizes = [1, 8, 16, 3], strides = [1, 1, 1, 1]} : vector<1x8x18x3xbf16> to vector<1x8x16x3xbf16>
    %8 = vector.extract_strided_slice %5 {offsets = [0, 0, 2, 0], sizes = [1, 8, 16, 3], strides = [1, 1, 1, 1]} : vector<1x8x18x3xbf16> to vector<1x8x16x3xbf16>
    %9 = tpu.concatenate %6, %7, %8 in 3 : vector<1x8x16x3xbf16>, vector<1x8x16x3xbf16>, vector<1x8x16x3xbf16> -> vector<1x8x16x9xbf16>
    %10 = vector.shape_cast %9 : vector<1x8x16x9xbf16> to vector<128x9xbf16>
    %11 = vector.extract_strided_slice %4 {offsets = [0, 0, 0], sizes = [1, 9, 32], strides = [1, 1, 1]} : vector<3x9x32xbf16> to vector<1x9x32xbf16>
    %12 = vector.shape_cast %11 : vector<1x9x32xbf16> to vector<9x32xbf16>
    %cst = arith.constant dense<0.000000e+00> : vector<128x32xf32>
    %13 = tpu.matmul %10, %12, %cst {dimension_numbers = #tpu.dot_dimension_numbers<[1], [0], [0], [1], [0, 0, 1, 1], [], []>} : vector<128x9xbf16>, vector<9x32xbf16>, vector<128x32xf32> -> vector<128x32xf32>
    %14 = vector.extract_strided_slice %3 {offsets = [0, 1, 0, 0], sizes = [1, 8, 18, 3], strides = [1, 1, 1, 1]} : vector<1x10x18x3xbf16> to vector<1x8x18x3xbf16>
    %15 = vector.extract_strided_slice %14 {offsets = [0, 0, 0, 0], sizes = [1, 8, 16, 3], strides = [1, 1, 1, 1]} : vector<1x8x18x3xbf16> to vector<1x8x16x3xbf16>
    %16 = vector.extract_strided_slice %14 {offsets = [0, 0, 1, 0], sizes = [1, 8, 16, 3], strides = [1, 1, 1, 1]} : vector<1x8x18x3xbf16> to vector<1x8x16x3xbf16>
    %17 = vector.extract_strided_slice %14 {offsets = [0, 0, 2, 0], sizes = [1, 8, 16, 3], strides = [1, 1, 1, 1]} : vector<1x8x18x3xbf16> to vector<1x8x16x3xbf16>
    %18 = tpu.concatenate %15, %16, %17 in 3 : vector<1x8x16x3xbf16>, vector<1x8x16x3xbf16>, vector<1x8x16x3xbf16> -> vector<1x8x16x9xbf16>
    %19 = vector.shape_cast %18 : vector<1x8x16x9xbf16> to vector<128x9xbf16>
    %20 = vector.extract_strided_slice %4 {offsets = [1, 0, 0], sizes = [1, 9, 32], strides = [1, 1, 1]} : vector<3x9x32xbf16> to vector<1x9x32xbf16>
    %21 = vector.shape_cast %20 : vector<1x9x32xbf16> to vector<9x32xbf16>
    %cst_14 = arith.constant dense<0.000000e+00> : vector<128x32xf32>
    %22 = tpu.matmul %19, %21, %cst_14 {dimension_numbers = #tpu.dot_dimension_numbers<[1], [0], [0], [1], [0, 0, 1, 1], [], []>} : vector<128x9xbf16>, vector<9x32xbf16>, vector<128x32xf32> -> vector<128x32xf32>
    %23 = arith.addf %13, %22 : vector<128x32xf32>
    %24 = vector.extract_strided_slice %3 {offsets = [0, 2, 0, 0], sizes = [1, 8, 18, 3], strides = [1, 1, 1, 1]} : vector<1x10x18x3xbf16> to vector<1x8x18x3xbf16>
    %25 = vector.extract_strided_slice %24 {offsets = [0, 0, 0, 0], sizes = [1, 8, 16, 3], strides = [1, 1, 1, 1]} : vector<1x8x18x3xbf16> to vector<1x8x16x3xbf16>
    %26 = vector.extract_strided_slice %24 {offsets = [0, 0, 1, 0], sizes = [1, 8, 16, 3], strides = [1, 1, 1, 1]} : vector<1x8x18x3xbf16> to vector<1x8x16x3xbf16>
    %27 = vector.extract_strided_slice %24 {offsets = [0, 0, 2, 0], sizes = [1, 8, 16, 3], strides = [1, 1, 1, 1]} : vector<1x8x18x3xbf16> to vector<1x8x16x3xbf16>
    %28 = tpu.concatenate %25, %26, %27 in 3 : vector<1x8x16x3xbf16>, vector<1x8x16x3xbf16>, vector<1x8x16x3xbf16> -> vector<1x8x16x9xbf16>
    %29 = vector.shape_cast %28 : vector<1x8x16x9xbf16> to vector<128x9xbf16>
    %30 = vector.extract_strided_slice %4 {offsets = [2, 0, 0], sizes = [1, 9, 32], strides = [1, 1, 1]} : vector<3x9x32xbf16> to vector<1x9x32xbf16>
    %31 = vector.shape_cast %30 : vector<1x9x32xbf16> to vector<9x32xbf16>
    %cst_15 = arith.constant dense<0.000000e+00> : vector<128x32xf32>
    %32 = tpu.matmul %29, %31, %cst_15 {dimension_numbers = #tpu.dot_dimension_numbers<[1], [0], [0], [1], [0, 0, 1, 1], [], []>} : vector<128x9xbf16>, vector<9x32xbf16>, vector<128x32xf32> -> vector<128x32xf32>
    %33 = arith.addf %23, %32 : vector<128x32xf32>
    %c0_16 = arith.constant 0 : index
    %c0_17 = arith.constant 0 : index
    %34 = vector.load %arg6[%c0_16, %c0_17] : memref<1x32xf32, #tpu.memory_space<vmem>>, vector<1x32xf32>
    %35 = vector.broadcast %34 : vector<1x32xf32> to vector<128x32xf32>
    %36 = arith.addf %33, %35 : vector<128x32xf32>
    %cst_18 = arith.constant 0.000000e+00 : f32
    %37 = vector.broadcast %cst_18 : f32 to vector<128x32xf32>
    %38 = arith.maximumf %36, %37 : vector<128x32xf32>
    %39 = vector.shape_cast %38 : vector<128x32xf32> to vector<1x8x16x32xf32>
    %40 = arith.truncf %39 : vector<1x8x16x32xf32> to vector<1x8x16x32xbf16>
    %c0_19 = arith.constant 0 : index
    %c0_20 = arith.constant 0 : index
    %c0_21 = arith.constant 0 : index
    %c0_22 = arith.constant 0 : index
    %41 = vector.load %arg7[%c0_19, %c0_20, %c0_21, %c0_22] : memref<1x8x16x32xbf16, #tpu.memory_space<vmem>>, vector<1x8x16x32xbf16>
    tpu.vector_store %arg7[%c0_19, %c0_20, %c0_21, %c0_22], %40 {strides = array<i32>} : memref<1x8x16x32xbf16, #tpu.memory_space<vmem>>, vector<1x8x16x32xbf16>,
    return
  }
  func.func @transform_0(%arg0: i32, %arg1: i32) -> (i32, i32, i32, i32) {
    %c0_i32 = arith.constant 0 : i32
    %c0_i32_0 = arith.constant 0 : i32
    %c0_i32_1 = arith.constant 0 : i32
    return %arg0, %arg1, %c0_i32, %c0_i32_0 : i32, i32, i32, i32
  }
  func.func @transform_1(%arg0: i32, %arg1: i32) -> (i32, i32, i32, i32) {
    %c1_i32 = arith.constant 1 : i32
    %0 = arith.addi %arg1, %c1_i32 : i32
    %c8_i32 = arith.constant 8 : i32
    %1 = arith.muli %0, %c8_i32 : i32
    %c0_i32 = arith.constant 0 : i32
    %c0_i32_0 = arith.constant 0 : i32
    %c0_i32_1 = arith.constant 0 : i32
    return %arg0, %1, %c0_i32, %c0_i32_0 : i32, i32, i32, i32
  }
  func.func @transform_2(%arg0: i32, %arg1: i32) -> (i32, i32, i32, i32) {
    %c1_i32 = arith.constant 1 : i32
    %0 = arith.addi %arg1, %c1_i32 : i32
    %c8_i32 = arith.constant 8 : i32
    %1 = arith.muli %0, %c8_i32 : i32
    %c1_i32_0 = arith.constant 1 : i32
    %2 = arith.addi %1, %c1_i32_0 : i32
    %c0_i32 = arith.constant 0 : i32
    %c0_i32_1 = arith.constant 0 : i32
    %c0_i32_2 = arith.constant 0 : i32
    return %arg0, %2, %c0_i32, %c0_i32_1 : i32, i32, i32, i32
  }
  func.func @transform_3(%arg0: i32, %arg1: i32) -> (i32, i32, i32) {
    %c0_i32 = arith.constant 0 : i32
    %c0_i32_0 = arith.constant 0 : i32
    %c0_i32_1 = arith.constant 0 : i32
    %c0_i32_2 = arith.constant 0 : i32
    return %c0_i32, %c0_i32_0, %c0_i32_1 : i32, i32, i32
  }
  func.func @transform_4(%arg0: i32, %arg1: i32) -> (i32, i32) {
    %c0_i32 = arith.constant 0 : i32
    %c0_i32_0 = arith.constant 0 : i32
    %c0_i32_1 = arith.constant 0 : i32
    return %c0_i32, %c0_i32_0 : i32, i32
  }
  func.func @transform_5(%arg0: i32, %arg1: i32) -> (i32, i32, i32, i32) {
    %c0_i32 = arith.constant 0 : i32
    %c0_i32_0 = arith.constant 0 : i32
    %c0_i32_1 = arith.constant 0 : i32
    return %arg0, %arg1, %c0_i32, %c0_i32_0 : i32, i32, i32, i32
  }
}

module attributes {stable_mosaic.version = 11 : i64} {
  func.func @_conv3x3_kernel(%arg0: i32, %arg1: i32, %arg2: memref<1x8x10x32xbf16, #tpu.memory_space<vmem>>, %arg3: memref<1x1x10x32xbf16, #tpu.memory_space<vmem>>, %arg4: memref<1x1x10x32xbf16, #tpu.memory_space<vmem>>, %arg5: memref<3x96x64xbf16, #tpu.memory_space<vmem>>, %arg6: memref<1x64xf32, #tpu.memory_space<vmem>>, %arg7: memref<1x8x8x64xbf16, #tpu.memory_space<vmem>>) attributes {dimension_semantics = [#tpu.dimension_semantics<parallel>, #tpu.dimension_semantics<parallel>], iteration_bounds = array<i64: 2, 1>, scalar_prefetch = 0 : i64, scratch_operands = 0 : i64, tpu.core_type = #tpu.core_type<tc>, window_params = [{transform_indices = @transform_0, window_bounds = array<i64: 1, 8, 10, 32>}, {transform_indices = @transform_1, window_bounds = array<i64: 1, 1, 10, 32>}, {transform_indices = @transform_2, window_bounds = array<i64: 1, 1, 10, 32>}, {pipeline_mode = #tpu.pipeline_mode<synchronous>, transform_indices = @transform_3, window_bounds = array<i64: 3, 96, 64>}, {pipeline_mode = #tpu.pipeline_mode<synchronous>, transform_indices = @transform_4, window_bounds = array<i64: 1, 64>}, {transform_indices = @transform_5, window_bounds = array<i64: 1, 8, 8, 64>}]} {
    %c0 = arith.constant 0 : index
    %c0_0 = arith.constant 0 : index
    %c0_1 = arith.constant 0 : index
    %c0_2 = arith.constant 0 : index
    %0 = vector.load %arg2[%c0, %c0_0, %c0_1, %c0_2] : memref<1x8x10x32xbf16, #tpu.memory_space<vmem>>, vector<1x8x10x32xbf16>
    %c0_3 = arith.constant 0 : index
    %c0_4 = arith.constant 0 : index
    %c0_5 = arith.constant 0 : index
    %c0_6 = arith.constant 0 : index
    %1 = vector.load %arg3[%c0_3, %c0_4, %c0_5, %c0_6] : memref<1x1x10x32xbf16, #tpu.memory_space<vmem>>, vector<1x1x10x32xbf16>
    %c0_7 = arith.constant 0 : index
    %c0_8 = arith.constant 0 : index
    %c0_9 = arith.constant 0 : index
    %c0_10 = arith.constant 0 : index
    %2 = vector.load %arg4[%c0_7, %c0_8, %c0_9, %c0_10] : memref<1x1x10x32xbf16, #tpu.memory_space<vmem>>, vector<1x1x10x32xbf16>
    %3 = tpu.concatenate %0, %1, %2 in 1 : vector<1x8x10x32xbf16>, vector<1x1x10x32xbf16>, vector<1x1x10x32xbf16> -> vector<1x10x10x32xbf16>
    %c0_11 = arith.constant 0 : index
    %c0_12 = arith.constant 0 : index
    %c0_13 = arith.constant 0 : index
    %4 = vector.load %arg5[%c0_11, %c0_12, %c0_13] : memref<3x96x64xbf16, #tpu.memory_space<vmem>>, vector<3x96x64xbf16>
    %5 = vector.extract_strided_slice %3 {offsets = [0, 0, 0, 0], sizes = [1, 8, 10, 32], strides = [1, 1, 1, 1]} : vector<1x10x10x32xbf16> to vector<1x8x10x32xbf16>
    %6 = vector.extract_strided_slice %5 {offsets = [0, 0, 0, 0], sizes = [1, 8, 8, 32], strides = [1, 1, 1, 1]} : vector<1x8x10x32xbf16> to vector<1x8x8x32xbf16>
    %7 = vector.extract_strided_slice %5 {offsets = [0, 0, 1, 0], sizes = [1, 8, 8, 32], strides = [1, 1, 1, 1]} : vector<1x8x10x32xbf16> to vector<1x8x8x32xbf16>
    %8 = vector.extract_strided_slice %5 {offsets = [0, 0, 2, 0], sizes = [1, 8, 8, 32], strides = [1, 1, 1, 1]} : vector<1x8x10x32xbf16> to vector<1x8x8x32xbf16>
    %9 = tpu.concatenate %6, %7, %8 in 3 : vector<1x8x8x32xbf16>, vector<1x8x8x32xbf16>, vector<1x8x8x32xbf16> -> vector<1x8x8x96xbf16>
    %10 = vector.shape_cast %9 : vector<1x8x8x96xbf16> to vector<64x96xbf16>
    %11 = vector.extract_strided_slice %4 {offsets = [0, 0, 0], sizes = [1, 96, 64], strides = [1, 1, 1]} : vector<3x96x64xbf16> to vector<1x96x64xbf16>
    %12 = vector.shape_cast %11 : vector<1x96x64xbf16> to vector<96x64xbf16>
    %cst = arith.constant dense<0.000000e+00> : vector<64x64xf32>
    %13 = tpu.matmul %10, %12, %cst {dimension_numbers = #tpu.dot_dimension_numbers<[1], [0], [0], [1], [0, 0, 1, 1], [], []>} : vector<64x96xbf16>, vector<96x64xbf16>, vector<64x64xf32> -> vector<64x64xf32>
    %14 = vector.extract_strided_slice %3 {offsets = [0, 1, 0, 0], sizes = [1, 8, 10, 32], strides = [1, 1, 1, 1]} : vector<1x10x10x32xbf16> to vector<1x8x10x32xbf16>
    %15 = vector.extract_strided_slice %14 {offsets = [0, 0, 0, 0], sizes = [1, 8, 8, 32], strides = [1, 1, 1, 1]} : vector<1x8x10x32xbf16> to vector<1x8x8x32xbf16>
    %16 = vector.extract_strided_slice %14 {offsets = [0, 0, 1, 0], sizes = [1, 8, 8, 32], strides = [1, 1, 1, 1]} : vector<1x8x10x32xbf16> to vector<1x8x8x32xbf16>
    %17 = vector.extract_strided_slice %14 {offsets = [0, 0, 2, 0], sizes = [1, 8, 8, 32], strides = [1, 1, 1, 1]} : vector<1x8x10x32xbf16> to vector<1x8x8x32xbf16>
    %18 = tpu.concatenate %15, %16, %17 in 3 : vector<1x8x8x32xbf16>, vector<1x8x8x32xbf16>, vector<1x8x8x32xbf16> -> vector<1x8x8x96xbf16>
    %19 = vector.shape_cast %18 : vector<1x8x8x96xbf16> to vector<64x96xbf16>
    %20 = vector.extract_strided_slice %4 {offsets = [1, 0, 0], sizes = [1, 96, 64], strides = [1, 1, 1]} : vector<3x96x64xbf16> to vector<1x96x64xbf16>
    %21 = vector.shape_cast %20 : vector<1x96x64xbf16> to vector<96x64xbf16>
    %cst_14 = arith.constant dense<0.000000e+00> : vector<64x64xf32>
    %22 = tpu.matmul %19, %21, %cst_14 {dimension_numbers = #tpu.dot_dimension_numbers<[1], [0], [0], [1], [0, 0, 1, 1], [], []>} : vector<64x96xbf16>, vector<96x64xbf16>, vector<64x64xf32> -> vector<64x64xf32>
    %23 = arith.addf %13, %22 : vector<64x64xf32>
    %24 = vector.extract_strided_slice %3 {offsets = [0, 2, 0, 0], sizes = [1, 8, 10, 32], strides = [1, 1, 1, 1]} : vector<1x10x10x32xbf16> to vector<1x8x10x32xbf16>
    %25 = vector.extract_strided_slice %24 {offsets = [0, 0, 0, 0], sizes = [1, 8, 8, 32], strides = [1, 1, 1, 1]} : vector<1x8x10x32xbf16> to vector<1x8x8x32xbf16>
    %26 = vector.extract_strided_slice %24 {offsets = [0, 0, 1, 0], sizes = [1, 8, 8, 32], strides = [1, 1, 1, 1]} : vector<1x8x10x32xbf16> to vector<1x8x8x32xbf16>
    %27 = vector.extract_strided_slice %24 {offsets = [0, 0, 2, 0], sizes = [1, 8, 8, 32], strides = [1, 1, 1, 1]} : vector<1x8x10x32xbf16> to vector<1x8x8x32xbf16>
    %28 = tpu.concatenate %25, %26, %27 in 3 : vector<1x8x8x32xbf16>, vector<1x8x8x32xbf16>, vector<1x8x8x32xbf16> -> vector<1x8x8x96xbf16>
    %29 = vector.shape_cast %28 : vector<1x8x8x96xbf16> to vector<64x96xbf16>
    %30 = vector.extract_strided_slice %4 {offsets = [2, 0, 0], sizes = [1, 96, 64], strides = [1, 1, 1]} : vector<3x96x64xbf16> to vector<1x96x64xbf16>
    %31 = vector.shape_cast %30 : vector<1x96x64xbf16> to vector<96x64xbf16>
    %cst_15 = arith.constant dense<0.000000e+00> : vector<64x64xf32>
    %32 = tpu.matmul %29, %31, %cst_15 {dimension_numbers = #tpu.dot_dimension_numbers<[1], [0], [0], [1], [0, 0, 1, 1], [], []>} : vector<64x96xbf16>, vector<96x64xbf16>, vector<64x64xf32> -> vector<64x64xf32>
    %33 = arith.addf %23, %32 : vector<64x64xf32>
    %c0_16 = arith.constant 0 : index
    %c0_17 = arith.constant 0 : index
    %34 = vector.load %arg6[%c0_16, %c0_17] : memref<1x64xf32, #tpu.memory_space<vmem>>, vector<1x64xf32>
    %35 = vector.broadcast %34 : vector<1x64xf32> to vector<64x64xf32>
    %36 = arith.addf %33, %35 : vector<64x64xf32>
    %cst_18 = arith.constant 0.000000e+00 : f32
    %37 = vector.broadcast %cst_18 : f32 to vector<64x64xf32>
    %38 = arith.maximumf %36, %37 : vector<64x64xf32>
    %39 = vector.shape_cast %38 : vector<64x64xf32> to vector<1x8x8x64xf32>
    %40 = arith.truncf %39 : vector<1x8x8x64xf32> to vector<1x8x8x64xbf16>
    %c0_19 = arith.constant 0 : index
    %c0_20 = arith.constant 0 : index
    %c0_21 = arith.constant 0 : index
    %c0_22 = arith.constant 0 : index
    %41 = vector.load %arg7[%c0_19, %c0_20, %c0_21, %c0_22] : memref<1x8x8x64xbf16, #tpu.memory_space<vmem>>, vector<1x8x8x64xbf16>
    tpu.vector_store %arg7[%c0_19, %c0_20, %c0_21, %c0_22], %40 {strides = array<i32>} : memref<1x8x8x64xbf16, #tpu.memory_space<vmem>>, vector<1x8x8x64xbf16>,
    return
  }
  func.func @transform_0(%arg0: i32, %arg1: i32) -> (i32, i32, i32, i32) {
    %c0_i32 = arith.constant 0 : i32
    %c0_i32_0 = arith.constant 0 : i32
    %c0_i32_1 = arith.constant 0 : i32
    return %arg0, %arg1, %c0_i32, %c0_i32_0 : i32, i32, i32, i32
  }
  func.func @transform_1(%arg0: i32, %arg1: i32) -> (i32, i32, i32, i32) {
    %c1_i32 = arith.constant 1 : i32
    %0 = arith.addi %arg1, %c1_i32 : i32
    %c8_i32 = arith.constant 8 : i32
    %1 = arith.muli %0, %c8_i32 : i32
    %c0_i32 = arith.constant 0 : i32
    %c0_i32_0 = arith.constant 0 : i32
    %c0_i32_1 = arith.constant 0 : i32
    return %arg0, %1, %c0_i32, %c0_i32_0 : i32, i32, i32, i32
  }
  func.func @transform_2(%arg0: i32, %arg1: i32) -> (i32, i32, i32, i32) {
    %c1_i32 = arith.constant 1 : i32
    %0 = arith.addi %arg1, %c1_i32 : i32
    %c8_i32 = arith.constant 8 : i32
    %1 = arith.muli %0, %c8_i32 : i32
    %c1_i32_0 = arith.constant 1 : i32
    %2 = arith.addi %1, %c1_i32_0 : i32
    %c0_i32 = arith.constant 0 : i32
    %c0_i32_1 = arith.constant 0 : i32
    %c0_i32_2 = arith.constant 0 : i32
    return %arg0, %2, %c0_i32, %c0_i32_1 : i32, i32, i32, i32
  }
  func.func @transform_3(%arg0: i32, %arg1: i32) -> (i32, i32, i32) {
    %c0_i32 = arith.constant 0 : i32
    %c0_i32_0 = arith.constant 0 : i32
    %c0_i32_1 = arith.constant 0 : i32
    %c0_i32_2 = arith.constant 0 : i32
    return %c0_i32, %c0_i32_0, %c0_i32_1 : i32, i32, i32
  }
  func.func @transform_4(%arg0: i32, %arg1: i32) -> (i32, i32) {
    %c0_i32 = arith.constant 0 : i32
    %c0_i32_0 = arith.constant 0 : i32
    %c0_i32_1 = arith.constant 0 : i32
    return %c0_i32, %c0_i32_0 : i32, i32
  }
  func.func @transform_5(%arg0: i32, %arg1: i32) -> (i32, i32, i32, i32) {
    %c0_i32 = arith.constant 0 : i32
    %c0_i32_0 = arith.constant 0 : i32
    %c0_i32_1 = arith.constant 0 : i32
    return %arg0, %arg1, %c0_i32, %c0_i32_0 : i32, i32, i32, i32
  }
}

module attributes {stable_mosaic.version = 11 : i64} {
  func.func @_conv3x3_kernel(%arg0: i32, %arg1: i32, %arg2: memref<1x4x6x64xbf16, #tpu.memory_space<vmem>>, %arg3: memref<1x1x6x64xbf16, #tpu.memory_space<vmem>>, %arg4: memref<1x1x6x64xbf16, #tpu.memory_space<vmem>>, %arg5: memref<3x192x512xbf16, #tpu.memory_space<vmem>>, %arg6: memref<1x512xf32, #tpu.memory_space<vmem>>, %arg7: memref<1x4x4x512xbf16, #tpu.memory_space<vmem>>) attributes {dimension_semantics = [#tpu.dimension_semantics<parallel>, #tpu.dimension_semantics<parallel>], iteration_bounds = array<i64: 2, 1>, scalar_prefetch = 0 : i64, scratch_operands = 0 : i64, tpu.core_type = #tpu.core_type<tc>, window_params = [{transform_indices = @transform_0, window_bounds = array<i64: 1, 4, 6, 64>}, {transform_indices = @transform_1, window_bounds = array<i64: 1, 1, 6, 64>}, {transform_indices = @transform_2, window_bounds = array<i64: 1, 1, 6, 64>}, {pipeline_mode = #tpu.pipeline_mode<synchronous>, transform_indices = @transform_3, window_bounds = array<i64: 3, 192, 512>}, {pipeline_mode = #tpu.pipeline_mode<synchronous>, transform_indices = @transform_4, window_bounds = array<i64: 1, 512>}, {transform_indices = @transform_5, window_bounds = array<i64: 1, 4, 4, 512>}]} {
    %c0 = arith.constant 0 : index
    %c0_0 = arith.constant 0 : index
    %c0_1 = arith.constant 0 : index
    %c0_2 = arith.constant 0 : index
    %0 = vector.load %arg2[%c0, %c0_0, %c0_1, %c0_2] : memref<1x4x6x64xbf16, #tpu.memory_space<vmem>>, vector<1x4x6x64xbf16>
    %c0_3 = arith.constant 0 : index
    %c0_4 = arith.constant 0 : index
    %c0_5 = arith.constant 0 : index
    %c0_6 = arith.constant 0 : index
    %1 = vector.load %arg3[%c0_3, %c0_4, %c0_5, %c0_6] : memref<1x1x6x64xbf16, #tpu.memory_space<vmem>>, vector<1x1x6x64xbf16>
    %c0_7 = arith.constant 0 : index
    %c0_8 = arith.constant 0 : index
    %c0_9 = arith.constant 0 : index
    %c0_10 = arith.constant 0 : index
    %2 = vector.load %arg4[%c0_7, %c0_8, %c0_9, %c0_10] : memref<1x1x6x64xbf16, #tpu.memory_space<vmem>>, vector<1x1x6x64xbf16>
    %3 = tpu.concatenate %0, %1, %2 in 1 : vector<1x4x6x64xbf16>, vector<1x1x6x64xbf16>, vector<1x1x6x64xbf16> -> vector<1x6x6x64xbf16>
    %c0_11 = arith.constant 0 : index
    %c0_12 = arith.constant 0 : index
    %c0_13 = arith.constant 0 : index
    %4 = vector.load %arg5[%c0_11, %c0_12, %c0_13] : memref<3x192x512xbf16, #tpu.memory_space<vmem>>, vector<3x192x512xbf16>
    %5 = vector.extract_strided_slice %3 {offsets = [0, 0, 0, 0], sizes = [1, 4, 6, 64], strides = [1, 1, 1, 1]} : vector<1x6x6x64xbf16> to vector<1x4x6x64xbf16>
    %6 = vector.extract_strided_slice %5 {offsets = [0, 0, 0, 0], sizes = [1, 4, 4, 64], strides = [1, 1, 1, 1]} : vector<1x4x6x64xbf16> to vector<1x4x4x64xbf16>
    %7 = vector.extract_strided_slice %5 {offsets = [0, 0, 1, 0], sizes = [1, 4, 4, 64], strides = [1, 1, 1, 1]} : vector<1x4x6x64xbf16> to vector<1x4x4x64xbf16>
    %8 = vector.extract_strided_slice %5 {offsets = [0, 0, 2, 0], sizes = [1, 4, 4, 64], strides = [1, 1, 1, 1]} : vector<1x4x6x64xbf16> to vector<1x4x4x64xbf16>
    %9 = tpu.concatenate %6, %7, %8 in 3 : vector<1x4x4x64xbf16>, vector<1x4x4x64xbf16>, vector<1x4x4x64xbf16> -> vector<1x4x4x192xbf16>
    %10 = vector.shape_cast %9 : vector<1x4x4x192xbf16> to vector<16x192xbf16>
    %11 = vector.extract_strided_slice %4 {offsets = [0, 0, 0], sizes = [1, 192, 512], strides = [1, 1, 1]} : vector<3x192x512xbf16> to vector<1x192x512xbf16>
    %12 = vector.shape_cast %11 : vector<1x192x512xbf16> to vector<192x512xbf16>
    %cst = arith.constant dense<0.000000e+00> : vector<16x512xf32>
    %13 = tpu.matmul %10, %12, %cst {dimension_numbers = #tpu.dot_dimension_numbers<[1], [0], [0], [1], [0, 0, 1, 1], [], []>} : vector<16x192xbf16>, vector<192x512xbf16>, vector<16x512xf32> -> vector<16x512xf32>
    %14 = vector.extract_strided_slice %3 {offsets = [0, 1, 0, 0], sizes = [1, 4, 6, 64], strides = [1, 1, 1, 1]} : vector<1x6x6x64xbf16> to vector<1x4x6x64xbf16>
    %15 = vector.extract_strided_slice %14 {offsets = [0, 0, 0, 0], sizes = [1, 4, 4, 64], strides = [1, 1, 1, 1]} : vector<1x4x6x64xbf16> to vector<1x4x4x64xbf16>
    %16 = vector.extract_strided_slice %14 {offsets = [0, 0, 1, 0], sizes = [1, 4, 4, 64], strides = [1, 1, 1, 1]} : vector<1x4x6x64xbf16> to vector<1x4x4x64xbf16>
    %17 = vector.extract_strided_slice %14 {offsets = [0, 0, 2, 0], sizes = [1, 4, 4, 64], strides = [1, 1, 1, 1]} : vector<1x4x6x64xbf16> to vector<1x4x4x64xbf16>
    %18 = tpu.concatenate %15, %16, %17 in 3 : vector<1x4x4x64xbf16>, vector<1x4x4x64xbf16>, vector<1x4x4x64xbf16> -> vector<1x4x4x192xbf16>
    %19 = vector.shape_cast %18 : vector<1x4x4x192xbf16> to vector<16x192xbf16>
    %20 = vector.extract_strided_slice %4 {offsets = [1, 0, 0], sizes = [1, 192, 512], strides = [1, 1, 1]} : vector<3x192x512xbf16> to vector<1x192x512xbf16>
    %21 = vector.shape_cast %20 : vector<1x192x512xbf16> to vector<192x512xbf16>
    %cst_14 = arith.constant dense<0.000000e+00> : vector<16x512xf32>
    %22 = tpu.matmul %19, %21, %cst_14 {dimension_numbers = #tpu.dot_dimension_numbers<[1], [0], [0], [1], [0, 0, 1, 1], [], []>} : vector<16x192xbf16>, vector<192x512xbf16>, vector<16x512xf32> -> vector<16x512xf32>
    %23 = arith.addf %13, %22 : vector<16x512xf32>
    %24 = vector.extract_strided_slice %3 {offsets = [0, 2, 0, 0], sizes = [1, 4, 6, 64], strides = [1, 1, 1, 1]} : vector<1x6x6x64xbf16> to vector<1x4x6x64xbf16>
    %25 = vector.extract_strided_slice %24 {offsets = [0, 0, 0, 0], sizes = [1, 4, 4, 64], strides = [1, 1, 1, 1]} : vector<1x4x6x64xbf16> to vector<1x4x4x64xbf16>
    %26 = vector.extract_strided_slice %24 {offsets = [0, 0, 1, 0], sizes = [1, 4, 4, 64], strides = [1, 1, 1, 1]} : vector<1x4x6x64xbf16> to vector<1x4x4x64xbf16>
    %27 = vector.extract_strided_slice %24 {offsets = [0, 0, 2, 0], sizes = [1, 4, 4, 64], strides = [1, 1, 1, 1]} : vector<1x4x6x64xbf16> to vector<1x4x4x64xbf16>
    %28 = tpu.concatenate %25, %26, %27 in 3 : vector<1x4x4x64xbf16>, vector<1x4x4x64xbf16>, vector<1x4x4x64xbf16> -> vector<1x4x4x192xbf16>
    %29 = vector.shape_cast %28 : vector<1x4x4x192xbf16> to vector<16x192xbf16>
    %30 = vector.extract_strided_slice %4 {offsets = [2, 0, 0], sizes = [1, 192, 512], strides = [1, 1, 1]} : vector<3x192x512xbf16> to vector<1x192x512xbf16>
    %31 = vector.shape_cast %30 : vector<1x192x512xbf16> to vector<192x512xbf16>
    %cst_15 = arith.constant dense<0.000000e+00> : vector<16x512xf32>
    %32 = tpu.matmul %29, %31, %cst_15 {dimension_numbers = #tpu.dot_dimension_numbers<[1], [0], [0], [1], [0, 0, 1, 1], [], []>} : vector<16x192xbf16>, vector<192x512xbf16>, vector<16x512xf32> -> vector<16x512xf32>
    %33 = arith.addf %23, %32 : vector<16x512xf32>
    %c0_16 = arith.constant 0 : index
    %c0_17 = arith.constant 0 : index
    %34 = vector.load %arg6[%c0_16, %c0_17] : memref<1x512xf32, #tpu.memory_space<vmem>>, vector<1x512xf32>
    %35 = vector.broadcast %34 : vector<1x512xf32> to vector<16x512xf32>
    %36 = arith.addf %33, %35 : vector<16x512xf32>
    %cst_18 = arith.constant 0.000000e+00 : f32
    %37 = vector.broadcast %cst_18 : f32 to vector<16x512xf32>
    %38 = arith.maximumf %36, %37 : vector<16x512xf32>
    %39 = vector.shape_cast %38 : vector<16x512xf32> to vector<1x4x4x512xf32>
    %40 = arith.truncf %39 : vector<1x4x4x512xf32> to vector<1x4x4x512xbf16>
    %c0_19 = arith.constant 0 : index
    %c0_20 = arith.constant 0 : index
    %c0_21 = arith.constant 0 : index
    %c0_22 = arith.constant 0 : index
    %41 = vector.load %arg7[%c0_19, %c0_20, %c0_21, %c0_22] : memref<1x4x4x512xbf16, #tpu.memory_space<vmem>>, vector<1x4x4x512xbf16>
    tpu.vector_store %arg7[%c0_19, %c0_20, %c0_21, %c0_22], %40 {strides = array<i32>} : memref<1x4x4x512xbf16, #tpu.memory_space<vmem>>, vector<1x4x4x512xbf16>,
    return
  }
  func.func @transform_0(%arg0: i32, %arg1: i32) -> (i32, i32, i32, i32) {
    %c0_i32 = arith.constant 0 : i32
    %c0_i32_0 = arith.constant 0 : i32
    %c0_i32_1 = arith.constant 0 : i32
    return %arg0, %arg1, %c0_i32, %c0_i32_0 : i32, i32, i32, i32
  }
  func.func @transform_1(%arg0: i32, %arg1: i32) -> (i32, i32, i32, i32) {
    %c1_i32 = arith.constant 1 : i32
    %0 = arith.addi %arg1, %c1_i32 : i32
    %c4_i32 = arith.constant 4 : i32
    %1 = arith.muli %0, %c4_i32 : i32
    %c0_i32 = arith.constant 0 : i32
    %c0_i32_0 = arith.constant 0 : i32
    %c0_i32_1 = arith.constant 0 : i32
    return %arg0, %1, %c0_i32, %c0_i32_0 : i32, i32, i32, i32
  }
  func.func @transform_2(%arg0: i32, %arg1: i32) -> (i32, i32, i32, i32) {
    %c1_i32 = arith.constant 1 : i32
    %0 = arith.addi %arg1, %c1_i32 : i32
    %c4_i32 = arith.constant 4 : i32
    %1 = arith.muli %0, %c4_i32 : i32
    %c1_i32_0 = arith.constant 1 : i32
    %2 = arith.addi %1, %c1_i32_0 : i32
    %c0_i32 = arith.constant 0 : i32
    %c0_i32_1 = arith.constant 0 : i32
    %c0_i32_2 = arith.constant 0 : i32
    return %arg0, %2, %c0_i32, %c0_i32_1 : i32, i32, i32, i32
  }
  func.func @transform_3(%arg0: i32, %arg1: i32) -> (i32, i32, i32) {
    %c0_i32 = arith.constant 0 : i32
    %c0_i32_0 = arith.constant 0 : i32
    %c0_i32_1 = arith.constant 0 : i32
    %c0_i32_2 = arith.constant 0 : i32
    return %c0_i32, %c0_i32_0, %c0_i32_1 : i32, i32, i32
  }
  func.func @transform_4(%arg0: i32, %arg1: i32) -> (i32, i32) {
    %c0_i32 = arith.constant 0 : i32
    %c0_i32_0 = arith.constant 0 : i32
    %c0_i32_1 = arith.constant 0 : i32
    return %c0_i32, %c0_i32_0 : i32, i32
  }
  func.func @transform_5(%arg0: i32, %arg1: i32) -> (i32, i32, i32, i32) {
    %c0_i32 = arith.constant 0 : i32
    %c0_i32_0 = arith.constant 0 : i32
    %c0_i32_1 = arith.constant 0 : i32
    return %arg0, %arg1, %c0_i32, %c0_i32_0 : i32, i32, i32, i32
  }
}

module attributes {stable_mosaic.version = 11 : i64} {
  func.func @_conv3x3_kernel(%arg0: i32, %arg1: i32, %arg2: memref<1x2x6x512xbf16, #tpu.memory_space<vmem>>, %arg3: memref<1x1x6x512xbf16, #tpu.memory_space<vmem>>, %arg4: memref<1x1x6x512xbf16, #tpu.memory_space<vmem>>, %arg5: memref<3x1536x64xbf16, #tpu.memory_space<vmem>>, %arg6: memref<1x64xf32, #tpu.memory_space<vmem>>, %arg7: memref<1x4x4x64xbf16, #tpu.memory_space<vmem>>) attributes {dimension_semantics = [#tpu.dimension_semantics<parallel>, #tpu.dimension_semantics<parallel>], iteration_bounds = array<i64: 2, 1>, scalar_prefetch = 0 : i64, scratch_operands = 0 : i64, tpu.core_type = #tpu.core_type<tc>, window_params = [{transform_indices = @transform_0, window_bounds = array<i64: 1, 2, 6, 512>}, {transform_indices = @transform_1, window_bounds = array<i64: 1, 1, 6, 512>}, {transform_indices = @transform_2, window_bounds = array<i64: 1, 1, 6, 512>}, {pipeline_mode = #tpu.pipeline_mode<synchronous>, transform_indices = @transform_3, window_bounds = array<i64: 3, 1536, 64>}, {pipeline_mode = #tpu.pipeline_mode<synchronous>, transform_indices = @transform_4, window_bounds = array<i64: 1, 64>}, {transform_indices = @transform_5, window_bounds = array<i64: 1, 4, 4, 64>}]} {
    %c0 = arith.constant 0 : index
    %c0_0 = arith.constant 0 : index
    %c0_1 = arith.constant 0 : index
    %c0_2 = arith.constant 0 : index
    %0 = vector.load %arg2[%c0, %c0_0, %c0_1, %c0_2] : memref<1x2x6x512xbf16, #tpu.memory_space<vmem>>, vector<1x2x6x512xbf16>
    %c0_3 = arith.constant 0 : index
    %c0_4 = arith.constant 0 : index
    %c0_5 = arith.constant 0 : index
    %c0_6 = arith.constant 0 : index
    %1 = vector.load %arg3[%c0_3, %c0_4, %c0_5, %c0_6] : memref<1x1x6x512xbf16, #tpu.memory_space<vmem>>, vector<1x1x6x512xbf16>
    %c0_7 = arith.constant 0 : index
    %c0_8 = arith.constant 0 : index
    %c0_9 = arith.constant 0 : index
    %c0_10 = arith.constant 0 : index
    %2 = vector.load %arg4[%c0_7, %c0_8, %c0_9, %c0_10] : memref<1x1x6x512xbf16, #tpu.memory_space<vmem>>, vector<1x1x6x512xbf16>
    %3 = tpu.concatenate %0, %1, %2 in 1 : vector<1x2x6x512xbf16>, vector<1x1x6x512xbf16>, vector<1x1x6x512xbf16> -> vector<1x4x6x512xbf16>
    %4 = vector.extract_strided_slice %3 {offsets = [0, 0, 0, 0], sizes = [1, 1, 6, 512], strides = [1, 1, 1, 1]} : vector<1x4x6x512xbf16> to vector<1x1x6x512xbf16>
    %5 = vector.extract_strided_slice %3 {offsets = [0, 1, 0, 0], sizes = [1, 1, 6, 512], strides = [1, 1, 1, 1]} : vector<1x4x6x512xbf16> to vector<1x1x6x512xbf16>
    %6 = vector.extract_strided_slice %3 {offsets = [0, 1, 0, 0], sizes = [1, 1, 6, 512], strides = [1, 1, 1, 1]} : vector<1x4x6x512xbf16> to vector<1x1x6x512xbf16>
    %7 = vector.extract_strided_slice %3 {offsets = [0, 2, 0, 0], sizes = [1, 1, 6, 512], strides = [1, 1, 1, 1]} : vector<1x4x6x512xbf16> to vector<1x1x6x512xbf16>
    %8 = vector.extract_strided_slice %3 {offsets = [0, 2, 0, 0], sizes = [1, 1, 6, 512], strides = [1, 1, 1, 1]} : vector<1x4x6x512xbf16> to vector<1x1x6x512xbf16>
    %9 = vector.extract_strided_slice %3 {offsets = [0, 3, 0, 0], sizes = [1, 1, 6, 512], strides = [1, 1, 1, 1]} : vector<1x4x6x512xbf16> to vector<1x1x6x512xbf16>
    %10 = tpu.concatenate %4, %5, %6, %7, %8, %9 in 1 : vector<1x1x6x512xbf16>, vector<1x1x6x512xbf16>, vector<1x1x6x512xbf16>, vector<1x1x6x512xbf16>, vector<1x1x6x512xbf16>, vector<1x1x6x512xbf16> -> vector<1x6x6x512xbf16>
    %c0_11 = arith.constant 0 : index
    %c0_12 = arith.constant 0 : index
    %c0_13 = arith.constant 0 : index
    %11 = vector.load %arg5[%c0_11, %c0_12, %c0_13] : memref<3x1536x64xbf16, #tpu.memory_space<vmem>>, vector<3x1536x64xbf16>
    %12 = vector.extract_strided_slice %10 {offsets = [0, 0, 0, 0], sizes = [1, 4, 6, 512], strides = [1, 1, 1, 1]} : vector<1x6x6x512xbf16> to vector<1x4x6x512xbf16>
    %13 = vector.extract_strided_slice %12 {offsets = [0, 0, 0, 0], sizes = [1, 4, 4, 512], strides = [1, 1, 1, 1]} : vector<1x4x6x512xbf16> to vector<1x4x4x512xbf16>
    %14 = vector.extract_strided_slice %12 {offsets = [0, 0, 1, 0], sizes = [1, 4, 4, 512], strides = [1, 1, 1, 1]} : vector<1x4x6x512xbf16> to vector<1x4x4x512xbf16>
    %15 = vector.extract_strided_slice %12 {offsets = [0, 0, 2, 0], sizes = [1, 4, 4, 512], strides = [1, 1, 1, 1]} : vector<1x4x6x512xbf16> to vector<1x4x4x512xbf16>
    %16 = tpu.concatenate %13, %14, %15 in 3 : vector<1x4x4x512xbf16>, vector<1x4x4x512xbf16>, vector<1x4x4x512xbf16> -> vector<1x4x4x1536xbf16>
    %17 = vector.shape_cast %16 : vector<1x4x4x1536xbf16> to vector<16x1536xbf16>
    %18 = vector.extract_strided_slice %11 {offsets = [0, 0, 0], sizes = [1, 1536, 64], strides = [1, 1, 1]} : vector<3x1536x64xbf16> to vector<1x1536x64xbf16>
    %19 = vector.shape_cast %18 : vector<1x1536x64xbf16> to vector<1536x64xbf16>
    %cst = arith.constant dense<0.000000e+00> : vector<16x64xf32>
    %20 = tpu.matmul %17, %19, %cst {dimension_numbers = #tpu.dot_dimension_numbers<[1], [0], [0], [1], [0, 0, 1, 1], [], []>} : vector<16x1536xbf16>, vector<1536x64xbf16>, vector<16x64xf32> -> vector<16x64xf32>
    %21 = vector.extract_strided_slice %10 {offsets = [0, 1, 0, 0], sizes = [1, 4, 6, 512], strides = [1, 1, 1, 1]} : vector<1x6x6x512xbf16> to vector<1x4x6x512xbf16>
    %22 = vector.extract_strided_slice %21 {offsets = [0, 0, 0, 0], sizes = [1, 4, 4, 512], strides = [1, 1, 1, 1]} : vector<1x4x6x512xbf16> to vector<1x4x4x512xbf16>
    %23 = vector.extract_strided_slice %21 {offsets = [0, 0, 1, 0], sizes = [1, 4, 4, 512], strides = [1, 1, 1, 1]} : vector<1x4x6x512xbf16> to vector<1x4x4x512xbf16>
    %24 = vector.extract_strided_slice %21 {offsets = [0, 0, 2, 0], sizes = [1, 4, 4, 512], strides = [1, 1, 1, 1]} : vector<1x4x6x512xbf16> to vector<1x4x4x512xbf16>
    %25 = tpu.concatenate %22, %23, %24 in 3 : vector<1x4x4x512xbf16>, vector<1x4x4x512xbf16>, vector<1x4x4x512xbf16> -> vector<1x4x4x1536xbf16>
    %26 = vector.shape_cast %25 : vector<1x4x4x1536xbf16> to vector<16x1536xbf16>
    %27 = vector.extract_strided_slice %11 {offsets = [1, 0, 0], sizes = [1, 1536, 64], strides = [1, 1, 1]} : vector<3x1536x64xbf16> to vector<1x1536x64xbf16>
    %28 = vector.shape_cast %27 : vector<1x1536x64xbf16> to vector<1536x64xbf16>
    %cst_14 = arith.constant dense<0.000000e+00> : vector<16x64xf32>
    %29 = tpu.matmul %26, %28, %cst_14 {dimension_numbers = #tpu.dot_dimension_numbers<[1], [0], [0], [1], [0, 0, 1, 1], [], []>} : vector<16x1536xbf16>, vector<1536x64xbf16>, vector<16x64xf32> -> vector<16x64xf32>
    %30 = arith.addf %20, %29 : vector<16x64xf32>
    %31 = vector.extract_strided_slice %10 {offsets = [0, 2, 0, 0], sizes = [1, 4, 6, 512], strides = [1, 1, 1, 1]} : vector<1x6x6x512xbf16> to vector<1x4x6x512xbf16>
    %32 = vector.extract_strided_slice %31 {offsets = [0, 0, 0, 0], sizes = [1, 4, 4, 512], strides = [1, 1, 1, 1]} : vector<1x4x6x512xbf16> to vector<1x4x4x512xbf16>
    %33 = vector.extract_strided_slice %31 {offsets = [0, 0, 1, 0], sizes = [1, 4, 4, 512], strides = [1, 1, 1, 1]} : vector<1x4x6x512xbf16> to vector<1x4x4x512xbf16>
    %34 = vector.extract_strided_slice %31 {offsets = [0, 0, 2, 0], sizes = [1, 4, 4, 512], strides = [1, 1, 1, 1]} : vector<1x4x6x512xbf16> to vector<1x4x4x512xbf16>
    %35 = tpu.concatenate %32, %33, %34 in 3 : vector<1x4x4x512xbf16>, vector<1x4x4x512xbf16>, vector<1x4x4x512xbf16> -> vector<1x4x4x1536xbf16>
    %36 = vector.shape_cast %35 : vector<1x4x4x1536xbf16> to vector<16x1536xbf16>
    %37 = vector.extract_strided_slice %11 {offsets = [2, 0, 0], sizes = [1, 1536, 64], strides = [1, 1, 1]} : vector<3x1536x64xbf16> to vector<1x1536x64xbf16>
    %38 = vector.shape_cast %37 : vector<1x1536x64xbf16> to vector<1536x64xbf16>
    %cst_15 = arith.constant dense<0.000000e+00> : vector<16x64xf32>
    %39 = tpu.matmul %36, %38, %cst_15 {dimension_numbers = #tpu.dot_dimension_numbers<[1], [0], [0], [1], [0, 0, 1, 1], [], []>} : vector<16x1536xbf16>, vector<1536x64xbf16>, vector<16x64xf32> -> vector<16x64xf32>
    %40 = arith.addf %30, %39 : vector<16x64xf32>
    %c0_16 = arith.constant 0 : index
    %c0_17 = arith.constant 0 : index
    %41 = vector.load %arg6[%c0_16, %c0_17] : memref<1x64xf32, #tpu.memory_space<vmem>>, vector<1x64xf32>
    %42 = vector.broadcast %41 : vector<1x64xf32> to vector<16x64xf32>
    %43 = arith.addf %40, %42 : vector<16x64xf32>
    %cst_18 = arith.constant 0.000000e+00 : f32
    %44 = vector.broadcast %cst_18 : f32 to vector<16x64xf32>
    %45 = arith.maximumf %43, %44 : vector<16x64xf32>
    %46 = vector.shape_cast %45 : vector<16x64xf32> to vector<1x4x4x64xf32>
    %47 = arith.truncf %46 : vector<1x4x4x64xf32> to vector<1x4x4x64xbf16>
    %c0_19 = arith.constant 0 : index
    %c0_20 = arith.constant 0 : index
    %c0_21 = arith.constant 0 : index
    %c0_22 = arith.constant 0 : index
    %48 = vector.load %arg7[%c0_19, %c0_20, %c0_21, %c0_22] : memref<1x4x4x64xbf16, #tpu.memory_space<vmem>>, vector<1x4x4x64xbf16>
    tpu.vector_store %arg7[%c0_19, %c0_20, %c0_21, %c0_22], %47 {strides = array<i32>} : memref<1x4x4x64xbf16, #tpu.memory_space<vmem>>, vector<1x4x4x64xbf16>,
    return
  }
  func.func @transform_0(%arg0: i32, %arg1: i32) -> (i32, i32, i32, i32) {
    %c0_i32 = arith.constant 0 : i32
    %c0_i32_0 = arith.constant 0 : i32
    %c0_i32_1 = arith.constant 0 : i32
    return %arg0, %arg1, %c0_i32, %c0_i32_0 : i32, i32, i32, i32
  }
  func.func @transform_1(%arg0: i32, %arg1: i32) -> (i32, i32, i32, i32) {
    %c1_i32 = arith.constant 1 : i32
    %0 = arith.addi %arg1, %c1_i32 : i32
    %c2_i32 = arith.constant 2 : i32
    %1 = arith.muli %0, %c2_i32 : i32
    %c0_i32 = arith.constant 0 : i32
    %c0_i32_0 = arith.constant 0 : i32
    %c0_i32_1 = arith.constant 0 : i32
    return %arg0, %1, %c0_i32, %c0_i32_0 : i32, i32, i32, i32
  }
  func.func @transform_2(%arg0: i32, %arg1: i32) -> (i32, i32, i32, i32) {
    %c1_i32 = arith.constant 1 : i32
    %0 = arith.addi %arg1, %c1_i32 : i32
    %c2_i32 = arith.constant 2 : i32
    %1 = arith.muli %0, %c2_i32 : i32
    %c1_i32_0 = arith.constant 1 : i32
    %2 = arith.addi %1, %c1_i32_0 : i32
    %c0_i32 = arith.constant 0 : i32
    %c0_i32_1 = arith.constant 0 : i32
    %c0_i32_2 = arith.constant 0 : i32
    return %arg0, %2, %c0_i32, %c0_i32_1 : i32, i32, i32, i32
  }
  func.func @transform_3(%arg0: i32, %arg1: i32) -> (i32, i32, i32) {
    %c0_i32 = arith.constant 0 : i32
    %c0_i32_0 = arith.constant 0 : i32
    %c0_i32_1 = arith.constant 0 : i32
    %c0_i32_2 = arith.constant 0 : i32
    return %c0_i32, %c0_i32_0, %c0_i32_1 : i32, i32, i32
  }
  func.func @transform_4(%arg0: i32, %arg1: i32) -> (i32, i32) {
    %c0_i32 = arith.constant 0 : i32
    %c0_i32_0 = arith.constant 0 : i32
    %c0_i32_1 = arith.constant 0 : i32
    return %c0_i32, %c0_i32_0 : i32, i32
  }
  func.func @transform_5(%arg0: i32, %arg1: i32) -> (i32, i32, i32, i32) {
    %c0_i32 = arith.constant 0 : i32
    %c0_i32_0 = arith.constant 0 : i32
    %c0_i32_1 = arith.constant 0 : i32
    return %arg0, %arg1, %c0_i32, %c0_i32_0 : i32, i32, i32, i32
  }
}

module attributes {stable_mosaic.version = 11 : i64} {
  func.func @_conv3x3_kernel(%arg0: i32, %arg1: i32, %arg2: memref<1x4x6x64xbf16, #tpu.memory_space<vmem>>, %arg3: memref<1x1x6x64xbf16, #tpu.memory_space<vmem>>, %arg4: memref<1x1x6x64xbf16, #tpu.memory_space<vmem>>, %arg5: memref<1x4x6x64xbf16, #tpu.memory_space<vmem>>, %arg6: memref<1x1x6x64xbf16, #tpu.memory_space<vmem>>, %arg7: memref<1x1x6x64xbf16, #tpu.memory_space<vmem>>, %arg8: memref<3x192x64xbf16, #tpu.memory_space<vmem>>, %arg9: memref<3x192x64xbf16, #tpu.memory_space<vmem>>, %arg10: memref<1x64xf32, #tpu.memory_space<vmem>>, %arg11: memref<1x4x4x64xbf16, #tpu.memory_space<vmem>>) attributes {dimension_semantics = [#tpu.dimension_semantics<parallel>, #tpu.dimension_semantics<parallel>], iteration_bounds = array<i64: 2, 1>, scalar_prefetch = 0 : i64, scratch_operands = 0 : i64, tpu.core_type = #tpu.core_type<tc>, window_params = [{transform_indices = @transform_0, window_bounds = array<i64: 1, 4, 6, 64>}, {transform_indices = @transform_1, window_bounds = array<i64: 1, 1, 6, 64>}, {transform_indices = @transform_2, window_bounds = array<i64: 1, 1, 6, 64>}, {transform_indices = @transform_3, window_bounds = array<i64: 1, 4, 6, 64>}, {transform_indices = @transform_4, window_bounds = array<i64: 1, 1, 6, 64>}, {transform_indices = @transform_5, window_bounds = array<i64: 1, 1, 6, 64>}, {pipeline_mode = #tpu.pipeline_mode<synchronous>, transform_indices = @transform_6, window_bounds = array<i64: 3, 192, 64>}, {pipeline_mode = #tpu.pipeline_mode<synchronous>, transform_indices = @transform_7, window_bounds = array<i64: 3, 192, 64>}, {pipeline_mode = #tpu.pipeline_mode<synchronous>, transform_indices = @transform_8, window_bounds = array<i64: 1, 64>}, {transform_indices = @transform_9, window_bounds = array<i64: 1, 4, 4, 64>}]} {
    %c0 = arith.constant 0 : index
    %c0_0 = arith.constant 0 : index
    %c0_1 = arith.constant 0 : index
    %c0_2 = arith.constant 0 : index
    %0 = vector.load %arg2[%c0, %c0_0, %c0_1, %c0_2] : memref<1x4x6x64xbf16, #tpu.memory_space<vmem>>, vector<1x4x6x64xbf16>
    %c0_3 = arith.constant 0 : index
    %c0_4 = arith.constant 0 : index
    %c0_5 = arith.constant 0 : index
    %c0_6 = arith.constant 0 : index
    %1 = vector.load %arg3[%c0_3, %c0_4, %c0_5, %c0_6] : memref<1x1x6x64xbf16, #tpu.memory_space<vmem>>, vector<1x1x6x64xbf16>
    %c0_7 = arith.constant 0 : index
    %c0_8 = arith.constant 0 : index
    %c0_9 = arith.constant 0 : index
    %c0_10 = arith.constant 0 : index
    %2 = vector.load %arg4[%c0_7, %c0_8, %c0_9, %c0_10] : memref<1x1x6x64xbf16, #tpu.memory_space<vmem>>, vector<1x1x6x64xbf16>
    %3 = tpu.concatenate %0, %1, %2 in 1 : vector<1x4x6x64xbf16>, vector<1x1x6x64xbf16>, vector<1x1x6x64xbf16> -> vector<1x6x6x64xbf16>
    %c0_11 = arith.constant 0 : index
    %c0_12 = arith.constant 0 : index
    %c0_13 = arith.constant 0 : index
    %4 = vector.load %arg8[%c0_11, %c0_12, %c0_13] : memref<3x192x64xbf16, #tpu.memory_space<vmem>>, vector<3x192x64xbf16>
    %5 = vector.extract_strided_slice %3 {offsets = [0, 0, 0, 0], sizes = [1, 4, 6, 64], strides = [1, 1, 1, 1]} : vector<1x6x6x64xbf16> to vector<1x4x6x64xbf16>
    %6 = vector.extract_strided_slice %5 {offsets = [0, 0, 0, 0], sizes = [1, 4, 4, 64], strides = [1, 1, 1, 1]} : vector<1x4x6x64xbf16> to vector<1x4x4x64xbf16>
    %7 = vector.extract_strided_slice %5 {offsets = [0, 0, 1, 0], sizes = [1, 4, 4, 64], strides = [1, 1, 1, 1]} : vector<1x4x6x64xbf16> to vector<1x4x4x64xbf16>
    %8 = vector.extract_strided_slice %5 {offsets = [0, 0, 2, 0], sizes = [1, 4, 4, 64], strides = [1, 1, 1, 1]} : vector<1x4x6x64xbf16> to vector<1x4x4x64xbf16>
    %9 = tpu.concatenate %6, %7, %8 in 3 : vector<1x4x4x64xbf16>, vector<1x4x4x64xbf16>, vector<1x4x4x64xbf16> -> vector<1x4x4x192xbf16>
    %10 = vector.shape_cast %9 : vector<1x4x4x192xbf16> to vector<16x192xbf16>
    %11 = vector.extract_strided_slice %4 {offsets = [0, 0, 0], sizes = [1, 192, 64], strides = [1, 1, 1]} : vector<3x192x64xbf16> to vector<1x192x64xbf16>
    %12 = vector.shape_cast %11 : vector<1x192x64xbf16> to vector<192x64xbf16>
    %cst = arith.constant dense<0.000000e+00> : vector<16x64xf32>
    %13 = tpu.matmul %10, %12, %cst {dimension_numbers = #tpu.dot_dimension_numbers<[1], [0], [0], [1], [0, 0, 1, 1], [], []>} : vector<16x192xbf16>, vector<192x64xbf16>, vector<16x64xf32> -> vector<16x64xf32>
    %14 = vector.extract_strided_slice %3 {offsets = [0, 1, 0, 0], sizes = [1, 4, 6, 64], strides = [1, 1, 1, 1]} : vector<1x6x6x64xbf16> to vector<1x4x6x64xbf16>
    %15 = vector.extract_strided_slice %14 {offsets = [0, 0, 0, 0], sizes = [1, 4, 4, 64], strides = [1, 1, 1, 1]} : vector<1x4x6x64xbf16> to vector<1x4x4x64xbf16>
    %16 = vector.extract_strided_slice %14 {offsets = [0, 0, 1, 0], sizes = [1, 4, 4, 64], strides = [1, 1, 1, 1]} : vector<1x4x6x64xbf16> to vector<1x4x4x64xbf16>
    %17 = vector.extract_strided_slice %14 {offsets = [0, 0, 2, 0], sizes = [1, 4, 4, 64], strides = [1, 1, 1, 1]} : vector<1x4x6x64xbf16> to vector<1x4x4x64xbf16>
    %18 = tpu.concatenate %15, %16, %17 in 3 : vector<1x4x4x64xbf16>, vector<1x4x4x64xbf16>, vector<1x4x4x64xbf16> -> vector<1x4x4x192xbf16>
    %19 = vector.shape_cast %18 : vector<1x4x4x192xbf16> to vector<16x192xbf16>
    %20 = vector.extract_strided_slice %4 {offsets = [1, 0, 0], sizes = [1, 192, 64], strides = [1, 1, 1]} : vector<3x192x64xbf16> to vector<1x192x64xbf16>
    %21 = vector.shape_cast %20 : vector<1x192x64xbf16> to vector<192x64xbf16>
    %cst_14 = arith.constant dense<0.000000e+00> : vector<16x64xf32>
    %22 = tpu.matmul %19, %21, %cst_14 {dimension_numbers = #tpu.dot_dimension_numbers<[1], [0], [0], [1], [0, 0, 1, 1], [], []>} : vector<16x192xbf16>, vector<192x64xbf16>, vector<16x64xf32> -> vector<16x64xf32>
    %23 = arith.addf %13, %22 : vector<16x64xf32>
    %24 = vector.extract_strided_slice %3 {offsets = [0, 2, 0, 0], sizes = [1, 4, 6, 64], strides = [1, 1, 1, 1]} : vector<1x6x6x64xbf16> to vector<1x4x6x64xbf16>
    %25 = vector.extract_strided_slice %24 {offsets = [0, 0, 0, 0], sizes = [1, 4, 4, 64], strides = [1, 1, 1, 1]} : vector<1x4x6x64xbf16> to vector<1x4x4x64xbf16>
    %26 = vector.extract_strided_slice %24 {offsets = [0, 0, 1, 0], sizes = [1, 4, 4, 64], strides = [1, 1, 1, 1]} : vector<1x4x6x64xbf16> to vector<1x4x4x64xbf16>
    %27 = vector.extract_strided_slice %24 {offsets = [0, 0, 2, 0], sizes = [1, 4, 4, 64], strides = [1, 1, 1, 1]} : vector<1x4x6x64xbf16> to vector<1x4x4x64xbf16>
    %28 = tpu.concatenate %25, %26, %27 in 3 : vector<1x4x4x64xbf16>, vector<1x4x4x64xbf16>, vector<1x4x4x64xbf16> -> vector<1x4x4x192xbf16>
    %29 = vector.shape_cast %28 : vector<1x4x4x192xbf16> to vector<16x192xbf16>
    %30 = vector.extract_strided_slice %4 {offsets = [2, 0, 0], sizes = [1, 192, 64], strides = [1, 1, 1]} : vector<3x192x64xbf16> to vector<1x192x64xbf16>
    %31 = vector.shape_cast %30 : vector<1x192x64xbf16> to vector<192x64xbf16>
    %cst_15 = arith.constant dense<0.000000e+00> : vector<16x64xf32>
    %32 = tpu.matmul %29, %31, %cst_15 {dimension_numbers = #tpu.dot_dimension_numbers<[1], [0], [0], [1], [0, 0, 1, 1], [], []>} : vector<16x192xbf16>, vector<192x64xbf16>, vector<16x64xf32> -> vector<16x64xf32>
    %33 = arith.addf %23, %32 : vector<16x64xf32>
    %c0_16 = arith.constant 0 : index
    %c0_17 = arith.constant 0 : index
    %c0_18 = arith.constant 0 : index
    %c0_19 = arith.constant 0 : index
    %34 = vector.load %arg5[%c0_16, %c0_17, %c0_18, %c0_19] : memref<1x4x6x64xbf16, #tpu.memory_space<vmem>>, vector<1x4x6x64xbf16>
    %c0_20 = arith.constant 0 : index
    %c0_21 = arith.constant 0 : index
    %c0_22 = arith.constant 0 : index
    %c0_23 = arith.constant 0 : index
    %35 = vector.load %arg6[%c0_20, %c0_21, %c0_22, %c0_23] : memref<1x1x6x64xbf16, #tpu.memory_space<vmem>>, vector<1x1x6x64xbf16>
    %c0_24 = arith.constant 0 : index
    %c0_25 = arith.constant 0 : index
    %c0_26 = arith.constant 0 : index
    %c0_27 = arith.constant 0 : index
    %36 = vector.load %arg7[%c0_24, %c0_25, %c0_26, %c0_27] : memref<1x1x6x64xbf16, #tpu.memory_space<vmem>>, vector<1x1x6x64xbf16>
    %37 = tpu.concatenate %34, %35, %36 in 1 : vector<1x4x6x64xbf16>, vector<1x1x6x64xbf16>, vector<1x1x6x64xbf16> -> vector<1x6x6x64xbf16>
    %c0_28 = arith.constant 0 : index
    %c0_29 = arith.constant 0 : index
    %c0_30 = arith.constant 0 : index
    %38 = vector.load %arg9[%c0_28, %c0_29, %c0_30] : memref<3x192x64xbf16, #tpu.memory_space<vmem>>, vector<3x192x64xbf16>
    %39 = vector.extract_strided_slice %37 {offsets = [0, 0, 0, 0], sizes = [1, 4, 6, 64], strides = [1, 1, 1, 1]} : vector<1x6x6x64xbf16> to vector<1x4x6x64xbf16>
    %40 = vector.extract_strided_slice %39 {offsets = [0, 0, 0, 0], sizes = [1, 4, 4, 64], strides = [1, 1, 1, 1]} : vector<1x4x6x64xbf16> to vector<1x4x4x64xbf16>
    %41 = vector.extract_strided_slice %39 {offsets = [0, 0, 1, 0], sizes = [1, 4, 4, 64], strides = [1, 1, 1, 1]} : vector<1x4x6x64xbf16> to vector<1x4x4x64xbf16>
    %42 = vector.extract_strided_slice %39 {offsets = [0, 0, 2, 0], sizes = [1, 4, 4, 64], strides = [1, 1, 1, 1]} : vector<1x4x6x64xbf16> to vector<1x4x4x64xbf16>
    %43 = tpu.concatenate %40, %41, %42 in 3 : vector<1x4x4x64xbf16>, vector<1x4x4x64xbf16>, vector<1x4x4x64xbf16> -> vector<1x4x4x192xbf16>
    %44 = vector.shape_cast %43 : vector<1x4x4x192xbf16> to vector<16x192xbf16>
    %45 = vector.extract_strided_slice %38 {offsets = [0, 0, 0], sizes = [1, 192, 64], strides = [1, 1, 1]} : vector<3x192x64xbf16> to vector<1x192x64xbf16>
    %46 = vector.shape_cast %45 : vector<1x192x64xbf16> to vector<192x64xbf16>
    %cst_31 = arith.constant dense<0.000000e+00> : vector<16x64xf32>
    %47 = tpu.matmul %44, %46, %cst_31 {dimension_numbers = #tpu.dot_dimension_numbers<[1], [0], [0], [1], [0, 0, 1, 1], [], []>} : vector<16x192xbf16>, vector<192x64xbf16>, vector<16x64xf32> -> vector<16x64xf32>
    %48 = arith.addf %33, %47 : vector<16x64xf32>
    %49 = vector.extract_strided_slice %37 {offsets = [0, 1, 0, 0], sizes = [1, 4, 6, 64], strides = [1, 1, 1, 1]} : vector<1x6x6x64xbf16> to vector<1x4x6x64xbf16>
    %50 = vector.extract_strided_slice %49 {offsets = [0, 0, 0, 0], sizes = [1, 4, 4, 64], strides = [1, 1, 1, 1]} : vector<1x4x6x64xbf16> to vector<1x4x4x64xbf16>
    %51 = vector.extract_strided_slice %49 {offsets = [0, 0, 1, 0], sizes = [1, 4, 4, 64], strides = [1, 1, 1, 1]} : vector<1x4x6x64xbf16> to vector<1x4x4x64xbf16>
    %52 = vector.extract_strided_slice %49 {offsets = [0, 0, 2, 0], sizes = [1, 4, 4, 64], strides = [1, 1, 1, 1]} : vector<1x4x6x64xbf16> to vector<1x4x4x64xbf16>
    %53 = tpu.concatenate %50, %51, %52 in 3 : vector<1x4x4x64xbf16>, vector<1x4x4x64xbf16>, vector<1x4x4x64xbf16> -> vector<1x4x4x192xbf16>
    %54 = vector.shape_cast %53 : vector<1x4x4x192xbf16> to vector<16x192xbf16>
    %55 = vector.extract_strided_slice %38 {offsets = [1, 0, 0], sizes = [1, 192, 64], strides = [1, 1, 1]} : vector<3x192x64xbf16> to vector<1x192x64xbf16>
    %56 = vector.shape_cast %55 : vector<1x192x64xbf16> to vector<192x64xbf16>
    %cst_32 = arith.constant dense<0.000000e+00> : vector<16x64xf32>
    %57 = tpu.matmul %54, %56, %cst_32 {dimension_numbers = #tpu.dot_dimension_numbers<[1], [0], [0], [1], [0, 0, 1, 1], [], []>} : vector<16x192xbf16>, vector<192x64xbf16>, vector<16x64xf32> -> vector<16x64xf32>
    %58 = arith.addf %48, %57 : vector<16x64xf32>
    %59 = vector.extract_strided_slice %37 {offsets = [0, 2, 0, 0], sizes = [1, 4, 6, 64], strides = [1, 1, 1, 1]} : vector<1x6x6x64xbf16> to vector<1x4x6x64xbf16>
    %60 = vector.extract_strided_slice %59 {offsets = [0, 0, 0, 0], sizes = [1, 4, 4, 64], strides = [1, 1, 1, 1]} : vector<1x4x6x64xbf16> to vector<1x4x4x64xbf16>
    %61 = vector.extract_strided_slice %59 {offsets = [0, 0, 1, 0], sizes = [1, 4, 4, 64], strides = [1, 1, 1, 1]} : vector<1x4x6x64xbf16> to vector<1x4x4x64xbf16>
    %62 = vector.extract_strided_slice %59 {offsets = [0, 0, 2, 0], sizes = [1, 4, 4, 64], strides = [1, 1, 1, 1]} : vector<1x4x6x64xbf16> to vector<1x4x4x64xbf16>
    %63 = tpu.concatenate %60, %61, %62 in 3 : vector<1x4x4x64xbf16>, vector<1x4x4x64xbf16>, vector<1x4x4x64xbf16> -> vector<1x4x4x192xbf16>
    %64 = vector.shape_cast %63 : vector<1x4x4x192xbf16> to vector<16x192xbf16>
    %65 = vector.extract_strided_slice %38 {offsets = [2, 0, 0], sizes = [1, 192, 64], strides = [1, 1, 1]} : vector<3x192x64xbf16> to vector<1x192x64xbf16>
    %66 = vector.shape_cast %65 : vector<1x192x64xbf16> to vector<192x64xbf16>
    %cst_33 = arith.constant dense<0.000000e+00> : vector<16x64xf32>
    %67 = tpu.matmul %64, %66, %cst_33 {dimension_numbers = #tpu.dot_dimension_numbers<[1], [0], [0], [1], [0, 0, 1, 1], [], []>} : vector<16x192xbf16>, vector<192x64xbf16>, vector<16x64xf32> -> vector<16x64xf32>
    %68 = arith.addf %58, %67 : vector<16x64xf32>
    %c0_34 = arith.constant 0 : index
    %c0_35 = arith.constant 0 : index
    %69 = vector.load %arg10[%c0_34, %c0_35] : memref<1x64xf32, #tpu.memory_space<vmem>>, vector<1x64xf32>
    %70 = vector.broadcast %69 : vector<1x64xf32> to vector<16x64xf32>
    %71 = arith.addf %68, %70 : vector<16x64xf32>
    %cst_36 = arith.constant 0.000000e+00 : f32
    %72 = vector.broadcast %cst_36 : f32 to vector<16x64xf32>
    %73 = arith.maximumf %71, %72 : vector<16x64xf32>
    %74 = vector.shape_cast %73 : vector<16x64xf32> to vector<1x4x4x64xf32>
    %75 = arith.truncf %74 : vector<1x4x4x64xf32> to vector<1x4x4x64xbf16>
    %c0_37 = arith.constant 0 : index
    %c0_38 = arith.constant 0 : index
    %c0_39 = arith.constant 0 : index
    %c0_40 = arith.constant 0 : index
    %76 = vector.load %arg11[%c0_37, %c0_38, %c0_39, %c0_40] : memref<1x4x4x64xbf16, #tpu.memory_space<vmem>>, vector<1x4x4x64xbf16>
    tpu.vector_store %arg11[%c0_37, %c0_38, %c0_39, %c0_40], %75 {strides = array<i32>} : memref<1x4x4x64xbf16, #tpu.memory_space<vmem>>, vector<1x4x4x64xbf16>,
    return
  }
  func.func @transform_0(%arg0: i32, %arg1: i32) -> (i32, i32, i32, i32) {
    %c0_i32 = arith.constant 0 : i32
    %c0_i32_0 = arith.constant 0 : i32
    %c0_i32_1 = arith.constant 0 : i32
    return %arg0, %arg1, %c0_i32, %c0_i32_0 : i32, i32, i32, i32
  }
  func.func @transform_1(%arg0: i32, %arg1: i32) -> (i32, i32, i32, i32) {
    %c1_i32 = arith.constant 1 : i32
    %0 = arith.addi %arg1, %c1_i32 : i32
    %c4_i32 = arith.constant 4 : i32
    %1 = arith.muli %0, %c4_i32 : i32
    %c0_i32 = arith.constant 0 : i32
    %c0_i32_0 = arith.constant 0 : i32
    %c0_i32_1 = arith.constant 0 : i32
    return %arg0, %1, %c0_i32, %c0_i32_0 : i32, i32, i32, i32
  }
  func.func @transform_2(%arg0: i32, %arg1: i32) -> (i32, i32, i32, i32) {
    %c1_i32 = arith.constant 1 : i32
    %0 = arith.addi %arg1, %c1_i32 : i32
    %c4_i32 = arith.constant 4 : i32
    %1 = arith.muli %0, %c4_i32 : i32
    %c1_i32_0 = arith.constant 1 : i32
    %2 = arith.addi %1, %c1_i32_0 : i32
    %c0_i32 = arith.constant 0 : i32
    %c0_i32_1 = arith.constant 0 : i32
    %c0_i32_2 = arith.constant 0 : i32
    return %arg0, %2, %c0_i32, %c0_i32_1 : i32, i32, i32, i32
  }
  func.func @transform_3(%arg0: i32, %arg1: i32) -> (i32, i32, i32, i32) {
    %c0_i32 = arith.constant 0 : i32
    %c0_i32_0 = arith.constant 0 : i32
    %c0_i32_1 = arith.constant 0 : i32
    return %arg0, %arg1, %c0_i32, %c0_i32_0 : i32, i32, i32, i32
  }
  func.func @transform_4(%arg0: i32, %arg1: i32) -> (i32, i32, i32, i32) {
    %c1_i32 = arith.constant 1 : i32
    %0 = arith.addi %arg1, %c1_i32 : i32
    %c4_i32 = arith.constant 4 : i32
    %1 = arith.muli %0, %c4_i32 : i32
    %c0_i32 = arith.constant 0 : i32
    %c0_i32_0 = arith.constant 0 : i32
    %c0_i32_1 = arith.constant 0 : i32
    return %arg0, %1, %c0_i32, %c0_i32_0 : i32, i32, i32, i32
  }
  func.func @transform_5(%arg0: i32, %arg1: i32) -> (i32, i32, i32, i32) {
    %c1_i32 = arith.constant 1 : i32
    %0 = arith.addi %arg1, %c1_i32 : i32
    %c4_i32 = arith.constant 4 : i32
    %1 = arith.muli %0, %c4_i32 : i32
    %c1_i32_0 = arith.constant 1 : i32
    %2 = arith.addi %1, %c1_i32_0 : i32
    %c0_i32 = arith.constant 0 : i32
    %c0_i32_1 = arith.constant 0 : i32
    %c0_i32_2 = arith.constant 0 : i32
    return %arg0, %2, %c0_i32, %c0_i32_1 : i32, i32, i32, i32
  }
  func.func @transform_6(%arg0: i32, %arg1: i32) -> (i32, i32, i32) {
    %c0_i32 = arith.constant 0 : i32
    %c0_i32_0 = arith.constant 0 : i32
    %c0_i32_1 = arith.constant 0 : i32
    %c0_i32_2 = arith.constant 0 : i32
    return %c0_i32, %c0_i32_0, %c0_i32_1 : i32, i32, i32
  }
  func.func @transform_7(%arg0: i32, %arg1: i32) -> (i32, i32, i32) {
    %c0_i32 = arith.constant 0 : i32
    %c0_i32_0 = arith.constant 0 : i32
    %c0_i32_1 = arith.constant 0 : i32
    %c0_i32_2 = arith.constant 0 : i32
    return %c0_i32, %c0_i32_0, %c0_i32_1 : i32, i32, i32
  }
  func.func @transform_8(%arg0: i32, %arg1: i32) -> (i32, i32) {
    %c0_i32 = arith.constant 0 : i32
    %c0_i32_0 = arith.constant 0 : i32
    %c0_i32_1 = arith.constant 0 : i32
    return %c0_i32, %c0_i32_0 : i32, i32
  }
  func.func @transform_9(%arg0: i32, %arg1: i32) -> (i32, i32, i32, i32) {
    %c0_i32 = arith.constant 0 : i32
    %c0_i32_0 = arith.constant 0 : i32
    %c0_i32_1 = arith.constant 0 : i32
    return %arg0, %arg1, %c0_i32, %c0_i32_0 : i32, i32, i32, i32
  }
}

module attributes {stable_mosaic.version = 11 : i64} {
  func.func @_conv3x3_kernel(%arg0: i32, %arg1: i32, %arg2: memref<1x4x10x64xbf16, #tpu.memory_space<vmem>>, %arg3: memref<1x1x10x64xbf16, #tpu.memory_space<vmem>>, %arg4: memref<1x1x10x64xbf16, #tpu.memory_space<vmem>>, %arg5: memref<3x192x32xbf16, #tpu.memory_space<vmem>>, %arg6: memref<1x32xf32, #tpu.memory_space<vmem>>, %arg7: memref<1x8x8x32xbf16, #tpu.memory_space<vmem>>) attributes {dimension_semantics = [#tpu.dimension_semantics<parallel>, #tpu.dimension_semantics<parallel>], iteration_bounds = array<i64: 2, 1>, scalar_prefetch = 0 : i64, scratch_operands = 0 : i64, tpu.core_type = #tpu.core_type<tc>, window_params = [{transform_indices = @transform_0, window_bounds = array<i64: 1, 4, 10, 64>}, {transform_indices = @transform_1, window_bounds = array<i64: 1, 1, 10, 64>}, {transform_indices = @transform_2, window_bounds = array<i64: 1, 1, 10, 64>}, {pipeline_mode = #tpu.pipeline_mode<synchronous>, transform_indices = @transform_3, window_bounds = array<i64: 3, 192, 32>}, {pipeline_mode = #tpu.pipeline_mode<synchronous>, transform_indices = @transform_4, window_bounds = array<i64: 1, 32>}, {transform_indices = @transform_5, window_bounds = array<i64: 1, 8, 8, 32>}]} {
    %c0 = arith.constant 0 : index
    %c0_0 = arith.constant 0 : index
    %c0_1 = arith.constant 0 : index
    %c0_2 = arith.constant 0 : index
    %0 = vector.load %arg2[%c0, %c0_0, %c0_1, %c0_2] : memref<1x4x10x64xbf16, #tpu.memory_space<vmem>>, vector<1x4x10x64xbf16>
    %c0_3 = arith.constant 0 : index
    %c0_4 = arith.constant 0 : index
    %c0_5 = arith.constant 0 : index
    %c0_6 = arith.constant 0 : index
    %1 = vector.load %arg3[%c0_3, %c0_4, %c0_5, %c0_6] : memref<1x1x10x64xbf16, #tpu.memory_space<vmem>>, vector<1x1x10x64xbf16>
    %c0_7 = arith.constant 0 : index
    %c0_8 = arith.constant 0 : index
    %c0_9 = arith.constant 0 : index
    %c0_10 = arith.constant 0 : index
    %2 = vector.load %arg4[%c0_7, %c0_8, %c0_9, %c0_10] : memref<1x1x10x64xbf16, #tpu.memory_space<vmem>>, vector<1x1x10x64xbf16>
    %3 = tpu.concatenate %0, %1, %2 in 1 : vector<1x4x10x64xbf16>, vector<1x1x10x64xbf16>, vector<1x1x10x64xbf16> -> vector<1x6x10x64xbf16>
    %4 = vector.extract_strided_slice %3 {offsets = [0, 0, 0, 0], sizes = [1, 1, 10, 64], strides = [1, 1, 1, 1]} : vector<1x6x10x64xbf16> to vector<1x1x10x64xbf16>
    %5 = vector.extract_strided_slice %3 {offsets = [0, 1, 0, 0], sizes = [1, 1, 10, 64], strides = [1, 1, 1, 1]} : vector<1x6x10x64xbf16> to vector<1x1x10x64xbf16>
    %6 = vector.extract_strided_slice %3 {offsets = [0, 1, 0, 0], sizes = [1, 1, 10, 64], strides = [1, 1, 1, 1]} : vector<1x6x10x64xbf16> to vector<1x1x10x64xbf16>
    %7 = vector.extract_strided_slice %3 {offsets = [0, 2, 0, 0], sizes = [1, 1, 10, 64], strides = [1, 1, 1, 1]} : vector<1x6x10x64xbf16> to vector<1x1x10x64xbf16>
    %8 = vector.extract_strided_slice %3 {offsets = [0, 2, 0, 0], sizes = [1, 1, 10, 64], strides = [1, 1, 1, 1]} : vector<1x6x10x64xbf16> to vector<1x1x10x64xbf16>
    %9 = vector.extract_strided_slice %3 {offsets = [0, 3, 0, 0], sizes = [1, 1, 10, 64], strides = [1, 1, 1, 1]} : vector<1x6x10x64xbf16> to vector<1x1x10x64xbf16>
    %10 = vector.extract_strided_slice %3 {offsets = [0, 3, 0, 0], sizes = [1, 1, 10, 64], strides = [1, 1, 1, 1]} : vector<1x6x10x64xbf16> to vector<1x1x10x64xbf16>
    %11 = vector.extract_strided_slice %3 {offsets = [0, 4, 0, 0], sizes = [1, 1, 10, 64], strides = [1, 1, 1, 1]} : vector<1x6x10x64xbf16> to vector<1x1x10x64xbf16>
    %12 = vector.extract_strided_slice %3 {offsets = [0, 4, 0, 0], sizes = [1, 1, 10, 64], strides = [1, 1, 1, 1]} : vector<1x6x10x64xbf16> to vector<1x1x10x64xbf16>
    %13 = vector.extract_strided_slice %3 {offsets = [0, 5, 0, 0], sizes = [1, 1, 10, 64], strides = [1, 1, 1, 1]} : vector<1x6x10x64xbf16> to vector<1x1x10x64xbf16>
    %14 = tpu.concatenate %4, %5, %6, %7, %8, %9, %10, %11, %12, %13 in 1 : vector<1x1x10x64xbf16>, vector<1x1x10x64xbf16>, vector<1x1x10x64xbf16>, vector<1x1x10x64xbf16>, vector<1x1x10x64xbf16>, vector<1x1x10x64xbf16>, vector<1x1x10x64xbf16>, vector<1x1x10x64xbf16>, vector<1x1x10x64xbf16>, vector<1x1x10x64xbf16> -> vector<1x10x10x64xbf16>
    %c0_11 = arith.constant 0 : index
    %c0_12 = arith.constant 0 : index
    %c0_13 = arith.constant 0 : index
    %15 = vector.load %arg5[%c0_11, %c0_12, %c0_13] : memref<3x192x32xbf16, #tpu.memory_space<vmem>>, vector<3x192x32xbf16>
    %16 = vector.extract_strided_slice %14 {offsets = [0, 0, 0, 0], sizes = [1, 8, 10, 64], strides = [1, 1, 1, 1]} : vector<1x10x10x64xbf16> to vector<1x8x10x64xbf16>
    %17 = vector.extract_strided_slice %16 {offsets = [0, 0, 0, 0], sizes = [1, 8, 8, 64], strides = [1, 1, 1, 1]} : vector<1x8x10x64xbf16> to vector<1x8x8x64xbf16>
    %18 = vector.extract_strided_slice %16 {offsets = [0, 0, 1, 0], sizes = [1, 8, 8, 64], strides = [1, 1, 1, 1]} : vector<1x8x10x64xbf16> to vector<1x8x8x64xbf16>
    %19 = vector.extract_strided_slice %16 {offsets = [0, 0, 2, 0], sizes = [1, 8, 8, 64], strides = [1, 1, 1, 1]} : vector<1x8x10x64xbf16> to vector<1x8x8x64xbf16>
    %20 = tpu.concatenate %17, %18, %19 in 3 : vector<1x8x8x64xbf16>, vector<1x8x8x64xbf16>, vector<1x8x8x64xbf16> -> vector<1x8x8x192xbf16>
    %21 = vector.shape_cast %20 : vector<1x8x8x192xbf16> to vector<64x192xbf16>
    %22 = vector.extract_strided_slice %15 {offsets = [0, 0, 0], sizes = [1, 192, 32], strides = [1, 1, 1]} : vector<3x192x32xbf16> to vector<1x192x32xbf16>
    %23 = vector.shape_cast %22 : vector<1x192x32xbf16> to vector<192x32xbf16>
    %cst = arith.constant dense<0.000000e+00> : vector<64x32xf32>
    %24 = tpu.matmul %21, %23, %cst {dimension_numbers = #tpu.dot_dimension_numbers<[1], [0], [0], [1], [0, 0, 1, 1], [], []>} : vector<64x192xbf16>, vector<192x32xbf16>, vector<64x32xf32> -> vector<64x32xf32>
    %25 = vector.extract_strided_slice %14 {offsets = [0, 1, 0, 0], sizes = [1, 8, 10, 64], strides = [1, 1, 1, 1]} : vector<1x10x10x64xbf16> to vector<1x8x10x64xbf16>
    %26 = vector.extract_strided_slice %25 {offsets = [0, 0, 0, 0], sizes = [1, 8, 8, 64], strides = [1, 1, 1, 1]} : vector<1x8x10x64xbf16> to vector<1x8x8x64xbf16>
    %27 = vector.extract_strided_slice %25 {offsets = [0, 0, 1, 0], sizes = [1, 8, 8, 64], strides = [1, 1, 1, 1]} : vector<1x8x10x64xbf16> to vector<1x8x8x64xbf16>
    %28 = vector.extract_strided_slice %25 {offsets = [0, 0, 2, 0], sizes = [1, 8, 8, 64], strides = [1, 1, 1, 1]} : vector<1x8x10x64xbf16> to vector<1x8x8x64xbf16>
    %29 = tpu.concatenate %26, %27, %28 in 3 : vector<1x8x8x64xbf16>, vector<1x8x8x64xbf16>, vector<1x8x8x64xbf16> -> vector<1x8x8x192xbf16>
    %30 = vector.shape_cast %29 : vector<1x8x8x192xbf16> to vector<64x192xbf16>
    %31 = vector.extract_strided_slice %15 {offsets = [1, 0, 0], sizes = [1, 192, 32], strides = [1, 1, 1]} : vector<3x192x32xbf16> to vector<1x192x32xbf16>
    %32 = vector.shape_cast %31 : vector<1x192x32xbf16> to vector<192x32xbf16>
    %cst_14 = arith.constant dense<0.000000e+00> : vector<64x32xf32>
    %33 = tpu.matmul %30, %32, %cst_14 {dimension_numbers = #tpu.dot_dimension_numbers<[1], [0], [0], [1], [0, 0, 1, 1], [], []>} : vector<64x192xbf16>, vector<192x32xbf16>, vector<64x32xf32> -> vector<64x32xf32>
    %34 = arith.addf %24, %33 : vector<64x32xf32>
    %35 = vector.extract_strided_slice %14 {offsets = [0, 2, 0, 0], sizes = [1, 8, 10, 64], strides = [1, 1, 1, 1]} : vector<1x10x10x64xbf16> to vector<1x8x10x64xbf16>
    %36 = vector.extract_strided_slice %35 {offsets = [0, 0, 0, 0], sizes = [1, 8, 8, 64], strides = [1, 1, 1, 1]} : vector<1x8x10x64xbf16> to vector<1x8x8x64xbf16>
    %37 = vector.extract_strided_slice %35 {offsets = [0, 0, 1, 0], sizes = [1, 8, 8, 64], strides = [1, 1, 1, 1]} : vector<1x8x10x64xbf16> to vector<1x8x8x64xbf16>
    %38 = vector.extract_strided_slice %35 {offsets = [0, 0, 2, 0], sizes = [1, 8, 8, 64], strides = [1, 1, 1, 1]} : vector<1x8x10x64xbf16> to vector<1x8x8x64xbf16>
    %39 = tpu.concatenate %36, %37, %38 in 3 : vector<1x8x8x64xbf16>, vector<1x8x8x64xbf16>, vector<1x8x8x64xbf16> -> vector<1x8x8x192xbf16>
    %40 = vector.shape_cast %39 : vector<1x8x8x192xbf16> to vector<64x192xbf16>
    %41 = vector.extract_strided_slice %15 {offsets = [2, 0, 0], sizes = [1, 192, 32], strides = [1, 1, 1]} : vector<3x192x32xbf16> to vector<1x192x32xbf16>
    %42 = vector.shape_cast %41 : vector<1x192x32xbf16> to vector<192x32xbf16>
    %cst_15 = arith.constant dense<0.000000e+00> : vector<64x32xf32>
    %43 = tpu.matmul %40, %42, %cst_15 {dimension_numbers = #tpu.dot_dimension_numbers<[1], [0], [0], [1], [0, 0, 1, 1], [], []>} : vector<64x192xbf16>, vector<192x32xbf16>, vector<64x32xf32> -> vector<64x32xf32>
    %44 = arith.addf %34, %43 : vector<64x32xf32>
    %c0_16 = arith.constant 0 : index
    %c0_17 = arith.constant 0 : index
    %45 = vector.load %arg6[%c0_16, %c0_17] : memref<1x32xf32, #tpu.memory_space<vmem>>, vector<1x32xf32>
    %46 = vector.broadcast %45 : vector<1x32xf32> to vector<64x32xf32>
    %47 = arith.addf %44, %46 : vector<64x32xf32>
    %cst_18 = arith.constant 0.000000e+00 : f32
    %48 = vector.broadcast %cst_18 : f32 to vector<64x32xf32>
    %49 = arith.maximumf %47, %48 : vector<64x32xf32>
    %50 = vector.shape_cast %49 : vector<64x32xf32> to vector<1x8x8x32xf32>
    %51 = arith.truncf %50 : vector<1x8x8x32xf32> to vector<1x8x8x32xbf16>
    %c0_19 = arith.constant 0 : index
    %c0_20 = arith.constant 0 : index
    %c0_21 = arith.constant 0 : index
    %c0_22 = arith.constant 0 : index
    %52 = vector.load %arg7[%c0_19, %c0_20, %c0_21, %c0_22] : memref<1x8x8x32xbf16, #tpu.memory_space<vmem>>, vector<1x8x8x32xbf16>
    tpu.vector_store %arg7[%c0_19, %c0_20, %c0_21, %c0_22], %51 {strides = array<i32>} : memref<1x8x8x32xbf16, #tpu.memory_space<vmem>>, vector<1x8x8x32xbf16>,
    return
  }
  func.func @transform_0(%arg0: i32, %arg1: i32) -> (i32, i32, i32, i32) {
    %c0_i32 = arith.constant 0 : i32
    %c0_i32_0 = arith.constant 0 : i32
    %c0_i32_1 = arith.constant 0 : i32
    return %arg0, %arg1, %c0_i32, %c0_i32_0 : i32, i32, i32, i32
  }
  func.func @transform_1(%arg0: i32, %arg1: i32) -> (i32, i32, i32, i32) {
    %c1_i32 = arith.constant 1 : i32
    %0 = arith.addi %arg1, %c1_i32 : i32
    %c4_i32 = arith.constant 4 : i32
    %1 = arith.muli %0, %c4_i32 : i32
    %c0_i32 = arith.constant 0 : i32
    %c0_i32_0 = arith.constant 0 : i32
    %c0_i32_1 = arith.constant 0 : i32
    return %arg0, %1, %c0_i32, %c0_i32_0 : i32, i32, i32, i32
  }
  func.func @transform_2(%arg0: i32, %arg1: i32) -> (i32, i32, i32, i32) {
    %c1_i32 = arith.constant 1 : i32
    %0 = arith.addi %arg1, %c1_i32 : i32
    %c4_i32 = arith.constant 4 : i32
    %1 = arith.muli %0, %c4_i32 : i32
    %c1_i32_0 = arith.constant 1 : i32
    %2 = arith.addi %1, %c1_i32_0 : i32
    %c0_i32 = arith.constant 0 : i32
    %c0_i32_1 = arith.constant 0 : i32
    %c0_i32_2 = arith.constant 0 : i32
    return %arg0, %2, %c0_i32, %c0_i32_1 : i32, i32, i32, i32
  }
  func.func @transform_3(%arg0: i32, %arg1: i32) -> (i32, i32, i32) {
    %c0_i32 = arith.constant 0 : i32
    %c0_i32_0 = arith.constant 0 : i32
    %c0_i32_1 = arith.constant 0 : i32
    %c0_i32_2 = arith.constant 0 : i32
    return %c0_i32, %c0_i32_0, %c0_i32_1 : i32, i32, i32
  }
  func.func @transform_4(%arg0: i32, %arg1: i32) -> (i32, i32) {
    %c0_i32 = arith.constant 0 : i32
    %c0_i32_0 = arith.constant 0 : i32
    %c0_i32_1 = arith.constant 0 : i32
    return %c0_i32, %c0_i32_0 : i32, i32
  }
  func.func @transform_5(%arg0: i32, %arg1: i32) -> (i32, i32, i32, i32) {
    %c0_i32 = arith.constant 0 : i32
    %c0_i32_0 = arith.constant 0 : i32
    %c0_i32_1 = arith.constant 0 : i32
    return %arg0, %arg1, %c0_i32, %c0_i32_0 : i32, i32, i32, i32
  }
}

module attributes {stable_mosaic.version = 11 : i64} {
  func.func @_conv3x3_kernel(%arg0: i32, %arg1: i32, %arg2: memref<1x8x10x32xbf16, #tpu.memory_space<vmem>>, %arg3: memref<1x1x10x32xbf16, #tpu.memory_space<vmem>>, %arg4: memref<1x1x10x32xbf16, #tpu.memory_space<vmem>>, %arg5: memref<1x8x10x32xbf16, #tpu.memory_space<vmem>>, %arg6: memref<1x1x10x32xbf16, #tpu.memory_space<vmem>>, %arg7: memref<1x1x10x32xbf16, #tpu.memory_space<vmem>>, %arg8: memref<3x96x32xbf16, #tpu.memory_space<vmem>>, %arg9: memref<3x96x32xbf16, #tpu.memory_space<vmem>>, %arg10: memref<1x32xf32, #tpu.memory_space<vmem>>, %arg11: memref<1x8x8x32xbf16, #tpu.memory_space<vmem>>) attributes {dimension_semantics = [#tpu.dimension_semantics<parallel>, #tpu.dimension_semantics<parallel>], iteration_bounds = array<i64: 2, 1>, scalar_prefetch = 0 : i64, scratch_operands = 0 : i64, tpu.core_type = #tpu.core_type<tc>, window_params = [{transform_indices = @transform_0, window_bounds = array<i64: 1, 8, 10, 32>}, {transform_indices = @transform_1, window_bounds = array<i64: 1, 1, 10, 32>}, {transform_indices = @transform_2, window_bounds = array<i64: 1, 1, 10, 32>}, {transform_indices = @transform_3, window_bounds = array<i64: 1, 8, 10, 32>}, {transform_indices = @transform_4, window_bounds = array<i64: 1, 1, 10, 32>}, {transform_indices = @transform_5, window_bounds = array<i64: 1, 1, 10, 32>}, {pipeline_mode = #tpu.pipeline_mode<synchronous>, transform_indices = @transform_6, window_bounds = array<i64: 3, 96, 32>}, {pipeline_mode = #tpu.pipeline_mode<synchronous>, transform_indices = @transform_7, window_bounds = array<i64: 3, 96, 32>}, {pipeline_mode = #tpu.pipeline_mode<synchronous>, transform_indices = @transform_8, window_bounds = array<i64: 1, 32>}, {transform_indices = @transform_9, window_bounds = array<i64: 1, 8, 8, 32>}]} {
    %c0 = arith.constant 0 : index
    %c0_0 = arith.constant 0 : index
    %c0_1 = arith.constant 0 : index
    %c0_2 = arith.constant 0 : index
    %0 = vector.load %arg2[%c0, %c0_0, %c0_1, %c0_2] : memref<1x8x10x32xbf16, #tpu.memory_space<vmem>>, vector<1x8x10x32xbf16>
    %c0_3 = arith.constant 0 : index
    %c0_4 = arith.constant 0 : index
    %c0_5 = arith.constant 0 : index
    %c0_6 = arith.constant 0 : index
    %1 = vector.load %arg3[%c0_3, %c0_4, %c0_5, %c0_6] : memref<1x1x10x32xbf16, #tpu.memory_space<vmem>>, vector<1x1x10x32xbf16>
    %c0_7 = arith.constant 0 : index
    %c0_8 = arith.constant 0 : index
    %c0_9 = arith.constant 0 : index
    %c0_10 = arith.constant 0 : index
    %2 = vector.load %arg4[%c0_7, %c0_8, %c0_9, %c0_10] : memref<1x1x10x32xbf16, #tpu.memory_space<vmem>>, vector<1x1x10x32xbf16>
    %3 = tpu.concatenate %0, %1, %2 in 1 : vector<1x8x10x32xbf16>, vector<1x1x10x32xbf16>, vector<1x1x10x32xbf16> -> vector<1x10x10x32xbf16>
    %c0_11 = arith.constant 0 : index
    %c0_12 = arith.constant 0 : index
    %c0_13 = arith.constant 0 : index
    %4 = vector.load %arg8[%c0_11, %c0_12, %c0_13] : memref<3x96x32xbf16, #tpu.memory_space<vmem>>, vector<3x96x32xbf16>
    %5 = vector.extract_strided_slice %3 {offsets = [0, 0, 0, 0], sizes = [1, 8, 10, 32], strides = [1, 1, 1, 1]} : vector<1x10x10x32xbf16> to vector<1x8x10x32xbf16>
    %6 = vector.extract_strided_slice %5 {offsets = [0, 0, 0, 0], sizes = [1, 8, 8, 32], strides = [1, 1, 1, 1]} : vector<1x8x10x32xbf16> to vector<1x8x8x32xbf16>
    %7 = vector.extract_strided_slice %5 {offsets = [0, 0, 1, 0], sizes = [1, 8, 8, 32], strides = [1, 1, 1, 1]} : vector<1x8x10x32xbf16> to vector<1x8x8x32xbf16>
    %8 = vector.extract_strided_slice %5 {offsets = [0, 0, 2, 0], sizes = [1, 8, 8, 32], strides = [1, 1, 1, 1]} : vector<1x8x10x32xbf16> to vector<1x8x8x32xbf16>
    %9 = tpu.concatenate %6, %7, %8 in 3 : vector<1x8x8x32xbf16>, vector<1x8x8x32xbf16>, vector<1x8x8x32xbf16> -> vector<1x8x8x96xbf16>
    %10 = vector.shape_cast %9 : vector<1x8x8x96xbf16> to vector<64x96xbf16>
    %11 = vector.extract_strided_slice %4 {offsets = [0, 0, 0], sizes = [1, 96, 32], strides = [1, 1, 1]} : vector<3x96x32xbf16> to vector<1x96x32xbf16>
    %12 = vector.shape_cast %11 : vector<1x96x32xbf16> to vector<96x32xbf16>
    %cst = arith.constant dense<0.000000e+00> : vector<64x32xf32>
    %13 = tpu.matmul %10, %12, %cst {dimension_numbers = #tpu.dot_dimension_numbers<[1], [0], [0], [1], [0, 0, 1, 1], [], []>} : vector<64x96xbf16>, vector<96x32xbf16>, vector<64x32xf32> -> vector<64x32xf32>
    %14 = vector.extract_strided_slice %3 {offsets = [0, 1, 0, 0], sizes = [1, 8, 10, 32], strides = [1, 1, 1, 1]} : vector<1x10x10x32xbf16> to vector<1x8x10x32xbf16>
    %15 = vector.extract_strided_slice %14 {offsets = [0, 0, 0, 0], sizes = [1, 8, 8, 32], strides = [1, 1, 1, 1]} : vector<1x8x10x32xbf16> to vector<1x8x8x32xbf16>
    %16 = vector.extract_strided_slice %14 {offsets = [0, 0, 1, 0], sizes = [1, 8, 8, 32], strides = [1, 1, 1, 1]} : vector<1x8x10x32xbf16> to vector<1x8x8x32xbf16>
    %17 = vector.extract_strided_slice %14 {offsets = [0, 0, 2, 0], sizes = [1, 8, 8, 32], strides = [1, 1, 1, 1]} : vector<1x8x10x32xbf16> to vector<1x8x8x32xbf16>
    %18 = tpu.concatenate %15, %16, %17 in 3 : vector<1x8x8x32xbf16>, vector<1x8x8x32xbf16>, vector<1x8x8x32xbf16> -> vector<1x8x8x96xbf16>
    %19 = vector.shape_cast %18 : vector<1x8x8x96xbf16> to vector<64x96xbf16>
    %20 = vector.extract_strided_slice %4 {offsets = [1, 0, 0], sizes = [1, 96, 32], strides = [1, 1, 1]} : vector<3x96x32xbf16> to vector<1x96x32xbf16>
    %21 = vector.shape_cast %20 : vector<1x96x32xbf16> to vector<96x32xbf16>
    %cst_14 = arith.constant dense<0.000000e+00> : vector<64x32xf32>
    %22 = tpu.matmul %19, %21, %cst_14 {dimension_numbers = #tpu.dot_dimension_numbers<[1], [0], [0], [1], [0, 0, 1, 1], [], []>} : vector<64x96xbf16>, vector<96x32xbf16>, vector<64x32xf32> -> vector<64x32xf32>
    %23 = arith.addf %13, %22 : vector<64x32xf32>
    %24 = vector.extract_strided_slice %3 {offsets = [0, 2, 0, 0], sizes = [1, 8, 10, 32], strides = [1, 1, 1, 1]} : vector<1x10x10x32xbf16> to vector<1x8x10x32xbf16>
    %25 = vector.extract_strided_slice %24 {offsets = [0, 0, 0, 0], sizes = [1, 8, 8, 32], strides = [1, 1, 1, 1]} : vector<1x8x10x32xbf16> to vector<1x8x8x32xbf16>
    %26 = vector.extract_strided_slice %24 {offsets = [0, 0, 1, 0], sizes = [1, 8, 8, 32], strides = [1, 1, 1, 1]} : vector<1x8x10x32xbf16> to vector<1x8x8x32xbf16>
    %27 = vector.extract_strided_slice %24 {offsets = [0, 0, 2, 0], sizes = [1, 8, 8, 32], strides = [1, 1, 1, 1]} : vector<1x8x10x32xbf16> to vector<1x8x8x32xbf16>
    %28 = tpu.concatenate %25, %26, %27 in 3 : vector<1x8x8x32xbf16>, vector<1x8x8x32xbf16>, vector<1x8x8x32xbf16> -> vector<1x8x8x96xbf16>
    %29 = vector.shape_cast %28 : vector<1x8x8x96xbf16> to vector<64x96xbf16>
    %30 = vector.extract_strided_slice %4 {offsets = [2, 0, 0], sizes = [1, 96, 32], strides = [1, 1, 1]} : vector<3x96x32xbf16> to vector<1x96x32xbf16>
    %31 = vector.shape_cast %30 : vector<1x96x32xbf16> to vector<96x32xbf16>
    %cst_15 = arith.constant dense<0.000000e+00> : vector<64x32xf32>
    %32 = tpu.matmul %29, %31, %cst_15 {dimension_numbers = #tpu.dot_dimension_numbers<[1], [0], [0], [1], [0, 0, 1, 1], [], []>} : vector<64x96xbf16>, vector<96x32xbf16>, vector<64x32xf32> -> vector<64x32xf32>
    %33 = arith.addf %23, %32 : vector<64x32xf32>
    %c0_16 = arith.constant 0 : index
    %c0_17 = arith.constant 0 : index
    %c0_18 = arith.constant 0 : index
    %c0_19 = arith.constant 0 : index
    %34 = vector.load %arg5[%c0_16, %c0_17, %c0_18, %c0_19] : memref<1x8x10x32xbf16, #tpu.memory_space<vmem>>, vector<1x8x10x32xbf16>
    %c0_20 = arith.constant 0 : index
    %c0_21 = arith.constant 0 : index
    %c0_22 = arith.constant 0 : index
    %c0_23 = arith.constant 0 : index
    %35 = vector.load %arg6[%c0_20, %c0_21, %c0_22, %c0_23] : memref<1x1x10x32xbf16, #tpu.memory_space<vmem>>, vector<1x1x10x32xbf16>
    %c0_24 = arith.constant 0 : index
    %c0_25 = arith.constant 0 : index
    %c0_26 = arith.constant 0 : index
    %c0_27 = arith.constant 0 : index
    %36 = vector.load %arg7[%c0_24, %c0_25, %c0_26, %c0_27] : memref<1x1x10x32xbf16, #tpu.memory_space<vmem>>, vector<1x1x10x32xbf16>
    %37 = tpu.concatenate %34, %35, %36 in 1 : vector<1x8x10x32xbf16>, vector<1x1x10x32xbf16>, vector<1x1x10x32xbf16> -> vector<1x10x10x32xbf16>
    %c0_28 = arith.constant 0 : index
    %c0_29 = arith.constant 0 : index
    %c0_30 = arith.constant 0 : index
    %38 = vector.load %arg9[%c0_28, %c0_29, %c0_30] : memref<3x96x32xbf16, #tpu.memory_space<vmem>>, vector<3x96x32xbf16>
    %39 = vector.extract_strided_slice %37 {offsets = [0, 0, 0, 0], sizes = [1, 8, 10, 32], strides = [1, 1, 1, 1]} : vector<1x10x10x32xbf16> to vector<1x8x10x32xbf16>
    %40 = vector.extract_strided_slice %39 {offsets = [0, 0, 0, 0], sizes = [1, 8, 8, 32], strides = [1, 1, 1, 1]} : vector<1x8x10x32xbf16> to vector<1x8x8x32xbf16>
    %41 = vector.extract_strided_slice %39 {offsets = [0, 0, 1, 0], sizes = [1, 8, 8, 32], strides = [1, 1, 1, 1]} : vector<1x8x10x32xbf16> to vector<1x8x8x32xbf16>
    %42 = vector.extract_strided_slice %39 {offsets = [0, 0, 2, 0], sizes = [1, 8, 8, 32], strides = [1, 1, 1, 1]} : vector<1x8x10x32xbf16> to vector<1x8x8x32xbf16>
    %43 = tpu.concatenate %40, %41, %42 in 3 : vector<1x8x8x32xbf16>, vector<1x8x8x32xbf16>, vector<1x8x8x32xbf16> -> vector<1x8x8x96xbf16>
    %44 = vector.shape_cast %43 : vector<1x8x8x96xbf16> to vector<64x96xbf16>
    %45 = vector.extract_strided_slice %38 {offsets = [0, 0, 0], sizes = [1, 96, 32], strides = [1, 1, 1]} : vector<3x96x32xbf16> to vector<1x96x32xbf16>
    %46 = vector.shape_cast %45 : vector<1x96x32xbf16> to vector<96x32xbf16>
    %cst_31 = arith.constant dense<0.000000e+00> : vector<64x32xf32>
    %47 = tpu.matmul %44, %46, %cst_31 {dimension_numbers = #tpu.dot_dimension_numbers<[1], [0], [0], [1], [0, 0, 1, 1], [], []>} : vector<64x96xbf16>, vector<96x32xbf16>, vector<64x32xf32> -> vector<64x32xf32>
    %48 = arith.addf %33, %47 : vector<64x32xf32>
    %49 = vector.extract_strided_slice %37 {offsets = [0, 1, 0, 0], sizes = [1, 8, 10, 32], strides = [1, 1, 1, 1]} : vector<1x10x10x32xbf16> to vector<1x8x10x32xbf16>
    %50 = vector.extract_strided_slice %49 {offsets = [0, 0, 0, 0], sizes = [1, 8, 8, 32], strides = [1, 1, 1, 1]} : vector<1x8x10x32xbf16> to vector<1x8x8x32xbf16>
    %51 = vector.extract_strided_slice %49 {offsets = [0, 0, 1, 0], sizes = [1, 8, 8, 32], strides = [1, 1, 1, 1]} : vector<1x8x10x32xbf16> to vector<1x8x8x32xbf16>
    %52 = vector.extract_strided_slice %49 {offsets = [0, 0, 2, 0], sizes = [1, 8, 8, 32], strides = [1, 1, 1, 1]} : vector<1x8x10x32xbf16> to vector<1x8x8x32xbf16>
    %53 = tpu.concatenate %50, %51, %52 in 3 : vector<1x8x8x32xbf16>, vector<1x8x8x32xbf16>, vector<1x8x8x32xbf16> -> vector<1x8x8x96xbf16>
    %54 = vector.shape_cast %53 : vector<1x8x8x96xbf16> to vector<64x96xbf16>
    %55 = vector.extract_strided_slice %38 {offsets = [1, 0, 0], sizes = [1, 96, 32], strides = [1, 1, 1]} : vector<3x96x32xbf16> to vector<1x96x32xbf16>
    %56 = vector.shape_cast %55 : vector<1x96x32xbf16> to vector<96x32xbf16>
    %cst_32 = arith.constant dense<0.000000e+00> : vector<64x32xf32>
    %57 = tpu.matmul %54, %56, %cst_32 {dimension_numbers = #tpu.dot_dimension_numbers<[1], [0], [0], [1], [0, 0, 1, 1], [], []>} : vector<64x96xbf16>, vector<96x32xbf16>, vector<64x32xf32> -> vector<64x32xf32>
    %58 = arith.addf %48, %57 : vector<64x32xf32>
    %59 = vector.extract_strided_slice %37 {offsets = [0, 2, 0, 0], sizes = [1, 8, 10, 32], strides = [1, 1, 1, 1]} : vector<1x10x10x32xbf16> to vector<1x8x10x32xbf16>
    %60 = vector.extract_strided_slice %59 {offsets = [0, 0, 0, 0], sizes = [1, 8, 8, 32], strides = [1, 1, 1, 1]} : vector<1x8x10x32xbf16> to vector<1x8x8x32xbf16>
    %61 = vector.extract_strided_slice %59 {offsets = [0, 0, 1, 0], sizes = [1, 8, 8, 32], strides = [1, 1, 1, 1]} : vector<1x8x10x32xbf16> to vector<1x8x8x32xbf16>
    %62 = vector.extract_strided_slice %59 {offsets = [0, 0, 2, 0], sizes = [1, 8, 8, 32], strides = [1, 1, 1, 1]} : vector<1x8x10x32xbf16> to vector<1x8x8x32xbf16>
    %63 = tpu.concatenate %60, %61, %62 in 3 : vector<1x8x8x32xbf16>, vector<1x8x8x32xbf16>, vector<1x8x8x32xbf16> -> vector<1x8x8x96xbf16>
    %64 = vector.shape_cast %63 : vector<1x8x8x96xbf16> to vector<64x96xbf16>
    %65 = vector.extract_strided_slice %38 {offsets = [2, 0, 0], sizes = [1, 96, 32], strides = [1, 1, 1]} : vector<3x96x32xbf16> to vector<1x96x32xbf16>
    %66 = vector.shape_cast %65 : vector<1x96x32xbf16> to vector<96x32xbf16>
    %cst_33 = arith.constant dense<0.000000e+00> : vector<64x32xf32>
    %67 = tpu.matmul %64, %66, %cst_33 {dimension_numbers = #tpu.dot_dimension_numbers<[1], [0], [0], [1], [0, 0, 1, 1], [], []>} : vector<64x96xbf16>, vector<96x32xbf16>, vector<64x32xf32> -> vector<64x32xf32>
    %68 = arith.addf %58, %67 : vector<64x32xf32>
    %c0_34 = arith.constant 0 : index
    %c0_35 = arith.constant 0 : index
    %69 = vector.load %arg10[%c0_34, %c0_35] : memref<1x32xf32, #tpu.memory_space<vmem>>, vector<1x32xf32>
    %70 = vector.broadcast %69 : vector<1x32xf32> to vector<64x32xf32>
    %71 = arith.addf %68, %70 : vector<64x32xf32>
    %cst_36 = arith.constant 0.000000e+00 : f32
    %72 = vector.broadcast %cst_36 : f32 to vector<64x32xf32>
    %73 = arith.maximumf %71, %72 : vector<64x32xf32>
    %74 = vector.shape_cast %73 : vector<64x32xf32> to vector<1x8x8x32xf32>
    %75 = arith.truncf %74 : vector<1x8x8x32xf32> to vector<1x8x8x32xbf16>
    %c0_37 = arith.constant 0 : index
    %c0_38 = arith.constant 0 : index
    %c0_39 = arith.constant 0 : index
    %c0_40 = arith.constant 0 : index
    %76 = vector.load %arg11[%c0_37, %c0_38, %c0_39, %c0_40] : memref<1x8x8x32xbf16, #tpu.memory_space<vmem>>, vector<1x8x8x32xbf16>
    tpu.vector_store %arg11[%c0_37, %c0_38, %c0_39, %c0_40], %75 {strides = array<i32>} : memref<1x8x8x32xbf16, #tpu.memory_space<vmem>>, vector<1x8x8x32xbf16>,
    return
  }
  func.func @transform_0(%arg0: i32, %arg1: i32) -> (i32, i32, i32, i32) {
    %c0_i32 = arith.constant 0 : i32
    %c0_i32_0 = arith.constant 0 : i32
    %c0_i32_1 = arith.constant 0 : i32
    return %arg0, %arg1, %c0_i32, %c0_i32_0 : i32, i32, i32, i32
  }
  func.func @transform_1(%arg0: i32, %arg1: i32) -> (i32, i32, i32, i32) {
    %c1_i32 = arith.constant 1 : i32
    %0 = arith.addi %arg1, %c1_i32 : i32
    %c8_i32 = arith.constant 8 : i32
    %1 = arith.muli %0, %c8_i32 : i32
    %c0_i32 = arith.constant 0 : i32
    %c0_i32_0 = arith.constant 0 : i32
    %c0_i32_1 = arith.constant 0 : i32
    return %arg0, %1, %c0_i32, %c0_i32_0 : i32, i32, i32, i32
  }
  func.func @transform_2(%arg0: i32, %arg1: i32) -> (i32, i32, i32, i32) {
    %c1_i32 = arith.constant 1 : i32
    %0 = arith.addi %arg1, %c1_i32 : i32
    %c8_i32 = arith.constant 8 : i32
    %1 = arith.muli %0, %c8_i32 : i32
    %c1_i32_0 = arith.constant 1 : i32
    %2 = arith.addi %1, %c1_i32_0 : i32
    %c0_i32 = arith.constant 0 : i32
    %c0_i32_1 = arith.constant 0 : i32
    %c0_i32_2 = arith.constant 0 : i32
    return %arg0, %2, %c0_i32, %c0_i32_1 : i32, i32, i32, i32
  }
  func.func @transform_3(%arg0: i32, %arg1: i32) -> (i32, i32, i32, i32) {
    %c0_i32 = arith.constant 0 : i32
    %c0_i32_0 = arith.constant 0 : i32
    %c0_i32_1 = arith.constant 0 : i32
    return %arg0, %arg1, %c0_i32, %c0_i32_0 : i32, i32, i32, i32
  }
  func.func @transform_4(%arg0: i32, %arg1: i32) -> (i32, i32, i32, i32) {
    %c1_i32 = arith.constant 1 : i32
    %0 = arith.addi %arg1, %c1_i32 : i32
    %c8_i32 = arith.constant 8 : i32
    %1 = arith.muli %0, %c8_i32 : i32
    %c0_i32 = arith.constant 0 : i32
    %c0_i32_0 = arith.constant 0 : i32
    %c0_i32_1 = arith.constant 0 : i32
    return %arg0, %1, %c0_i32, %c0_i32_0 : i32, i32, i32, i32
  }
  func.func @transform_5(%arg0: i32, %arg1: i32) -> (i32, i32, i32, i32) {
    %c1_i32 = arith.constant 1 : i32
    %0 = arith.addi %arg1, %c1_i32 : i32
    %c8_i32 = arith.constant 8 : i32
    %1 = arith.muli %0, %c8_i32 : i32
    %c1_i32_0 = arith.constant 1 : i32
    %2 = arith.addi %1, %c1_i32_0 : i32
    %c0_i32 = arith.constant 0 : i32
    %c0_i32_1 = arith.constant 0 : i32
    %c0_i32_2 = arith.constant 0 : i32
    return %arg0, %2, %c0_i32, %c0_i32_1 : i32, i32, i32, i32
  }
  func.func @transform_6(%arg0: i32, %arg1: i32) -> (i32, i32, i32) {
    %c0_i32 = arith.constant 0 : i32
    %c0_i32_0 = arith.constant 0 : i32
    %c0_i32_1 = arith.constant 0 : i32
    %c0_i32_2 = arith.constant 0 : i32
    return %c0_i32, %c0_i32_0, %c0_i32_1 : i32, i32, i32
  }
  func.func @transform_7(%arg0: i32, %arg1: i32) -> (i32, i32, i32) {
    %c0_i32 = arith.constant 0 : i32
    %c0_i32_0 = arith.constant 0 : i32
    %c0_i32_1 = arith.constant 0 : i32
    %c0_i32_2 = arith.constant 0 : i32
    return %c0_i32, %c0_i32_0, %c0_i32_1 : i32, i32, i32
  }
  func.func @transform_8(%arg0: i32, %arg1: i32) -> (i32, i32) {
    %c0_i32 = arith.constant 0 : i32
    %c0_i32_0 = arith.constant 0 : i32
    %c0_i32_1 = arith.constant 0 : i32
    return %c0_i32, %c0_i32_0 : i32, i32
  }
  func.func @transform_9(%arg0: i32, %arg1: i32) -> (i32, i32, i32, i32) {
    %c0_i32 = arith.constant 0 : i32
    %c0_i32_0 = arith.constant 0 : i32
    %c0_i32_1 = arith.constant 0 : i32
    return %arg0, %arg1, %c0_i32, %c0_i32_0 : i32, i32, i32, i32
  }
}

module attributes {stable_mosaic.version = 11 : i64} {
  func.func @_conv3x3_kernel(%arg0: i32, %arg1: i32, %arg2: memref<1x4x18x32xbf16, #tpu.memory_space<vmem>>, %arg3: memref<1x1x18x32xbf16, #tpu.memory_space<vmem>>, %arg4: memref<1x1x18x32xbf16, #tpu.memory_space<vmem>>, %arg5: memref<3x96x3xbf16, #tpu.memory_space<vmem>>, %arg6: memref<1x3xf32, #tpu.memory_space<vmem>>, %arg7: memref<1x8x16x3xf32, #tpu.memory_space<vmem>>) attributes {dimension_semantics = [#tpu.dimension_semantics<parallel>, #tpu.dimension_semantics<parallel>], iteration_bounds = array<i64: 2, 2>, scalar_prefetch = 0 : i64, scratch_operands = 0 : i64, tpu.core_type = #tpu.core_type<tc>, window_params = [{transform_indices = @transform_0, window_bounds = array<i64: 1, 4, 18, 32>}, {transform_indices = @transform_1, window_bounds = array<i64: 1, 1, 18, 32>}, {transform_indices = @transform_2, window_bounds = array<i64: 1, 1, 18, 32>}, {pipeline_mode = #tpu.pipeline_mode<synchronous>, transform_indices = @transform_3, window_bounds = array<i64: 3, 96, 3>}, {pipeline_mode = #tpu.pipeline_mode<synchronous>, transform_indices = @transform_4, window_bounds = array<i64: 1, 3>}, {transform_indices = @transform_5, window_bounds = array<i64: 1, 8, 16, 3>}]} {
    %c0 = arith.constant 0 : index
    %c0_0 = arith.constant 0 : index
    %c0_1 = arith.constant 0 : index
    %c0_2 = arith.constant 0 : index
    %0 = vector.load %arg2[%c0, %c0_0, %c0_1, %c0_2] : memref<1x4x18x32xbf16, #tpu.memory_space<vmem>>, vector<1x4x18x32xbf16>
    %c0_3 = arith.constant 0 : index
    %c0_4 = arith.constant 0 : index
    %c0_5 = arith.constant 0 : index
    %c0_6 = arith.constant 0 : index
    %1 = vector.load %arg3[%c0_3, %c0_4, %c0_5, %c0_6] : memref<1x1x18x32xbf16, #tpu.memory_space<vmem>>, vector<1x1x18x32xbf16>
    %c0_7 = arith.constant 0 : index
    %c0_8 = arith.constant 0 : index
    %c0_9 = arith.constant 0 : index
    %c0_10 = arith.constant 0 : index
    %2 = vector.load %arg4[%c0_7, %c0_8, %c0_9, %c0_10] : memref<1x1x18x32xbf16, #tpu.memory_space<vmem>>, vector<1x1x18x32xbf16>
    %3 = tpu.concatenate %0, %1, %2 in 1 : vector<1x4x18x32xbf16>, vector<1x1x18x32xbf16>, vector<1x1x18x32xbf16> -> vector<1x6x18x32xbf16>
    %4 = vector.extract_strided_slice %3 {offsets = [0, 0, 0, 0], sizes = [1, 1, 18, 32], strides = [1, 1, 1, 1]} : vector<1x6x18x32xbf16> to vector<1x1x18x32xbf16>
    %5 = vector.extract_strided_slice %3 {offsets = [0, 1, 0, 0], sizes = [1, 1, 18, 32], strides = [1, 1, 1, 1]} : vector<1x6x18x32xbf16> to vector<1x1x18x32xbf16>
    %6 = vector.extract_strided_slice %3 {offsets = [0, 1, 0, 0], sizes = [1, 1, 18, 32], strides = [1, 1, 1, 1]} : vector<1x6x18x32xbf16> to vector<1x1x18x32xbf16>
    %7 = vector.extract_strided_slice %3 {offsets = [0, 2, 0, 0], sizes = [1, 1, 18, 32], strides = [1, 1, 1, 1]} : vector<1x6x18x32xbf16> to vector<1x1x18x32xbf16>
    %8 = vector.extract_strided_slice %3 {offsets = [0, 2, 0, 0], sizes = [1, 1, 18, 32], strides = [1, 1, 1, 1]} : vector<1x6x18x32xbf16> to vector<1x1x18x32xbf16>
    %9 = vector.extract_strided_slice %3 {offsets = [0, 3, 0, 0], sizes = [1, 1, 18, 32], strides = [1, 1, 1, 1]} : vector<1x6x18x32xbf16> to vector<1x1x18x32xbf16>
    %10 = vector.extract_strided_slice %3 {offsets = [0, 3, 0, 0], sizes = [1, 1, 18, 32], strides = [1, 1, 1, 1]} : vector<1x6x18x32xbf16> to vector<1x1x18x32xbf16>
    %11 = vector.extract_strided_slice %3 {offsets = [0, 4, 0, 0], sizes = [1, 1, 18, 32], strides = [1, 1, 1, 1]} : vector<1x6x18x32xbf16> to vector<1x1x18x32xbf16>
    %12 = vector.extract_strided_slice %3 {offsets = [0, 4, 0, 0], sizes = [1, 1, 18, 32], strides = [1, 1, 1, 1]} : vector<1x6x18x32xbf16> to vector<1x1x18x32xbf16>
    %13 = vector.extract_strided_slice %3 {offsets = [0, 5, 0, 0], sizes = [1, 1, 18, 32], strides = [1, 1, 1, 1]} : vector<1x6x18x32xbf16> to vector<1x1x18x32xbf16>
    %14 = tpu.concatenate %4, %5, %6, %7, %8, %9, %10, %11, %12, %13 in 1 : vector<1x1x18x32xbf16>, vector<1x1x18x32xbf16>, vector<1x1x18x32xbf16>, vector<1x1x18x32xbf16>, vector<1x1x18x32xbf16>, vector<1x1x18x32xbf16>, vector<1x1x18x32xbf16>, vector<1x1x18x32xbf16>, vector<1x1x18x32xbf16>, vector<1x1x18x32xbf16> -> vector<1x10x18x32xbf16>
    %c0_11 = arith.constant 0 : index
    %c0_12 = arith.constant 0 : index
    %c0_13 = arith.constant 0 : index
    %15 = vector.load %arg5[%c0_11, %c0_12, %c0_13] : memref<3x96x3xbf16, #tpu.memory_space<vmem>>, vector<3x96x3xbf16>
    %16 = vector.extract_strided_slice %14 {offsets = [0, 0, 0, 0], sizes = [1, 8, 18, 32], strides = [1, 1, 1, 1]} : vector<1x10x18x32xbf16> to vector<1x8x18x32xbf16>
    %17 = vector.extract_strided_slice %16 {offsets = [0, 0, 0, 0], sizes = [1, 8, 16, 32], strides = [1, 1, 1, 1]} : vector<1x8x18x32xbf16> to vector<1x8x16x32xbf16>
    %18 = vector.extract_strided_slice %16 {offsets = [0, 0, 1, 0], sizes = [1, 8, 16, 32], strides = [1, 1, 1, 1]} : vector<1x8x18x32xbf16> to vector<1x8x16x32xbf16>
    %19 = vector.extract_strided_slice %16 {offsets = [0, 0, 2, 0], sizes = [1, 8, 16, 32], strides = [1, 1, 1, 1]} : vector<1x8x18x32xbf16> to vector<1x8x16x32xbf16>
    %20 = tpu.concatenate %17, %18, %19 in 3 : vector<1x8x16x32xbf16>, vector<1x8x16x32xbf16>, vector<1x8x16x32xbf16> -> vector<1x8x16x96xbf16>
    %21 = vector.shape_cast %20 : vector<1x8x16x96xbf16> to vector<128x96xbf16>
    %22 = vector.extract_strided_slice %15 {offsets = [0, 0, 0], sizes = [1, 96, 3], strides = [1, 1, 1]} : vector<3x96x3xbf16> to vector<1x96x3xbf16>
    %23 = vector.shape_cast %22 : vector<1x96x3xbf16> to vector<96x3xbf16>
    %cst = arith.constant dense<0.000000e+00> : vector<128x3xf32>
    %24 = tpu.matmul %21, %23, %cst {dimension_numbers = #tpu.dot_dimension_numbers<[1], [0], [0], [1], [0, 0, 1, 1], [], []>} : vector<128x96xbf16>, vector<96x3xbf16>, vector<128x3xf32> -> vector<128x3xf32>
    %25 = vector.extract_strided_slice %14 {offsets = [0, 1, 0, 0], sizes = [1, 8, 18, 32], strides = [1, 1, 1, 1]} : vector<1x10x18x32xbf16> to vector<1x8x18x32xbf16>
    %26 = vector.extract_strided_slice %25 {offsets = [0, 0, 0, 0], sizes = [1, 8, 16, 32], strides = [1, 1, 1, 1]} : vector<1x8x18x32xbf16> to vector<1x8x16x32xbf16>
    %27 = vector.extract_strided_slice %25 {offsets = [0, 0, 1, 0], sizes = [1, 8, 16, 32], strides = [1, 1, 1, 1]} : vector<1x8x18x32xbf16> to vector<1x8x16x32xbf16>
    %28 = vector.extract_strided_slice %25 {offsets = [0, 0, 2, 0], sizes = [1, 8, 16, 32], strides = [1, 1, 1, 1]} : vector<1x8x18x32xbf16> to vector<1x8x16x32xbf16>
    %29 = tpu.concatenate %26, %27, %28 in 3 : vector<1x8x16x32xbf16>, vector<1x8x16x32xbf16>, vector<1x8x16x32xbf16> -> vector<1x8x16x96xbf16>
    %30 = vector.shape_cast %29 : vector<1x8x16x96xbf16> to vector<128x96xbf16>
    %31 = vector.extract_strided_slice %15 {offsets = [1, 0, 0], sizes = [1, 96, 3], strides = [1, 1, 1]} : vector<3x96x3xbf16> to vector<1x96x3xbf16>
    %32 = vector.shape_cast %31 : vector<1x96x3xbf16> to vector<96x3xbf16>
    %cst_14 = arith.constant dense<0.000000e+00> : vector<128x3xf32>
    %33 = tpu.matmul %30, %32, %cst_14 {dimension_numbers = #tpu.dot_dimension_numbers<[1], [0], [0], [1], [0, 0, 1, 1], [], []>} : vector<128x96xbf16>, vector<96x3xbf16>, vector<128x3xf32> -> vector<128x3xf32>
    %34 = arith.addf %24, %33 : vector<128x3xf32>
    %35 = vector.extract_strided_slice %14 {offsets = [0, 2, 0, 0], sizes = [1, 8, 18, 32], strides = [1, 1, 1, 1]} : vector<1x10x18x32xbf16> to vector<1x8x18x32xbf16>
    %36 = vector.extract_strided_slice %35 {offsets = [0, 0, 0, 0], sizes = [1, 8, 16, 32], strides = [1, 1, 1, 1]} : vector<1x8x18x32xbf16> to vector<1x8x16x32xbf16>
    %37 = vector.extract_strided_slice %35 {offsets = [0, 0, 1, 0], sizes = [1, 8, 16, 32], strides = [1, 1, 1, 1]} : vector<1x8x18x32xbf16> to vector<1x8x16x32xbf16>
    %38 = vector.extract_strided_slice %35 {offsets = [0, 0, 2, 0], sizes = [1, 8, 16, 32], strides = [1, 1, 1, 1]} : vector<1x8x18x32xbf16> to vector<1x8x16x32xbf16>
    %39 = tpu.concatenate %36, %37, %38 in 3 : vector<1x8x16x32xbf16>, vector<1x8x16x32xbf16>, vector<1x8x16x32xbf16> -> vector<1x8x16x96xbf16>
    %40 = vector.shape_cast %39 : vector<1x8x16x96xbf16> to vector<128x96xbf16>
    %41 = vector.extract_strided_slice %15 {offsets = [2, 0, 0], sizes = [1, 96, 3], strides = [1, 1, 1]} : vector<3x96x3xbf16> to vector<1x96x3xbf16>
    %42 = vector.shape_cast %41 : vector<1x96x3xbf16> to vector<96x3xbf16>
    %cst_15 = arith.constant dense<0.000000e+00> : vector<128x3xf32>
    %43 = tpu.matmul %40, %42, %cst_15 {dimension_numbers = #tpu.dot_dimension_numbers<[1], [0], [0], [1], [0, 0, 1, 1], [], []>} : vector<128x96xbf16>, vector<96x3xbf16>, vector<128x3xf32> -> vector<128x3xf32>
    %44 = arith.addf %34, %43 : vector<128x3xf32>
    %c0_16 = arith.constant 0 : index
    %c0_17 = arith.constant 0 : index
    %45 = vector.load %arg6[%c0_16, %c0_17] : memref<1x3xf32, #tpu.memory_space<vmem>>, vector<1x3xf32>
    %46 = vector.broadcast %45 : vector<1x3xf32> to vector<128x3xf32>
    %47 = arith.addf %44, %46 : vector<128x3xf32>
    %48 = arith.negf %47 : vector<128x3xf32>
    %49 = math.exp %48 : vector<128x3xf32>
    %cst_18 = arith.constant 1.000000e+00 : f32
    %50 = vector.broadcast %cst_18 : f32 to vector<128x3xf32>
    %51 = arith.addf %50, %49 : vector<128x3xf32>
    %52 = arith.divf %50, %51 : vector<128x3xf32>
    %53 = vector.shape_cast %52 : vector<128x3xf32> to vector<1x8x16x3xf32>
    %c0_19 = arith.constant 0 : index
    %c0_20 = arith.constant 0 : index
    %c0_21 = arith.constant 0 : index
    %c0_22 = arith.constant 0 : index
    %54 = vector.load %arg7[%c0_19, %c0_20, %c0_21, %c0_22] : memref<1x8x16x3xf32, #tpu.memory_space<vmem>>, vector<1x8x16x3xf32>
    tpu.vector_store %arg7[%c0_19, %c0_20, %c0_21, %c0_22], %53 {strides = array<i32>} : memref<1x8x16x3xf32, #tpu.memory_space<vmem>>, vector<1x8x16x3xf32>,
    return
  }
  func.func @transform_0(%arg0: i32, %arg1: i32) -> (i32, i32, i32, i32) {
    %c0_i32 = arith.constant 0 : i32
    %c0_i32_0 = arith.constant 0 : i32
    %c0_i32_1 = arith.constant 0 : i32
    return %arg0, %arg1, %c0_i32, %c0_i32_0 : i32, i32, i32, i32
  }
  func.func @transform_1(%arg0: i32, %arg1: i32) -> (i32, i32, i32, i32) {
    %c1_i32 = arith.constant 1 : i32
    %0 = arith.addi %arg1, %c1_i32 : i32
    %c4_i32 = arith.constant 4 : i32
    %1 = arith.muli %0, %c4_i32 : i32
    %c0_i32 = arith.constant 0 : i32
    %c0_i32_0 = arith.constant 0 : i32
    %c0_i32_1 = arith.constant 0 : i32
    return %arg0, %1, %c0_i32, %c0_i32_0 : i32, i32, i32, i32
  }
  func.func @transform_2(%arg0: i32, %arg1: i32) -> (i32, i32, i32, i32) {
    %c1_i32 = arith.constant 1 : i32
    %0 = arith.addi %arg1, %c1_i32 : i32
    %c4_i32 = arith.constant 4 : i32
    %1 = arith.muli %0, %c4_i32 : i32
    %c1_i32_0 = arith.constant 1 : i32
    %2 = arith.addi %1, %c1_i32_0 : i32
    %c0_i32 = arith.constant 0 : i32
    %c0_i32_1 = arith.constant 0 : i32
    %c0_i32_2 = arith.constant 0 : i32
    return %arg0, %2, %c0_i32, %c0_i32_1 : i32, i32, i32, i32
  }
  func.func @transform_3(%arg0: i32, %arg1: i32) -> (i32, i32, i32) {
    %c0_i32 = arith.constant 0 : i32
    %c0_i32_0 = arith.constant 0 : i32
    %c0_i32_1 = arith.constant 0 : i32
    %c0_i32_2 = arith.constant 0 : i32
    return %c0_i32, %c0_i32_0, %c0_i32_1 : i32, i32, i32
  }
  func.func @transform_4(%arg0: i32, %arg1: i32) -> (i32, i32) {
    %c0_i32 = arith.constant 0 : i32
    %c0_i32_0 = arith.constant 0 : i32
    %c0_i32_1 = arith.constant 0 : i32
    return %c0_i32, %c0_i32_0 : i32, i32
  }
  func.func @transform_5(%arg0: i32, %arg1: i32) -> (i32, i32, i32, i32) {
    %c0_i32 = arith.constant 0 : i32
    %c0_i32_0 = arith.constant 0 : i32
    %c0_i32_1 = arith.constant 0 : i32
    return %arg0, %arg1, %c0_i32, %c0_i32_0 : i32, i32, i32, i32
  }
}

</mosaic_0001>

<bundles_post_ra>
// kernel: ae_network_forward.8
= control target key start
LH: loop header
LB: loop body
LE: loop exit
PB: predicated region body
PF: predicated region fallthrough
CT: control target
= control target key end

     0   :  { %10 = vsyncpa [#allocation3], 0  ;;  %s1491_s18 = smov 0   ;;  %s1493_s19 = smov 0   ;;  %s1834_s0 = inlined_call_operand.vmem [shape: bf16[2,18,18,3], index: 0, kind: input, shape index: {}, may-alias: {0,1,2}]   ;;  %s1835_s1 = inlined_call_operand.vmem [shape: bf16[2,18,18,3], index: 1, kind: input, shape index: {}, may-alias: {0,1,2}]   ;;  %s1836_s2 = inlined_call_operand.vmem [shape: bf16[2,18,18,3], index: 2, kind: input, shape index: {}, may-alias: {0,1,2}]   ;;  %s1837_s3 = inlined_call_operand.vmem [shape: bf16[3,9,32], index: 3, kind: input, shape index: {}]   ;;  %s1838_s4 = inlined_call_operand.hbm [shape: f32[1,32], index: 4, kind: input, shape index: {}]   ;;  %s1839_s5 = inlined_call_operand.vmem [shape: bf16[2,16,16,32], index: 5, kind: output, shape index: {}]  }
   0x1   :  { %s1495_s20 = smov 0   ;;  %s1497_s21 = smov 0  }
   0x2   :  { %s1499_s22 = smov 0  }
   0x3 LB: > { %s1197_s23 = sadd.s32 4294967295, %s1455_s22   ;;  %s25_s24 = sadd.s32 1, %s1447_s20  ;;  %s1455_s22 = sphi %s1499_s22, %s16_s22   ;;  %s1451_s21 = sphi %s1497_s21, %s1844_s21   ;;  %s1447_s20 = sphi %s1495_s20, %s1843_s20   ;;  %s1443_s19 = sphi %s1493_s19, %s1842_s19   ;;  %s1439_s18 = sphi %s1491_s18, %s1841_s18  }
   0x4   : > { %p26_p0 = scmp.ge.s32.totalorder %s25_s24, 2  ;;  %s28_s25 = sadd.s32 1, %s1451_s21 }
   0x5   : > { %p1203_p1 = scmp.ge.s32.totalorder %s1455_s22, 1  ;;  %p197_p2 = scmp.lt.s32.totalorder %s1455_s22, 5 }
   0x6   : > { %s1846_s24 = smov (%p26_p0, %s25_s24), 0  ;;  %s1848_s25 = smov (!%p26_p0, %s28_s25), %s1451_s21 }
   0x7   : > { %p198_p3 = pnand %p1203_p1, %p197_p2  ;;  %p30_p4 = scmp.ge.s32.totalorder %s1848_s25, 2 }
   0x8   : > { %p1336_p5 = scmp.eq.s32.totalorder %s1197_s23, 0  ;;  %s212_s28 = sshll.u32 %s1838_s4, 4  ;;  %s213_s28 = int_to_ptr.hbm [resolvable:$true] %s212_s28 }
   0x9   : > { %p1332_p6 = pneg %p198_p3  ;;  %s1850_s25 = smov (%p30_p4, %s1848_s25), 0 }
   0xa   : > { %s1457_s29 = smov [#allocation2]   ;;  %285 = sbr.rel (%p198_p3) target bundleno = 393 (0x189), region = 40 }
   0xb   : > { %s214_s30 = sshll.u32 %s1457_s29, 4  ;;  %p1333_p7 = pnand %p1336_p5, %p1332_p6  ;;  %s215_s30 = int_to_ptr.vmem [resolvable:$true] %s214_s30 }
   0xd   : > { %1335 = dma.hbm_to_vmem [thread:$0]  (!%p1333_p7), %s213_s28, 16, %s215_s30, [#allocation3]  }
   0xf   : > { %1434 = dma.done.wait (%p1336_p5), [#allocation3], 16  }
  0x10   : > { %1436 = vsyncadd (%p1336_p5), [#allocation3], 4294967280  ;;  %s1527_s6 = sshll.u32 %s1439_s18, 3  ;;  %p358_p8 = scmp.lt.s32.totalorder %s1443_s19, 1  ;;  %vm626_vm0 = vcmask 1046528   ;;  %vm754_vm2 = vcmask 1043456  }
  0x11   : > { %p360_p9 = scmp.lt.s32.totalorder %s1527_s6, 17  ;;  %s1539_s10 = sadd.s32 8, %s1527_s6  ;;  %vm513_vm1 = vsmask.f32 7424  ;;  %vm755_vm3 = vcmask 1044480   ;;  %vm667_vm4 = vcmask 23552  }
  0x12   : > { %s1852_s19 = smov (!%p358_p8, %s1443_s19), 1  ;;  %p377_p10 = scmp.lt.s32.totalorder %s1539_s10, 17  ;;  %vm684_vm5 = vcmask 48128   ;;  %vm737_vm6 = vcmask 72704   ;;  %vm1027_vm7 = vcmask 257024  }
  0x13   : > { %s361_s7 = scalar_select %p360_p9, %s1527_s6, 17 }
  0x14   : > { %s1536_s8 = smul.u32 54, %s1852_s19  ;;  %s1458_s26 = smov 6  }
  0x15   : > { %s1324_s9 = smul.u32 3, %s361_s7  ;;  %s1459_s30 = smov 3  }
  0x16   : > { %s378_s16 = scalar_select %p377_p10, %s1539_s10, 17 }
  0x17   : > { %s364_s11 = sadd.s32 %s1536_s8, %s1324_s9  ;;  %s388_s7 = sadd.s32 1, %s1539_s10 }
  0x18   : > { %s1209_s12 = sshll.u32 %s364_s11, 2  ;;  %s1326_s17 = smul.u32 3, %s378_s16 }
  0x19   : > { %s1546_s15 = scalar_lea.vmem %s1834_s0, %s1209_s12  ;;  %p1587_p11 = scmp.lt.s32.totalorder %s388_s7, 17 }
  0x1a   : > { %v1549_v0 = vld [vmem:[%s1546_s15 + $0x18] sm:$0xff]  ;;  %v421_v1 = vld [vmem:[%s1546_s15 + $0x20] sm:$0x1]  ;;  %v415_v11 = vld [vmem:[%s1546_s15 + $0x8] sm:$0x1]  ;;  %s381_s18 = sadd.s32 %s1326_s17, %s1536_s8  ;;  %p404_p12 = scmp.lt.s32.totalorder %s1527_s6, 15 }
  0x1b   : > { %v1553_v2 = vld [vmem:[%s1546_s15 + $0x54] sm:$0xff]  ;;  %v499_v3 = vunpack.c.l.b16 %v421_v1  ;;  %v436_v4 = vld [vmem:[%s1546_s15 + $0x5c] sm:$0x1]  ;;  %v539_v5 = vshrl.u32 %v1549_v0, 16  ;;  %v541_v6 = vshll.u32 %v1549_v0, 16  ;;  %v633_v9 = vrot.slane %v1549_v0, 1 }
  0x1c   : > { %v504_v7 = vunpack.c.l.b16 %v436_v4  ;;  %v601_v10 = vshll.u32 %v1553_v2, 16  ;;  %v599_v17 = vshrl.u32 %v1553_v2, 16  ;;  %v418_v18 = vld [vmem:[%s1546_s15 + $0x14] sm:$0x1]  ;;  %v497_v19 = vunpack.c.l.b16 %v415_v11  ;;  %s1211_s23 = sshll.u32 %s381_s18, 2  ;;  %v1574_v28 = vld [vmem:[%s1546_s15] sm:$0xff] }
  0x1d   : > { %v507_v8 = vpack.c.b16 %v499_v3, %v499_v3  ;;  %v543_v12 = vrot.slane %v541_v6, 1  ;;  %v648_v25 = vrot.slane %v1553_v2, 1  ;;  %v498_v27 = vunpack.c.l.b16 %v418_v18  ;;  %s383_s29 = scalar_lea.vmem %s1835_s1, %s1211_s23  ;;  %v424_v32 = vld [vmem:[%s1546_s15 + $0x2c] sm:$0x1]  ;;  %v1598_v54 = vld [vmem:[%s1546_s15 + $0x24] sm:$0xff]  ;;  %s1854_s7 = smov (!%p1587_p11, %s388_s7), 17 }
  0x1e   : > { %v512_v13 = vpack.c.b16 %v504_v7, %v504_v7  ;;  %v603_v22 = vrot.slane %v601_v10, 1  ;;  %v505_v29 = vpack.c.b16 %v497_v19, %v497_v19  ;;  %v439_v33 = vld [vmem:[%s383_s29 + $0x8] sm:$0x1]  ;;  %v515_v34 = vshrl.u32 %v1574_v28, 16  ;;  %v1582_v38 = vld [vmem:[%s1546_s15 + $0xc] sm:$0xff]  ;;  %v1585_v44 = vld [vmem:[%s383_s29] sm:$0xff] }
  0x1f   : > { %v634_v14 = vrot.slane %v507_v8, 1  ;;  %v546_v15 = vshll.u32 %v507_v8, 16  ;;  %v544_v16 = vor.u32 %v543_v12, %v539_v5  ;;  %v517_v35 = vshll.u32 %v1574_v28, 16  ;;  %v433_v57 = vld [vmem:[%s1546_s15 + $0x50] sm:$0x1]  ;;  %v1614_v4 = vld [vmem:[%s1546_s15 + $0x48] sm:$0xff] }
  0x20   : > { %v606_v23 = vshll.u32 %v512_v13, 16  ;;  %v649_v26 = vrot.slane %v512_v13, 1  ;;  %v604_v30 = vor.u32 %v603_v22, %v599_v17  ;;  %v522_v36 = vshll.u32 %v505_v29, 16  ;;  %v427_v61 = vld [vmem:[%s1546_s15 + $0x38] sm:$0x1]  ;;  %v1621_v12 = vld [vmem:[%s1546_s15 + $0x30] sm:$0xff] }
  0x21   : > { %v635_v20 = vsel %vm626_vm0, %v633_v9, %v634_v14  ;;  %v548_v21 = vrot.slane %v546_v15, 1  ;;  %v506_v39 = vpack.c.b16 %v498_v27, %v498_v27  ;;  %v519_v40 = vrot.slane %v517_v35, 1  ;;  %s1327_s10 = smul.u32 3, %s1854_s7  ;;  %s1856_s6 = smov (!%p404_p12, %s1527_s6), 15 }
  0x22   : > { %655 = vrot.lane.b32.xlu1 %v635_v20, %s1458_s26  ;;  %v608_v31 = vrot.slane %v606_v23, 1  ;;  %v650_v37 = vsel %vm626_vm0, %v648_v25, %v649_v26  ;;  %v524_v41 = vrot.slane %v522_v36, 1  ;;  %v500_v43 = vunpack.c.l.b16 %v424_v32  ;;  %v430_v20 = vld [vmem:[%s1546_s15 + $0x44] sm:$0x1]  ;;  %v1636_v32 = vld [vmem:[%s1546_s15 + $0x3c] sm:$0xff] }
  0x23   : > { %v549_v24 = vsel %vm513_vm1, %v544_v16, %v548_v21  ;;  %v707_v45 = vunpack.c.l.b16 %v439_v33  ;;  %v520_v46 = vor.u32 %v519_v40, %v515_v34  ;;  %v527_v47 = vshrl.u32 %v1582_v38, 16  ;;  %s395_s11 = sadd.s32 %s1327_s10, %s1536_s8  ;;  %s1215_s10 = sshll.u32 %s1856_s6, 1 }
  0x24   : > { %614 = vrot.lane.b32.xlu0 %v549_v24, %s1459_s30  ;;  %v609_v42 = vsel %vm513_vm1, %v604_v30, %v608_v31  ;;  %v529_v48 = vshll.u32 %v1582_v38, 16  ;;  %v630_v49 = vrot.slane %v1582_v38, 1  ;;  %v631_v50 = vrot.slane %v506_v39, 1  ;;  %s1213_s12 = sshll.u32 %s395_s11, 2  ;;  %s1216_s11 = sshll.u32 %s1852_s19, 5 }
  0x25   : > { %v534_v51 = vshll.u32 %v506_v39, 16  ;;  %v627_v52 = vrot.slane %v1574_v28, 1  ;;  %v628_v53 = vrot.slane %v505_v29, 1  ;;  %v525_v55 = vsel %vm513_vm1, %v520_v46, %v524_v41  ;;  %s397_s14 = scalar_lea.vmem %s1836_s2, %s1213_s12  ;;  %s408_s12 = sadd.s32 %s1216_s11, %s1215_s10 }
  0x26   : > { %v531_v56 = vrot.slane %v529_v48, 1  ;;  %v508_v58 = vpack.c.b16 %v500_v43, %v500_v43  ;;  %v1602_v59 = vpack.c.b16 %v707_v45, %v707_v45  ;;  %v712_v60 = vshll.u32 %v1585_v44, 16  ;;  %610 = vrot.lane.b32.xlu2 %v525_v55, %s1459_s30  ;;  %s1217_s8 = sshll.u32 %s408_s12, 2 }
  0x27   : > { %v536_v63 = vrot.slane %v534_v51, 1  ;;  %v553_v1 = vshll.u32 %v1598_v54, 16  ;;  %v632_v3 = vsel %vm626_vm0, %v630_v49, %v631_v50  ;;  %v503_v5 = vunpack.c.l.b16 %v433_v57  ;;  %v442_v49 = vld [vmem:[%s397_s14 + $0x8] sm:$0x1]  ;;  %s1762_s15 = scalar_lea.vmem %s1839_s5, %s1217_s8 }
  0x28   : > { %v532_v62 = vor.u32 %v531_v56, %v527_v47  ;;  %v629_v6 = vsel %vm626_vm0, %v627_v52, %v628_v53  ;;  %v636_v7 = vrot.slane %v1598_v54, 1  ;;  %v710_v8 = vshrl.u32 %v1585_v44, 16  ;;  %v1653_v56 = vld [vmem:[%s397_s14] sm:$0xff] }
  0x29   : > { %v637_v9 = vrot.slane %v508_v58, 1  ;;  %v714_v10 = vrot.slane %v712_v60, 1  ;;  %v717_v11 = vshll.u32 %v1602_v59, 16  ;;  %v501_v13 = vunpack.c.l.b16 %v427_v61 }
  0x2a   : > { %665 = vrot.lane.b32.xlu1 %v650_v37, %s1458_s26  ;;  %v537_v14 = vsel %vm513_vm1, %v532_v62, %v536_v63  ;;  %v551_v15 = vshrl.u32 %v1598_v54, 16  ;;  %v555_v16 = vrot.slane %v553_v1, 1  ;;  %v558_v17 = vshll.u32 %v508_v58, 16 }
  0x2b   : > { %v511_v18 = vpack.c.b16 %v503_v5, %v503_v5  ;;  %v589_v19 = vshll.u32 %v1614_v4, 16  ;;  %v715_v21 = vor.u32 %v714_v10, %v710_v8  ;;  %v719_v22 = vrot.slane %v717_v11, 1 }
  0x2c   : > { %624 = vrot.lane.b32.xlu0 %v609_v42, %s1459_s30  ;;  %v509_v23 = vpack.c.b16 %v501_v13, %v501_v13  ;;  %v565_v24 = vshll.u32 %v1621_v12, 16  ;;  %v638_v25 = vsel %vm626_vm0, %v636_v7, %v637_v9  ;;  %v556_v26 = vor.u32 %v555_v16, %v551_v15 }
  0x2d   : > { %v560_v27 = vrot.slane %v558_v17, 1  ;;  %v587_v29 = vshrl.u32 %v1614_v4, 16  ;;  %v591_v30 = vrot.slane %v589_v19, 1  ;;  %v594_v31 = vshll.u32 %v511_v18, 16 }
  0x2e   : > { %612 = vrot.lane.b32.xlu2 %v537_v14, %s1459_s30  ;;  %v502_v33 = vunpack.c.l.b16 %v430_v20  ;;  %v720_v34 = vsel %vm513_vm1, %v715_v21, %v719_v22  ;;  %v563_v35 = vshrl.u32 %v1621_v12, 16  ;;  %v567_v36 = vrot.slane %v565_v24, 1  ;;  %v1284_v22 = vld [vmem:[%s1837_s3 + $0x10] sm:$0xf] }
  0x2f   : > { %v570_v37 = vshll.u32 %v509_v23, 16  ;;  %v561_v39 = vsel %vm513_vm1, %v556_v26, %v560_v27  ;;  %v592_v40 = vor.u32 %v591_v30, %v587_v29  ;;  %v596_v41 = vrot.slane %v594_v31, 1  ;;  %v1256_v30 = vld [vmem:[%s1837_s3 + $0x8] sm:$0xf]  ;;  %v1319_v31 = vld [vmem:[%s1837_s3 + $0x8] sm:$0x10] }
  0x30   : > { %v510_v42 = vpack.c.b16 %v502_v33, %v502_v33  ;;  %v577_v43 = vshll.u32 %v1636_v32, 16  ;;  %v568_v45 = vor.u32 %v567_v36, %v563_v35  ;;  %v723_v47 = vrot.slane %v1585_v44, 1  ;;  %v1268_v35 = vld [vmem:[%s1837_s3] sm:$0xf]  ;;  %v1318_v36 = vld [vmem:[%s1837_s3] sm:$0x10] }
  0x31   : > { %v572_v46 = vrot.slane %v570_v37, 1  ;;  %v724_v48 = vrot.slane %v1602_v59, 1  ;;  %v597_v50 = vsel %vm513_vm1, %v592_v40, %v596_v41  ;;  %v575_v51 = vshrl.u32 %v1636_v32, 16 }
  0x32   : > { %653 = vrot.lane.b32.xlu1 %v632_v3, %s1458_s26  ;;  %v579_v52 = vrot.slane %v577_v43, 1  ;;  %v582_v53 = vshll.u32 %v510_v42, 16  ;;  %v875_v57 = vunpack.c.l.b16 %v442_v49  ;;  %v645_v59 = vrot.slane %v1614_v4, 1 }
  0x33   : > { %v573_v55 = vsel %vm513_vm1, %v568_v45, %v572_v46  ;;  %v725_v58 = vsel %vm626_vm0, %v723_v47, %v724_v48  ;;  %v646_v62 = vrot.slane %v511_v18, 1  ;;  %v880_v1 = vshll.u32 %v1653_v56, 16 }
  0x34   : > { %651 = vrot.lane.b32.xlu0 %v629_v6, %s1458_s26  ;;  %v580_v60 = vor.u32 %v579_v52, %v575_v51  ;;  %v584_v61 = vrot.slane %v582_v53, 1  ;;  %v876_v63 = vpack.c.b16 %v875_v57, %v875_v57  ;;  %v639_v3 = vrot.slane %v1621_v12, 1 }
  0x35   : > { %v640_v5 = vrot.slane %v509_v23, 1  ;;  %v647_v7 = vsel %vm626_vm0, %v645_v59, %v646_v62  ;;  %v878_v8 = vshrl.u32 %v1653_v56, 16  ;;  %v882_v9 = vrot.slane %v880_v1, 1  ;;  %v1320_v23 = vld [vmem:[%s1837_s3 + $0x10] sm:$0x10] }
  0x36   : > { %616 = vrot.lane.b32.xlu2 %v561_v39, %s1459_s30  ;;  %v585_v6 = vsel %vm513_vm1, %v580_v60, %v584_v61  ;;  %v885_v10 = vshll.u32 %v876_v63, 16  ;;  %v891_v13 = vrot.slane %v1653_v56, 1  ;;  %v892_v14 = vrot.slane %v876_v63, 1 }
  0x37   : > { %v641_v11 = vsel %vm626_vm0, %v639_v3, %v640_v5  ;;  %v883_v15 = vor.u32 %v882_v9, %v878_v8  ;;  %v642_v17 = vrot.slane %v1636_v32, 1  ;;  %v643_v18 = vrot.slane %v510_v42, 1 }
  0x38   : > { %v887_v16 = vrot.slane %v885_v10, 1  ;;  %v893_v19 = vsel %vm626_vm0, %v891_v13, %v892_v14  ;;  %v1460_v24 = vmov 65535   ;;  %v1285_v26 = vor.u32 %v1320_v23, %v1284_v22 }
  0x39   : > { %v644_v21 = vsel %vm626_vm0, %v642_v17, %v643_v18  ;;  %v1257_v33 = vor.u32 %v1319_v31, %v1256_v30  ;;  %v1269_v37 = vor.u32 %v1318_v36, %v1268_v35  ;;  %v1754_v18 = vld [vmem:[#allocation2] ss:$0 sm:$0xff] }
  0x3a   : > { %657 = vrot.lane.b32.xlu1 %v638_v25, %s1458_s26  ;;  %v888_v20 = vsel %vm513_vm1, %v883_v15, %v887_v16  ;;  %v756_v25 = vsel %vm754_vm2, 4294967295, %v1460_v24 }
  0x3b   : > { %v757_v27 = vsel %vm755_vm3, %v756_v25, 0 }
  0x3c   : > { %721 = vrot.lane.b32.xlu0 %v720_v34, %s1459_s30  ;;  %v908_v29 = vand.u32 %v1285_v26, %v757_v27  ;;  %v759_v34 = vand.u32 %v1257_v33, %v757_v27  ;;  %v818_v39 = vand.u32 %v1269_v37, %v757_v27 }
  0x3e   : > { %726 = vrot.lane.b32.xlu2 %v725_v58, %s1458_s26  ;;  %917 = vmatpush.bf16.msra.mxu2 %v908_v29 }
  0x3f   : > { %1321 = vmatpush.bf16.msra.mxu3 %v759_v34  ;;  %768 = vmatpush.bf16.msra.mxu0 %v759_v34 }
  0x40   : > { %827 = vmatpush.bf16.msra.mxu1 %v818_v39 }
  0x42   : > { %622 = vrot.lane.b32.xlu1 %v597_v50, %s1459_s30 }
  0x43   : > { %1322 = vmatpush.bf16.msrb.mxu3 %v818_v39 }
  0x44   : > { %618 = vrot.lane.b32.xlu0 %v573_v55, %s1459_s30 }
  0x46   : > { %659 = vrot.lane.b32.xlu2 %v641_v11, %s1458_s26 }
  0x4a   : > { %620 = vrot.lane.b32.xlu1 %v585_v6, %s1459_s30 }
  0x4c   : > { %663 = vrot.lane.b32.xlu0 %v647_v7, %s1458_s26 }
  0x4e   : > { %661 = vrot.lane.b32.xlu2 %v644_v21, %s1458_s26 }
  0x52   : > { %894 = vrot.lane.b32.xlu1 %v893_v19, %s1458_s26 }
  0x54   : > { %889 = vrot.lane.b32.xlu0 %v888_v20, %s1459_s30 }
  0x80   : > { %v611_v40 = vpop.permute.xlu2 %610 }
  0x81   : > { %v669_v55 = vsel %vm667_vm4, %v1574_v28, %v611_v40 }
  0x88   : > { %v613_v46 = vpop.permute.xlu2 %612 }
  0x89   : > { %v671_v51 = vsel %vm667_vm4, %v1582_v38, %v613_v46 }
  0x90   : > { %v617_v52 = vpop.permute.xlu2 %616 }
  0x91   : > { %v675_v58 = vsel %vm667_vm4, %v1598_v54, %v617_v52 }
  0x94   : > { %v656_v41 = vpop.permute.xlu1 %655 }
  0x96   : > { %v615_v42 = vpop.permute.xlu0 %614 }
  0x97   : > { %v673_v43 = vsel %vm667_vm4, %v1549_v0, %v615_v42 }
  0x98   : > { %v690_v45 = vsel %vm684_vm5, %v673_v43, %v656_v41  ;;  %v727_v61 = vpop.permute.xlu2 %726 }
  0x99   : > { %1286 = vmatmul.msk.bf16.vlgmr.msra.gmra.mxu2 %vm737_vm6, %v690_v45 }
  0x9c   : > { %v666_v47 = vpop.permute.xlu1 %665 }
  0x9e   : > { %v625_v48 = vpop.permute.xlu0 %624 }
  0x9f   : > { %v683_v49 = vsel %vm667_vm4, %v1553_v2, %v625_v48 }
  0xa0   : > { %v700_v50 = vsel %vm684_vm5, %v683_v49, %v666_v47  ;;  %v660_v1 = vpop.permute.xlu2 %659 }
  0xa1   : > { %1264 = vmatmul.msk.bf16.vlgmr.msra.gmra.mxu3 %vm737_vm6, %v700_v50 }
  0xa2   : > { %1323 = vmatpush.bf16.msra.mxu3 %v908_v29 }
  0xa4   : > { %v654_v0 = vpop.permute.xlu1 %653 }
  0xa5   : > { %v688_v53 = vsel %vm684_vm5, %v671_v51, %v654_v0 }
  0xa6   : > { %v652_v57 = vpop.permute.xlu0 %651  ;;  %1258 = vmatmul.msk.bf16.vlgmr.msra.gmra.mxu0 %vm737_vm6, %v688_v53 }
  0xa7   : > { %v686_v2 = vsel %vm684_vm5, %v669_v55, %v652_v57 }
  0xa8   : > { %1270 = vmatmul.msk.bf16.vlgmr.msra.gmra.mxu1 %vm737_vm6, %v686_v2  ;;  %v662_v9 = vpop.permute.xlu2 %661 }
  0xac   : > { %v658_v60 = vpop.permute.xlu1 %657 }
  0xad   : > { %v692_v38 = vsel %vm684_vm5, %v675_v58, %v658_v60 }
  0xae   : > { %v722_v59 = vpop.permute.xlu0 %721  ;;  %1287 = vmatmul.msk.bf16.gmra.mxu2 %vm737_vm6, %v692_v38 }
  0xaf   : > { %v729_v28 = vsel %vm667_vm4, %v1585_v44, %v722_v59 }
  0xb0   : > { %v731_v62 = vsel %vm684_vm5, %v729_v28, %v727_v61 }
  0xb1   : > { %1265 = vmatmul.msk.bf16.gmra.mxu3 %vm737_vm6, %v731_v62 }
  0xb4   : > { %v623_v3 = vpop.permute.xlu1 %622 }
  0xb5   : > { %v681_v6 = vsel %vm667_vm4, %v1614_v4, %v623_v3 }
  0xb6   : > { %1259 = vmatmul.msk.bf16.gmra.mxu0 %vm737_vm6, %v690_v45  ;;  %v619_v63 = vpop.permute.xlu0 %618 }
  0xb7   : > { %v677_v54 = vsel %vm667_vm4, %v1621_v12, %v619_v63 }
  0xb8   : > { %1271 = vmatmul.msk.bf16.gmra.mxu1 %vm737_vm6, %v688_v53  ;;  %v694_v5 = vsel %vm684_vm5, %v677_v54, %v660_v1 }
  0xbc   : > { %v621_v8 = vpop.permute.xlu1 %620 }
  0xbd   : > { %v679_v12 = vsel %vm667_vm4, %v1636_v32, %v621_v8 }
  0xbe   : > { %1288 = vmatmul.msk.bf16.gmra.mxu2 %vm737_vm6, %v694_v5  ;;  %v664_v44 = vpop.permute.xlu0 %663  ;;  %v696_v10 = vsel %vm684_vm5, %v679_v12, %v662_v9 }
  0xbf   : > { %v698_v7 = vsel %vm684_vm5, %v681_v6, %v664_v44 }
  0xc1   : > { %1276 = vmatmul.msk.bf16.vlgmr.msrb.gmra.mxu3 %vm737_vm6, %v698_v7 }
  0xc4   : > { %v895_v11 = vpop.permute.xlu1 %894 }
  0xc6   : > { %1260 = vmatmul.msk.bf16.gmra.mxu0 %vm737_vm6, %v692_v38  ;;  %v890_v4 = vpop.permute.xlu0 %889 }
  0xc7   : > { %v897_v32 = vsel %vm667_vm4, %v1653_v56, %v890_v4 }
  0xc8   : > { %1272 = vmatmul.msk.bf16.gmra.mxu1 %vm737_vm6, %v690_v45  ;;  %v899_v13 = vsel %vm684_vm5, %v897_v32, %v895_v11 }
  0xce   : > { %1289 = vmatmul.msk.bf16.gmra.mxu2 %vm737_vm6, %v696_v10 }
  0xd1   : > { %1277 = vmatmul.msk.bf16.gmra.mxu3 %vm737_vm6, %v700_v50 }
  0xd6   : > { %1261 = vmatmul.msk.bf16.gmra.mxu0 %vm737_vm6, %v694_v5 }
  0xd8   : > { %1273 = vmatmul.msk.bf16.gmra.mxu1 %vm737_vm6, %v692_v38 }
  0xde   : > { %1290 = vmatmul.msk.bf16.gmra.mxu2 %vm737_vm6, %v698_v7 }
  0xe1   : > { %1292 = vmatmul.msk.bf16.vlgmr.msra.gmra.mxu3 %vm737_vm6, %v731_v62 }
  0xe6   : > { %1262 = vmatmul.msk.bf16.gmra.mxu0 %vm737_vm6, %v696_v10 }
  0xe8   : > { %1274 = vmatmul.msk.bf16.gmra.mxu1 %vm737_vm6, %v694_v5 }
  0xee   : > { %1291 = vmatmul.msk.bf16.gmra.mxu2 %vm737_vm6, %v700_v50 }
  0xf1   : > { %1293 = vmatmul.msk.bf16.gmra.mxu3 %vm737_vm6, %v899_v13 }
  0xf6   : > { %1263 = vmatmul.msk.bf16.gmra.mxu0 %vm737_vm6, %v698_v7 }
  0xf8   : > { %1275 = vmatmul.msk.bf16.gmra.mxu1 %vm737_vm6, %v696_v10 }
 0x11c   : > { %v919_v14 = vpop.f32.mrf.mxu2 }
 0x123   : > { %v770_v15 = vpop.f32.mrf.mxu0 }
 0x124   : > { %v1751_v16 = vpop.f32.mrf.mxu3  ;;  %v921_v20 = vpop.f32.mrf.mxu2 }
 0x125   : > { %v829_v56 = vpop.f32.mrf.mxu1 }
 0x126   : > { %v830_v17 = vadd.f32 %v829_v56, %v770_v15 }
 0x128   : > { %v959_v19 = vadd.f32 %v919_v14, %v830_v17 }
 0x12a   : > { %v979_v21 = vadd.f32 %v1754_v18, %v959_v19 }
 0x12b   : > { %v772_v22 = vpop.f32.mrf.mxu0 }
 0x12c   : > { %v995_v23 = vmax.f32 %v979_v21, 0.0  ;;  %v1757_v24 = vpop.f32.mrf.mxu3 }
 0x12d   : > { %v831_v25 = vpop.f32.mrf.mxu1 }
 0x12e   : > { %v1011_v26 = vpack.c.bf16 %v995_v23, %v995_v23  ;;  %v832_v27 = vadd.f32 %v831_v25, %v772_v22 }
 0x130   : > { %1028 = vst.msk [vmem:[%s1762_s15] sm:$0xf] %vm1027_vm7, %v1011_v26  ;;  %v960_v29 = vadd.f32 %v921_v20, %v832_v27 }
 0x131   : > { %v924_v30 = vpop.f32.mrf.mxu2 }
 0x132   : > { %v980_v31 = vadd.f32 %v1754_v18, %v960_v29 }
 0x133   : > { %v775_v33 = vpop.f32.mrf.mxu0 }
 0x134   : > { %v996_v34 = vmax.f32 %v980_v31, 0.0  ;;  %v1767_v35 = vpop.f32.mrf.mxu3 }
 0x135   : > { %v834_v36 = vpop.f32.mrf.mxu1 }
 0x136   : > { %v1012_v37 = vpack.c.bf16 %v996_v34, %v996_v34  ;;  %v835_v39 = vadd.f32 %v834_v36, %v775_v33 }
 0x138   : > { %1029 = vst.msk [vmem:[%s1762_s15 + $0x4] sm:$0xf] %vm1027_vm7, %v1012_v37  ;;  %v961_v40 = vadd.f32 %v924_v30, %v835_v39 }
 0x139   : > { %v926_v41 = vpop.f32.mrf.mxu2 }
 0x13a   : > { %v981_v42 = vadd.f32 %v1754_v18, %v961_v40 }
 0x13b   : > { %v777_v43 = vpop.f32.mrf.mxu0 }
 0x13c   : > { %v997_v45 = vmax.f32 %v981_v42, 0.0  ;;  %v1772_v46 = vpop.f32.mrf.mxu3 }
 0x13d   : > { %v836_v47 = vpop.f32.mrf.mxu1 }
 0x13e   : > { %v1013_v48 = vpack.c.bf16 %v997_v45, %v997_v45  ;;  %v837_v49 = vadd.f32 %v836_v47, %v777_v43 }
 0x140   : > { %1030 = vst.msk [vmem:[%s1762_s15 + $0x8] sm:$0xf] %vm1027_vm7, %v1013_v48  ;;  %v962_v50 = vadd.f32 %v926_v41, %v837_v49 }
 0x141   : > { %v929_v51 = vpop.f32.mrf.mxu2 }
 0x142   : > { %v982_v52 = vadd.f32 %v1754_v18, %v962_v50 }
 0x143   : > { %v780_v0 = vpop.f32.mrf.mxu0 }
 0x144   : > { %v998_v53 = vmax.f32 %v982_v52, 0.0  ;;  %v859_v55 = vpop.f32.mrf.mxu3 }
 0x145   : > { %v839_v57 = vpop.f32.mrf.mxu1  ;;  %v860_v23 = vadd.f32 %v859_v55, %v1751_v16 }
 0x146   : > { %v1014_v2 = vpack.c.bf16 %v998_v53, %v998_v53  ;;  %v840_v58 = vadd.f32 %v839_v57, %v780_v0 }
 0x148   : > { %1031 = vst.msk [vmem:[%s1762_s15 + $0xc] sm:$0xf] %vm1027_vm7, %v1014_v2  ;;  %v963_v60 = vadd.f32 %v929_v51, %v840_v58 }
 0x149   : > { %v931_v38 = vpop.f32.mrf.mxu2 }
 0x14a   : > { %v983_v61 = vadd.f32 %v1754_v18, %v963_v60 }
 0x14b   : > { %v782_v59 = vpop.f32.mrf.mxu0 }
 0x14c   : > { %v999_v28 = vmax.f32 %v983_v61, 0.0  ;;  %v861_v62 = vpop.f32.mrf.mxu3 }
 0x14d   : > { %v841_v63 = vpop.f32.mrf.mxu1  ;;  %v862_v40 = vadd.f32 %v861_v62, %v1757_v24 }
 0x14e   : > { %v1015_v54 = vpack.c.bf16 %v999_v28, %v999_v28  ;;  %v842_v1 = vadd.f32 %v841_v63, %v782_v59 }
 0x150   : > { %1032 = vst.msk [vmem:[%s1762_s15 + $0x10] sm:$0xf] %vm1027_vm7, %v1015_v54  ;;  %v964_v3 = vadd.f32 %v931_v38, %v842_v1 }
 0x151   : > { %v934_v5 = vpop.f32.mrf.mxu2 }
 0x152   : > { %v984_v6 = vadd.f32 %v1754_v18, %v964_v3 }
 0x153   : > { %v785_v44 = vpop.f32.mrf.mxu0 }
 0x154   : > { %v1000_v7 = vmax.f32 %v984_v6, 0.0  ;;  %v864_v8 = vpop.f32.mrf.mxu3 }
 0x155   : > { %v844_v12 = vpop.f32.mrf.mxu1  ;;  %v865_v53 = vadd.f32 %v864_v8, %v1767_v35 }
 0x156   : > { %v1016_v9 = vpack.c.bf16 %v1000_v7, %v1000_v7  ;;  %v845_v10 = vadd.f32 %v844_v12, %v785_v44 }
 0x158   : > { %1033 = vst.msk [vmem:[%s1762_s15 + $0x14] sm:$0xf] %vm1027_vm7, %v1016_v9  ;;  %v965_v4 = vadd.f32 %v934_v5, %v845_v10 }
 0x159   : > { %v936_v32 = vpop.f32.mrf.mxu2 }
 0x15a   : > { %v985_v11 = vadd.f32 %v1754_v18, %v965_v4 }
 0x15b   : > { %v787_v13 = vpop.f32.mrf.mxu0 }
 0x15c   : > { %v1001_v14 = vmax.f32 %v985_v11, 0.0  ;;  %v866_v15 = vpop.f32.mrf.mxu3 }
 0x15d   : > { %v846_v56 = vpop.f32.mrf.mxu1  ;;  %v867_v1 = vadd.f32 %v866_v15, %v1772_v46 }
 0x15e   : > { %v1017_v17 = vpack.c.bf16 %v1001_v14, %v1001_v14  ;;  %v847_v19 = vadd.f32 %v846_v56, %v787_v13 }
 0x160   : > { %1034 = vst.msk [vmem:[%s1762_s15 + $0x18] sm:$0xf] %vm1027_vm7, %v1017_v17  ;;  %v966_v20 = vadd.f32 %v936_v32, %v847_v19 }
 0x161   : > { %v939_v21 = vpop.f32.mrf.mxu2 }
 0x162   : > { %v986_v22 = vadd.f32 %v1754_v18, %v966_v20 }
 0x163   : > { %v790_v25 = vpop.f32.mrf.mxu0 }
 0x164   : > { %v1002_v26 = vmax.f32 %v986_v22, 0.0  ;;  %v949_v27 = vpop.f32.mrf.mxu3 }
 0x165   : > { %v971_v29 = vadd.f32 %v949_v27, %v860_v23  ;;  %v849_v30 = vpop.f32.mrf.mxu1 }
 0x166   : > { %v1018_v31 = vpack.c.bf16 %v1002_v26, %v1002_v26  ;;  %v850_v33 = vadd.f32 %v849_v30, %v790_v25 }
 0x167   : > { %v991_v34 = vadd.f32 %v1754_v18, %v971_v29 }
 0x168   : > { %1035 = vst.msk [vmem:[%s1762_s15 + $0x1c] sm:$0xf] %vm1027_vm7, %v1018_v31  ;;  %v967_v36 = vadd.f32 %v939_v21, %v850_v33 }
 0x169   : > { %v1007_v37 = vmax.f32 %v991_v34, 0.0  ;;  %v941_v41 = vpop.f32.mrf.mxu2 }
 0x16a   : > { %v987_v39 = vadd.f32 %v1754_v18, %v967_v36 }
 0x16b   : > { %v1023_v16 = vpack.c.bf16 %v1007_v37, %v1007_v37  ;;  %v792_v42 = vpop.f32.mrf.mxu0 }
 0x16c   : > { %v1003_v43 = vmax.f32 %v987_v39, 0.0  ;;  %v951_v45 = vpop.f32.mrf.mxu3 }
 0x16d   : > { %1040 = vst.msk [vmem:[%s1762_s15 + $0x30] sm:$0xf] %vm1027_vm7, %v1023_v16  ;;  %v972_v47 = vadd.f32 %v951_v45, %v862_v40  ;;  %v851_v48 = vpop.f32.mrf.mxu1 }
 0x16e   : > { %v1019_v49 = vpack.c.bf16 %v1003_v43, %v1003_v43  ;;  %v852_v50 = vadd.f32 %v851_v48, %v792_v42 }
 0x16f   : > { %v992_v51 = vadd.f32 %v1754_v18, %v972_v47 }
 0x170   : > { %1036 = vst.msk [vmem:[%s1762_s15 + $0x20] sm:$0xf] %vm1027_vm7, %v1019_v49  ;;  %v968_v52 = vadd.f32 %v941_v41, %v852_v50 }
 0x171   : > { %v1008_v0 = vmax.f32 %v992_v51, 0.0  ;;  %v944_v60 = vpop.f32.mrf.mxu2 }
 0x172   : > { %v988_v24 = vadd.f32 %v1754_v18, %v968_v52 }
 0x173   : > { %v1024_v55 = vpack.c.bf16 %v1008_v0, %v1008_v0  ;;  %v795_v57 = vpop.f32.mrf.mxu0 }
 0x174   : > { %v1004_v2 = vmax.f32 %v988_v24, 0.0  ;;  %v954_v58 = vpop.f32.mrf.mxu3 }
 0x175   : > { %1041 = vst.msk [vmem:[%s1762_s15 + $0x34] sm:$0xf] %vm1027_vm7, %v1024_v55  ;;  %v973_v38 = vadd.f32 %v954_v58, %v865_v53  ;;  %v854_v61 = vpop.f32.mrf.mxu1 }
 0x176   : > { %v1020_v59 = vpack.c.bf16 %v1004_v2, %v1004_v2  ;;  %v855_v28 = vadd.f32 %v854_v61, %v795_v57 }
 0x177   : > { %v993_v62 = vadd.f32 %v1754_v18, %v973_v38 }
 0x178   : > { %1037 = vst.msk [vmem:[%s1762_s15 + $0x24] sm:$0xf] %vm1027_vm7, %v1020_v59  ;;  %v969_v63 = vadd.f32 %v944_v60, %v855_v28 }
 0x179   : > { %v1009_v54 = vmax.f32 %v993_v62, 0.0  ;;  %v946_v10 = vpop.f32.mrf.mxu2 }
 0x17a   : > { %v989_v35 = vadd.f32 %v1754_v18, %v969_v63 }
 0x17b   : > { %v1025_v3 = vpack.c.bf16 %v1009_v54, %v1009_v54  ;;  %v797_v44 = vpop.f32.mrf.mxu0 }
 0x17c   : > { %v1005_v5 = vmax.f32 %v989_v35, 0.0  ;;  %v956_v6 = vpop.f32.mrf.mxu3 }
 0x17d   : > { %1042 = vst.msk [vmem:[%s1762_s15 + $0x38] sm:$0xf] %vm1027_vm7, %v1025_v3  ;;  %v974_v7 = vadd.f32 %v956_v6, %v867_v1  ;;  %v856_v8 = vpop.f32.mrf.mxu1 }
 0x17e   : > { %v1021_v12 = vpack.c.bf16 %v1005_v5, %v1005_v5  ;;  %v857_v9 = vadd.f32 %v856_v8, %v797_v44 }
 0x17f   : > { %v994_v4 = vadd.f32 %v1754_v18, %v974_v7 }
 0x180   : > { %1038 = vst.msk [vmem:[%s1762_s15 + $0x28] sm:$0xf] %vm1027_vm7, %v1021_v12  ;;  %v970_v32 = vadd.f32 %v946_v10, %v857_v9 }
 0x181   : > { %v1010_v11 = vmax.f32 %v994_v4, 0.0 }
 0x182   : > { %v990_v46 = vadd.f32 %v1754_v18, %v970_v32 }
 0x183   : > { %v1026_v13 = vpack.c.bf16 %v1010_v11, %v1010_v11 }
 0x184   : > { %v1006_v14 = vmax.f32 %v990_v46, 0.0 }
 0x185   : > { %1043 = vst.msk [vmem:[%s1762_s15 + $0x3c] sm:$0xf] %vm1027_vm7, %v1026_v13 }
 0x186   : > { %v1022_v15 = vpack.c.bf16 %v1006_v14, %v1006_v14 }
 0x188   : > { %1039 = vst.msk [vmem:[%s1762_s15 + $0x2c] sm:$0xf] %vm1027_vm7, %v1022_v15 }
 0x189 PF: > { %s16_s22 = sadd.s32 1, %s1455_s22   ;;  %s1841_s18 = smov %s1447_s20 }
 0x18a   : > { %p13_p13 = scmp.ge.s32.totalorder %s16_s22, 6   ;;  %s1842_s19 = smov %s1451_s21 }
 0x18b   : > { %s1843_s20 = smov %s1846_s24  ;;  %s1844_s21 = smov %s1850_s25 }
 0x18c   :  { %15 = sbr.rel (!%p13_p13) target bundleno = 3 (0x3), region = 81 }
 0x191   :  { %1076 = vsyncpa [#allocation3], 1 }
 0x192   :  { %1078 = vsyncpa [#allocation3 + $0x1], 1 }

// kernel: ae_network_forward.9
= control target key start
LH: loop header
LB: loop body
LE: loop exit
PB: predicated region body
PF: predicated region fallthrough
CT: control target
= control target key end

     0   :  { %10 = vsyncpa [#allocation3], 0  ;;  %s1714_s0 = inlined_call_operand.vmem [shape: bf16[2,10,10,32], index: 0, kind: input, shape index: {}, may-alias: {0,1,2}]   ;;  %s1715_s1 = inlined_call_operand.vmem [shape: bf16[2,10,10,32], index: 1, kind: input, shape index: {}, may-alias: {0,1,2}]   ;;  %s1716_s2 = inlined_call_operand.vmem [shape: bf16[2,10,10,32], index: 2, kind: input, shape index: {}, may-alias: {0,1,2}]   ;;  %s1717_s3 = inlined_call_operand.hbm [shape: bf16[3,96,64], index: 3, kind: input, shape index: {}]   ;;  %s1718_s4 = inlined_call_operand.hbm [shape: f32[1,64], index: 4, kind: input, shape index: {}]   ;;  %s1719_s5 = inlined_call_operand.vmem [shape: bf16[2,8,8,64], index: 5, kind: output, shape index: {}]  }
   0x1   :  { %11 = vsyncpa [#allocation5], 0  ;;  %s1517_s18 = smov 0   ;;  %s1519_s19 = smov 0  }
   0x2   :  { %s1521_s20 = smov 0  }
   0x3 LB: > { %s1157_s21 = sadd.s32 4294967295, %s1479_s20   ;;  %s29_s22 = sadd.s32 1, %s1475_s19  ;;  %s1479_s20 = sphi %s1521_s20, %s17_s20   ;;  %s1475_s19 = sphi %s1519_s19, %s1723_s19   ;;  %s1471_s18 = sphi %s1517_s18, %s1722_s18  }
   0x4   : > { %p31_p0 = scmp.ge.s32.totalorder %s29_s22, 2  ;;  %p1159_p1 = scmp.ge.s32.totalorder %s1479_s20, 1 }
   0x5   : > { %p198_p2 = scmp.lt.s32.totalorder %s1479_s20, 3  ;;  %p1542_p4 = scmp.eq.s32.totalorder %s1157_s21, 0 }
   0x6   : > { %s1725_s22 = smov (%p31_p0, %s29_s22), 0  ;;  %s209_s27 = sshll.u32 %s1717_s3, 4  ;;  %s210_s27 = int_to_ptr.hbm [resolvable:$true] %s209_s27 }
   0x7   : > { %p1538_p3 = pnand %p1159_p1, %p198_p2  ;;  %s1481_s28 = smov [#allocation2]  }
   0x8   : > { %s211_s29 = sshll.u32 %s1481_s28, 4  ;;  %s224_s7 = sshll.u32 %s1718_s4, 4  ;;  %s212_s29 = int_to_ptr.vmem [resolvable:$true] %s211_s29  ;;  %s225_s7 = int_to_ptr.hbm [resolvable:$true] %s224_s7 }
   0x9   : > { %p1346_p5 = pneg %p1538_p3  ;;  %s1482_s8 = smov 64  }
   0xa   : > { %s1483_s9 = smov 4   ;;  %s1484_s10 = smov [#allocation4]  }
   0xb   : > { %p1347_p6 = pnand %p1542_p4, %p1346_p5  ;;  %s226_s11 = sshll.u32 %s1484_s10, 4  ;;  %s227_s11 = int_to_ptr.vmem [resolvable:$true] %s226_s11 }
   0xc   : > { %297 = sbr.rel (%p1538_p3) target bundleno = 364 (0x16c), region = 40 }
   0xd   : > { %1349 = dma.hbm_to_vmem [thread:$0]  (!%p1347_p6), %s210_s27, 2304, %s212_s29, [#allocation3], %s1482_s8, %s1482_s8, %s1483_s9  }
   0xe   : > { %1352 = dma.hbm_to_vmem [thread:$0]  (!%p1347_p6), %s225_s7, 16, %s227_s11, [#allocation5]  }
  0x11   : > { %1462 = dma.done.wait (%p1542_p4), [#allocation3], 2304  }
  0x12   : > { %1464 = vsyncadd (%p1542_p4), [#allocation3], 4294964992 }
  0x13   : > { %1466 = dma.done.wait (%p1542_p4), [#allocation5], 16  }
  0x14   : > { %1468 = vsyncadd (%p1542_p4), [#allocation5], 4294967280  ;;  %p374_p7 = scmp.lt.s32.totalorder %s1471_s18, 1  ;;  %s1485_s16 = smov 64   ;;  %v1329_v49 = vld [vmem:[#allocation2 + $0x88] sm:$0xff]  ;;  %v1323_v50 = vld [vmem:[#allocation2 + $0x58] sm:$0xff] }
  0x15   : > { %s1486_s17 = smov 32   ;;  %931 = vmatpush.bf16.msra.mxu2 %v1329_v49  ;;  %755 = vmatpush.bf16.msra.mxu0 %v1323_v50  ;;  %v1328_v55 = vld [vmem:[#allocation2 + $0x80] sm:$0xff]  ;;  %vm620_vm0 = vcmask 261120   ;;  %vm645_vm1 = vcmask 523264   ;;  %vm740_vm2 = vcmask 785408   ;;  %vm994_vm3 = vcmask 519168  }
  0x16   : > { %s1727_s18 = smov (!%p374_p7, %s1471_s18), 1  ;;  %1330 = vmatpush.bf16.msra.mxu3 %v1323_v50 }
  0x17   : > { %s1571_s12 = smul.u32 80, %s1727_s18  ;;  %s1301_s30 = sshll.u32 %s1727_s18, 5 }
  0x18   : > { %s1680_s8 = scalar_lea.vmem %s1719_s5, %s1301_s30 }
  0x19   : > { %s1577_s15 = scalar_lea.vmem %s1714_s0, %s1571_s12  ;;  %s1298_s21 = sadd.s32 64, %s1571_s12  ;;  %932 = vmatpush.bf16.msra.mxu2 %v1328_v55 }
  0x1a   : > { %v1181_v0 = vld [vmem:[%s1577_s15 + $0x10] sm:$0xf]  ;;  %v1304_v1 = vld [vmem:[%s1577_s15 + $0x10] sm:$0x10]  ;;  %v1185_v2 = vld [vmem:[%s1577_s15 + $0x18] sm:$0xf]  ;;  %s1604_s25 = scalar_lea.vmem %s1715_s1, %s1298_s21 }
  0x1b   : > { %v1182_v3 = vor.u32 %v1304_v1, %v1181_v0  ;;  %v1305_v4 = vld [vmem:[%s1577_s15 + $0x18] sm:$0x10]  ;;  %v1173_v6 = vld [vmem:[%s1577_s15] sm:$0xf]  ;;  %v1302_v7 = vld [vmem:[%s1577_s15] sm:$0x10] }
  0x1c   : > { %v1186_v5 = vor.u32 %v1305_v4, %v1185_v2  ;;  %v1177_v11 = vld [vmem:[%s1577_s15 + $0x8] sm:$0xf]  ;;  %v1303_v12 = vld [vmem:[%s1577_s15 + $0x8] sm:$0x10]  ;;  %v1174_v13 = vor.u32 %v1302_v7, %v1173_v6  ;;  %v1189_v28 = vld [vmem:[%s1577_s15 + $0x20] sm:$0xf] }
  0x1d   : > { %v598_v8 = vrot.slane %v1182_v3, 1  ;;  %v539_v9 = vshrl.u32 %v1182_v3, 16  ;;  %v541_v10 = vshll.u32 %v1182_v3, 16  ;;  %v1178_v19 = vor.u32 %v1303_v12, %v1177_v11  ;;  %v1193_v25 = vld [vmem:[%s1577_s15 + $0x28] sm:$0xf]  ;;  %s1300_s26 = sadd.s32 72, %s1571_s12 }
  0x1e   : > { %v548_v15 = vshll.u32 %v1186_v5, 16  ;;  %v525_v16 = vshrl.u32 %v1174_v13, 16  ;;  %v527_v17 = vshll.u32 %v1174_v13, 16  ;;  %v599_v21 = vrot.slane %v1186_v5, 1  ;;  %v1307_v26 = vld [vmem:[%s1577_s15 + $0x28] sm:$0x10]  ;;  %s1618_s29 = scalar_lea.vmem %s1716_s2, %s1300_s26 }
  0x1f   : > { %608 = vrot.lane.b32.xlu1 %v598_v8, %s1485_s16  ;;  %v543_v14 = vrot.slane %v541_v10, 1  ;;  %v546_v22 = vshrl.u32 %v1186_v5, 16  ;;  %v534_v24 = vshll.u32 %v1178_v19, 16  ;;  %v1306_v29 = vld [vmem:[%s1577_s15 + $0x20] sm:$0x10]  ;;  %v532_v30 = vshrl.u32 %v1178_v19, 16 }
  0x20   : > { %v529_v20 = vrot.slane %v527_v17, 1  ;;  %v550_v23 = vrot.slane %v548_v15, 1  ;;  %v1194_v33 = vor.u32 %v1307_v26, %v1193_v25  ;;  %v1190_v34 = vor.u32 %v1306_v29, %v1189_v28  ;;  %v1197_v44 = vld [vmem:[%s1577_s15 + $0x30] sm:$0xf]  ;;  %v1308_v45 = vld [vmem:[%s1577_s15 + $0x30] sm:$0x10] }
  0x21   : > { %v544_v18 = vor.u32 %v543_v14, %v539_v9  ;;  %v536_v31 = vrot.slane %v534_v24, 1  ;;  %v597_v37 = vrot.slane %v1178_v19, 1  ;;  %v596_v41 = vrot.slane %v1174_v13, 1  ;;  %v1205_v51 = vld [vmem:[%s1604_s25] sm:$0xf]  ;;  %v1322_v19 = vld [vmem:[#allocation2 + $0x50] sm:$0xff] }
  0x22   : > { %v530_v27 = vor.u32 %v529_v20, %v525_v16  ;;  %v551_v32 = vor.u32 %v550_v23, %v546_v22  ;;  %v555_v36 = vshll.u32 %v1190_v34, 16  ;;  %v562_v38 = vshll.u32 %v1194_v33, 16  ;;  %v1310_v52 = vld [vmem:[%s1604_s25] sm:$0x10]  ;;  %v1201_v53 = vld [vmem:[%s1577_s15 + $0x38] sm:$0xf]  ;;  %756 = vmatpush.bf16.msra.mxu0 %v1322_v19  ;;  %1331 = vmatpush.bf16.msra.mxu3 %v1322_v19 }
  0x23   : > { %584 = vrot.lane.b32.xlu0 %v544_v18, %s1486_s17  ;;  %v537_v35 = vor.u32 %v536_v31, %v532_v30  ;;  %v553_v39 = vshrl.u32 %v1190_v34, 16  ;;  %v560_v42 = vshrl.u32 %v1194_v33, 16  ;;  %v1198_v48 = vor.u32 %v1308_v45, %v1197_v44  ;;  %v1309_v54 = vld [vmem:[%s1577_s15 + $0x38] sm:$0x10]  ;;  %v1265_v7 = vld [vmem:[%s1618_s29] sm:$0xf] }
  0x24   : > { %580 = vrot.lane.b32.xlu2 %v530_v27, %s1486_s17  ;;  %v557_v40 = vrot.slane %v555_v36, 1  ;;  %v564_v43 = vrot.slane %v562_v38, 1  ;;  %v600_v56 = vrot.slane %v1190_v34, 1  ;;  %v1206_v58 = vor.u32 %v1310_v52, %v1205_v51  ;;  %v1311_v8 = vld [vmem:[%s1618_s29] sm:$0x10]  ;;  %v1317_v20 = vld [vmem:[#allocation2 + $0x28] sm:$0xff] }
  0x25   : > { %v569_v57 = vshll.u32 %v1198_v48, 16  ;;  %v1202_v59 = vor.u32 %v1309_v54, %v1201_v53  ;;  %v601_v60 = vrot.slane %v1194_v33, 1  ;;  %v567_v62 = vshrl.u32 %v1198_v48, 16  ;;  %838 = vmatpush.bf16.msra.mxu1 %v1317_v20  ;;  %v1321_v22 = vld [vmem:[#allocation2 + $0x48] sm:$0xff]  ;;  %v1316_v23 = vld [vmem:[#allocation2 + $0x20] sm:$0xff]  ;;  %v1326_v24 = vld [vmem:[#allocation2 + $0x70] sm:$0xff] }
  0x26   : > { %v558_v46 = vor.u32 %v557_v40, %v553_v39  ;;  %v565_v47 = vor.u32 %v564_v43, %v560_v42  ;;  %v602_v0 = vrot.slane %v1198_v48, 1  ;;  %v670_v1 = vshll.u32 %v1206_v58, 16  ;;  %757 = vmatpush.bf16.msra.mxu0 %v1321_v22  ;;  %v1320_v25 = vld [vmem:[#allocation2 + $0x40] sm:$0xff]  ;;  %v1315_v26 = vld [vmem:[#allocation2 + $0x18] sm:$0xff]  ;;  %v1325_v27 = vld [vmem:[#allocation2 + $0x68] sm:$0xff]  ;;  %1332 = vmatpush.bf16.msra.mxu3 %v1321_v22 }
  0x27   : > { %610 = vrot.lane.b32.xlu1 %v599_v21, %s1485_s16  ;;  %v576_v61 = vshll.u32 %v1202_v59, 16  ;;  %v571_v63 = vrot.slane %v569_v57, 1  ;;  %v574_v2 = vshrl.u32 %v1202_v59, 16  ;;  %v668_v5 = vshrl.u32 %v1206_v58, 16  ;;  %v1327_v21 = vld [vmem:[#allocation2 + $0x78] sm:$0xff]  ;;  %v1314_v29 = vld [vmem:[#allocation2 + $0x10] sm:$0xff] }
  0x28   : > { %v672_v6 = vrot.slane %v670_v1, 1  ;;  %v1266_v11 = vor.u32 %v1311_v8, %v1265_v7  ;;  %v603_v12 = vrot.slane %v1202_v59, 1  ;;  %v676_v14 = vrot.slane %v1206_v58, 1  ;;  %933 = vmatpush.bf16.msra.mxu2 %v1327_v21  ;;  %v1319_v28 = vld [vmem:[#allocation2 + $0x38] sm:$0xff]  ;;  %v1324_v30 = vld [vmem:[#allocation2 + $0x60] sm:$0xff]  ;;  %v1318_v31 = vld [vmem:[#allocation2 + $0x30] sm:$0xff] }
  0x29   : > { %v578_v3 = vrot.slane %v576_v61, 1  ;;  %v572_v4 = vor.u32 %v571_v63, %v567_v62  ;;  %839 = vmatpush.bf16.msra.mxu1 %v1316_v23  ;;  %v1312_v33 = vld [vmem:[#allocation2] sm:$0xff]  ;;  %v432_v38 = vld [vmem:[%s1577_s15 + $0x10] sm:$0xf]  ;;  %v430_v42 = vld [vmem:[%s1577_s15 + $0x8] sm:$0xf] }
  0x2a   : > { %v673_v10 = vor.u32 %v672_v6, %v668_v5  ;;  %v873_v13 = vshll.u32 %v1266_v11, 16  ;;  %v871_v15 = vshrl.u32 %v1266_v11, 16  ;;  %v879_v17 = vrot.slane %v1266_v11, 1  ;;  %758 = vmatpush.bf16.msra.mxu0 %v1320_v25  ;;  %1333 = vmatpush.bf16.msra.mxu3 %v1320_v25  ;;  %v428_v52 = vld [vmem:[%s1577_s15] sm:$0xf] }
  0x2b   : > { %586 = vrot.lane.b32.xlu0 %v551_v32, %s1486_s17  ;;  %v579_v9 = vor.u32 %v578_v3, %v574_v2  ;;  %v1313_v32 = vld [vmem:[#allocation2 + $0x8] sm:$0xff]  ;;  %v436_v1 = vld [vmem:[%s1577_s15 + $0x20] sm:$0xf]  ;;  %v440_v11 = vld [vmem:[%s1577_s15 + $0x30] sm:$0xf] }
  0x2c   : > { %582 = vrot.lane.b32.xlu2 %v537_v35, %s1486_s17  ;;  %v875_v16 = vrot.slane %v873_v13, 1  ;;  %934 = vmatpush.bf16.msra.mxu2 %v1326_v24  ;;  %v438_v61 = vld [vmem:[%s1577_s15 + $0x28] sm:$0xf] }
  0x2d   : > { %840 = vmatpush.bf16.msra.mxu1 %v1315_v26  ;;  %v444_v26 = vld [vmem:[%s1604_s25] sm:$0xf] }
  0x2e   : > { %v876_v18 = vor.u32 %v875_v16, %v871_v15  ;;  %759 = vmatpush.bf16.msra.mxu0 %v1319_v28  ;;  %1334 = vmatpush.bf16.msra.mxu3 %v1319_v28  ;;  %v442_v15 = vld [vmem:[%s1577_s15 + $0x38] sm:$0xf] }
  0x2f   : > { %606 = vrot.lane.b32.xlu1 %v597_v37, %s1485_s16 }
  0x30   : > { %935 = vmatpush.bf16.msra.mxu2 %v1325_v27  ;;  %v446_v27 = vld [vmem:[%s1618_s29] sm:$0xf] }
  0x31   : > { %841 = vmatpush.bf16.msra.mxu1 %v1314_v29 }
  0x32   : > { %760 = vmatpush.bf16.msra.mxu0 %v1318_v31  ;;  %1335 = vmatpush.bf16.msra.mxu3 %v1318_v31 }
  0x33   : > { %604 = vrot.lane.b32.xlu0 %v596_v41, %s1485_s16  ;;  %v434_v41 = vld [vmem:[%s1577_s15 + $0x18] sm:$0xf] }
  0x34   : > { %588 = vrot.lane.b32.xlu2 %v558_v46, %s1486_s17  ;;  %936 = vmatpush.bf16.msra.mxu2 %v1324_v30 }
  0x35   : > { %842 = vmatpush.bf16.msra.mxu1 %v1313_v32 }
  0x37   : > { %590 = vrot.lane.b32.xlu1 %v565_v47, %s1486_s17 }
  0x39   : > { %843 = vmatpush.bf16.msra.mxu1 %v1312_v33 }
  0x3b   : > { %612 = vrot.lane.b32.xlu0 %v600_v56, %s1485_s16 }
  0x3c   : > { %614 = vrot.lane.b32.xlu2 %v601_v60, %s1485_s16 }
  0x3f   : > { %616 = vrot.lane.b32.xlu1 %v602_v0, %s1485_s16 }
  0x43   : > { %592 = vrot.lane.b32.xlu0 %v572_v4, %s1486_s17 }
  0x44   : > { %594 = vrot.lane.b32.xlu2 %v579_v9, %s1486_s17 }
  0x47   : > { %674 = vrot.lane.b32.xlu1 %v673_v10, %s1486_s17 }
  0x4b   : > { %618 = vrot.lane.b32.xlu0 %v603_v12, %s1485_s16 }
  0x4c   : > { %677 = vrot.lane.b32.xlu2 %v676_v14, %s1485_s16 }
  0x4f   : > { %880 = vrot.lane.b32.xlu1 %v879_v17, %s1485_s16 }
  0x53   : > { %877 = vrot.lane.b32.xlu0 %v876_v18, %s1486_s17 }
  0x7e   : > { %v581_v34 = vpop.permute.xlu2 %580 }
  0x7f   : > { %v623_v56 = vsel %vm620_vm0, %v428_v52, %v581_v34 }
  0x86   : > { %v583_v36 = vpop.permute.xlu2 %582 }
  0x87   : > { %v626_v48 = vsel %vm620_vm0, %v430_v42, %v583_v36 }
  0x8e   : > { %v589_v46 = vpop.permute.xlu2 %588 }
  0x8f   : > { %v635_v4 = vsel %vm620_vm0, %v436_v1, %v589_v46 }
  0x91   : > { %v609_v35 = vpop.permute.xlu1 %608 }
  0x95   : > { %v585_v37 = vpop.permute.xlu0 %584 }
  0x96   : > { %v629_v40 = vsel %vm620_vm0, %v432_v38, %v585_v37  ;;  %v615_v62 = vpop.permute.xlu2 %614 }
  0x97   : > { %v651_v43 = vsel %vm645_vm1, %v629_v40, %v609_v35 }
  0x98   : > { %v693_v49 = vunpack.c.l.b16 %v651_v43  ;;  %v1673_v43 = vld [vmem:[#allocation4] ss:$0 sm:$0xff] }
  0x99   : > { %v611_v39 = vpop.permute.xlu1 %610 }
  0x9d   : > { %v587_v44 = vpop.permute.xlu0 %586 }
  0x9e   : > { %v632_v45 = vsel %vm620_vm0, %v434_v41, %v587_v44  ;;  %v595_v17 = vpop.permute.xlu2 %594 }
  0x9f   : > { %v653_v47 = vsel %vm645_vm1, %v632_v45, %v611_v39  ;;  %v644_v18 = vsel %vm620_vm0, %v442_v15, %v595_v17 }
  0xa0   : > { %v694_v50 = vunpack.c.l.b16 %v653_v47 }
  0xa1   : > { %v607_v51 = vpop.permute.xlu1 %606 }
  0xa2   : > { %v649_v53 = vsel %vm645_vm1, %v626_v48, %v607_v51  ;;  %v785_v54 = vpack.c.b16 %v694_v50, %v693_v49 }
  0xa3   : > { %v692_v55 = vunpack.c.l.b16 %v649_v53 }
  0xa4   : > { %1291 = vmatmul.msk.bf16.vlgmr.msra.gmra.mxu2 %vm740_vm2, %v785_v54 }
  0xa5   : > { %v605_v57 = vpop.permute.xlu0 %604  ;;  %v700_v58 = vpack.c.b16 %v693_v49, %v692_v55 }
  0xa6   : > { %v647_v59 = vsel %vm645_vm1, %v623_v56, %v605_v57  ;;  %v678_v30 = vpop.permute.xlu2 %677 }
  0xa7   : > { %v783_v60 = vunpack.c.l.b16 %v647_v59  ;;  %1231 = vmatmul.msk.bf16.vlgmr.msra.gmra.mxu0 %vm740_vm2, %v700_v58 }
  0xa9   : > { %v784_v63 = vpack.c.b16 %v692_v55, %v783_v60  ;;  %v591_v0 = vpop.permute.xlu1 %590 }
  0xaa   : > { %v638_v2 = vsel %vm620_vm0, %v438_v61, %v591_v0 }
  0xab   : > { %1259 = vmatmul.msk.bf16.vlgmr.msra.gmra.mxu1 %vm740_vm2, %v784_v63  ;;  %v657_v3 = vsel %vm645_vm1, %v638_v2, %v615_v62 }
  0xac   : > { %v696_v6 = vunpack.c.l.b16 %v657_v3 }
  0xad   : > { %v613_v5 = vpop.permute.xlu0 %612 }
  0xae   : > { %v655_v7 = vsel %vm645_vm1, %v635_v4, %v613_v5 }
  0xaf   : > { %v695_v8 = vunpack.c.l.b16 %v655_v7 }
  0xb1   : > { %v701_v9 = vpack.c.b16 %v695_v8, %v694_v50  ;;  %v786_v10 = vpack.c.b16 %v696_v6, %v695_v8  ;;  %v617_v14 = vpop.permute.xlu1 %616 }
  0xb3   : > { %1232 = vmatmul.msk.bf16.vlgmr.msra.gmra.mxu3 %vm740_vm2, %v701_v9 }
  0xb4   : > { %1292 = vmatmul.msk.bf16.gmra.mxu2 %vm740_vm2, %v786_v10 }
  0xb5   : > { %v593_v12 = vpop.permute.xlu0 %592 }
  0xb6   : > { %v641_v13 = vsel %vm620_vm0, %v440_v11, %v593_v12 }
  0xb7   : > { %v659_v16 = vsel %vm645_vm1, %v641_v13, %v617_v14 }
  0xb8   : > { %v697_v19 = vunpack.c.l.b16 %v659_v16 }
  0xb9   : > { %v675_v23 = vpop.permute.xlu1 %674 }
  0xba   : > { %v702_v24 = vpack.c.b16 %v697_v19, %v696_v6  ;;  %v681_v29 = vsel %vm620_vm0, %v444_v26, %v675_v23 }
  0xbb   : > { %1260 = vmatmul.msk.bf16.gmra.mxu1 %vm740_vm2, %v785_v54  ;;  %v683_v33 = vsel %vm645_vm1, %v681_v29, %v678_v30 }
  0xbc   : > { %v699_v35 = vunpack.c.l.b16 %v683_v33 }
  0xbd   : > { %v619_v20 = vpop.permute.xlu0 %618 }
  0xbe   : > { %v661_v21 = vsel %vm645_vm1, %v644_v18, %v619_v20 }
  0xbf   : > { %v698_v22 = vunpack.c.l.b16 %v661_v21 }
  0xc1   : > { %v787_v25 = vpack.c.b16 %v698_v22, %v697_v19  ;;  %v881_v32 = vpop.permute.xlu1 %880  ;;  %v703_v37 = vpack.c.b16 %v699_v35, %v698_v22 }
  0xc3   : > { %1233 = vmatmul.msk.bf16.gmra.mxu3 %vm740_vm2, %v702_v24 }
  0xc4   : > { %1293 = vmatmul.msk.bf16.gmra.mxu2 %vm740_vm2, %v787_v25 }
  0xc5   : > { %v878_v28 = vpop.permute.xlu0 %877 }
  0xc6   : > { %v884_v31 = vsel %vm620_vm0, %v446_v27, %v878_v28 }
  0xc7   : > { %v886_v34 = vsel %vm645_vm1, %v884_v31, %v881_v32 }
  0xc8   : > { %v888_v36 = vunpack.c.l.b16 %v886_v34 }
  0xca   : > { %v889_v38 = vpack.c.b16 %v888_v36, %v699_v35 }
  0xcb   : > { %1261 = vmatmul.msk.bf16.gmra.mxu1 %vm740_vm2, %v786_v10 }
  0xd3   : > { %1234 = vmatmul.msk.bf16.gmra.mxu3 %vm740_vm2, %v703_v37 }
  0xd4   : > { %1294 = vmatmul.msk.bf16.gmra.mxu2 %vm740_vm2, %v889_v38 }
  0xdb   : > { %1262 = vmatmul.msk.bf16.gmra.mxu1 %vm740_vm2, %v787_v25 }
 0x124   : > { %v762_v39 = vpop.f32.mrf.mxu0 }
 0x127   : > { %v938_v40 = vpop.f32.mrf.mxu2 }
 0x128   : > { %v845_v41 = vpop.f32.mrf.mxu1 }
 0x129   : > { %v846_v42 = vadd.f32 %v845_v41, %v762_v39 }
 0x12b   : > { %v958_v44 = vadd.f32 %v938_v40, %v846_v42 }
 0x12c   : > { %v764_v48 = vpop.f32.mrf.mxu0 }
 0x12d   : > { %v970_v45 = vadd.f32 %v1673_v43, %v958_v44 }
 0x12f   : > { %v978_v46 = vmax.f32 %v970_v45, 0.0  ;;  %v940_v47 = vpop.f32.mrf.mxu2 }
 0x130   : > { %v847_v49 = vpop.f32.mrf.mxu1 }
 0x131   : > { %v986_v50 = vpack.c.bf16 %v978_v46, %v978_v46  ;;  %v848_v51 = vadd.f32 %v847_v49, %v764_v48 }
 0x133   : > { %995 = vst.msk [vmem:[%s1680_s8] sm:$0xf] %vm994_vm3, %v986_v50  ;;  %v959_v52 = vadd.f32 %v940_v47, %v848_v51 }
 0x135   : > { %v971_v53 = vadd.f32 %v1673_v43, %v959_v52 }
 0x136   : > { %v767_v54 = vpop.f32.mrf.mxu3 }
 0x137   : > { %v979_v55 = vmax.f32 %v971_v53, 0.0  ;;  %v943_v56 = vpop.f32.mrf.mxu2 }
 0x138   : > { %v850_v57 = vpop.f32.mrf.mxu1 }
 0x139   : > { %v987_v58 = vpack.c.bf16 %v979_v55, %v979_v55  ;;  %v851_v59 = vadd.f32 %v850_v57, %v767_v54 }
 0x13b   : > { %996 = vst.msk [vmem:[%s1680_s8 + $0x4] sm:$0xf] %vm994_vm3, %v987_v58  ;;  %v960_v60 = vadd.f32 %v943_v56, %v851_v59 }
 0x13d   : > { %v972_v61 = vadd.f32 %v1673_v43, %v960_v60 }
 0x13e   : > { %v769_v62 = vpop.f32.mrf.mxu3 }
 0x13f   : > { %v980_v63 = vmax.f32 %v972_v61, 0.0  ;;  %v945_v0 = vpop.f32.mrf.mxu2 }
 0x140   : > { %v852_v1 = vpop.f32.mrf.mxu1 }
 0x141   : > { %v988_v2 = vpack.c.bf16 %v980_v63, %v980_v63  ;;  %v853_v3 = vadd.f32 %v852_v1, %v769_v62 }
 0x143   : > { %997 = vst.msk [vmem:[%s1680_s8 + $0x8] sm:$0xf] %vm994_vm3, %v988_v2  ;;  %v961_v4 = vadd.f32 %v945_v0, %v853_v3 }
 0x145   : > { %v973_v5 = vadd.f32 %v1673_v43, %v961_v4 }
 0x146   : > { %v772_v6 = vpop.f32.mrf.mxu3 }
 0x147   : > { %v981_v7 = vmax.f32 %v973_v5, 0.0  ;;  %v948_v8 = vpop.f32.mrf.mxu2 }
 0x148   : > { %v855_v9 = vpop.f32.mrf.mxu1 }
 0x149   : > { %v989_v10 = vpack.c.bf16 %v981_v7, %v981_v7  ;;  %v856_v11 = vadd.f32 %v855_v9, %v772_v6 }
 0x14b   : > { %998 = vst.msk [vmem:[%s1680_s8 + $0xc] sm:$0xf] %vm994_vm3, %v989_v10  ;;  %v962_v12 = vadd.f32 %v948_v8, %v856_v11 }
 0x14d   : > { %v974_v13 = vadd.f32 %v1673_v43, %v962_v12 }
 0x14e   : > { %v774_v14 = vpop.f32.mrf.mxu3 }
 0x14f   : > { %v982_v15 = vmax.f32 %v974_v13, 0.0  ;;  %v950_v16 = vpop.f32.mrf.mxu2 }
 0x150   : > { %v857_v17 = vpop.f32.mrf.mxu1 }
 0x151   : > { %v990_v18 = vpack.c.bf16 %v982_v15, %v982_v15  ;;  %v858_v19 = vadd.f32 %v857_v17, %v774_v14 }
 0x153   : > { %999 = vst.msk [vmem:[%s1680_s8 + $0x10] sm:$0xf] %vm994_vm3, %v990_v18  ;;  %v963_v20 = vadd.f32 %v950_v16, %v858_v19 }
 0x155   : > { %v975_v21 = vadd.f32 %v1673_v43, %v963_v20 }
 0x156   : > { %v777_v22 = vpop.f32.mrf.mxu3 }
 0x157   : > { %v983_v23 = vmax.f32 %v975_v21, 0.0  ;;  %v953_v24 = vpop.f32.mrf.mxu2 }
 0x158   : > { %v860_v25 = vpop.f32.mrf.mxu1 }
 0x159   : > { %v991_v26 = vpack.c.bf16 %v983_v23, %v983_v23  ;;  %v861_v27 = vadd.f32 %v860_v25, %v777_v22 }
 0x15b   : > { %1000 = vst.msk [vmem:[%s1680_s8 + $0x14] sm:$0xf] %vm994_vm3, %v991_v26  ;;  %v964_v28 = vadd.f32 %v953_v24, %v861_v27 }
 0x15d   : > { %v976_v29 = vadd.f32 %v1673_v43, %v964_v28 }
 0x15e   : > { %v779_v31 = vpop.f32.mrf.mxu3 }
 0x15f   : > { %v984_v30 = vmax.f32 %v976_v29, 0.0  ;;  %v955_v35 = vpop.f32.mrf.mxu2 }
 0x160   : > { %v862_v32 = vpop.f32.mrf.mxu1 }
 0x161   : > { %v992_v33 = vpack.c.bf16 %v984_v30, %v984_v30  ;;  %v863_v34 = vadd.f32 %v862_v32, %v779_v31 }
 0x163   : > { %1001 = vst.msk [vmem:[%s1680_s8 + $0x18] sm:$0xf] %vm994_vm3, %v992_v33  ;;  %v965_v36 = vadd.f32 %v955_v35, %v863_v34 }
 0x165   : > { %v977_v37 = vadd.f32 %v1673_v43, %v965_v36 }
 0x167   : > { %v985_v38 = vmax.f32 %v977_v37, 0.0 }
 0x169   : > { %v993_v39 = vpack.c.bf16 %v985_v38, %v985_v38 }
 0x16b   : > { %1002 = vst.msk [vmem:[%s1680_s8 + $0x1c] sm:$0xf] %vm994_vm3, %v993_v39 }
 0x16c PF: > { %s17_s20 = sadd.s32 1, %s1479_s20   ;;  %s1722_s18 = smov %s1475_s19 }
 0x16d   : > { %p14_p8 = scmp.ge.s32.totalorder %s17_s20, 4   ;;  %s1723_s19 = smov %s1725_s22 }
 0x16f   :  { %16 = sbr.rel (!%p14_p8) target bundleno = 3 (0x3), region = 85 }
 0x174   :  { %1033 = vsyncpa [#allocation3], 1 }
 0x175   :  { %1035 = vsyncpa [#allocation3 + $0x1], 1 }
 0x176   :  { %1036 = vsyncpa [#allocation5], 1 }

// kernel: ae_network_forward.10
= control target key start
LH: loop header
LB: loop body
LE: loop exit
PB: predicated region body
PF: predicated region fallthrough
CT: control target
= control target key end

     0   :  { %10 = vsyncpa [#allocation3], 0  ;;  %s2951_s18 = smov 0   ;;  %s2953_s19 = smov 0   ;;  %s4055_s0 = inlined_call_operand.vmem [shape: bf16[2,6,6,64], index: 0, kind: input, shape index: {}, may-alias: {0,1,2}]   ;;  %s4056_s1 = inlined_call_operand.vmem [shape: bf16[2,6,6,64], index: 1, kind: input, shape index: {}, may-alias: {0,1,2}]   ;;  %s4057_s2 = inlined_call_operand.vmem [shape: bf16[2,6,6,64], index: 2, kind: input, shape index: {}, may-alias: {0,1,2}]   ;;  %s4058_s3 = inlined_call_operand.vmem [shape: bf16[3,192,512], index: 3, kind: input, shape index: {}]   ;;  %s4059_s4 = inlined_call_operand.hbm [shape: f32[1,512], index: 4, kind: input, shape index: {}]   ;;  %s4060_s5 = inlined_call_operand.vmem [shape: bf16[2,4,4,512], index: 5, kind: output, shape index: {}]  }
   0x1   :  { %s2955_s20 = smov 0  }
   0x2 LB: > { %s2065_s21 = sadd.s32 4294967295, %s2917_s20   ;;  %s28_s22 = sadd.s32 1, %s2913_s19  ;;  %s2917_s20 = sphi %s2955_s20, %s16_s20   ;;  %s2913_s19 = sphi %s2953_s19, %s4062_s19   ;;  %s2909_s18 = sphi %s2951_s18, %s4061_s18  }
   0x3   : > { %p30_p0 = scmp.ge.s32.totalorder %s28_s22, 2  ;;  %p2067_p1 = scmp.ge.s32.totalorder %s2917_s20, 1 }
   0x4   : > { %p197_p2 = scmp.lt.s32.totalorder %s2917_s20, 3  ;;  %p2832_p4 = scmp.eq.s32.totalorder %s2065_s21, 0 }
   0x5   : > { %s4064_s22 = smov (%p30_p0, %s28_s22), 0  ;;  %s212_s25 = sshll.u32 %s4059_s4, 4  ;;  %s213_s25 = int_to_ptr.hbm [resolvable:$true] %s212_s25 }
   0x6   : > { %p198_p3 = pnand %p2067_p1, %p197_p2  ;;  %s2919_s26 = smov [#allocation2]  }
   0x7   : > { %s214_s27 = sshll.u32 %s2919_s26, 4  ;;  %s215_s27 = int_to_ptr.vmem [resolvable:$true] %s214_s27 }
   0x8   : > { %p2828_p5 = pneg %p198_p3  ;;  %280 = sbr.rel (%p198_p3) target bundleno = 444 (0x1bc), region = 40 }
   0xa   : > { %p2829_p6 = pnand %p2832_p4, %p2828_p5 }
   0xc   : > { %2831 = dma.hbm_to_vmem [thread:$0]  (!%p2829_p6), %s213_s25, 64, %s215_s27, [#allocation3]  }
   0xd   : > { %2904 = dma.done.wait (%p2832_p4), [#allocation3], 64  }
   0xe   : > { %2906 = vsyncadd (%p2832_p4), [#allocation3], 4294967232  ;;  %p348_p7 = scmp.lt.s32.totalorder %s2909_s18, 1  ;;  %v2196_v10 = vld [vmem:[%s4058_s3 + $0x260] sm:$0xf]  ;;  %s2920_s24 = smov 64  }
   0xf   : > { %v2756_v11 = vld [vmem:[%s4058_s3 + $0x26c] sm:$0xf0]  ;;  %v2180_v12 = vld [vmem:[%s4058_s3 + $0x240] sm:$0xf]  ;;  %v2754_v38 = vld [vmem:[%s4058_s3 + $0x264] sm:$0xf] }
  0x10   : > { %s4066_s18 = smov (!%p348_p7, %s2909_s18), 1  ;;  %v2197_v17 = vor.u32 %v2756_v11, %v2196_v10  ;;  %v2752_v18 = vld [vmem:[%s4058_s3 + $0x24c] sm:$0xf0]  ;;  %v2164_v29 = vld [vmem:[%s4058_s3 + $0x220] sm:$0xf]  ;;  %vm601_vm0 = vcmask 523264  }
  0x11   : > { %s2822_s28 = smul.u32 24, %s4066_s18  ;;  %v2181_v22 = vor.u32 %v2752_v18, %v2180_v12  ;;  %v2748_v30 = vld [vmem:[%s4058_s3 + $0x22c] sm:$0xf0]  ;;  %v2148_v36 = vld [vmem:[%s4058_s3 + $0x200] sm:$0xf]  ;;  %vm618_vm1 = vcmask 1041408  }
  0x12   : > { %898 = vmatpush.bf16.msra.mxu0 %v2197_v17  ;;  %v2744_v37 = vld [vmem:[%s4058_s3 + $0x20c] sm:$0xf0]  ;;  %v2198_v39 = vld [vmem:[%s4058_s3 + $0x270] sm:$0xf0]  ;;  %v2165_v43 = vor.u32 %v2748_v30, %v2164_v29  ;;  %v2260_v44 = vld [vmem:[%s4058_s3 + $0x2e0] sm:$0xf] }
  0x13   : > { %s355_s6 = scalar_lea.vmem %s4055_s0, %s2822_s28  ;;  %s2674_s7 = sadd.s32 16, %s2822_s28  ;;  %v2772_v45 = vld [vmem:[%s4058_s3 + $0x2ec] sm:$0xf0]  ;;  %v2750_v49 = vld [vmem:[%s4058_s3 + $0x244] sm:$0xf]  ;;  %v2201_v53 = vor.u32 %v2754_v38, %v2198_v39  ;;  %v2149_v60 = vor.u32 %v2744_v37, %v2148_v36  ;;  %vm1803_vm2 = vcmask 1043456  }
  0x14   : > { %v2979_v0 = vld [vmem:[%s355_s6 + $0xc] sm:$0x7]  ;;  %v2981_v1 = vld [vmem:[%s355_s6 + $0x4] sm:$0x7]  ;;  %s370_s10 = scalar_lea.vmem %s4056_s1, %s2674_s7  ;;  %v2986_v2 = vld [vmem:[%s355_s6 + $0x8] sm:$0x7]  ;;  %v2261_v56 = vor.u32 %v2772_v45, %v2260_v44 }
  0x15   : > { %v556_v3 = vunpack.c.l.b16 %v2979_v0  ;;  %v554_v4 = vunpack.c.l.b16 %v2981_v1  ;;  %v2990_v5 = vld [vmem:[%s370_s10] sm:$0x7]  ;;  %v555_v6 = vunpack.c.l.b16 %v2986_v2  ;;  %s2676_s11 = sadd.s32 20, %s2822_s28  ;;  %v2182_v54 = vld [vmem:[%s4058_s3 + $0x250] sm:$0xf0]  ;;  %926 = vmatpush.bf16.msra.mxu2 %v2201_v53  ;;  %vm1890_vm3 = vcmask 1045508  }
  0x16   : > { %v2993_v7 = vld [vmem:[%s355_s6] sm:$0x7]  ;;  %v628_v8 = vunpack.c.l.b16 %v2990_v5  ;;  %s383_s14 = scalar_lea.vmem %s4057_s2, %s2676_s11  ;;  %899 = vmatpush.bf16.msra.mxu0 %v2181_v22  ;;  %v2768_v57 = vld [vmem:[%s4058_s3 + $0x2cc] sm:$0xf0]  ;;  %916 = vmatpush.bf16.msra.mxu1 %v2261_v56  ;;  %v2185_v63 = vor.u32 %v2750_v49, %v2182_v54  ;;  %v2742_v22 = vld [vmem:[%s4058_s3 + $0x204] sm:$0xf] }
  0x17   : > { %v553_v9 = vunpack.c.l.b16 %v2993_v7  ;;  %v3009_v13 = vpack.c.b16 %v556_v3, %v556_v3  ;;  %v3011_v14 = vpack.c.b16 %v554_v4, %v554_v4  ;;  %v3013_v15 = vpack.c.b16 %v555_v6, %v555_v6  ;;  %v3015_v16 = vld [vmem:[%s383_s14] sm:$0x7]  ;;  %v2740_v62 = vld [vmem:[%s4058_s3 + $0x1ec] sm:$0xf0]  ;;  %v2746_v4 = vld [vmem:[%s4058_s3 + $0x224] sm:$0xf] }
  0x18   : > { %v3020_v19 = vpack.c.b16 %v628_v8, %v628_v8  ;;  %v1375_v21 = vunpack.c.l.b16 %v3015_v16  ;;  %v2244_v55 = vld [vmem:[%s4058_s3 + $0x2c0] sm:$0xf]  ;;  %v2764_v11 = vld [vmem:[%s4058_s3 + $0x2ac] sm:$0xf0]  ;;  %v2246_v36 = vld [vmem:[%s4058_s3 + $0x2d0] sm:$0xf0] }
  0x19   : > { %v3022_v20 = vpack.c.b16 %v553_v9, %v553_v9  ;;  %v583_v23 = vshrl.u32 %v3009_v13, 16  ;;  %v585_v24 = vshll.u32 %v3009_v13, 16  ;;  %v569_v25 = vshrl.u32 %v3011_v14, 16  ;;  %v2132_v61 = vld [vmem:[%s4058_s3 + $0x1e0] sm:$0xf]  ;;  %927 = vmatpush.bf16.msra.mxu2 %v2185_v63 }
  0x1a   : > { %v571_v26 = vshll.u32 %v3011_v14, 16  ;;  %v633_v27 = vshll.u32 %v3020_v19, 16  ;;  %v578_v28 = vshll.u32 %v3013_v15, 16  ;;  %v3039_v35 = vpack.c.b16 %v1375_v21, %v1375_v21  ;;  %900 = vmatpush.bf16.msra.mxu0 %v2165_v43  ;;  %v2166_v9 = vld [vmem:[%s4058_s3 + $0x230] sm:$0xf0] }
  0x1b   : > { %v587_v31 = vrot.slane %v585_v24, 1  ;;  %v562_v33 = vshrl.u32 %v3022_v20, 16  ;;  %v564_v34 = vshll.u32 %v3022_v20, 16  ;;  %v631_v46 = vshrl.u32 %v3020_v19, 16  ;;  %v2228_v10 = vld [vmem:[%s4058_s3 + $0x2a0] sm:$0xf] }
  0x1c   : > { %v573_v32 = vrot.slane %v571_v26, 1  ;;  %v576_v47 = vshrl.u32 %v3013_v15, 16  ;;  %v1380_v48 = vshll.u32 %v3039_v35, 16  ;;  %v635_v50 = vrot.slane %v633_v27, 1  ;;  %v2116_v18 = vld [vmem:[%s4058_s3 + $0x1c0] sm:$0xf] }
  0x1d   : > { %v588_v40 = vor.u32 %v587_v31, %v583_v23  ;;  %v566_v42 = vrot.slane %v564_v34, 1  ;;  %v580_v51 = vrot.slane %v578_v28, 1  ;;  %v1378_v58 = vshrl.u32 %v3039_v35, 16  ;;  %v2736_v21 = vld [vmem:[%s4058_s3 + $0x1cc] sm:$0xf0] }
  0x1e   : > { %v574_v41 = vor.u32 %v573_v32, %v569_v25  ;;  %v1382_v59 = vrot.slane %v1380_v48, 1  ;;  %v2245_v3 = vor.u32 %v2768_v57, %v2244_v55  ;;  %v636_v6 = vor.u32 %v635_v50, %v631_v46  ;;  %901 = vmatpush.bf16.msra.mxu0 %v2149_v60  ;;  %v2150_v25 = vld [vmem:[%s4058_s3 + $0x210] sm:$0xf0]  ;;  %v2770_v26 = vld [vmem:[%s4058_s3 + $0x2e4] sm:$0xf] }
  0x1f   : > { %595 = vrot.lane.b32.xlu1 %v588_v40, %s2920_s24  ;;  %v567_v52 = vor.u32 %v566_v42, %v562_v33  ;;  %v581_v8 = vor.u32 %v580_v51, %v576_v47  ;;  %v2133_v17 = vor.u32 %v2740_v62, %v2132_v61  ;;  %v2169_v23 = vor.u32 %v2746_v4, %v2166_v9  ;;  %v2262_v27 = vld [vmem:[%s4058_s3 + $0x2f0] sm:$0xf0]  ;;  %v2212_v28 = vld [vmem:[%s4058_s3 + $0x280] sm:$0xf]  ;;  %v2760_v29 = vld [vmem:[%s4058_s3 + $0x28c] sm:$0xf0] }
  0x20   : > { %591 = vrot.lane.b32.xlu0 %v574_v41, %s2920_s24  ;;  %v1383_v12 = vor.u32 %v1382_v59, %v1378_v58  ;;  %917 = vmatpush.bf16.msra.mxu1 %v2245_v3  ;;  %v2229_v24 = vor.u32 %v2764_v11, %v2228_v10  ;;  %v2265_v30 = vor.u32 %v2770_v26, %v2262_v27  ;;  %v2204_v31 = vld [vmem:[%s4058_s3 + $0x268] sm:$0xf]  ;;  %v2757_v32 = vld [vmem:[%s4058_s3 + $0x274] sm:$0xf0]  ;;  %v2766_v34 = vld [vmem:[%s4058_s3 + $0x2c4] sm:$0xf] }
  0x21   : > { %589 = vrot.lane.b32.xlu2 %v567_v52, %s2920_s24  ;;  %v2117_v33 = vor.u32 %v2736_v21, %v2116_v18  ;;  %v2100_v37 = vld [vmem:[%s4058_s3 + $0x1a0] sm:$0xf]  ;;  %v2732_v38 = vld [vmem:[%s4058_s3 + $0x1ac] sm:$0xf0]  ;;  %928 = vmatpush.bf16.msra.mxu2 %v2169_v23  ;;  %v2153_v39 = vor.u32 %v2742_v22, %v2150_v25  ;;  %v2213_v40 = vor.u32 %v2760_v29, %v2212_v28  ;;  %v2738_v41 = vld [vmem:[%s4058_s3 + $0x1e4] sm:$0xf] }
  0x22   : > { %902 = vmatpush.bf16.msra.mxu0 %v2133_v17  ;;  %v2134_v42 = vld [vmem:[%s4058_s3 + $0x1f0] sm:$0xf0]  ;;  %944 = vmatpush.bf16.msra.mxu3 %v2265_v30  ;;  %v2205_v43 = vor.u32 %v2757_v32, %v2204_v31  ;;  %v2249_v44 = vor.u32 %v2766_v34, %v2246_v36  ;;  %v2188_v45 = vld [vmem:[%s4058_s3 + $0x248] sm:$0xf]  ;;  %v2753_v46 = vld [vmem:[%s4058_s3 + $0x254] sm:$0xf0]  ;;  %v2101_v47 = vor.u32 %v2732_v38, %v2100_v37 }
  0x23   : > { %v2084_v48 = vld [vmem:[%s4058_s3 + $0x180] sm:$0xf]  ;;  %v2728_v49 = vld [vmem:[%s4058_s3 + $0x18c] sm:$0xf0]  ;;  %v2755_v50 = vld [vmem:[%s4058_s3 + $0x26c] sm:$0xf]  ;;  %v2137_v51 = vor.u32 %v2738_v41, %v2134_v42  ;;  %v2189_v55 = vor.u32 %v2753_v46, %v2188_v45 }
  0x24   : > { %918 = vmatpush.bf16.msra.mxu1 %v2229_v24  ;;  %v2206_v52 = vld [vmem:[%s4058_s3 + $0x278] sm:$0xf0]  ;;  %v2734_v53 = vld [vmem:[%s4058_s3 + $0x1c4] sm:$0xf]  ;;  %v2118_v54 = vld [vmem:[%s4058_s3 + $0x1d0] sm:$0xf0]  ;;  %v2085_v56 = vor.u32 %v2728_v49, %v2084_v48 }
  0x25   : > { %929 = vmatpush.bf16.msra.mxu2 %v2153_v39  ;;  %v2209_v57 = vor.u32 %v2755_v50, %v2206_v52  ;;  %v2121_v58 = vor.u32 %v2734_v53, %v2118_v54  ;;  %v2751_v59 = vld [vmem:[%s4058_s3 + $0x24c] sm:$0xf]  ;;  %v2190_v60 = vld [vmem:[%s4058_s3 + $0x258] sm:$0xf0]  ;;  %v2730_v4 = vld [vmem:[%s4058_s3 + $0x1a4] sm:$0xf] }
  0x26   : > { %903 = vmatpush.bf16.msra.mxu0 %v2117_v33  ;;  %945 = vmatpush.bf16.msra.mxu3 %v2249_v44  ;;  %v2193_v61 = vor.u32 %v2751_v59, %v2190_v60  ;;  %v2747_v62 = vld [vmem:[%s4058_s3 + $0x22c] sm:$0xf]  ;;  %v2174_v63 = vld [vmem:[%s4058_s3 + $0x238] sm:$0xf0]  ;;  %v2230_v10 = vld [vmem:[%s4058_s3 + $0x2b0] sm:$0xf0] }
  0x27   : > { %637 = vrot.lane.b32.xlu1 %v636_v6, %s2920_s24  ;;  %v2177_v3 = vor.u32 %v2747_v62, %v2174_v63  ;;  %v2102_v6 = vld [vmem:[%s4058_s3 + $0x1b0] sm:$0xf0]  ;;  %v2172_v11 = vld [vmem:[%s4058_s3 + $0x228] sm:$0xf]  ;;  %v2749_v17 = vld [vmem:[%s4058_s3 + $0x234] sm:$0xf0] }
  0x28   : > { %593 = vrot.lane.b32.xlu0 %v581_v8, %s2920_s24  ;;  %919 = vmatpush.bf16.msra.mxu1 %v2213_v40  ;;  %v2762_v8 = vld [vmem:[%s4058_s3 + $0x2a4] sm:$0xf]  ;;  %v2105_v9 = vor.u32 %v2730_v4, %v2102_v6  ;;  %v2743_v18 = vld [vmem:[%s4058_s3 + $0x20c] sm:$0xf]  ;;  %v2158_v21 = vld [vmem:[%s4058_s3 + $0x218] sm:$0xf0]  ;;  %v2173_v22 = vor.u32 %v2749_v17, %v2172_v11 }
  0x29   : > { %1384 = vrot.lane.b32.xlu2 %v1383_v12, %s2920_s24  ;;  %930 = vmatpush.bf16.msra.mxu2 %v2137_v51  ;;  %v2233_v12 = vor.u32 %v2762_v8, %v2230_v10  ;;  %v2161_v23 = vor.u32 %v2743_v18, %v2158_v21  ;;  %v2726_v24 = vld [vmem:[%s4058_s3 + $0x184] sm:$0xf]  ;;  %v2086_v25 = vld [vmem:[%s4058_s3 + $0x190] sm:$0xf0]  ;;  %v2156_v29 = vld [vmem:[%s4058_s3 + $0x208] sm:$0xf] }
  0x2a   : > { %904 = vmatpush.bf16.msra.mxu0 %v2101_v47  ;;  %v2758_v26 = vld [vmem:[%s4058_s3 + $0x284] sm:$0xf]  ;;  %v2089_v27 = vor.u32 %v2726_v24, %v2086_v25  ;;  %v2214_v28 = vld [vmem:[%s4058_s3 + $0x290] sm:$0xf0]  ;;  %v2745_v30 = vld [vmem:[%s4058_s3 + $0x214] sm:$0xf0] }
  0x2b   : > { %946 = vmatpush.bf16.msra.mxu3 %v2233_v12  ;;  %v2217_v31 = vor.u32 %v2758_v26, %v2214_v28  ;;  %v2157_v32 = vor.u32 %v2745_v30, %v2156_v29  ;;  %v2268_v33 = vld [vmem:[%s4058_s3 + $0x2e8] sm:$0xf]  ;;  %v2773_v34 = vld [vmem:[%s4058_s3 + $0x2f4] sm:$0xf0]  ;;  %v2739_v36 = vld [vmem:[%s4058_s3 + $0x1ec] sm:$0xf] }
  0x2c   : > { %954 = vmatpush.bf16.msrb.mxu1 %v2205_v43  ;;  %v2269_v37 = vor.u32 %v2773_v34, %v2268_v33  ;;  %v2142_v38 = vld [vmem:[%s4058_s3 + $0x1f8] sm:$0xf0]  ;;  %v2771_v39 = vld [vmem:[%s4058_s3 + $0x2ec] sm:$0xf]  ;;  %v2140_v43 = vld [vmem:[%s4058_s3 + $0x1e8] sm:$0xf] }
  0x2d   : > { %931 = vmatpush.bf16.msra.mxu2 %v2121_v58  ;;  %v2270_v40 = vld [vmem:[%s4058_s3 + $0x2f8] sm:$0xf0]  ;;  %v2145_v41 = vor.u32 %v2739_v36, %v2142_v38  ;;  %v2741_v44 = vld [vmem:[%s4058_s3 + $0x1f4] sm:$0xf0]  ;;  %v2252_v46 = vld [vmem:[%s4058_s3 + $0x2c8] sm:$0xf] }
  0x2e   : > { %905 = vmatpush.bf16.msra.mxu0 %v2085_v56  ;;  %v2273_v42 = vor.u32 %v2771_v39, %v2270_v40  ;;  %v2141_v45 = vor.u32 %v2741_v44, %v2140_v43  ;;  %v2769_v47 = vld [vmem:[%s4058_s3 + $0x2d4] sm:$0xf0]  ;;  %v2735_v48 = vld [vmem:[%s4058_s3 + $0x1cc] sm:$0xf]  ;;  %v2126_v50 = vld [vmem:[%s4058_s3 + $0x1d8] sm:$0xf0] }
  0x2f   : > { %947 = vmatpush.bf16.msra.mxu3 %v2217_v31  ;;  %v2253_v49 = vor.u32 %v2769_v47, %v2252_v46  ;;  %v2767_v51 = vld [vmem:[%s4058_s3 + $0x2cc] sm:$0xf]  ;;  %v2254_v52 = vld [vmem:[%s4058_s3 + $0x2d8] sm:$0xf0]  ;;  %v2129_v53 = vor.u32 %v2735_v48, %v2126_v50  ;;  %v2737_v56 = vld [vmem:[%s4058_s3 + $0x1d4] sm:$0xf0] }
  0x30   : > { %955 = vmatpush.bf16.msrb.mxu1 %v2189_v55  ;;  %v2257_v54 = vor.u32 %v2767_v51, %v2254_v52  ;;  %v2124_v55 = vld [vmem:[%s4058_s3 + $0x1c8] sm:$0xf]  ;;  %v2765_v59 = vld [vmem:[%s4058_s3 + $0x2b4] sm:$0xf0]  ;;  %v2731_v60 = vld [vmem:[%s4058_s3 + $0x1ac] sm:$0xf] }
  0x31   : > { %932 = vmatpush.bf16.msra.mxu2 %v2105_v9  ;;  %v2236_v58 = vld [vmem:[%s4058_s3 + $0x2a8] sm:$0xf]  ;;  %v2110_v62 = vld [vmem:[%s4058_s3 + $0x1b8] sm:$0xf0]  ;;  %v2763_v63 = vld [vmem:[%s4058_s3 + $0x2ac] sm:$0xf] }
  0x32   : > { %982 = vmatpush.bf16.msrb.mxu0 %v2209_v57  ;;  %v2125_v57 = vor.u32 %v2737_v56, %v2124_v55  ;;  %v2113_v4 = vor.u32 %v2731_v60, %v2110_v62  ;;  %v2108_v8 = vld [vmem:[%s4058_s3 + $0x1a8] sm:$0xf]  ;;  %v2733_v9 = vld [vmem:[%s4058_s3 + $0x1b4] sm:$0xf0]  ;;  %v2727_v17 = vld [vmem:[%s4058_s3 + $0x18c] sm:$0xf] }
  0x33   : > { %972 = vmatpush.bf16.msrb.mxu3 %v2269_v37  ;;  %v2109_v10 = vor.u32 %v2733_v9, %v2108_v8  ;;  %v2220_v11 = vld [vmem:[%s4058_s3 + $0x288] sm:$0xf]  ;;  %v2761_v12 = vld [vmem:[%s4058_s3 + $0x294] sm:$0xf0]  ;;  %v2094_v21 = vld [vmem:[%s4058_s3 + $0x198] sm:$0xf0] }
  0x34   : > { %956 = vmatpush.bf16.msrb.mxu1 %v2173_v22  ;;  %v2221_v18 = vor.u32 %v2761_v12, %v2220_v11  ;;  %v2759_v22 = vld [vmem:[%s4058_s3 + $0x28c] sm:$0xf]  ;;  %v2097_v24 = vor.u32 %v2727_v17, %v2094_v21  ;;  %v2092_v26 = vld [vmem:[%s4058_s3 + $0x188] sm:$0xf]  ;;  %v2080_v29 = vrot.slane %v3009_v13, 7  ;;  %v2078_v30 = vrot.slane %v3011_v14, 7 }
  0x35   : > { %933 = vmatpush.bf16.msra.mxu2 %v2089_v27  ;;  %v2729_v27 = vld [vmem:[%s4058_s3 + $0x194] sm:$0xf0]  ;;  %v2081_v13 = vrot.slane %v3020_v19, 7  ;;  %v2079_v14 = vrot.slane %v3013_v15, 7  ;;  %v2077_v15 = vrot.slane %v3022_v20, 7  ;;  %s2677_s24 = sshll.u32 %s4066_s18, 5 }
  0x36   : > { %983 = vmatpush.bf16.msrb.mxu0 %v2193_v61  ;;  %v2237_v61 = vor.u32 %v2765_v59, %v2236_v58  ;;  %v2093_v28 = vor.u32 %v2729_v27, %v2092_v26  ;;  %v2394_v43 = vld [vmem:[%s4058_s3 + $0xf0] sm:$0xf0]  ;;  %v2707_v20 = vld [vmem:[%s4058_s3 + $0xec] sm:$0xf]  ;;  %v2402_v44 = vld [vmem:[%s4058_s3 + $0xf8] sm:$0xf0]  ;;  %s4028_s7 = scalar_lea.vmem %s4060_s5, %s2677_s24 }
  0x37   : > { %973 = vmatpush.bf16.msrb.mxu3 %v2253_v49  ;;  %v2724_v46 = vld [vmem:[%s4058_s3 + $0x16c] sm:$0xf0]  ;;  %v2376_v48 = vld [vmem:[%s4058_s3 + $0xc0] sm:$0xf]  ;;  %v2702_v50 = vld [vmem:[%s4058_s3 + $0xc4] sm:$0xf] }
  0x38   : > { %957 = vmatpush.bf16.msrb.mxu1 %v2157_v32  ;;  %v2704_v49 = vld [vmem:[%s4058_s3 + $0xcc] sm:$0xf0]  ;;  %v2440_v60 = vld [vmem:[%s4058_s3 + $0x140] sm:$0xf]  ;;  %v2699_v11 = vld [vmem:[%s4058_s3 + $0xac] sm:$0xf] }
  0x39   : > { %1000 = vmatpush.bf16.msrb.mxu2 %v2273_v42  ;;  %v2706_v42 = vld [vmem:[%s4058_s3 + $0xe4] sm:$0xf]  ;;  %v2360_v62 = vld [vmem:[%s4058_s3 + $0xa0] sm:$0xf]  ;;  %v2370_v12 = vld [vmem:[%s4058_s3 + $0xb8] sm:$0xf0] }
  0x3a   : > { %984 = vmatpush.bf16.msrb.mxu0 %v2177_v3  ;;  %v2238_v3 = vld [vmem:[%s4058_s3 + $0x2b8] sm:$0xf0]  ;;  %v2397_v52 = vor.u32 %v2706_v42, %v2394_v43  ;;  %v2424_v17 = vld [vmem:[%s4058_s3 + $0x120] sm:$0xf]  ;;  %v2696_v26 = vld [vmem:[%s4058_s3 + $0x8c] sm:$0xf0]  ;;  %v2373_v27 = vor.u32 %v2699_v11, %v2370_v12 }
  0x3b   : > { %v2241_v6 = vor.u32 %v2763_v63, %v2238_v3  ;;  %974 = vmatpush.bf16.msrb.mxu3 %v2237_v61  ;;  %v2720_v61 = vld [vmem:[%s4058_s3 + $0x14c] sm:$0xf0]  ;;  %v2377_v63 = vor.u32 %v2704_v49, %v2376_v48  ;;  %v2709_v42 = vld [vmem:[%s4058_s3 + $0xf4] sm:$0xf0]  ;;  %v2338_v43 = vld [vmem:[%s4058_s3 + $0x78] sm:$0xf0] }
  0x3c   : > { %958 = vmatpush.bf16.msrb.mxu1 %v2141_v45  ;;  %v2456_v45 = vld [vmem:[%s4058_s3 + $0x160] sm:$0xf]  ;;  %v2441_v9 = vor.u32 %v2720_v61, %v2440_v60  ;;  %v2314_v48 = vld [vmem:[%s4058_s3 + $0x50] sm:$0xf0]  ;;  %v2384_v49 = vld [vmem:[%s4058_s3 + $0xc8] sm:$0xf] }
  0x3d   : > { %1001 = vmatpush.bf16.msrb.mxu2 %v2257_v54  ;;  %v2386_v54 = vld [vmem:[%s4058_s3 + $0xd8] sm:$0xf0]  ;;  %v2457_v58 = vor.u32 %v2724_v46, %v2456_v45  ;;  %v2312_v45 = vld [vmem:[%s4058_s3 + $0x40] sm:$0xf]  ;;  %v2368_v60 = vld [vmem:[%s4058_s3 + $0xa8] sm:$0xf] }
  0x3e   : > { %985 = vmatpush.bf16.msrb.mxu0 %v2161_v23  ;;  %v2222_v23 = vld [vmem:[%s4058_s3 + $0x298] sm:$0xf0]  ;;  %v2701_v61 = vld [vmem:[%s4058_s3 + $0xb4] sm:$0xf0]  ;;  %v2282_v12 = vld [vmem:[%s4058_s3 + $0x10] sm:$0xf0] }
  0x3f   : > { %v2225_v25 = vor.u32 %v2759_v22, %v2222_v23  ;;  %975 = vmatpush.bf16.msrb.mxu3 %v2221_v18  ;;  %v2716_v18 = vld [vmem:[%s4058_s3 + $0x12c] sm:$0xf0]  ;;  %v2474_v22 = vrot.slane %v3039_v35, 7  ;;  %v2346_v35 = vld [vmem:[%s4058_s3 + $0x90] sm:$0xf0] }
  0x40   : > { %959 = vmatpush.bf16.msrb.mxu1 %v2125_v57  ;;  %v2405_v57 = vor.u32 %v2707_v20, %v2402_v44 }
  0x41   : > { %1002 = vmatpush.bf16.msrb.mxu2 %v2241_v6  ;;  %v2698_v6 = vld [vmem:[%s4058_s3 + $0xa4] sm:$0xf] }
  0x42   : > { %986 = vmatpush.bf16.msrb.mxu0 %v2145_v41 }
  0x44   : > { %960 = vmatpush.bf16.msrb.mxu1 %v2109_v10  ;;  %v2362_v10 = vld [vmem:[%s4058_s3 + $0xb0] sm:$0xf0] }
  0x45   : > { %1003 = vmatpush.bf16.msrb.mxu2 %v2225_v25  ;;  %v2344_v25 = vld [vmem:[%s4058_s3 + $0x80] sm:$0xf] }
  0x46   : > { %987 = vmatpush.bf16.msrb.mxu0 %v2129_v53  ;;  %v2378_v53 = vld [vmem:[%s4058_s3 + $0xd0] sm:$0xf0] }
  0x47   : > { %v2381_v3 = vor.u32 %v2702_v50, %v2378_v53  ;;  %v2705_v50 = vld [vmem:[%s4058_s3 + $0xd4] sm:$0xf0] }
  0x48   : > { %961 = vmatpush.bf16.msrb.mxu1 %v2093_v28  ;;  %v2425_v28 = vor.u32 %v2716_v18, %v2424_v17  ;;  %v2352_v17 = vld [vmem:[%s4058_s3 + $0x88] sm:$0xf]  ;;  %v2697_v18 = vld [vmem:[%s4058_s3 + $0x94] sm:$0xf0] }
  0x4a   : > { %988 = vmatpush.bf16.msrb.mxu0 %v2113_v4  ;;  %v2700_v4 = vld [vmem:[%s4058_s3 + $0xac] sm:$0xf0] }
  0x4b   : > { %v2361_v23 = vor.u32 %v2700_v4, %v2360_v62  ;;  %v2683_v62 = vld [vmem:[%s4058_s3 + $0x2c] sm:$0xf] }
  0x4e   : > { %989 = vmatpush.bf16.msrb.mxu0 %v2097_v24  ;;  %v2365_v24 = vor.u32 %v2698_v6, %v2362_v10  ;;  %v2280_v6 = vld [vmem:[%s4058_s3] sm:$0xf]  ;;  %v2369_v10 = vor.u32 %v2701_v61, %v2368_v60  ;;  %v2725_v60 = vld [vmem:[%s4058_s3 + $0x174] sm:$0xf0]  ;;  %v2802_v61 = vld [vmem:[%s4058_s3 + $0x3e4] sm:$0xf] }
  0x7b   : > { %v590_v19 = vpop.permute.xlu2 %589 }
  0x7c   : > { %v604_v47 = vsel %vm601_vm0, %v2993_v7, %v590_v19  ;;  %v2703_v7 = vld [vmem:[%s4058_s3 + $0xcc] sm:$0xf] }
  0x7d   : > { %v620_v59 = vsel %vm618_vm1, %v604_v47, %v2077_v15  ;;  %v2389_v8 = vor.u32 %v2703_v7, %v2386_v54  ;;  %v2296_v54 = vld [vmem:[%s4058_s3 + $0x20] sm:$0xf] }
  0x83   : > { %v1385_v21 = vpop.permute.xlu2 %1384 }
  0x91   : > { %v596_v31 = vpop.permute.xlu1 %595 }
  0x92   : > { %v592_v32 = vpop.permute.xlu0 %591  ;;  %v613_v33 = vsel %vm601_vm0, %v2979_v0, %v596_v31  ;;  %v1389_v31 = vsel %vm601_vm0, %v3015_v16, %v1385_v21  ;;  %v2692_v16 = vld [vmem:[%s4058_s3 + $0x6c] sm:$0xf0]  ;;  %v2679_v21 = vld [vmem:[%s4058_s3 + $0xc] sm:$0xf] }
  0x93   : > { %v607_v34 = vsel %vm601_vm0, %v2981_v1, %v592_v32  ;;  %v3328_v36 = vsel %vm618_vm1, %v613_v33, %v2080_v29  ;;  %v2694_v29 = vld [vmem:[%s4058_s3 + $0x84] sm:$0xf]  ;;  %v2354_v32 = vld [vmem:[%s4058_s3 + $0x98] sm:$0xf0]  ;;  %v2408_v33 = vld [vmem:[%s4058_s3 + $0x100] sm:$0xf]  ;;  %v1392_v15 = vsel %vm618_vm1, %v1389_v31, %v2474_v22 }
  0x94   : > { %v622_v37 = vsel %vm618_vm1, %v607_v34, %v2078_v30  ;;  %650 = vst [vmem:[#allocation1 + $0x2] ss:$4 sm:$0xff] %v3328_v36  ;;  %v2695_v30 = vld [vmem:[%s4058_s3 + $0x8c] sm:$0xf]  ;;  %v2712_v34 = vld [vmem:[%s4058_s3 + $0x10c] sm:$0xf0] }
  0x95   : > { %646 = vst [vmem:[#allocation1] ss:$4 sm:$0xff] %v622_v37  ;;  %v2357_v19 = vor.u32 %v2695_v30, %v2354_v32  ;;  %v2290_v22 = vld [vmem:[%s4058_s3 + $0x18] sm:$0xf0]  ;;  %v2353_v30 = vor.u32 %v2697_v18, %v2352_v17  ;;  %v2653_v17 = vld [vmem:[%s4058_s3 + $0x460] sm:$0xf] }
  0x96   : > { %v2293_v31 = vor.u32 %v2679_v21, %v2290_v22  ;;  %v2820_v18 = vld [vmem:[%s4058_s3 + $0x46c] sm:$0xf0] }
  0x99   : > { %v638_v38 = vpop.permute.xlu1 %637 }
  0x9a   : > { %v594_v39 = vpop.permute.xlu0 %593  ;;  %v642_v0 = vsel %vm601_vm0, %v2990_v5, %v638_v38  ;;  %v2392_v5 = vld [vmem:[%s4058_s3 + $0xe0] sm:$0xf] }
  0x9b   : > { %v610_v1 = vsel %vm601_vm0, %v2986_v2, %v594_v39  ;;  %v3339_v40 = vsel %vm618_vm1, %v642_v0, %v2081_v13  ;;  %v2708_v2 = vld [vmem:[%s4058_s3 + $0xec] sm:$0xf0]  ;;  %v2690_v13 = vld [vmem:[%s4058_s3 + $0x64] sm:$0xf]  ;;  %v2345_v0 = vor.u32 %v2696_v26, %v2344_v25  ;;  %v2723_v25 = vld [vmem:[%s4058_s3 + $0x16c] sm:$0xf] }
  0x9c   : > { %v3342_v41 = vsel %vm618_vm1, %v610_v1, %v2079_v14  ;;  %652 = vst [vmem:[#allocation1 + $0x3] ss:$4 sm:$0xff] %v3339_v40  ;;  %v2393_v51 = vor.u32 %v2708_v2, %v2392_v5  ;;  %v2330_v14 = vld [vmem:[%s4058_s3 + $0x70] sm:$0xf0]  ;;  %v2349_v1 = vor.u32 %v2694_v29, %v2346_v35  ;;  %v2409_v5 = vor.u32 %v2712_v34, %v2408_v33  ;;  %v2400_v2 = vld [vmem:[%s4058_s3 + $0xe8] sm:$0xf] }
  0x9d   : > { %648 = vst [vmem:[#allocation1 + $0x1] ss:$4 sm:$0xff] %v3342_v41  ;;  %v2333_v44 = vor.u32 %v2690_v13, %v2330_v14  ;;  %v2401_v46 = vor.u32 %v2709_v42, %v2400_v2  ;;  %v2466_v26 = vld [vmem:[%s4058_s3 + $0x178] sm:$0xf0]  ;;  %v2818_v29 = vld [vmem:[%s4058_s3 + $0x464] sm:$0xf] }
  0x9e   : > { %v2655_v35 = vld [vmem:[%s4058_s3 + $0x470] sm:$0xf0]  ;;  %v2469_v33 = vor.u32 %v2723_v25, %v2466_v26  ;;  %v2336_v34 = vld [vmem:[%s4058_s3 + $0x68] sm:$0xf]  ;;  %v2798_v25 = vld [vmem:[%s4058_s3 + $0x3c4] sm:$0xf] }
  0x9f   : > { %v2658_v13 = vor.u32 %v2818_v29, %v2655_v35  ;;  %v2442_v14 = vld [vmem:[%s4058_s3 + $0x150] sm:$0xf0]  ;;  %v2583_v29 = vld [vmem:[%s4058_s3 + $0x3d8] sm:$0xf0]  ;;  %v2654_v35 = vor.u32 %v2820_v18, %v2653_v17  ;;  %v2557_v18 = vld [vmem:[%s4058_s3 + $0x3a0] sm:$0xf] }
  0xa0   : > { %v2519_v17 = vld [vmem:[%s4058_s3 + $0x358] sm:$0xf0] }
  0xa4   : > { %v3391_v55 = vld.sshfl [vmem:[#allocation1] sm:$0xff pattern:$0x73625140]  ;;  %v3393_v56 = vld.sshfl [vmem:[#allocation1 + $0x8] sm:$0xff pattern:$0x73625140] }
  0xa5   : > { %1012 = vst [vmem:[#allocation1 + $0x1] ss:$4 sm:$0xff] %v622_v37  ;;  %906 = vmatmul.bf16.vlgmr.msra.gmra.mxu0 %v3391_v55  ;;  %2274 = vmatmul.msk.bf16.vlgmr.msra.gmra.mxu1 %vm601_vm0, %v3393_v56  ;;  %v2328_v37 = vld [vmem:[%s4058_s3 + $0x60] sm:$0xf] }
  0xa6   : > { %1014 = vst [vmem:[#allocation1 + $0x2] ss:$4 sm:$0xff] %v3342_v41  ;;  %934 = vmatmul.bf16.vlgmr.msra.gmra.mxu2 %v3391_v55  ;;  %2275 = vmatmul.msk.bf16.vlgmr.msra.gmra.mxu3 %vm601_vm0, %v3393_v56  ;;  %v2329_v20 = vor.u32 %v2692_v16, %v2328_v37  ;;  %v2693_v37 = vld [vmem:[%s4058_s3 + $0x74] sm:$0xf0]  ;;  %v2718_v16 = vld [vmem:[%s4058_s3 + $0x144] sm:$0xf] }
  0xa7   : > { %1016 = vst [vmem:[#allocation1 + $0x3] ss:$4 sm:$0xff] %v3328_v36  ;;  %1262 = vmatpush.bf16.msra.mxu3 %v2393_v51  ;;  %1290 = vmatpush.bf16.msra.mxu2 %v2397_v52  ;;  %v2687_v51 = vld [vmem:[%s4058_s3 + $0x4c] sm:$0xf]  ;;  %v2322_v52 = vld [vmem:[%s4058_s3 + $0x58] sm:$0xf0]  ;;  %v2445_v2 = vor.u32 %v2718_v16, %v2442_v14 }
  0xa8   : > { %1010 = vst [vmem:[#allocation1] ss:$4 sm:$0xff] %v620_v59  ;;  %1346 = vmatpush.bf16.msra.mxu0 %v2405_v57  ;;  %1280 = vmatpush.bf16.msra.mxu1 %v2457_v58  ;;  %v2385_v57 = vor.u32 %v2705_v50, %v2384_v49  ;;  %v2325_v58 = vor.u32 %v2687_v51, %v2322_v52  ;;  %v2298_v59 = vld [vmem:[%s4058_s3 + $0x30] sm:$0xf0]  ;;  %v2304_v49 = vld [vmem:[%s4058_s3 + $0x28] sm:$0xf] }
  0xa9   : > { %v2685_v50 = vld [vmem:[%s4058_s3 + $0x34] sm:$0xf0]  ;;  %v2559_v14 = vld [vmem:[%s4058_s3 + $0x3b0] sm:$0xf0] }
  0xaa   : > { %v2717_v16 = vld [vmem:[%s4058_s3 + $0x134] sm:$0xf0] }
  0xab   : > { %1263 = vmatpush.bf16.msra.mxu3 %v2377_v63  ;;  %1291 = vmatpush.bf16.msra.mxu2 %v2381_v3  ;;  %v2306_v63 = vld [vmem:[%s4058_s3 + $0x38] sm:$0xf0] }
  0xac   : > { %1347 = vmatpush.bf16.msra.mxu0 %v2389_v8  ;;  %1281 = vmatpush.bf16.msra.mxu1 %v2441_v9  ;;  %v2680_v8 = vld [vmem:[%s4058_s3 + $0xc] sm:$0xf0]  ;;  %v2678_v9 = vld [vmem:[%s4058_s3 + $0x4] sm:$0xf]  ;;  %v2309_v11 = vor.u32 %v2683_v62, %v2306_v63  ;;  %v2305_v62 = vor.u32 %v2685_v50, %v2304_v49  ;;  %v2591_v63 = vld [vmem:[%s4058_s3 + $0x3f0] sm:$0xf0] }
  0xad   : > { %v2594_v21 = vor.u32 %v2802_v61, %v2591_v63  ;;  %v2605_v50 = vld [vmem:[%s4058_s3 + $0x400] sm:$0xf]  ;;  %v2800_v61 = vld [vmem:[%s4058_s3 + $0x3cc] sm:$0xf0] }
  0xaf   : > { %v3473_v38 = vld.sshfl [vmem:[#allocation1] sm:$0xff pattern:$0x73625140]  ;;  %v3475_v39 = vld.sshfl [vmem:[#allocation1 + $0x8] sm:$0xff pattern:$0x73625140]  ;;  %1264 = vmatpush.bf16.msra.mxu3 %v2361_v23  ;;  %1292 = vmatpush.bf16.msra.mxu2 %v2365_v24 }
  0xb0   : > { %1393 = vst [vmem:[#allocation1] ss:$4 sm:$0xff] %v3342_v41  ;;  %1348 = vmatpush.bf16.msra.mxu0 %v2373_v27  ;;  %1282 = vmatpush.bf16.msra.mxu1 %v2425_v28  ;;  %v2691_v41 = vld [vmem:[%s4058_s3 + $0x6c] sm:$0xf]  ;;  %v2722_v23 = vld [vmem:[%s4058_s3 + $0x164] sm:$0xf]  ;;  %v2281_v27 = vor.u32 %v2680_v8, %v2280_v6  ;;  %v2285_v28 = vor.u32 %v2678_v9, %v2282_v12 }
  0xb1   : > { %1395 = vst [vmem:[#allocation1 + $0x1] ss:$4 sm:$0xff] %v3328_v36  ;;  %v2688_v36 = vld [vmem:[%s4058_s3 + $0x4c] sm:$0xf0]  ;;  %v2341_v47 = vor.u32 %v2691_v41, %v2338_v43  ;;  %v2458_v24 = vld [vmem:[%s4058_s3 + $0x170] sm:$0xf0] }
  0xb2   : > { %1397 = vst [vmem:[#allocation1 + $0x2] ss:$4 sm:$0xff] %v3339_v40  ;;  %v2686_v40 = vld [vmem:[%s4058_s3 + $0x44] sm:$0xf]  ;;  %v2313_v53 = vor.u32 %v2688_v36, %v2312_v45  ;;  %v2461_v32 = vor.u32 %v2722_v23, %v2458_v24  ;;  %v2320_v41 = vld [vmem:[%s4058_s3 + $0x48] sm:$0xf] }
  0xb3   : > { %1399 = vst [vmem:[#allocation1 + $0x3] ss:$4 sm:$0xff] %v1392_v15  ;;  %1265 = vmatpush.bf16.msra.mxu3 %v2345_v0  ;;  %1293 = vmatpush.bf16.msra.mxu2 %v2349_v1  ;;  %v2317_v7 = vor.u32 %v2686_v40, %v2314_v48  ;;  %v2719_v0 = vld [vmem:[%s4058_s3 + $0x14c] sm:$0xf]  ;;  %v2450_v1 = vld [vmem:[%s4058_s3 + $0x158] sm:$0xf0] }
  0xb4   : > { %1349 = vmatpush.bf16.msra.mxu0 %v2357_v19  ;;  %1283 = vmatpush.bf16.msra.mxu1 %v2409_v5  ;;  %v2814_v15 = vld [vmem:[%s4058_s3 + $0x444] sm:$0xf]  ;;  %v2639_v19 = vld [vmem:[%s4058_s3 + $0x450] sm:$0xf0]  ;;  %v2337_v5 = vor.u32 %v2693_v37, %v2336_v34  ;;  %v2453_v42 = vor.u32 %v2719_v0, %v2450_v1  ;;  %v2689_v43 = vld [vmem:[%s4058_s3 + $0x54] sm:$0xf0] }
  0xb5   : > { %962 = vmatmul.bf16.vlgmr.msrb.gmra.mxu1 %v3391_v55  ;;  %990 = vmatmul.bf16.vlgmr.msrb.gmra.mxu0 %v3391_v55  ;;  %v2684_v55 = vld [vmem:[%s4058_s3 + $0x2c] sm:$0xf0]  ;;  %v2426_v45 = vld [vmem:[%s4058_s3 + $0x130] sm:$0xf0]  ;;  %v2715_v36 = vld [vmem:[%s4058_s3 + $0x12c] sm:$0xf]  ;;  %v2321_v48 = vor.u32 %v2689_v43, %v2320_v41 }
  0xb6   : > { %2276 = vmatmul.msk.bf16.vlgmr.msrb.gmra.mxu3 %vm601_vm0, %v3393_v56  ;;  %2277 = vmatmul.msk.bf16.vlgmr.msrb.gmra.mxu2 %vm601_vm0, %v3393_v56  ;;  %v2682_v56 = vld [vmem:[%s4058_s3 + $0x24] sm:$0xf]  ;;  %v2297_v3 = vor.u32 %v2684_v55, %v2296_v54  ;;  %v2623_v40 = vld [vmem:[%s4058_s3 + $0x430] sm:$0xf0]  ;;  %v2711_v54 = vld [vmem:[%s4058_s3 + $0x10c] sm:$0xf] }
  0xb7   : > { %1266 = vmatpush.bf16.msra.mxu3 %v2329_v20  ;;  %1294 = vmatpush.bf16.msra.mxu2 %v2333_v44  ;;  %v2301_v4 = vor.u32 %v2682_v56, %v2298_v59  ;;  %v2714_v20 = vld [vmem:[%s4058_s3 + $0x124] sm:$0xf]  ;;  %v2642_v44 = vor.u32 %v2814_v15, %v2639_v19  ;;  %v2607_v56 = vld [vmem:[%s4058_s3 + $0x410] sm:$0xf0]  ;;  %v2464_v59 = vld [vmem:[%s4058_s3 + $0x168] sm:$0xf] }
  0xb8   : > { %1318 = vmatpush.bf16.msrb.mxu1 %v2401_v46  ;;  %1350 = vmatpush.bf16.msra.mxu0 %v2341_v47  ;;  %v2434_v46 = vld [vmem:[%s4058_s3 + $0x138] sm:$0xf0]  ;;  %v2810_v47 = vld [vmem:[%s4058_s3 + $0x424] sm:$0xf]  ;;  %v2429_v51 = vor.u32 %v2714_v20, %v2426_v45  ;;  %v2288_v9 = vld [vmem:[%s4058_s3 + $0x8] sm:$0xf]  ;;  %v2465_v12 = vor.u32 %v2725_v60, %v2464_v59 }
  0xb9   : > { %v2437_v52 = vor.u32 %v2715_v36, %v2434_v46  ;;  %v2626_v55 = vor.u32 %v2810_v47, %v2623_v40  ;;  %v2448_v23 = vld [vmem:[%s4058_s3 + $0x148] sm:$0xf]  ;;  %v2721_v24 = vld [vmem:[%s4058_s3 + $0x154] sm:$0xf0]  ;;  %v2795_v0 = vld [vmem:[%s4058_s3 + $0x3ac] sm:$0xf] }
  0xba   : > { %v2432_v37 = vld [vmem:[%s4058_s3 + $0x128] sm:$0xf]  ;;  %v2567_v1 = vld [vmem:[%s4058_s3 + $0x3b8] sm:$0xf0]  ;;  %v2790_v45 = vld [vmem:[%s4058_s3 + $0x384] sm:$0xf] }
  0xbb   : > { %1267 = vmatpush.bf16.msra.mxu3 %v2313_v53  ;;  %1295 = vmatpush.bf16.msra.mxu2 %v2317_v7  ;;  %v2710_v53 = vld [vmem:[%s4058_s3 + $0x104] sm:$0xf]  ;;  %v2410_v7 = vld [vmem:[%s4058_s3 + $0x110] sm:$0xf0]  ;;  %v2570_v43 = vor.u32 %v2795_v0, %v2567_v1  ;;  %v2416_v20 = vld [vmem:[%s4058_s3 + $0x108] sm:$0xf] }
  0xbc   : > { %1319 = vmatpush.bf16.msrb.mxu1 %v2385_v57  ;;  %1351 = vmatpush.bf16.msra.mxu0 %v2325_v58  ;;  %v2418_v57 = vld [vmem:[%s4058_s3 + $0x118] sm:$0xf0]  ;;  %v2806_v58 = vld [vmem:[%s4058_s3 + $0x404] sm:$0xf]  ;;  %v2413_v6 = vor.u32 %v2710_v53, %v2410_v7  ;;  %v2543_v36 = vld [vmem:[%s4058_s3 + $0x390] sm:$0xf0] }
  0xbd   : > { %v2421_v8 = vor.u32 %v2711_v54, %v2418_v57  ;;  %v3738_v15 = vld.sshfl [vmem:[#allocation1 + $0x8] sm:$0xff pattern:$0x73625140]  ;;  %v2551_v47 = vld [vmem:[%s4058_s3 + $0x398] sm:$0xf0] }
  0xbe   : > { %v2791_v46 = vld [vmem:[%s4058_s3 + $0x38c] sm:$0xf]  ;;  %v2804_v40 = vld [vmem:[%s4058_s3 + $0x3ec] sm:$0xf0]  ;;  %v2786_v7 = vld [vmem:[%s4058_s3 + $0x364] sm:$0xf] }
  0xbf   : > { %1268 = vmatpush.bf16.msra.mxu3 %v2297_v3  ;;  %1296 = vmatpush.bf16.msra.mxu2 %v2301_v4  ;;  %v2803_v3 = vld [vmem:[%s4058_s3 + $0x3ec] sm:$0xf]  ;;  %v2599_v4 = vld [vmem:[%s4058_s3 + $0x3f8] sm:$0xf0]  ;;  %v2808_v53 = vld [vmem:[%s4058_s3 + $0x40c] sm:$0xf0] }
  0xc0   : > { %1320 = vmatpush.bf16.msrb.mxu1 %v2369_v10  ;;  %1352 = vmatpush.bf16.msra.mxu0 %v2309_v11  ;;  %v2681_v10 = vld [vmem:[%s4058_s3 + $0x14] sm:$0xf0]  ;;  %v2610_v11 = vor.u32 %v2806_v58, %v2607_v56  ;;  %v2602_v22 = vor.u32 %v2803_v3, %v2599_v4  ;;  %v2527_v54 = vld [vmem:[%s4058_s3 + $0x370] sm:$0xf0]  ;;  %v2597_v57 = vld [vmem:[%s4058_s3 + $0x3e8] sm:$0xf] }
  0xc1   : > { %v2289_v26 = vor.u32 %v2681_v10, %v2288_v9  ;;  %v2805_v58 = vld [vmem:[%s4058_s3 + $0x3f4] sm:$0xf0]  ;;  %v2787_v56 = vld [vmem:[%s4058_s3 + $0x36c] sm:$0xf]  ;;  %v2535_v59 = vld [vmem:[%s4058_s3 + $0x378] sm:$0xf0]  ;;  %v2530_v63 = vor.u32 %v2786_v7, %v2527_v54 }
  0xc2   : > { %v2573_v60 = vld [vmem:[%s4058_s3 + $0x3c0] sm:$0xf]  ;;  %v2598_v3 = vor.u32 %v2805_v58, %v2597_v57  ;;  %v2782_v4 = vld [vmem:[%s4058_s3 + $0x344] sm:$0xf]  ;;  %v2581_v10 = vld [vmem:[%s4058_s3 + $0x3c8] sm:$0xf] }
  0xc3   : > { %1269 = vmatpush.bf16.msra.mxu3 %v2281_v27  ;;  %1297 = vmatpush.bf16.msra.mxu2 %v2285_v28  ;;  %v2575_v27 = vld [vmem:[%s4058_s3 + $0x3d0] sm:$0xf0]  ;;  %v2799_v28 = vld [vmem:[%s4058_s3 + $0x3cc] sm:$0xf]  ;;  %v2574_v9 = vor.u32 %v2800_v61, %v2573_v60  ;;  %v2549_v0 = vld [vmem:[%s4058_s3 + $0x388] sm:$0xf] }
  0xc4   : > { %1321 = vmatpush.bf16.msrb.mxu1 %v2353_v30  ;;  %1353 = vmatpush.bf16.msra.mxu0 %v2293_v31  ;;  %v2449_v30 = vor.u32 %v2721_v24, %v2448_v23  ;;  %v2637_v31 = vld [vmem:[%s4058_s3 + $0x440] sm:$0xf]  ;;  %v2586_v34 = vor.u32 %v2799_v28, %v2583_v29  ;;  %v2778_v24 = vld [vmem:[%s4058_s3 + $0x324] sm:$0xf]  ;;  %v2565_v28 = vld [vmem:[%s4058_s3 + $0x3a8] sm:$0xf] }
  0xc5   : > { %2470 = vmatmul.msk.bf16.vlgmr.msra.gmra.mxu1 %vm601_vm0, %v3475_v39  ;;  %v2797_v29 = vld [vmem:[%s4058_s3 + $0x3b4] sm:$0xf0]  ;;  %v2780_v57 = vld [vmem:[%s4058_s3 + $0x32c] sm:$0xf0]  ;;  %v2811_v58 = vld [vmem:[%s4058_s3 + $0x42c] sm:$0xf] }
  0xc6   : > { %1270 = vmatmul.bf16.vlgmr.msra.gmra.mxu3 %v3473_v38  ;;  %1298 = vmatmul.bf16.vlgmr.msra.gmra.mxu2 %v3473_v38  ;;  %v2793_v1 = vld [vmem:[%s4058_s3 + $0x394] sm:$0xf0]  ;;  %v2501_v61 = vld [vmem:[%s4058_s3 + $0x328] sm:$0xf] }
  0xc7   : > { %1308 = vmatpush.bf16.msrb.mxu3 %v2461_v32  ;;  %1364 = vmatpush.bf16.msrb.mxu2 %v2469_v33  ;;  %v2816_v32 = vld [vmem:[%s4058_s3 + $0x44c] sm:$0xf0]  ;;  %v2578_v33 = vor.u32 %v2798_v25, %v2575_v27  ;;  %v2495_v25 = vld [vmem:[%s4058_s3 + $0x330] sm:$0xf0]  ;;  %v2785_v7 = vld [vmem:[%s4058_s3 + $0x354] sm:$0xf0] }
  0xc8   : > { %1691 = vmatpush.bf16.msrb.mxu0 %v2658_v13  ;;  %1322 = vmatpush.bf16.msrb.mxu1 %v2337_v5  ;;  %v2794_v13 = vld [vmem:[%s4058_s3 + $0x3a4] sm:$0xf]  ;;  %v2638_v19 = vor.u32 %v2816_v32, %v2637_v31  ;;  %v2433_v5 = vor.u32 %v2717_v16, %v2432_v37  ;;  %v2541_v31 = vld [vmem:[%s4058_s3 + $0x380] sm:$0xf]  ;;  %v2792_v32 = vld [vmem:[%s4058_s3 + $0x38c] sm:$0xf0] }
  0xc9   : > { %1354 = vmatmul.bf16.vlgmr.msra.gmra.mxu0 %v3473_v38  ;;  %v2562_v41 = vor.u32 %v2794_v13, %v2559_v14  ;;  %v2774_v37 = vld [vmem:[%s4058_s3 + $0x304] sm:$0xf]  ;;  %v2479_v16 = vld [vmem:[%s4058_s3 + $0x310] sm:$0xf0]  ;;  %v2542_v14 = vor.u32 %v2792_v32, %v2541_v31 }
  0xcb   : > { %1309 = vmatpush.bf16.msrb.mxu3 %v2445_v2  ;;  %1365 = vmatpush.bf16.msrb.mxu2 %v2453_v42  ;;  %v2621_v2 = vld [vmem:[%s4058_s3 + $0x420] sm:$0xf]  ;;  %v2812_v42 = vld [vmem:[%s4058_s3 + $0x42c] sm:$0xf0] }
  0xcc   : > { %1692 = vmatpush.bf16.msrb.mxu0 %v2642_v44  ;;  %1323 = vmatpush.bf16.msrb.mxu1 %v2321_v48  ;;  %v2713_v44 = vld [vmem:[%s4058_s3 + $0x114] sm:$0xf0]  ;;  %v2622_v48 = vor.u32 %v2812_v42, %v2621_v2  ;;  %v2525_v2 = vld [vmem:[%s4058_s3 + $0x360] sm:$0xf]  ;;  %v2788_v42 = vld [vmem:[%s4058_s3 + $0x36c] sm:$0xf0] }
  0xcd   : > { %v2417_v49 = vor.u32 %v2713_v44, %v2416_v20  ;;  %v2550_v20 = vor.u32 %v2793_v1, %v2549_v0 }
  0xcf   : > { %1310 = vmatpush.bf16.msrb.mxu3 %v2429_v51  ;;  %1366 = vmatpush.bf16.msrb.mxu2 %v2437_v52  ;;  %v2546_v51 = vor.u32 %v2790_v45, %v2543_v36  ;;  %v2554_v52 = vor.u32 %v2791_v46, %v2551_v47  ;;  %v2526_v45 = vor.u32 %v2788_v42, %v2525_v2  ;;  %v2533_v36 = vld [vmem:[%s4058_s3 + $0x368] sm:$0xf]  ;;  %v2789_v46 = vld [vmem:[%s4058_s3 + $0x374] sm:$0xf0] }
  0xd0   : > { %1693 = vmatpush.bf16.msrb.mxu0 %v2626_v55  ;;  %1324 = vmatpush.bf16.msrb.mxu1 %v2305_v62  ;;  %v2606_v62 = vor.u32 %v2808_v53, %v2605_v50  ;;  %v1400_v50 = vld.sshfl [vmem:[#allocation1] sm:$0xff pattern:$0x73625140]  ;;  %v2517_v53 = vld [vmem:[%s4058_s3 + $0x348] sm:$0xf] }
  0xd3   : > { %1311 = vmatpush.bf16.msrb.mxu3 %v2413_v6  ;;  %1367 = vmatpush.bf16.msrb.mxu2 %v2421_v8  ;;  %v2511_v6 = vld [vmem:[%s4058_s3 + $0x350] sm:$0xf0]  ;;  %v2538_v8 = vor.u32 %v2787_v56, %v2535_v59  ;;  %v2631_v56 = vld [vmem:[%s4058_s3 + $0x438] sm:$0xf0]  ;;  %v2518_v59 = vor.u32 %v2785_v7, %v2517_v53 }
  0xd4   : > { %1694 = vmatpush.bf16.msrb.mxu0 %v2610_v11  ;;  %1325 = vmatpush.bf16.msrb.mxu1 %v2289_v26  ;;  %v2801_v11 = vld [vmem:[%s4058_s3 + $0x3d4] sm:$0xf0] }
  0xd5   : > { %v2582_v23 = vor.u32 %v2801_v11, %v2581_v10  ;;  %v2615_v10 = vld [vmem:[%s4058_s3 + $0x418] sm:$0xf0] }
  0xd6   : > { %2471 = vmatmul.msk.bf16.vlgmr.msrb.gmra.mxu3 %vm601_vm0, %v3475_v39  ;;  %2473 = vmatmul.msk.bf16.vlgmr.msrb.gmra.mxu2 %vm601_vm0, %v3475_v39 }
  0xd7   : > { %1336 = vmatpush.bf16.msra.mxu3 %v2465_v12  ;;  %1673 = vmatpush.bf16.msra.mxu2 %v2594_v21  ;;  %v2783_v12 = vld [vmem:[%s4058_s3 + $0x34c] sm:$0xf]  ;;  %v2796_v21 = vld [vmem:[%s4058_s3 + $0x3ac] sm:$0xf0] }
  0xd8   : > { %1729 = vmatpush.bf16.msra.mxu0 %v2602_v22  ;;  %1663 = vmatpush.bf16.msra.mxu1 %v2654_v35  ;;  %v2514_v22 = vor.u32 %v2782_v4, %v2511_v6  ;;  %v2522_v26 = vor.u32 %v2783_v12, %v2519_v17  ;;  %v2558_v27 = vor.u32 %v2796_v21, %v2557_v18  ;;  %v2779_v35 = vld [vmem:[%s4058_s3 + $0x32c] sm:$0xf]  ;;  %v2776_v4 = vld [vmem:[%s4058_s3 + $0x30c] sm:$0xf0]  ;;  %v2661_v6 = vld [vmem:[%s4058_s3 + $0x468] sm:$0xf] }
  0xd9   : > { %1326 = vmatmul.bf16.vlgmr.msrb.gmra.mxu1 %v3473_v38  ;;  %2668 = vmatmul.msk.bf16.vlgmr.msrb.gmra.mxu0 %vm601_vm0, %v3738_v15  ;;  %v2589_v38 = vld [vmem:[%s4058_s3 + $0x3e0] sm:$0xf]  ;;  %v2485_v17 = vld [vmem:[%s4058_s3 + $0x308] sm:$0xf]  ;;  %v2777_v18 = vld [vmem:[%s4058_s3 + $0x314] sm:$0xf0] }
  0xda   : > { %v2590_v55 = vor.u32 %v2804_v40, %v2589_v38  ;;  %v2509_v38 = vld [vmem:[%s4058_s3 + $0x340] sm:$0xf]  ;;  %v2784_v40 = vld [vmem:[%s4058_s3 + $0x34c] sm:$0xf0] }
  0xdb   : > { %1337 = vmatpush.bf16.msra.mxu3 %v2449_v30  ;;  %1674 = vmatpush.bf16.msra.mxu2 %v2578_v33  ;;  %v2503_v30 = vld [vmem:[%s4058_s3 + $0x338] sm:$0xf0]  ;;  %v2498_v33 = vor.u32 %v2778_v24, %v2495_v25  ;;  %v2817_v24 = vld [vmem:[%s4058_s3 + $0x454] sm:$0xf0]  ;;  %v2486_v25 = vor.u32 %v2777_v18, %v2485_v17 }
  0xdc   : > { %1730 = vmatpush.bf16.msra.mxu0 %v2586_v34  ;;  %1664 = vmatpush.bf16.msra.mxu1 %v2638_v19  ;;  %v2566_v34 = vor.u32 %v2797_v29, %v2565_v28  ;;  %v2506_v13 = vor.u32 %v2779_v35, %v2503_v30  ;;  %v2775_v19 = vld [vmem:[%s4058_s3 + $0x30c] sm:$0xf]  ;;  %v2813_v28 = vld [vmem:[%s4058_s3 + $0x434] sm:$0xf0]  ;;  %v2613_v35 = vld [vmem:[%s4058_s3 + $0x408] sm:$0xf] }
  0xdd   : > { %v2809_v30 = vld [vmem:[%s4058_s3 + $0x414] sm:$0xf0] }
  0xde   : > { %v2614_v31 = vor.u32 %v2809_v30, %v2613_v35 }
  0xdf   : > { %1338 = vmatpush.bf16.msra.mxu3 %v2433_v5  ;;  %1675 = vmatpush.bf16.msra.mxu2 %v2562_v41  ;;  %v2487_v5 = vld [vmem:[%s4058_s3 + $0x318] sm:$0xf0]  ;;  %v2819_v41 = vld [vmem:[%s4058_s3 + $0x46c] sm:$0xf] }
  0xe0   : > { %1731 = vmatpush.bf16.msra.mxu0 %v2570_v43  ;;  %1665 = vmatpush.bf16.msra.mxu1 %v2622_v48  ;;  %v2482_v43 = vor.u32 %v2774_v37, %v2479_v16  ;;  %v2490_v44 = vor.u32 %v2775_v19, %v2487_v5  ;;  %v2815_v48 = vld [vmem:[%s4058_s3 + $0x44c] sm:$0xf] }
  0xe3   : > { %1339 = vmatpush.bf16.msra.mxu3 %v2417_v49  ;;  %1676 = vmatpush.bf16.msra.mxu2 %v2546_v51  ;;  %v2647_v49 = vld [vmem:[%s4058_s3 + $0x458] sm:$0xf0]  ;;  %v2534_v51 = vor.u32 %v2789_v46, %v2533_v36 }
  0xe4   : > { %1732 = vmatpush.bf16.msra.mxu0 %v2554_v52  ;;  %1666 = vmatpush.bf16.msra.mxu1 %v2606_v62  ;;  %v2510_v52 = vor.u32 %v2784_v40, %v2509_v38  ;;  %v2650_v54 = vor.u32 %v2815_v48, %v2647_v49  ;;  %v2781_v62 = vld [vmem:[%s4058_s3 + $0x334] sm:$0xf0] }
  0xe5   : > { %v2502_v11 = vor.u32 %v2781_v62, %v2501_v61 }
  0xe6   : > { %2472 = vmatmul.msk.bf16.vlgmr.msra.gmra.mxu3 %vm601_vm0, %v3475_v39  ;;  %v2663_v39 = vld [vmem:[%s4058_s3 + $0x478] sm:$0xf0] }
  0xe7   : > { %1645 = vmatpush.bf16.msrb.mxu3 %v2590_v55  ;;  %1677 = vmatpush.bf16.msra.mxu2 %v2530_v63  ;;  %v2666_v47 = vor.u32 %v2819_v41, %v2663_v39  ;;  %v2493_v55 = vld [vmem:[%s4058_s3 + $0x320] sm:$0xf]  ;;  %v2634_v63 = vor.u32 %v2811_v58, %v2631_v56 }
  0xe8   : > { %1701 = vmatpush.bf16.msrb.mxu1 %v2598_v3  ;;  %1733 = vmatpush.bf16.msra.mxu0 %v2538_v8  ;;  %v2494_v60 = vor.u32 %v2780_v57, %v2493_v55  ;;  %v2477_v3 = vld [vmem:[%s4058_s3 + $0x300] sm:$0xf]  ;;  %v2821_v8 = vld [vmem:[%s4058_s3 + $0x474] sm:$0xf0] }
  0xe9   : > { %2667 = vmatmul.msk.bf16.vlgmr.msra.gmra.mxu1 %vm601_vm0, %v3738_v15  ;;  %v2478_v12 = vor.u32 %v2776_v4, %v2477_v3  ;;  %v2662_v21 = vor.u32 %v2821_v8, %v2661_v6 }
  0xeb   : > { %1646 = vmatpush.bf16.msrb.mxu3 %v2574_v9  ;;  %1678 = vmatpush.bf16.msra.mxu2 %v2514_v22  ;;  %v2807_v9 = vld [vmem:[%s4058_s3 + $0x40c] sm:$0xf] }
  0xec   : > { %1702 = vmatpush.bf16.msrb.mxu1 %v2582_v23  ;;  %1734 = vmatpush.bf16.msra.mxu0 %v2522_v26  ;;  %v2618_v22 = vor.u32 %v2807_v9, %v2615_v10  ;;  %v2645_v23 = vld [vmem:[%s4058_s3 + $0x448] sm:$0xf] }
  0xed   : > { %v2646_v26 = vor.u32 %v2817_v24, %v2645_v23 }
  0xef   : > { %1647 = vmatpush.bf16.msrb.mxu3 %v2558_v27  ;;  %1679 = vmatpush.bf16.msra.mxu2 %v2498_v33  ;;  %v2629_v27 = vld [vmem:[%s4058_s3 + $0x428] sm:$0xf] }
  0xf0   : > { %1703 = vmatpush.bf16.msrb.mxu1 %v2566_v34  ;;  %1735 = vmatpush.bf16.msra.mxu0 %v2506_v13  ;;  %v2630_v29 = vor.u32 %v2813_v28, %v2629_v27 }
  0xf3   : > { %1648 = vmatpush.bf16.msrb.mxu3 %v2542_v14  ;;  %1680 = vmatpush.bf16.msra.mxu2 %v2482_v43 }
  0xf4   : > { %1704 = vmatpush.bf16.msrb.mxu1 %v2550_v20  ;;  %1736 = vmatpush.bf16.msra.mxu0 %v2490_v44 }
  0xf6   : > { %1681 = vmatmul.bf16.vlgmr.msra.gmra.mxu2 %v1400_v50 }
  0xf7   : > { %1649 = vmatpush.bf16.msrb.mxu3 %v2526_v45  ;;  %1747 = vmatpush.bf16.msrb.mxu2 %v2666_v47 }
  0xf8   : > { %1737 = vmatmul.bf16.vlgmr.msra.gmra.mxu0 %v1400_v50  ;;  %1705 = vmatpush.bf16.msrb.mxu1 %v2534_v51 }
  0xfb   : > { %1650 = vmatpush.bf16.msrb.mxu3 %v2510_v52  ;;  %1748 = vmatpush.bf16.msrb.mxu2 %v2650_v54 }
  0xfc   : > { %1706 = vmatpush.bf16.msrb.mxu1 %v2518_v59  ;;  %v3999_v59 = vld [vmem:[#allocation2] sm:$0xf] }
  0xfd   : > { %v1767_v23 = vperm.slane %v3999_v59, 0 }
  0xff   : > { %1651 = vmatpush.bf16.msrb.mxu3 %v2494_v60  ;;  %1749 = vmatpush.bf16.msrb.mxu2 %v2634_v63  ;;  %v1768_v63 = vperm.slane %v3999_v59, 1 }
 0x100   : > { %1707 = vmatpush.bf16.msrb.mxu1 %v2502_v11 }
 0x103   : > { %1652 = vmatpush.bf16.msrb.mxu3 %v2478_v12  ;;  %1750 = vmatpush.bf16.msrb.mxu2 %v2618_v22 }
 0x104   : > { %1708 = vmatpush.bf16.msrb.mxu1 %v2486_v25 }
 0x106   : > { %1653 = vmatmul.bf16.vlgmr.msrb.gmra.mxu3 %v1400_v50  ;;  %2670 = vmatmul.msk.bf16.vlgmr.msrb.gmra.mxu2 %vm601_vm0, %v3738_v15 }
 0x107   : > { %1719 = vmatpush.bf16.msra.mxu3 %v2662_v21  ;;  %1709 = vmatmul.bf16.vlgmr.msrb.gmra.mxu1 %v1400_v50 }
 0x10b   : > { %1720 = vmatpush.bf16.msra.mxu3 %v2646_v26 }
 0x10f   : > { %1721 = vmatpush.bf16.msra.mxu3 %v2630_v29 }
 0x113   : > { %1722 = vmatpush.bf16.msra.mxu3 %v2614_v31 }
 0x116   : > { %2669 = vmatmul.msk.bf16.vlgmr.msra.gmra.mxu3 %vm601_vm0, %v3738_v15 }
 0x122   : > { %v921_v34 = vpop.f32.mrf.mxu1  ;;  %v907_v13 = vpop.f32.mrf.mxu0 }
 0x123   : > { %v922_v61 = vadd.f32 %v921_v34, %v907_v13 }
 0x129   : > { %v935_v32 = vpop.f32.mrf.mxu2  ;;  %v949_v33 = vpop.f32.mrf.mxu3 }
 0x12a   : > { %v923_v14 = vpop.f32.mrf.mxu1  ;;  %v909_v5 = vpop.f32.mrf.mxu0  ;;  %v950_v55 = vadd.f32 %v949_v33, %v935_v32 }
 0x12b   : > { %v924_v24 = vadd.f32 %v923_v14, %v909_v5 }
 0x131   : > { %v937_v37 = vpop.f32.mrf.mxu2  ;;  %v951_v16 = vpop.f32.mrf.mxu3 }
 0x132   : > { %v3981_v2 = vpop.f32.mrf.mxu1  ;;  %v991_v39 = vpop.f32.mrf.mxu0  ;;  %v952_v8 = vadd.f32 %v951_v16, %v937_v37 }
 0x139   : > { %v3977_v0 = vpop.f32.mrf.mxu3  ;;  %v1005_v1 = vpop.f32.mrf.mxu2 }
 0x13a   : > { %v3985_v15 = vpop.f32.mrf.mxu1  ;;  %v3987_v44 = vpop.f32.mrf.mxu0  ;;  %v1006_v29 = vadd.f32 %v1005_v1, %v991_v39  ;;  %v1770_v39 = vperm.slane %v3999_v59, 3 }
 0x141   : > { %v3979_v19 = vpop.f32.mrf.mxu3  ;;  %v3983_v42 = vpop.f32.mrf.mxu2 }
 0x142   : > { %v1285_v45 = vpop.f32.mrf.mxu1 }
 0x146   : > { %v1355_v47 = vpop.f32.mrf.mxu0 }
 0x147   : > { %v1356_v32 = vadd.f32 %v1355_v47, %v1006_v29 }
 0x149   : > { %v1271_v41 = vpop.f32.mrf.mxu3  ;;  %v1299_v43 = vpop.f32.mrf.mxu2 }
 0x14a   : > { %v1287_v38 = vpop.f32.mrf.mxu1  ;;  %v1300_v57 = vadd.f32 %v1299_v43, %v950_v55  ;;  %v1272_v9 = vadd.f32 %v1271_v41, %v922_v61 }
 0x14c   : > { %v1286_v18 = vadd.f32 %v1285_v45, %v1272_v9 }
 0x14e   : > { %v1357_v49 = vpop.f32.mrf.mxu0 }
 0x151   : > { %v1273_v20 = vpop.f32.mrf.mxu3  ;;  %v1301_v36 = vpop.f32.mrf.mxu2 }
 0x152   : > { %v1302_v10 = vadd.f32 %v1301_v36, %v952_v8  ;;  %v1274_v30 = vadd.f32 %v1273_v20, %v924_v24 }
 0x154   : > { %v1288_v45 = vadd.f32 %v1287_v38, %v1274_v30  ;;  %v978_v38 = vadd.f32 %v3977_v0, %v3981_v2 }
 0x156   : > { %v3989_v50 = vpop.f32.mrf.mxu1  ;;  %v1696_v53 = vpop.f32.mrf.mxu0 }
 0x159   : > { %v1313_v46 = vpop.f32.mrf.mxu3  ;;  %v1369_v40 = vpop.f32.mrf.mxu2 }
 0x15a   : > { %v1314_v60 = vadd.f32 %v1313_v46, %v1300_v57  ;;  %v1370_v41 = vadd.f32 %v1369_v40, %v1356_v32 }
 0x15e   : > { %v3995_v7 = vpop.f32.mrf.mxu1  ;;  %v1698_v4 = vpop.f32.mrf.mxu0 }
 0x161   : > { %v1315_v48 = vpop.f32.mrf.mxu3  ;;  %v3991_v51 = vpop.f32.mrf.mxu2 }
 0x162   : > { %v1316_v21 = vadd.f32 %v1315_v48, %v1302_v10  ;;  %v1008_v48 = vadd.f32 %v3983_v42, %v3987_v44  ;;  %v1769_v42 = vperm.slane %v3999_v59, 2 }
 0x166   : > { %v1668_v6 = vpop.f32.mrf.mxu1 }
 0x169   : > { %v3993_v52 = vpop.f32.mrf.mxu3 }
 0x16e   : > { %v1670_v33 = vpop.f32.mrf.mxu1 }
 0x171   : > { %v3997_v56 = vpop.f32.mrf.mxu3 }
 0x175   : > { %v1738_v35 = vpop.f32.mrf.mxu0 }
 0x179   : > { %v1682_v54 = vpop.f32.mrf.mxu2 }
 0x17a   : > { %v1697_v58 = vadd.f32 %v1696_v53, %v1682_v54  ;;  %v1358_v54 = vadd.f32 %v1357_v49, %v1008_v48 }
 0x17c   : > { %v1758_v62 = vadd.f32 %v1697_v58, %v1314_v60  ;;  %v1328_v60 = vadd.f32 %v3989_v50, %v978_v38 }
 0x17d   : > { %v1740_v55 = vpop.f32.mrf.mxu0 }
 0x17e   : > { %v1776_v11 = vadd.f32 %v1768_v63, %v1758_v62  ;;  %v1342_v44 = vadd.f32 %v3993_v52, %v1328_v60 }
 0x180   : > { %v1784_v25 = vmax.f32 %v1776_v11, 0.0 }
 0x181   : > { %v1684_v3 = vpop.f32.mrf.mxu2 }
 0x182   : > { %v1699_v12 = vadd.f32 %v1698_v4, %v1684_v3  ;;  %v1799_v37 = vrot.slane %v1784_v25, 4  ;;  %v1372_v3 = vadd.f32 %v3991_v51, %v1358_v54  ;;  %v980_v51 = vadd.f32 %v3979_v19, %v3985_v15 }
 0x184   : > { %v1762_v26 = vadd.f32 %v1699_v12, %v1316_v21  ;;  %v1710_v57 = vpop.f32.mrf.mxu1  ;;  %v1330_v52 = vadd.f32 %v3995_v7, %v980_v51 }
 0x186   : > { %v1780_v16 = vadd.f32 %v1768_v63, %v1762_v26  ;;  %v1344_v25 = vadd.f32 %v3997_v56, %v1330_v52 }
 0x188   : > { %v1788_v20 = vmax.f32 %v1780_v16, 0.0 }
 0x189   : > { %v1654_v17 = vpop.f32.mrf.mxu3  ;;  %v1752_v28 = vpop.f32.mrf.mxu2 }
 0x18a   : > { %v1669_v22 = vadd.f32 %v1668_v6, %v1654_v17  ;;  %v1753_v34 = vadd.f32 %v1752_v28, %v1738_v35  ;;  %v1801_v61 = vrot.slane %v1788_v20, 4 }
 0x18c   : > { %v1757_v27 = vadd.f32 %v1669_v22, %v1286_v18  ;;  %v1760_v1 = vadd.f32 %v1753_v34, %v1370_v41 }
 0x18e   : > { %v1775_v31 = vadd.f32 %v1767_v23, %v1757_v27  ;;  %v1778_v58 = vadd.f32 %v1770_v39, %v1760_v1 }
 0x190   : > { %v1783_v13 = vmax.f32 %v1775_v31, 0.0  ;;  %v1786_v9 = vmax.f32 %v1778_v58, 0.0 }
 0x191   : > { %v1656_v43 = vpop.f32.mrf.mxu3  ;;  %v1754_v53 = vpop.f32.mrf.mxu2 }
 0x192   : > { %v1804_v14 = vsel %vm1803_vm2, %v1783_v13, %v1799_v37  ;;  %v1806_v5 = vsel %vm1803_vm2, %v1799_v37, %v1783_v13  ;;  %v1671_v36 = vadd.f32 %v1670_v33, %v1656_v43  ;;  %v1755_v63 = vadd.f32 %v1754_v53, %v1740_v55 }
 0x193   : > { %v1807_v46 = vrot.slane %v1806_v5, 4  ;;  %1816 = vst [vmem:[#allocation1] ss:$2 sm:$0xff] %v1804_v14  ;;  %v1800_v18 = vrot.slane %v1786_v9, 4 }
 0x194   : > { %v1761_v47 = vadd.f32 %v1671_v36, %v1288_v45  ;;  %v1764_v12 = vadd.f32 %v1755_v63, %v1372_v3 }
 0x195   : > { %1824 = vst [vmem:[#allocation1 + $0x20] ss:$2 sm:$0xff] %v1807_v46 }
 0x196   : > { %v1779_v40 = vadd.f32 %v1767_v23, %v1761_v47  ;;  %v1782_v21 = vadd.f32 %v1770_v39, %v1764_v12  ;;  %v1712_v23 = vpop.f32.mrf.mxu1 }
 0x198   : > { %v1787_v62 = vmax.f32 %v1779_v40, 0.0  ;;  %v1790_v35 = vmax.f32 %v1782_v21, 0.0 }
 0x199   : > { %v1724_v4 = vpop.f32.mrf.mxu3 }
 0x19a   : > { %v1810_v6 = vsel %vm1803_vm2, %v1787_v62, %v1801_v61  ;;  %v1812_v0 = vsel %vm1803_vm2, %v1801_v61, %v1787_v62  ;;  %v1725_v2 = vadd.f32 %v1724_v4, %v1710_v57  ;;  %v1819_v49 = vld.sshfl [vmem:[#allocation1] sm:$0xff pattern:$0x75316420]  ;;  %v1820_v8 = vld.sshfl [vmem:[#allocation1 + $0x8] sm:$0xff pattern:$0x75316420] }
 0x19b   : > { %v1813_v10 = vrot.slane %v1812_v0, 4  ;;  %1831 = vst [vmem:[#allocation1] ss:$2 sm:$0xff] %v1810_v6  ;;  %v1859_v15 = vpack.c.bf16 %v1820_v8, %v1819_v49  ;;  %v1802_v30 = vrot.slane %v1790_v35, 4 }
 0x19c   : > { %v1827_v50 = vld.sshfl [vmem:[#allocation1 + $0x20] sm:$0xff pattern:$0x75316420]  ;;  %v1828_v11 = vld.sshfl [vmem:[#allocation1 + $0x28] sm:$0xff pattern:$0x75316420]  ;;  %v1759_v17 = vadd.f32 %v1725_v2, %v1342_v44 }
 0x19d   : > { %1837 = vst [vmem:[#allocation1 + $0x20] ss:$2 sm:$0xff] %v1813_v10  ;;  %v1861_v32 = vpack.c.bf16 %v1828_v11, %v1827_v50  ;;  %v1875_v33 = vrot.slane %v1859_v15, 2 }
 0x19e   : > { %v1777_v59 = vadd.f32 %v1769_v42, %v1759_v17 }
 0x19f   : > { %v1878_v36 = vrot.slane %v1861_v32, 2  ;;  %v1889_v48 = vsel %vm618_vm1, %v1859_v15, %v1875_v33 }
 0x1a0   : > { %v1785_v22 = vmax.f32 %v1777_v59, 0.0 }
 0x1a1   : > { %v1726_v24 = vpop.f32.mrf.mxu3  ;;  %v1897_v57 = vsel %vm618_vm1, %v1861_v32, %v1878_v36 }
 0x1a2   : > { %v1805_v26 = vsel %vm1803_vm2, %v1785_v22, %v1800_v18  ;;  %v1808_v27 = vsel %vm1803_vm2, %v1800_v18, %v1785_v22  ;;  %v1727_v28 = vadd.f32 %v1726_v24, %v1712_v23  ;;  %v1833_v13 = vld.sshfl [vmem:[#allocation1] sm:$0xff pattern:$0x75316420]  ;;  %v1834_v43 = vld.sshfl [vmem:[#allocation1 + $0x8] sm:$0xff pattern:$0x75316420] }
 0x1a3   : > { %v1809_v29 = vrot.slane %v1808_v27, 4  ;;  %1818 = vst [vmem:[#allocation1 + $0x10] ss:$2 sm:$0xff] %v1805_v26  ;;  %v1863_v53 = vpack.c.bf16 %v1834_v43, %v1833_v13 }
 0x1a4   : > { %v1763_v19 = vadd.f32 %v1727_v28, %v1344_v25  ;;  %v1839_v20 = vld.sshfl [vmem:[#allocation1 + $0x20] sm:$0xff pattern:$0x75316420]  ;;  %v1840_v47 = vld.sshfl [vmem:[#allocation1 + $0x28] sm:$0xff pattern:$0x75316420] }
 0x1a5   : > { %1826 = vst [vmem:[#allocation1 + $0x30] ss:$2 sm:$0xff] %v1809_v29  ;;  %v1865_v58 = vpack.c.bf16 %v1840_v47, %v1839_v20  ;;  %v1881_v4 = vrot.slane %v1863_v53, 2 }
 0x1a6   : > { %v1781_v7 = vadd.f32 %v1769_v42, %v1763_v19 }
 0x1a7   : > { %v1884_v49 = vrot.slane %v1865_v58, 2  ;;  %v1904_v10 = vsel %vm618_vm1, %v1863_v53, %v1881_v4 }
 0x1a8   : > { %v1789_v31 = vmax.f32 %v1781_v7, 0.0 }
 0x1a9   : > { %v1911_v12 = vsel %vm618_vm1, %v1865_v58, %v1884_v49 }
 0x1aa   : > { %v1811_v56 = vsel %vm1803_vm2, %v1789_v31, %v1802_v30  ;;  %v1814_v34 = vsel %vm1803_vm2, %v1802_v30, %v1789_v31  ;;  %v1821_v37 = vld.sshfl [vmem:[#allocation1 + $0x10] sm:$0xff pattern:$0x75316420]  ;;  %v1822_v16 = vld.sshfl [vmem:[#allocation1 + $0x18] sm:$0xff pattern:$0x75316420] }
 0x1ab   : > { %v1815_v41 = vrot.slane %v1814_v34, 4  ;;  %1832 = vst [vmem:[#allocation1 + $0x10] ss:$2 sm:$0xff] %v1811_v56  ;;  %v1860_v45 = vpack.c.bf16 %v1822_v16, %v1821_v37 }
 0x1ac   : > { %v1829_v14 = vld.sshfl [vmem:[#allocation1 + $0x30] sm:$0xff pattern:$0x75316420]  ;;  %v1830_v5 = vld.sshfl [vmem:[#allocation1 + $0x38] sm:$0xff pattern:$0x75316420] }
 0x1ad   : > { %1838 = vst [vmem:[#allocation1 + $0x30] ss:$2 sm:$0xff] %v1815_v41  ;;  %v1862_v46 = vpack.c.bf16 %v1830_v5, %v1829_v14  ;;  %v1876_v1 = vrot.slane %v1860_v45, 4  ;;  %v1877_v39 = vrot.slane %v1860_v45, 6 }
 0x1af   : > { %v1879_v38 = vrot.slane %v1862_v46, 4  ;;  %v1880_v40 = vrot.slane %v1862_v46, 6  ;;  %v1893_v54 = vsel %vm1890_vm3, %v1876_v1, %v1877_v39 }
 0x1b0   : > { %v1894_v55 = vsel %vm1803_vm2, %v1889_v48, %v1893_v54 }
 0x1b1   : > { %v1900_v60 = vsel %vm1890_vm3, %v1879_v38, %v1880_v40  ;;  %1920 = vst [vmem:[%s4028_s7] sm:$0xff] %v1894_v55 }
 0x1b2   : > { %v1835_v61 = vld.sshfl [vmem:[#allocation1 + $0x10] sm:$0xff pattern:$0x75316420]  ;;  %v1836_v62 = vld.sshfl [vmem:[#allocation1 + $0x18] sm:$0xff pattern:$0x75316420]  ;;  %v1901_v63 = vsel %vm1803_vm2, %v1897_v57, %v1900_v60 }
 0x1b3   : > { %v1864_v3 = vpack.c.bf16 %v1836_v62, %v1835_v61  ;;  %1921 = vst [vmem:[%s4028_s7 + $0x8] sm:$0xff] %v1901_v63 }
 0x1b4   : > { %v1841_v42 = vld.sshfl [vmem:[#allocation1 + $0x30] sm:$0xff pattern:$0x75316420]  ;;  %v1842_v44 = vld.sshfl [vmem:[#allocation1 + $0x38] sm:$0xff pattern:$0x75316420] }
 0x1b5   : > { %v1866_v6 = vpack.c.bf16 %v1842_v44, %v1841_v42  ;;  %v1882_v0 = vrot.slane %v1864_v3, 4  ;;  %v1883_v2 = vrot.slane %v1864_v3, 6 }
 0x1b7   : > { %v1885_v8 = vrot.slane %v1866_v6, 4  ;;  %v1886_v9 = vrot.slane %v1866_v6, 6  ;;  %v1907_v50 = vsel %vm1890_vm3, %v1882_v0, %v1883_v2 }
 0x1b8   : > { %v1908_v11 = vsel %vm1803_vm2, %v1904_v10, %v1907_v50 }
 0x1b9   : > { %v1914_v17 = vsel %vm1890_vm3, %v1885_v8, %v1886_v9  ;;  %1922 = vst [vmem:[%s4028_s7 + $0x10] sm:$0xff] %v1908_v11 }
 0x1ba   : > { %v1915_v51 = vsel %vm1803_vm2, %v1911_v12, %v1914_v17 }
 0x1bb   : > { %1923 = vst [vmem:[%s4028_s7 + $0x18] sm:$0xff] %v1915_v51 }
 0x1bc PF: > { %s16_s20 = sadd.s32 1, %s2917_s20   ;;  %s4061_s18 = smov %s2913_s19 }
 0x1bd   : > { %p13_p8 = scmp.ge.s32.totalorder %s16_s20, 4   ;;  %s4062_s19 = smov %s4064_s22 }
 0x1bf   :  { %15 = sbr.rel (!%p13_p8) target bundleno = 2 (0x2), region = 93 }
 0x1c4   :  { %1956 = vsyncpa [#allocation3], 1 }
 0x1c5   :  { %1958 = vsyncpa [#allocation3 + $0x1], 1 }

// kernel: ae_network_forward.12
= control target key start
LH: loop header
LB: loop body
LE: loop exit
PB: predicated region body
PF: predicated region fallthrough
CT: control target
= control target key end

     0   :  { %s2415_s30 = smov 0   ;;  %s2417_s10 = smov 0   ;;  %s2866_s0 = inlined_call_operand.vmem [shape: bf16[2,6,6,64], index: 0, kind: input, shape index: {}, may-alias: {0,1,2}]   ;;  %s2867_s1 = inlined_call_operand.vmem [shape: bf16[2,6,6,64], index: 1, kind: input, shape index: {}, may-alias: {0,1,2}]   ;;  %s2868_s2 = inlined_call_operand.vmem [shape: bf16[2,6,6,64], index: 2, kind: input, shape index: {}, may-alias: {0,1,2}]   ;;  %s2869_s3 = inlined_call_operand.vmem [shape: bf16[2,6,6,64], index: 3, kind: input, shape index: {}, may-alias: {3,4,5}]   ;;  %s2870_s4 = inlined_call_operand.vmem [shape: bf16[2,6,6,64], index: 4, kind: input, shape index: {}, may-alias: {3,4,5}]   ;;  %s2871_s5 = inlined_call_operand.vmem [shape: bf16[2,6,6,64], index: 5, kind: input, shape index: {}, may-alias: {3,4,5}]   ;;  %s2872_s6 = inlined_call_operand.vmem [shape: bf16[3,192,64], index: 6, kind: input, shape index: {}]   ;;  %s2873_s7 = inlined_call_operand.vmem [shape: bf16[3,192,64], index: 7, kind: input, shape index: {}]   ;;  %s2874_s8 = inlined_call_operand.vmem [shape: f32[1,64], index: 8, kind: input, shape index: {}]   ;;  %s2875_s9 = inlined_call_operand.vmem [shape: bf16[2,4,4,64], index: 9, kind: output, shape index: {}]  }
   0x1   :  { %s2419_s11 = smov 0  }
   0x2 LB: > { %s31_s12 = sadd.s32 1, %s2358_s10  ;;  %p1913_p0 = scmp.ge.s32.totalorder %s2362_s11, 1  ;;  %s2362_s11 = sphi %s2419_s11, %s19_s11   ;;  %s2358_s10 = sphi %s2417_s10, %s2877_s10   ;;  %s2354_s30 = sphi %s2415_s30, %s2876_s30  }
   0x3   : > { %p33_p1 = scmp.ge.s32.totalorder %s31_s12, 2  ;;  %p441_p2 = scmp.lt.s32.totalorder %s2362_s11, 3 }
   0x5   : > { %s2879_s12 = smov (%p33_p1, %s31_s12), 0  ;;  %p442_p3 = pnand %p1913_p0, %p441_p2 }
   0x6   : > { %p549_p4 = scmp.lt.s32.totalorder (!%p442_p3), %s2354_s30, 1  ;;  %s2364_s15 = smov (!%p442_p3), 64  }
   0x7   : > { %445 = sbr.rel (%p442_p3) target bundleno = 369 (0x171), region = 56 }
   0xc   : > { %s2881_s30 = smov (!%p549_p4, %s2354_s30), 1  ;;  %v2258_v40 = vld [vmem:[%s2872_s6 + $0x98] sm:$0xff]  ;;  %v2257_v52 = vld [vmem:[%s2872_s6 + $0x90] sm:$0xff]  ;;  %vm773_vm0 = vcmask 523264   ;;  %vm790_vm1 = vcmask 1041408   ;;  %vm1727_vm2 = vcmask 517120  }
   0xd   : > { %s2436_s13 = smul.u32 24, %s2881_s30  ;;  %v2246_v41 = vld [vmem:[%s2872_s6 + $0x38] sm:$0xff]  ;;  %902 = vmatpush.bf16.msra.mxu0 %v2258_v40  ;;  %v2245_v53 = vld [vmem:[%s2872_s6 + $0x30] sm:$0xff] }
   0xe   : > { %v2262_v47 = vld [vmem:[%s2872_s6 + $0xb8] sm:$0xff]  ;;  %1014 = vmatpush.bf16.msra.mxu2 %v2246_v41  ;;  %v2261_v57 = vld [vmem:[%s2872_s6 + $0xb0] sm:$0xff] }
   0xf   : > { %s2442_s16 = scalar_lea.vmem %s2866_s0, %s2436_s13  ;;  %s2231_s17 = sadd.s32 16, %s2436_s13  ;;  %920 = vmatpush.bf16.msra.mxu1 %v2262_v47 }
  0x10   : > { %v2446_v0 = vld [vmem:[%s2442_s16 + $0xc] sm:$0x7]  ;;  %v2449_v1 = vld [vmem:[%s2442_s16 + $0x4] sm:$0x7]  ;;  %s571_s20 = scalar_lea.vmem %s2867_s1, %s2231_s17  ;;  %v2457_v2 = vld [vmem:[%s2442_s16 + $0x8] sm:$0x7]  ;;  %s2463_s23 = scalar_lea.vmem %s2869_s3, %s2436_s13 }
  0x11   : > { %v728_v3 = vunpack.c.l.b16 %v2446_v0  ;;  %v726_v4 = vunpack.c.l.b16 %v2449_v1  ;;  %v2467_v5 = vld [vmem:[%s571_s20] sm:$0x7]  ;;  %v727_v6 = vunpack.c.l.b16 %v2457_v2  ;;  %v2481_v12 = vld [vmem:[%s2463_s23 + $0x4] sm:$0x7]  ;;  %s2233_s24 = sadd.s32 20, %s2436_s13  ;;  %s615_s14 = scalar_lea.vmem %s2870_s4, %s2231_s17  ;;  %903 = vmatpush.bf16.msra.mxu0 %v2257_v52  ;;  %v2250_v52 = vld [vmem:[%s2872_s6 + $0x58] sm:$0xff] }
  0x12   : > { %v800_v7 = vunpack.c.l.b16 %v2467_v5  ;;  %v2478_v11 = vld [vmem:[%s2463_s23] sm:$0x7]  ;;  %v1258_v19 = vunpack.c.l.b16 %v2481_v12  ;;  %s584_s27 = scalar_lea.vmem %s2868_s2, %s2233_s24  ;;  %v2515_v31 = vld [vmem:[%s2463_s23 + $0xc] sm:$0x7]  ;;  %v2539_v46 = vld [vmem:[%s2463_s23 + $0x8] sm:$0x7]  ;;  %1015 = vmatpush.bf16.msra.mxu2 %v2245_v53  ;;  %1032 = vmatpush.bf16.msra.mxu3 %v2250_v52 }
  0x13   : > { %v2471_v8 = vpack.c.b16 %v728_v3, %v728_v3  ;;  %v2473_v9 = vpack.c.b16 %v726_v4, %v726_v4  ;;  %v2475_v10 = vpack.c.b16 %v727_v6, %v727_v6  ;;  %v1257_v18 = vunpack.c.l.b16 %v2478_v11  ;;  %v2505_v24 = vld [vmem:[%s2442_s16] sm:$0x7]  ;;  %s628_s16 = scalar_lea.vmem %s2871_s5, %s2233_s24  ;;  %v2256_v4 = vld [vmem:[%s2872_s6 + $0x88] sm:$0xff]  ;;  %921 = vmatpush.bf16.msra.mxu1 %v2261_v57  ;;  %v2253_v53 = vld [vmem:[%s2872_s6 + $0x70] sm:$0xff] }
  0x14   : > { %v2484_v13 = vpack.c.b16 %v800_v7, %v800_v7  ;;  %v2507_v27 = vld [vmem:[%s584_s27] sm:$0x7]  ;;  %v2512_v30 = vpack.c.b16 %v1258_v19, %v1258_v19  ;;  %v725_v36 = vunpack.c.l.b16 %v2505_v24  ;;  %v1260_v38 = vunpack.c.l.b16 %v2515_v31  ;;  %v2244_v6 = vld [vmem:[%s2872_s6 + $0x28] sm:$0xff]  ;;  %v2249_v57 = vld [vmem:[%s2872_s6 + $0x50] sm:$0xff] }
  0x15   : > { %v755_v14 = vshrl.u32 %v2471_v8, 16  ;;  %v757_v15 = vshll.u32 %v2471_v8, 16  ;;  %v741_v16 = vshrl.u32 %v2473_v9, 16  ;;  %v743_v17 = vshll.u32 %v2473_v9, 16  ;;  %v2520_v35 = vld [vmem:[%s615_s14] sm:$0x7]  ;;  %904 = vmatpush.bf16.msra.mxu0 %v2256_v4 }
  0x16   : > { %v805_v22 = vshll.u32 %v2484_v13, 16  ;;  %v750_v23 = vshll.u32 %v2475_v10, 16  ;;  %v803_v28 = vshrl.u32 %v2484_v13, 16  ;;  %v2510_v29 = vpack.c.b16 %v1257_v18, %v1257_v18  ;;  %1016 = vmatpush.bf16.msra.mxu2 %v2244_v6  ;;  %1033 = vmatpush.bf16.msra.mxu3 %v2249_v57  ;;  %v2268_v4 = vld [vmem:[%s2872_s6 + $0xe8] sm:$0xff]  ;;  %v2282_v6 = vld [vmem:[%s2873_s7 + $0x38] sm:$0xff]  ;;  %v2275_v57 = vld [vmem:[%s2873_s7] sm:$0xff] }
  0x17   : > { %v759_v20 = vrot.slane %v757_v15, 1  ;;  %v745_v21 = vrot.slane %v743_v17, 1  ;;  %v748_v33 = vshrl.u32 %v2475_v10, 16  ;;  %v1043_v37 = vunpack.c.l.b16 %v2507_v27  ;;  %v2583_v17 = vld [vmem:[%s628_s16] sm:$0x7]  ;;  %s2238_s16 = sshll.u32 %s2881_s30, 3 }
  0x18   : > { %v807_v32 = vrot.slane %v805_v22, 1  ;;  %v752_v34 = vrot.slane %v750_v23, 1  ;;  %v2525_v39 = vpack.c.b16 %v725_v36, %v725_v36  ;;  %v1268_v42 = vshll.u32 %v2510_v29, 16  ;;  %v2255_v22 = vld [vmem:[%s2872_s6 + $0x80] sm:$0xff]  ;;  %s640_s19 = scalar_lea.vmem %s2875_s9, %s2238_s16 }
  0x19   : > { %v760_v25 = vor.u32 %v759_v20, %v755_v14  ;;  %v746_v26 = vor.u32 %v745_v21, %v741_v16  ;;  %v1275_v43 = vshll.u32 %v2512_v30, 16  ;;  %v1444_v44 = vunpack.c.l.b16 %v2520_v35  ;;  %v2260_v16 = vld [vmem:[%s2872_s6 + $0xa8] sm:$0xff]  ;;  %v2243_v23 = vld [vmem:[%s2872_s6 + $0x20] sm:$0xff]  ;;  %905 = vmatpush.bf16.msra.mxu0 %v2255_v22  ;;  %v2285_v22 = vld [vmem:[%s2873_s7 + $0x50] sm:$0xff] }
  0x1a   : > { %v2536_v45 = vpack.c.b16 %v1043_v37, %v1043_v37  ;;  %v808_v48 = vor.u32 %v807_v32, %v803_v28  ;;  %v753_v49 = vor.u32 %v752_v34, %v748_v33  ;;  %v734_v50 = vshrl.u32 %v2525_v39, 16  ;;  %922 = vmatpush.bf16.msra.mxu1 %v2260_v16  ;;  %1017 = vmatpush.bf16.msra.mxu2 %v2243_v23  ;;  %v2254_v37 = vld [vmem:[%s2872_s6 + $0x78] sm:$0xff] }
  0x1b   : > { %767 = vrot.lane.b32.xlu1 %v760_v25, %s2364_s15  ;;  %763 = vrot.lane.b32.xlu0 %v746_v26, %s2364_s15  ;;  %v736_v51 = vshll.u32 %v2525_v39, 16  ;;  %v1259_v56 = vunpack.c.l.b16 %v2539_v46  ;;  %v1266_v58 = vshrl.u32 %v2510_v29, 16  ;;  %v1270_v59 = vrot.slane %v1268_v42, 1  ;;  %v2274_v16 = vld [vmem:[%s2872_s6 + $0x118] sm:$0xff] }
  0x1c   : > { %v1048_v55 = vshll.u32 %v2536_v45, 16  ;;  %v1273_v60 = vshrl.u32 %v2512_v30, 16  ;;  %v1277_v61 = vrot.slane %v1275_v43, 1  ;;  %v2561_v62 = vpack.c.b16 %v1260_v38, %v1260_v38  ;;  %v2266_v23 = vld [vmem:[%s2872_s6 + $0xd8] sm:$0xff] }
  0x1d   : > { %v738_v54 = vrot.slane %v736_v51, 1  ;;  %v2563_v63 = vpack.c.b16 %v1444_v44, %v1444_v44  ;;  %v1046_v7 = vshrl.u32 %v2536_v45, 16  ;;  %v2578_v15 = vpack.c.b16 %v1259_v56, %v1259_v56  ;;  %906 = vmatpush.bf16.msra.mxu0 %v2254_v37  ;;  %v2242_v51 = vld [vmem:[%s2872_s6 + $0x18] sm:$0xff]  ;;  %v2241_v56 = vld [vmem:[%s2872_s6 + $0x10] sm:$0xff] }
  0x1e   : > { %v1050_v14 = vrot.slane %v1048_v55, 1  ;;  %v1271_v18 = vor.u32 %v1270_v59, %v1266_v58  ;;  %v1278_v19 = vor.u32 %v1277_v61, %v1273_v60  ;;  %v1289_v20 = vshll.u32 %v2561_v62, 16  ;;  %1018 = vmatpush.bf16.msra.mxu2 %v2242_v51  ;;  %v2270_v55 = vld [vmem:[%s2872_s6 + $0xf8] sm:$0xff]  ;;  %v2252_v58 = vld [vmem:[%s2872_s6 + $0x68] sm:$0xff]  ;;  %v2269_v59 = vld [vmem:[%s2872_s6 + $0xf0] sm:$0xff] }
  0x1f   : > { %v739_v3 = vor.u32 %v738_v54, %v734_v50  ;;  %v1449_v21 = vshll.u32 %v2563_v63, 16  ;;  %v1282_v26 = vshll.u32 %v2578_v15, 16  ;;  %v1577_v28 = vunpack.c.l.b16 %v2583_v17  ;;  %v2259_v54 = vld [vmem:[%s2872_s6 + $0xa0] sm:$0xff]  ;;  %v2240_v60 = vld [vmem:[%s2872_s6 + $0x8] sm:$0xff] }
  0x20   : > { %v1051_v25 = vor.u32 %v1050_v14, %v1046_v7  ;;  %v1287_v32 = vshrl.u32 %v2561_v62, 16  ;;  %v1291_v33 = vrot.slane %v1289_v20, 1  ;;  %v1447_v34 = vshrl.u32 %v2563_v63, 16  ;;  %923 = vmatpush.bf16.msra.mxu1 %v2259_v54  ;;  %v2248_v61 = vld [vmem:[%s2872_s6 + $0x48] sm:$0xff]  ;;  %v2239_v7 = vld [vmem:[%s2872_s6] sm:$0xff]  ;;  %v2281_v20 = vld [vmem:[%s2873_s7 + $0x30] sm:$0xff] }
  0x21   : > { %761 = vrot.lane.b32.xlu2 %v739_v3, %s2364_s15  ;;  %v1451_v36 = vrot.slane %v1449_v21, 1  ;;  %v1280_v38 = vshrl.u32 %v2578_v15, 16  ;;  %v1284_v40 = vrot.slane %v1282_v26, 1  ;;  %v2604_v41 = vpack.c.b16 %v1577_v28, %v1577_v28  ;;  %907 = vmatpush.bf16.msra.mxu0 %v2253_v53  ;;  %v2251_v3 = vld [vmem:[%s2872_s6 + $0x60] sm:$0xff]  ;;  %v2273_v21 = vld [vmem:[%s2872_s6 + $0x110] sm:$0xff]  ;;  %v2272_v26 = vld [vmem:[%s2872_s6 + $0x108] sm:$0xff] }
  0x22   : > { %v1292_v42 = vor.u32 %v1291_v33, %v1287_v32  ;;  %1019 = vmatpush.bf16.msra.mxu2 %v2241_v56  ;;  %1034 = vmatpush.bf16.msra.mxu3 %v2248_v61  ;;  %v2247_v14 = vld [vmem:[%s2872_s6 + $0x40] sm:$0xff]  ;;  %v2284_v28 = vld [vmem:[%s2873_s7 + $0x48] sm:$0xff]  ;;  %v2265_v32 = vld [vmem:[%s2872_s6 + $0xd0] sm:$0xff] }
  0x23   : > { %809 = vrot.lane.b32.xlu1 %v808_v48, %s2364_s15  ;;  %765 = vrot.lane.b32.xlu0 %v753_v49, %s2364_s15  ;;  %v1452_v43 = vor.u32 %v1451_v36, %v1447_v34  ;;  %v1285_v44 = vor.u32 %v1284_v40, %v1280_v38  ;;  %v1582_v47 = vshll.u32 %v2604_v41, 16  ;;  %v1580_v48 = vshrl.u32 %v2604_v41, 16  ;;  %v2279_v33 = vld [vmem:[%s2873_s7 + $0x20] sm:$0xff] }
  0x24   : > { %1145 = vmatpush.bf16.msrb.mxu1 %v2270_v55  ;;  %v1925_v34 = vrot.slane %v2471_v8, 7  ;;  %v1923_v36 = vrot.slane %v2473_v9, 7  ;;  %v2271_v40 = vld [vmem:[%s2872_s6 + $0x100] sm:$0xff]  ;;  %v2264_v9 = vld [vmem:[%s2872_s6 + $0xc8] sm:$0xff] }
  0x25   : > { %v1584_v49 = vrot.slane %v1582_v47, 1  ;;  %908 = vmatpush.bf16.msra.mxu0 %v2252_v58  ;;  %v2298_v58 = vld [vmem:[%s2873_s7 + $0xb8] sm:$0xff] }
  0x26   : > { %1020 = vmatpush.bf16.msra.mxu2 %v2240_v60  ;;  %1035 = vmatpush.bf16.msra.mxu3 %v2247_v14  ;;  %v2025_v14 = vrot.slane %v2536_v45, 7 }
  0x27   : > { %v1585_v50 = vor.u32 %v1584_v49, %v1580_v48  ;;  %v1926_v49 = vrot.slane %v2484_v13, 7 }
  0x28   : > { %1146 = vmatpush.bf16.msrb.mxu1 %v2269_v59 }
  0x29   : > { %1052 = vrot.lane.b32.xlu2 %v1051_v25, %s2364_s15  ;;  %909 = vmatpush.bf16.msra.mxu0 %v2251_v3  ;;  %v2280_v25 = vld [vmem:[%s2873_s7 + $0x28] sm:$0xff] }
  0x2a   : > { %1021 = vmatpush.bf16.msra.mxu2 %v2239_v7  ;;  %1163 = vmatpush.bf16.msrb.mxu3 %v2274_v16  ;;  %v2309_v7 = vld [vmem:[%s2873_s7 + $0x110] sm:$0xff] }
  0x2b   : > { %1293 = vrot.lane.b32.xlu0 %v1271_v18, %s2364_s15  ;;  %1295 = vrot.lane.b32.xlu1 %v1278_v19, %s2364_s15  ;;  %v2286_v18 = vld [vmem:[%s2873_s7 + $0x58] sm:$0xff]  ;;  %v2267_v19 = vld [vmem:[%s2872_s6 + $0xe0] sm:$0xff] }
  0x2c   : > { %1147 = vmatpush.bf16.msrb.mxu1 %v2268_v4 }
  0x2d   : > { %1413 = vmatpush.bf16.msrb.mxu0 %v2282_v6  ;;  %v2296_v6 = vld [vmem:[%s2873_s7 + $0xa8] sm:$0xff] }
  0x2e   : > { %1431 = vmatpush.bf16.msrb.mxu2 %v2286_v18  ;;  %1164 = vmatpush.bf16.msrb.mxu3 %v2273_v21  ;;  %v2294_v18 = vld [vmem:[%s2873_s7 + $0x98] sm:$0xff] }
  0x30   : > { %1148 = vmatpush.bf16.msrb.mxu1 %v2267_v19  ;;  %v2306_v19 = vld [vmem:[%s2873_s7 + $0xf8] sm:$0xff] }
  0x31   : > { %1297 = vrot.lane.b32.xlu2 %v1285_v44, %s2364_s15  ;;  %1414 = vmatpush.bf16.msrb.mxu0 %v2281_v20  ;;  %v2278_v44 = vld [vmem:[%s2873_s7 + $0x18] sm:$0xff]  ;;  %v2295_v20 = vld [vmem:[%s2873_s7 + $0xa0] sm:$0xff] }
  0x32   : > { %1432 = vmatpush.bf16.msrb.mxu2 %v2285_v22  ;;  %1165 = vmatpush.bf16.msrb.mxu3 %v2272_v26 }
  0x33   : > { %1299 = vrot.lane.b32.xlu0 %v1292_v42, %s2364_s15  ;;  %1453 = vrot.lane.b32.xlu1 %v1452_v43, %s2364_s15  ;;  %v2283_v42 = vld [vmem:[%s2873_s7 + $0x40] sm:$0xff] }
  0x34   : > { %1149 = vmatpush.bf16.msrb.mxu1 %v2266_v23  ;;  %v2293_v23 = vld [vmem:[%s2873_s7 + $0x90] sm:$0xff] }
  0x35   : > { %1415 = vmatpush.bf16.msrb.mxu0 %v2280_v25  ;;  %v2305_v25 = vld [vmem:[%s2873_s7 + $0xf0] sm:$0xff] }
  0x36   : > { %1433 = vmatpush.bf16.msrb.mxu2 %v2284_v28  ;;  %1166 = vmatpush.bf16.msrb.mxu3 %v2271_v40  ;;  %v2307_v28 = vld [vmem:[%s2873_s7 + $0x100] sm:$0xff]  ;;  %v2078_v40 = vrot.slane %v2561_v62, 7 }
  0x38   : > { %1150 = vmatpush.bf16.msrb.mxu1 %v2265_v32  ;;  %v2076_v32 = vrot.slane %v2512_v30, 7 }
  0x39   : > { %1586 = vrot.lane.b32.xlu2 %v1585_v50, %s2364_s15  ;;  %1416 = vmatpush.bf16.msrb.mxu0 %v2279_v33  ;;  %v1924_v50 = vrot.slane %v2475_v10, 7  ;;  %v2276_v10 = vld [vmem:[%s2873_s7 + $0x8] sm:$0xff] }
  0x3a   : > { %1434 = vmatpush.bf16.msrb.mxu2 %v2283_v42  ;;  %v2075_v42 = vrot.slane %v2510_v29, 7  ;;  %v2291_v29 = vld [vmem:[%s2873_s7 + $0x80] sm:$0xff] }
  0x3c   : > { %1151 = vmatpush.bf16.msrb.mxu1 %v2264_v9 }
  0x3d   : > { %1417 = vmatpush.bf16.msrb.mxu0 %v2278_v44 }
  0x7b   : > { %v762_v13 = vpop.permute.xlu2 %761 }
  0x83   : > { %v1053_v4 = vpop.permute.xlu2 %1052 }
  0x84   : > { %v1057_v16 = vsel %vm773_vm0, %v2507_v27, %v1053_v4  ;;  %v2308_v27 = vld [vmem:[%s2873_s7 + $0x108] sm:$0xff] }
  0x85   : > { %v1060_v45 = vsel %vm790_vm1, %v1057_v16, %v2025_v14 }
  0x8d   : > { %v768_v37 = vpop.permute.xlu1 %767  ;;  %v764_v38 = vpop.permute.xlu0 %763 }
  0x8e   : > { %v785_v43 = vsel %vm773_vm0, %v2446_v0, %v768_v37  ;;  %v779_v8 = vsel %vm773_vm0, %v2449_v1, %v764_v38  ;;  %v2263_v0 = vld [vmem:[%s2872_s6 + $0xc0] sm:$0xff]  ;;  %v2277_v1 = vld [vmem:[%s2873_s7 + $0x10] sm:$0xff]  ;;  %v2292_v37 = vld [vmem:[%s2873_s7 + $0x88] sm:$0xff] }
  0x8f   : > { %v798_v47 = vsel %vm790_vm1, %v785_v43, %v1925_v34  ;;  %v794_v48 = vsel %vm790_vm1, %v779_v8, %v1923_v36  ;;  %1152 = vmatpush.bf16.msrb.mxu1 %v2263_v0  ;;  %1418 = vmatpush.bf16.msrb.mxu0 %v2277_v1  ;;  %v1298_v36 = vpop.permute.xlu2 %1297  ;;  %v2304_v38 = vld [vmem:[%s2873_s7 + $0xe8] sm:$0xff]  ;;  %v2289_v1 = vld [vmem:[%s2873_s7 + $0x70] sm:$0xff] }
  0x90   : > { %822 = vst [vmem:[#allocation1 + $0x2] ss:$4 sm:$0xff] %v798_v47  ;;  %v1313_v9 = vsel %vm773_vm0, %v2539_v46, %v1298_v36  ;;  %v2290_v46 = vld [vmem:[%s2873_s7 + $0x78] sm:$0xff] }
  0x91   : > { %818 = vst [vmem:[#allocation1] ss:$4 sm:$0xff] %v794_v48 }
  0x93   : > { %1419 = vmatpush.bf16.msrb.mxu0 %v2276_v10 }
  0x95   : > { %v810_v51 = vpop.permute.xlu1 %809  ;;  %v766_v52 = vpop.permute.xlu0 %765 }
  0x96   : > { %v814_v53 = vsel %vm773_vm0, %v2467_v5, %v810_v51  ;;  %v782_v54 = vsel %vm773_vm0, %v2457_v2, %v766_v52  ;;  %v1922_v5 = vrot.slane %v2525_v39, 7  ;;  %v776_v2 = vsel %vm773_vm0, %v2505_v24, %v762_v13  ;;  %v2297_v39 = vld [vmem:[%s2873_s7 + $0xb0] sm:$0xff]  ;;  %v2310_v24 = vld [vmem:[%s2873_s7 + $0x118] sm:$0xff]  ;;  %v2288_v52 = vld [vmem:[%s2873_s7 + $0x68] sm:$0xff] }
  0x97   : > { %v817_v55 = vsel %vm790_vm1, %v814_v53, %v1926_v49  ;;  %v796_v56 = vsel %vm790_vm1, %v782_v54, %v1924_v50  ;;  %1420 = vmatpush.bf16.msrb.mxu0 %v2275_v57  ;;  %v2301_v49 = vld [vmem:[%s2873_s7 + $0xd0] sm:$0xff]  ;;  %v2128_v50 = vrot.slane %v2563_v63, 7  ;;  %v2300_v53 = vld [vmem:[%s2873_s7 + $0xc8] sm:$0xff]  ;;  %v2299_v63 = vld [vmem:[%s2873_s7 + $0xc0] sm:$0xff]  ;;  %v1587_v10 = vpop.permute.xlu2 %1586  ;;  %v2178_v13 = vrot.slane %v2604_v41, 7 }
  0x98   : > { %824 = vst [vmem:[#allocation1 + $0x3] ss:$4 sm:$0xff] %v817_v55  ;;  %v792_v61 = vsel %vm790_vm1, %v776_v2, %v1922_v5  ;;  %v1591_v57 = vsel %vm773_vm0, %v2583_v17, %v1587_v10 }
  0x99   : > { %820 = vst [vmem:[#allocation1 + $0x1] ss:$4 sm:$0xff] %v796_v56 }
  0x9d   : > { %v1294_v3 = vpop.permute.xlu0 %1293  ;;  %v1296_v26 = vpop.permute.xlu1 %1295 }
  0x9e   : > { %v1310_v34 = vsel %vm773_vm0, %v2481_v12, %v1296_v26  ;;  %v2077_v12 = vrot.slane %v2578_v15, 7  ;;  %v1307_v43 = vsel %vm773_vm0, %v2478_v11, %v1294_v3 }
  0x9f   : > { %v1324_v8 = vsel %vm790_vm1, %v1310_v34, %v2076_v32  ;;  %v1322_v11 = vsel %vm790_vm1, %v1307_v43, %v2075_v42 }
  0xa0   : > { %v825_v59 = vld.sshfl [vmem:[#allocation1] sm:$0xff pattern:$0x73625140]  ;;  %v826_v60 = vld.sshfl [vmem:[#allocation1 + $0x8] sm:$0xff pattern:$0x73625140] }
  0xa1   : > { %932 = vst [vmem:[#allocation1 + $0x1] ss:$4 sm:$0xff] %v794_v48  ;;  %910 = vmatmul.bf16.vlgmr.msra.gmra.mxu0 %v825_v59  ;;  %1975 = vmatmul.msk.bf16.vlgmr.msra.gmra.mxu1 %vm773_vm0, %v826_v60  ;;  %v2302_v48 = vld [vmem:[%s2873_s7 + $0xd8] sm:$0xff] }
  0xa2   : > { %934 = vst [vmem:[#allocation1 + $0x2] ss:$4 sm:$0xff] %v796_v56  ;;  %1564 = vmatpush.bf16.msra.mxu1 %v2298_v58  ;;  %1697 = vmatpush.bf16.msra.mxu0 %v2310_v24  ;;  %v1594_v58 = vsel %vm790_vm1, %v1591_v57, %v2178_v13 }
  0xa3   : > { %936 = vst [vmem:[#allocation1 + $0x3] ss:$4 sm:$0xff] %v798_v47 }
  0xa4   : > { %930 = vst [vmem:[#allocation1] ss:$4 sm:$0xff] %v792_v61 }
  0xa5   : > { %v1300_v33 = vpop.permute.xlu0 %1299  ;;  %v1454_v0 = vpop.permute.xlu1 %1453 }
  0xa6   : > { %1565 = vmatpush.bf16.msra.mxu1 %v2297_v39  ;;  %1698 = vmatpush.bf16.msra.mxu0 %v2309_v7  ;;  %v1316_v30 = vsel %vm773_vm0, %v2515_v31, %v1300_v33  ;;  %v2303_v31 = vld [vmem:[%s2873_s7 + $0xe0] sm:$0xff]  ;;  %v1458_v51 = vsel %vm773_vm0, %v2520_v35, %v1454_v0 }
  0xa7   : > { %v1328_v44 = vsel %vm790_vm1, %v1316_v30, %v2078_v40  ;;  %v2287_v35 = vld [vmem:[%s2873_s7 + $0x60] sm:$0xff] }
  0xaa   : > { %1566 = vmatpush.bf16.msra.mxu1 %v2296_v6  ;;  %1699 = vmatpush.bf16.msra.mxu0 %v2308_v27 }
  0xab   : > { %v937_v21 = vld.sshfl [vmem:[#allocation1] sm:$0xff pattern:$0x73625140]  ;;  %v938_v22 = vld.sshfl [vmem:[#allocation1 + $0x8] sm:$0xff pattern:$0x73625140] }
  0xac   : > { %1061 = vst [vmem:[#allocation1] ss:$4 sm:$0xff] %v796_v56  ;;  %1022 = vmatmul.bf16.vlgmr.msra.gmra.mxu2 %v937_v21  ;;  %2024 = vmatmul.msk.bf16.vlgmr.msra.gmra.mxu3 %vm773_vm0, %v938_v22  ;;  %v1461_v56 = vsel %vm790_vm1, %v1458_v51, %v2128_v50 }
  0xad   : > { %1063 = vst [vmem:[#allocation1 + $0x1] ss:$4 sm:$0xff] %v798_v47  ;;  %1546 = vmatpush.bf16.msra.mxu3 %v2294_v18  ;;  %1679 = vmatpush.bf16.msra.mxu2 %v2306_v19  ;;  %v1326_v47 = vsel %vm790_vm1, %v1313_v9, %v2077_v12 }
  0xae   : > { %1065 = vst [vmem:[#allocation1 + $0x2] ss:$4 sm:$0xff] %v817_v55  ;;  %1567 = vmatpush.bf16.msra.mxu1 %v2295_v20  ;;  %1700 = vmatpush.bf16.msra.mxu0 %v2307_v28 }
  0xaf   : > { %1067 = vst [vmem:[#allocation1 + $0x3] ss:$4 sm:$0xff] %v1060_v45 }
  0xb1   : > { %1547 = vmatpush.bf16.msra.mxu3 %v2293_v23  ;;  %1680 = vmatpush.bf16.msra.mxu2 %v2305_v25 }
  0xb5   : > { %1548 = vmatpush.bf16.msra.mxu3 %v2292_v37  ;;  %1681 = vmatpush.bf16.msra.mxu2 %v2304_v38 }
  0xb6   : > { %v1068_v62 = vld.sshfl [vmem:[#allocation1] sm:$0xff pattern:$0x73625140]  ;;  %v1069_v15 = vld.sshfl [vmem:[#allocation1 + $0x8] sm:$0xff pattern:$0x73625140] }
  0xb7   : > { %1331 = vst [vmem:[#allocation1 + $0x1] ss:$4 sm:$0xff] %v1324_v8  ;;  %1153 = vmatmul.bf16.vlgmr.msrb.gmra.mxu1 %v1068_v62 }
  0xb8   : > { %1329 = vst [vmem:[#allocation1] ss:$4 sm:$0xff] %v1322_v11 }
  0xb9   : > { %1335 = vst [vmem:[#allocation1 + $0x3] ss:$4 sm:$0xff] %v1328_v44  ;;  %1549 = vmatpush.bf16.msra.mxu3 %v2291_v29  ;;  %1682 = vmatpush.bf16.msra.mxu2 %v2303_v31  ;;  %v2339_v31 = vld [vmem:[%s2874_s8] ss:$0 sm:$0xff] }
  0xba   : > { %1333 = vst [vmem:[#allocation1 + $0x2] ss:$4 sm:$0xff] %v1326_v47 }
  0xbc   : > { %2074 = vmatmul.msk.bf16.vlgmr.msrb.gmra.mxu3 %vm773_vm0, %v1069_v15 }
  0xbd   : > { %1550 = vmatpush.bf16.msra.mxu3 %v2290_v46  ;;  %1683 = vmatpush.bf16.msra.mxu2 %v2302_v48 }
  0xc1   : > { %v1336_v54 = vld.sshfl [vmem:[#allocation1] sm:$0xff pattern:$0x73625140]  ;;  %v1337_v55 = vld.sshfl [vmem:[#allocation1 + $0x8] sm:$0xff pattern:$0x73625140]  ;;  %1551 = vmatpush.bf16.msra.mxu3 %v2289_v1  ;;  %1684 = vmatpush.bf16.msra.mxu2 %v2301_v49 }
  0xc2   : > { %1421 = vmatmul.bf16.vlgmr.msrb.gmra.mxu0 %v1336_v54  ;;  %2127 = vmatmul.msk.bf16.vlgmr.msrb.gmra.mxu2 %vm773_vm0, %v1337_v55  ;;  %1462 = vst [vmem:[#allocation1] ss:$4 sm:$0xff] %v1324_v8 }
  0xc3   : > { %1464 = vst [vmem:[#allocation1 + $0x1] ss:$4 sm:$0xff] %v1326_v47 }
  0xc4   : > { %1466 = vst [vmem:[#allocation1 + $0x2] ss:$4 sm:$0xff] %v1328_v44 }
  0xc5   : > { %1468 = vst [vmem:[#allocation1 + $0x3] ss:$4 sm:$0xff] %v1461_v56  ;;  %1552 = vmatpush.bf16.msra.mxu3 %v2288_v52  ;;  %1685 = vmatpush.bf16.msra.mxu2 %v2300_v53 }
  0xc9   : > { %1553 = vmatpush.bf16.msra.mxu3 %v2287_v35  ;;  %1686 = vmatpush.bf16.msra.mxu2 %v2299_v63 }
  0xcc   : > { %v1470_v5 = vld.sshfl [vmem:[#allocation1 + $0x8] sm:$0xff pattern:$0x73625140]  ;;  %v1469_v2 = vld.sshfl [vmem:[#allocation1] sm:$0xff pattern:$0x73625140] }
  0xcd   : > { %2177 = vmatmul.msk.bf16.vlgmr.msra.gmra.mxu1 %vm773_vm0, %v1470_v5  ;;  %1554 = vmatmul.bf16.vlgmr.msra.gmra.mxu3 %v1469_v2  ;;  %1595 = vst [vmem:[#allocation1] ss:$4 sm:$0xff] %v1326_v47 }
  0xce   : > { %1597 = vst [vmem:[#allocation1 + $0x1] ss:$4 sm:$0xff] %v1328_v44 }
  0xcf   : > { %1599 = vst [vmem:[#allocation1 + $0x2] ss:$4 sm:$0xff] %v1461_v56 }
  0xd0   : > { %1601 = vst [vmem:[#allocation1 + $0x3] ss:$4 sm:$0xff] %v1594_v58 }
  0xd7   : > { %v1602_v59 = vld.sshfl [vmem:[#allocation1] sm:$0xff pattern:$0x73625140]  ;;  %v1603_v60 = vld.sshfl [vmem:[#allocation1 + $0x8] sm:$0xff pattern:$0x73625140] }
  0xd8   : > { %1687 = vmatmul.bf16.vlgmr.msra.gmra.mxu2 %v1602_v59  ;;  %2227 = vmatmul.msk.bf16.vlgmr.msra.gmra.mxu0 %vm773_vm0, %v1603_v60 }
 0x11e   : > { %v925_v41 = vpop.f32.mrf.mxu1  ;;  %v911_v39 = vpop.f32.mrf.mxu0 }
 0x11f   : > { %v926_v21 = vadd.f32 %v925_v41, %v911_v39 }
 0x126   : > { %v927_v24 = vpop.f32.mrf.mxu1  ;;  %v913_v4 = vpop.f32.mrf.mxu0 }
 0x127   : > { %v928_v32 = vadd.f32 %v927_v24, %v913_v4 }
 0x12f   : > { %v1037_v61 = vpop.f32.mrf.mxu3  ;;  %v1023_v17 = vpop.f32.mrf.mxu2 }
 0x130   : > { %v1024_v22 = vadd.f32 %v1023_v17, %v926_v21 }
 0x132   : > { %v1038_v26 = vadd.f32 %v1037_v61, %v1024_v22 }
 0x134   : > { %v1154_v7 = vpop.f32.mrf.mxu1 }
 0x137   : > { %v1039_v3 = vpop.f32.mrf.mxu3  ;;  %v1025_v6 = vpop.f32.mrf.mxu2 }
 0x138   : > { %v1026_v34 = vadd.f32 %v1025_v6, %v928_v32 }
 0x13a   : > { %v1040_v30 = vadd.f32 %v1039_v3, %v1026_v34 }
 0x13c   : > { %v1156_v20 = vpop.f32.mrf.mxu1 }
 0x13f   : > { %v1168_v14 = vpop.f32.mrf.mxu3  ;;  %v1422_v16 = vpop.f32.mrf.mxu0 }
 0x140   : > { %v1169_v27 = vadd.f32 %v1168_v14, %v1154_v7 }
 0x142   : > { %v1173_v33 = vadd.f32 %v1169_v27, %v1038_v26 }
 0x145   : > { %v1436_v18 = vpop.f32.mrf.mxu2 }
 0x146   : > { %v1437_v36 = vadd.f32 %v1436_v18, %v1422_v16 }
 0x147   : > { %v1170_v19 = vpop.f32.mrf.mxu3  ;;  %v1424_v45 = vpop.f32.mrf.mxu0 }
 0x148   : > { %v1441_v38 = vadd.f32 %v1437_v36, %v1173_v33  ;;  %v1171_v40 = vadd.f32 %v1170_v19, %v1156_v20 }
 0x14a   : > { %v1569_v28 = vpop.f32.mrf.mxu1  ;;  %v1174_v9 = vadd.f32 %v1171_v40, %v1040_v30 }
 0x14d   : > { %v1438_v23 = vpop.f32.mrf.mxu2 }
 0x14e   : > { %v1439_v15 = vadd.f32 %v1438_v23, %v1424_v45 }
 0x150   : > { %v1555_v25 = vpop.f32.mrf.mxu3  ;;  %v1442_v47 = vadd.f32 %v1439_v15, %v1174_v9 }
 0x151   : > { %v1570_v37 = vadd.f32 %v1569_v28, %v1555_v25 }
 0x152   : > { %v1571_v62 = vpop.f32.mrf.mxu1 }
 0x153   : > { %v1574_v12 = vadd.f32 %v1570_v37, %v1441_v38 }
 0x155   : > { %v1702_v42 = vpop.f32.mrf.mxu0 }
 0x158   : > { %v1557_v8 = vpop.f32.mrf.mxu3 }
 0x159   : > { %v1572_v11 = vadd.f32 %v1571_v62, %v1557_v8 }
 0x15b   : > { %v1688_v43 = vpop.f32.mrf.mxu2  ;;  %v1575_v0 = vadd.f32 %v1572_v11, %v1442_v47 }
 0x15c   : > { %v1703_v29 = vadd.f32 %v1702_v42, %v1688_v43 }
 0x15d   : > { %v1704_v1 = vpop.f32.mrf.mxu0 }
 0x15e   : > { %v1707_v44 = vadd.f32 %v1703_v29, %v1574_v12 }
 0x160   : > { %v1713_v46 = vadd.f32 %v2339_v31, %v1707_v44 }
 0x162   : > { %v1715_v48 = vmax.f32 %v1713_v46, 0.0 }
 0x163   : > { %v1690_v49 = vpop.f32.mrf.mxu2 }
 0x164   : > { %v1719_v50 = vrot.slane %v1715_v48, 4  ;;  %v1723_v51 = vpack.c.bf16 %v1715_v48, %v1715_v48  ;;  %v1705_v52 = vadd.f32 %v1704_v1, %v1690_v49 }
 0x166   : > { %v1724_v53 = vpack.c.bf16 %v1719_v50, %v1719_v50  ;;  %1728 = vst.msk [vmem:[%s640_s19] sm:$0x3] %vm1727_vm2, %v1723_v51  ;;  %v1708_v54 = vadd.f32 %v1705_v52, %v1575_v0 }
 0x168   : > { %1729 = vst.msk [vmem:[%s640_s19 + $0x2] sm:$0x3] %vm1727_vm2, %v1724_v53  ;;  %v1714_v55 = vadd.f32 %v2339_v31, %v1708_v54 }
 0x16a   : > { %v1716_v56 = vmax.f32 %v1714_v55, 0.0 }
 0x16c   : > { %v1720_v35 = vrot.slane %v1716_v56, 4  ;;  %v1725_v63 = vpack.c.bf16 %v1716_v56, %v1716_v56 }
 0x16e   : > { %v1726_v10 = vpack.c.bf16 %v1720_v35, %v1720_v35  ;;  %1730 = vst.msk [vmem:[%s640_s19 + $0x4] sm:$0x3] %vm1727_vm2, %v1725_v63 }
 0x170   : > { %1731 = vst.msk [vmem:[%s640_s19 + $0x6] sm:$0x3] %vm1727_vm2, %v1726_v10 }
 0x171 PF: > { %s19_s11 = sadd.s32 1, %s2362_s11   ;;  %s2876_s30 = smov %s2358_s10 }
 0x172   : > { %p16_p5 = scmp.ge.s32.totalorder %s19_s11, 4   ;;  %s2877_s10 = smov %s2879_s12 }
 0x174   :  { %18 = sbr.rel (!%p16_p5) target bundleno = 2 (0x2), region = 119 }

// kernel: ae_network_forward.13
= control target key start
LH: loop header
LB: loop body
LE: loop exit
PB: predicated region body
PF: predicated region fallthrough
CT: control target
= control target key end

     0   :  { %s1559_s18 = smov 0   ;;  %s1561_s19 = smov 0   ;;  %s1910_s0 = inlined_call_operand.vmem [shape: bf16[2,6,10,64], index: 0, kind: input, shape index: {}, may-alias: {0,1,2}]   ;;  %s1911_s1 = inlined_call_operand.vmem [shape: bf16[2,6,10,64], index: 1, kind: input, shape index: {}, may-alias: {0,1,2}]   ;;  %s1912_s2 = inlined_call_operand.vmem [shape: bf16[2,6,10,64], index: 2, kind: input, shape index: {}, may-alias: {0,1,2}]   ;;  %s1913_s3 = inlined_call_operand.vmem [shape: bf16[3,192,32], index: 3, kind: input, shape index: {}]   ;;  %s1914_s4 = inlined_call_operand.vmem [shape: f32[1,32], index: 4, kind: input, shape index: {}]   ;;  %s1915_s5 = inlined_call_operand.vmem [shape: bf16[2,8,8,32], index: 5, kind: output, shape index: {}]  }
   0x1   :  { %s1563_s20 = smov 0  }
   0x2 LB: > { %s27_s21 = sadd.s32 1, %s1522_s19  ;;  %p1232_p0 = scmp.ge.s32.totalorder %s1526_s20, 1  ;;  %s1526_s20 = sphi %s1563_s20, %s15_s20   ;;  %s1522_s19 = sphi %s1561_s19, %s1917_s19   ;;  %s1518_s18 = sphi %s1559_s18, %s1916_s18  }
   0x3   : > { %p29_p1 = scmp.ge.s32.totalorder %s27_s21, 2  ;;  %p271_p2 = scmp.lt.s32.totalorder %s1526_s20, 3 }
   0x5   : > { %s1919_s21 = smov (%p29_p1, %s27_s21), 0  ;;  %p272_p3 = pnand %p1232_p0, %p271_p2 }
   0x6   : > { %p342_p4 = scmp.lt.s32.totalorder (!%p272_p3), %s1518_s18, 1 }
   0x7   : > { %275 = sbr.rel (%p272_p3) target bundleno = 375 (0x177), region = 40 }
   0xc   : > { %v1580_v0 = vld [vmem:[%s1913_s3 + $0x58] sm:$0xff]  ;;  %s1921_s18 = smov (!%p342_p4, %s1518_s18), 1  ;;  %v1593_v2 = vld [vmem:[%s1913_s3 + $0x50] sm:$0xff]  ;;  %v1624_v7 = vld [vmem:[%s1913_s3 + $0x48] sm:$0xff]  ;;  %vm555_vm0 = vcmask 523264   ;;  %vm1087_vm1 = vcmask 257024  }
   0xd   : > { %v1585_v1 = vld [vmem:[%s1913_s3 + $0xb8] sm:$0xff]  ;;  %1471 = vmatpush.bf16.msra.mxu3 %v1580_v0  ;;  %v1599_v3 = vld [vmem:[%s1913_s3 + $0xb0] sm:$0xff]  ;;  %s1605_s7 = smul.u32 48, %s1921_s18  ;;  %v1629_v8 = vld [vmem:[%s1913_s3 + $0xa8] sm:$0xff] }
   0xe   : > { %1467 = vmatpush.bf16.msra.mxu1 %v1585_v1  ;;  %v1450_v4 = vld [vmem:[%s1913_s3 + $0x98] sm:$0xff]  ;;  %v1449_v5 = vld [vmem:[%s1913_s3 + $0x90] sm:$0xff]  ;;  %v1448_v12 = vld [vmem:[%s1913_s3 + $0x88] sm:$0xff] }
   0xf   : > { %682 = vmatpush.bf16.msra.mxu0 %v1450_v4  ;;  %v1438_v6 = vld [vmem:[%s1913_s3 + $0x38] sm:$0xff]  ;;  %s1617_s14 = scalar_lea.vmem %s1910_s0, %s1605_s7  ;;  %s1421_s15 = sadd.s32 32, %s1605_s7  ;;  %v1649_v17 = vld [vmem:[%s1913_s3 + $0x40] sm:$0xff]  ;;  %v1461_v51 = vld [vmem:[%s1913_s3 + $0xf0] sm:$0xff] }
  0x10   : > { %v1248_v9 = vld [vmem:[%s1617_s14 + $0x10] sm:$0xf]  ;;  %v1427_v10 = vld [vmem:[%s1617_s14 + $0x10] sm:$0x10]  ;;  %v1244_v11 = vld [vmem:[%s1617_s14 + $0x8] sm:$0xf]  ;;  %s1637_s26 = scalar_lea.vmem %s1911_s1, %s1421_s15  ;;  %836 = vmatpush.bf16.msra.mxu2 %v1438_v6 }
  0x11   : > { %1472 = vmatpush.bf16.msra.mxu3 %v1593_v2  ;;  %v1249_v13 = vor.u32 %v1427_v10, %v1248_v9  ;;  %v1426_v14 = vld [vmem:[%s1617_s14 + $0x8] sm:$0x10]  ;;  %v1240_v15 = vld [vmem:[%s1617_s14] sm:$0xf]  ;;  %v1425_v16 = vld [vmem:[%s1617_s14] sm:$0x10] }
  0x12   : > { %1468 = vmatpush.bf16.msra.mxu1 %v1599_v3  ;;  %v1245_v18 = vor.u32 %v1426_v14, %v1244_v11  ;;  %v1651_v19 = vor.u32 %v1425_v16, %v1240_v15  ;;  %v1252_v20 = vld [vmem:[%s1617_s14 + $0x18] sm:$0xf]  ;;  %v1428_v21 = vld [vmem:[%s1617_s14 + $0x18] sm:$0x10]  ;;  %v1256_v22 = vld [vmem:[%s1637_s26] sm:$0xf] }
  0x13   : > { %683 = vmatpush.bf16.msra.mxu0 %v1449_v5  ;;  %v520_v23 = vshrl.u32 %v1249_v13, 16  ;;  %v522_v24 = vshll.u32 %v1249_v13, 16  ;;  %v1253_v25 = vor.u32 %v1428_v21, %v1252_v20  ;;  %v1429_v26 = vld [vmem:[%s1637_s26] sm:$0x10]  ;;  %v552_v27 = vrot.slane %v1249_v13, 1  ;;  %s1423_s6 = sadd.s32 40, %s1605_s7 }
  0x14   : > { %v513_v28 = vshrl.u32 %v1245_v18, 16  ;;  %v515_v29 = vshll.u32 %v1245_v18, 16  ;;  %s1662_s10 = scalar_lea.vmem %s1912_s2, %s1423_s6  ;;  %v1668_v30 = vld [vmem:[%s1913_s3 + $0xa0] sm:$0xff]  ;;  %v1670_v33 = vor.u32 %v1429_v26, %v1256_v22  ;;  %v1462_v35 = vld [vmem:[%s1913_s3 + $0xf8] sm:$0xff]  ;;  %v508_v37 = vshll.u32 %v1651_v19, 16  ;;  %s1528_s15 = smov 64  }
  0x15   : > { %1473 = vmatpush.bf16.msra.mxu3 %v1624_v7  ;;  %v524_v31 = vrot.slane %v522_v24, 1  ;;  %v529_v32 = vshll.u32 %v1253_v25, 16  ;;  %v1364_v34 = vld [vmem:[%s1662_s10] sm:$0xf]  ;;  %v551_v38 = vrot.slane %v1245_v18, 1  ;;  %v1677_v39 = vunpack.c.l.b16 %v552_v27  ;;  %v1466_v58 = vld [vmem:[%s1913_s3 + $0x118] sm:$0xff] }
  0x16   : > { %1469 = vmatpush.bf16.msra.mxu1 %v1629_v8  ;;  %v517_v36 = vrot.slane %v515_v29, 1  ;;  %v1430_v40 = vld [vmem:[%s1662_s10] sm:$0x10]  ;;  %v534_v42 = vshrl.u32 %v1670_v33, 16  ;;  %v536_v43 = vshll.u32 %v1670_v33, 16  ;;  %v527_v47 = vshrl.u32 %v1253_v25, 16 }
  0x17   : > { %684 = vmatpush.bf16.msra.mxu0 %v1448_v12  ;;  %v525_v41 = vor.u32 %v524_v31, %v520_v23  ;;  %v1683_v45 = vunpack.c.l.b16 %v551_v38  ;;  %v1685_v46 = vor.u32 %v1430_v40, %v1364_v34  ;;  %v531_v48 = vrot.slane %v529_v32, 1  ;;  %v1447_v59 = vld [vmem:[%s1913_s3 + $0x80] sm:$0xff]  ;;  %v1437_v60 = vld [vmem:[%s1913_s3 + $0x30] sm:$0xff]  ;;  %v1460_v5 = vld [vmem:[%s1913_s3 + $0xe8] sm:$0xff] }
  0x18   : > { %v518_v44 = vor.u32 %v517_v36, %v513_v28  ;;  %v538_v49 = vrot.slane %v536_v43, 1  ;;  %v553_v50 = vrot.slane %v1253_v25, 1  ;;  %v506_v52 = vshrl.u32 %v1651_v19, 16  ;;  %v1465_v9 = vld [vmem:[%s1913_s3 + $0x110] sm:$0xff]  ;;  %837 = vmatpush.bf16.msra.mxu2 %v1437_v60  ;;  %v1446_v10 = vld [vmem:[%s1913_s3 + $0x78] sm:$0xff]  ;;  %v1436_v11 = vld [vmem:[%s1913_s3 + $0x28] sm:$0xff] }
  0x19   : > { %1474 = vmatpush.bf16.msra.mxu3 %v1649_v17  ;;  %544 = vrot.lane.b32.xlu1 %v525_v41, %s1528_s15  ;;  %v510_v53 = vrot.slane %v508_v37, 1  ;;  %v743_v54 = vpack.c.b16 %v1677_v39, %v1683_v45  ;;  %v902_v55 = vshll.u32 %v1685_v46, 16  ;;  %v532_v61 = vor.u32 %v531_v48, %v527_v47  ;;  %v1459_v13 = vld [vmem:[%s1913_s3 + $0xe0] sm:$0xff]  ;;  %v1464_v14 = vld [vmem:[%s1913_s3 + $0x108] sm:$0xff]  ;;  %v1445_v15 = vld [vmem:[%s1913_s3 + $0x70] sm:$0xff] }
  0x1a   : > { %1470 = vmatpush.bf16.msra.mxu1 %v1668_v30  ;;  %542 = vrot.lane.b32.xlu0 %v518_v44, %s1528_s15  ;;  %v539_v56 = vor.u32 %v538_v49, %v534_v42  ;;  %v583_v57 = vunpack.c.l.b16 %v553_v50  ;;  %v900_v62 = vshrl.u32 %v1685_v46, 16  ;;  %v1435_v16 = vld [vmem:[%s1913_s3 + $0x20] sm:$0xff]  ;;  %v554_v18 = vrot.slane %v1670_v33, 1  ;;  %v1458_v20 = vld [vmem:[%s1913_s3 + $0xd8] sm:$0xff]  ;;  %v1444_v22 = vld [vmem:[%s1913_s3 + $0x68] sm:$0xff] }
  0x1b   : > { %v904_v63 = vrot.slane %v902_v55, 1  ;;  %v511_v6 = vor.u32 %v510_v53, %v506_v52  ;;  %685 = vmatpush.bf16.msra.mxu0 %v1447_v59  ;;  %v1463_v21 = vld [vmem:[%s1913_s3 + $0x100] sm:$0xff]  ;;  %v1434_v23 = vld [vmem:[%s1913_s3 + $0x18] sm:$0xff]  ;;  %v1457_v26 = vld [vmem:[%s1913_s3 + $0xd0] sm:$0xff]  ;;  %v908_v47 = vrot.slane %v1685_v46, 1 }
  0x1c   : > { %1359 = vmatmul.msk.bf16.vlgmr.msra.gmra.mxu3 %vm555_vm0, %v743_v54  ;;  %548 = vrot.lane.b32.xlu2 %v539_v56, %s1528_s15  ;;  %v591_v4 = vpack.c.b16 %v583_v57, %v583_v57  ;;  %v745_v24 = vpack.c.b16 %v583_v57, %v1677_v39  ;;  %v585_v25 = vunpack.c.l.b16 %v554_v18  ;;  %v1456_v28 = vld [vmem:[%s1913_s3 + $0xc8] sm:$0xff]  ;;  %v1443_v31 = vld [vmem:[%s1913_s3 + $0x60] sm:$0xff]  ;;  %v1433_v32 = vld [vmem:[%s1913_s3 + $0x10] sm:$0xff] }
  0x1d   : > { %1026 = vmatpush.bf16.msrb.mxu3 %v1466_v58  ;;  %v905_v12 = vor.u32 %v904_v63, %v900_v62  ;;  %838 = vmatpush.bf16.msra.mxu2 %v1436_v11  ;;  %v1455_v33 = vld [vmem:[%s1913_s3 + $0xc0] sm:$0xff]  ;;  %v1432_v34 = vld [vmem:[%s1913_s3 + $0x8] sm:$0xff]  ;;  %v914_v50 = vunpack.c.l.b16 %v908_v47 }
  0x1e   : > { %993 = vmatpush.bf16.msrb.mxu1 %v1462_v35  ;;  %v593_v27 = vpack.c.b16 %v585_v25, %v585_v25  ;;  %v747_v29 = vpack.c.b16 %v585_v25, %v583_v57  ;;  %v1431_v35 = vld [vmem:[%s1913_s3] sm:$0xff] }
  0x1f   : > { %1308 = vmatmul.msk.bf16.vlgmr.msra.gmra.mxu1 %vm555_vm0, %v591_v4  ;;  %686 = vmatpush.bf16.msra.mxu0 %v1446_v10  ;;  %v916_v52 = vpack.c.b16 %v914_v50, %v585_v25  ;;  %v404_v56 = vld [vmem:[%s1637_s26] sm:$0xf] }
  0x20   : > { %v406_v60 = vld [vmem:[%s1662_s10] sm:$0xf]  ;;  %s1424_s10 = sshll.u32 %s1921_s18, 5 }
  0x21   : > { %546 = vrot.lane.b32.xlu1 %v532_v61, %s1528_s15  ;;  %1027 = vmatpush.bf16.msrb.mxu3 %v1465_v9  ;;  %v550_v9 = vrot.slane %v1651_v19, 1  ;;  %s1857_s11 = scalar_lea.vmem %s1915_s5, %s1424_s10 }
  0x22   : > { %994 = vmatpush.bf16.msrb.mxu1 %v1461_v51  ;;  %540 = vrot.lane.b32.xlu0 %v511_v6, %s1528_s15  ;;  %v587_v6 = vpack.c.b16 %v1683_v45, %v1683_v45 }
  0x23   : > { %687 = vmatpush.bf16.msra.mxu0 %v1445_v15  ;;  %839 = vmatpush.bf16.msra.mxu2 %v1435_v16  ;;  %v577_v10 = vunpack.c.l.b16 %v550_v9 }
  0x24   : > { %906 = vrot.lane.b32.xlu2 %v905_v12, %s1528_s15 }
  0x25   : > { %1028 = vmatpush.bf16.msrb.mxu3 %v1464_v14  ;;  %v741_v12 = vpack.c.b16 %v1683_v45, %v577_v10  ;;  %v589_v14 = vpack.c.b16 %v1677_v39, %v1677_v39 }
  0x26   : > { %995 = vmatpush.bf16.msrb.mxu1 %v1460_v5 }
  0x27   : > { %688 = vmatpush.bf16.msra.mxu0 %v1444_v22  ;;  %840 = vmatpush.bf16.msra.mxu2 %v1434_v23 }
  0x29   : > { %1029 = vmatpush.bf16.msrb.mxu3 %v1463_v21 }
  0x2a   : > { %996 = vmatpush.bf16.msrb.mxu1 %v1459_v13 }
  0x2b   : > { %689 = vmatpush.bf16.msra.mxu0 %v1443_v31  ;;  %841 = vmatpush.bf16.msra.mxu2 %v1433_v32 }
  0x2c   : > { %1360 = vmatmul.msk.bf16.gmra.mxu3 %vm555_vm0, %v745_v24 }
  0x2e   : > { %997 = vmatpush.bf16.msrb.mxu1 %v1458_v20 }
  0x2f   : > { %1309 = vmatmul.msk.bf16.gmra.mxu1 %vm555_vm0, %v593_v27  ;;  %715 = vmatpush.bf16.msrb.mxu0 %v1585_v1  ;;  %v400_v1 = vld [vmem:[%s1617_s14 + $0x10] sm:$0xf] }
  0x30   : > { %842 = vmatpush.bf16.msra.mxu2 %v1432_v34 }
  0x32   : > { %998 = vmatpush.bf16.msrb.mxu1 %v1457_v26 }
  0x33   : > { %716 = vmatpush.bf16.msrb.mxu0 %v1599_v3  ;;  %v398_v3 = vld [vmem:[%s1617_s14 + $0x8] sm:$0xf] }
  0x34   : > { %843 = vmatpush.bf16.msra.mxu2 %v1431_v35 }
  0x36   : > { %999 = vmatpush.bf16.msrb.mxu1 %v1456_v28 }
  0x37   : > { %717 = vmatpush.bf16.msrb.mxu0 %v1629_v8 }
  0x38   : > { %869 = vmatpush.bf16.msrb.mxu2 %v1580_v0 }
  0x3a   : > { %1000 = vmatpush.bf16.msrb.mxu1 %v1455_v33 }
  0x3b   : > { %718 = vmatpush.bf16.msrb.mxu0 %v1668_v30  ;;  %v396_v30 = vld [vmem:[%s1617_s14] sm:$0xf] }
  0x3c   : > { %1361 = vmatmul.msk.bf16.gmra.mxu3 %vm555_vm0, %v747_v29  ;;  %870 = vmatpush.bf16.msrb.mxu2 %v1593_v2 }
  0x40   : > { %871 = vmatpush.bf16.msrb.mxu2 %v1624_v7  ;;  %v402_v7 = vld [vmem:[%s1617_s14 + $0x18] sm:$0xf] }
  0x44   : > { %872 = vmatpush.bf16.msrb.mxu2 %v1649_v17 }
  0x4c   : > { %1414 = vmatmul.msk.bf16.vlgmr.msrb.gmra.mxu3 %vm555_vm0, %v743_v54 }
  0x5c   : > { %1415 = vmatmul.msk.bf16.gmra.mxu3 %vm555_vm0, %v745_v24 }
  0x6c   : > { %1416 = vmatmul.msk.bf16.gmra.mxu3 %vm555_vm0, %v747_v29 }
  0x76   : > { %v549_v55 = vpop.permute.xlu2 %548 }
  0x77   : > { %v570_v57 = vsel %vm555_vm0, %v404_v56, %v549_v55 }
  0x78   : > { %v584_v46 = vunpack.c.l.b16 %v570_v57 }
  0x7a   : > { %v592_v4 = vpack.c.b16 %v584_v46, %v584_v46 }
  0x7c   : > { %1417 = vmatmul.msk.bf16.gmra.mxu3 %vm555_vm0, %v916_v52 }
  0x7e   : > { %v907_v61 = vpop.permute.xlu2 %906 }
  0x7f   : > { %v911_v62 = vsel %vm555_vm0, %v406_v60, %v907_v61 }
  0x80   : > { %v913_v63 = vunpack.c.l.b16 %v911_v62 }
  0x82   : > { %v915_v5 = vpack.c.b16 %v913_v63, %v584_v46 }
  0x8b   : > { %v545_v36 = vpop.permute.xlu1 %544 }
  0x8c   : > { %v564_v37 = vsel %vm555_vm0, %v400_v1, %v545_v36  ;;  %v543_v38 = vpop.permute.xlu0 %542 }
  0x8d   : > { %v580_v40 = vunpack.c.l.b16 %v564_v37  ;;  %v561_v0 = vsel %vm555_vm0, %v398_v3, %v543_v38 }
  0x8e   : > { %v578_v8 = vunpack.c.l.b16 %v561_v0 }
  0x8f   : > { %v588_v53 = vpack.c.b16 %v580_v40, %v580_v40 }
  0x90   : > { %v586_v41 = vpack.c.b16 %v578_v8, %v578_v8  ;;  %v742_v2 = vpack.c.b16 %v580_v40, %v578_v8 }
  0x92   : > { %690 = vmatmul.bf16.vlgmr.msra.gmra.mxu0 %v586_v41  ;;  %1001 = vmatmul.bf16.vlgmr.msrb.gmra.mxu1 %v742_v2 }
  0x93   : > { %v547_v43 = vpop.permute.xlu1 %546 }
  0x94   : > { %v541_v42 = vpop.permute.xlu0 %540  ;;  %v567_v48 = vsel %vm555_vm0, %v402_v7, %v547_v43 }
  0x95   : > { %v558_v17 = vsel %vm555_vm0, %v396_v30, %v541_v42  ;;  %v582_v51 = vunpack.c.l.b16 %v567_v48 }
  0x96   : > { %v576_v44 = vunpack.c.l.b16 %v558_v17  ;;  %v1850_v17 = vld [vmem:[%s1914_s4] ss:$0 sm:$0xff] }
  0x97   : > { %v744_v54 = vpack.c.b16 %v582_v51, %v580_v40  ;;  %v590_v58 = vpack.c.b16 %v582_v51, %v582_v51  ;;  %v746_v59 = vpack.c.b16 %v584_v46, %v582_v51 }
  0x98   : > { %v740_v49 = vpack.c.b16 %v578_v8, %v576_v44 }
  0x9a   : > { %844 = vmatmul.bf16.vlgmr.msra.gmra.mxu2 %v740_v49 }
  0x9c   : > { %v730_v16 = vpop.f32.mrf.mxu1 }
  0x9f   : > { %v1804_v11 = vpop.f32.mrf.mxu3 }
  0xa2   : > { %695 = vmatmul.bf16.gmra.mxu0 %v588_v53  ;;  %1006 = vmatmul.bf16.gmra.mxu1 %v744_v54 }
  0xa4   : > { %v732_v19 = vpop.f32.mrf.mxu1 }
  0xa7   : > { %v1808_v13 = vpop.f32.mrf.mxu3 }
  0xaa   : > { %849 = vmatmul.bf16.gmra.mxu2 %v742_v2 }
  0xac   : > { %v735_v21 = vpop.f32.mrf.mxu1 }
  0xaf   : > { %v884_v15 = vpop.f32.mrf.mxu3 }
  0xb2   : > { %700 = vmatmul.bf16.gmra.mxu0 %v590_v58  ;;  %1011 = vmatmul.bf16.gmra.mxu1 %v746_v59 }
  0xb4   : > { %v737_v23 = vpop.f32.mrf.mxu1 }
  0xb7   : > { %v886_v18 = vpop.f32.mrf.mxu3 }
  0xba   : > { %854 = vmatmul.bf16.gmra.mxu2 %v744_v54 }
  0xbf   : > { %v889_v20 = vpop.f32.mrf.mxu3 }
  0xc2   : > { %705 = vmatmul.bf16.gmra.mxu0 %v592_v4  ;;  %1016 = vmatmul.bf16.gmra.mxu1 %v915_v5 }
  0xc7   : > { %v1813_v22 = vpop.f32.mrf.mxu3 }
  0xca   : > { %859 = vmatmul.bf16.gmra.mxu2 %v746_v59 }
  0xcf   : > { %v1815_v24 = vpop.f32.mrf.mxu3 }
  0xd2   : > { %1306 = vmatmul.msk.bf16.vlgmr.msrb.gmra.mxu0 %vm555_vm0, %v587_v6 }
  0xd7   : > { %v1823_v39 = vpop.f32.mrf.mxu3 }
  0xda   : > { %1358 = vmatmul.msk.bf16.vlgmr.msrb.gmra.mxu2 %vm555_vm0, %v741_v12 }
  0xdf   : > { %v1831_v31 = vpop.f32.mrf.mxu3 }
  0xe2   : > { %1307 = vmatmul.msk.bf16.gmra.mxu0 %vm555_vm0, %v589_v14 }
  0xe7   : > { %v1839_v35 = vpop.f32.mrf.mxu3 }
  0xef   : > { %v1041_v38 = vpop.f32.mrf.mxu3 }
  0xf7   : > { %v1043_v7 = vpop.f32.mrf.mxu3 }
  0xff   : > { %v1046_v57 = vpop.f32.mrf.mxu3 }
 0x107   : > { %v1048_v14 = vpop.f32.mrf.mxu3 }
 0x10f   : > { %v1817_v45 = vpop.f32.mrf.mxu0  ;;  %v1819_v25 = vpop.f32.mrf.mxu1 }
 0x117   : > { %v1821_v26 = vpop.f32.mrf.mxu0  ;;  %v1825_v27 = vpop.f32.mrf.mxu1 }
 0x11d   : > { %v1827_v28 = vpop.f32.mrf.mxu2 }
 0x11f   : > { %v1829_v29 = vpop.f32.mrf.mxu0  ;;  %v1833_v32 = vpop.f32.mrf.mxu1 }
 0x125   : > { %v1835_v33 = vpop.f32.mrf.mxu2 }
 0x127   : > { %v1837_v34 = vpop.f32.mrf.mxu0  ;;  %v1841_v1 = vpop.f32.mrf.mxu1 }
 0x12d   : > { %v1843_v3 = vpop.f32.mrf.mxu2 }
 0x12f   : > { %v701_v36 = vpop.f32.mrf.mxu0  ;;  %v1012_v40 = vpop.f32.mrf.mxu1 }
 0x130   : > { %v731_v8 = vadd.f32 %v730_v16, %v701_v36  ;;  %v1042_v42 = vadd.f32 %v1041_v38, %v1012_v40 }
 0x135   : > { %v1845_v37 = vpop.f32.mrf.mxu2 }
 0x137   : > { %v703_v0 = vpop.f32.mrf.mxu0  ;;  %v1014_v44 = vpop.f32.mrf.mxu1 }
 0x138   : > { %v733_v48 = vadd.f32 %v732_v19, %v703_v0  ;;  %v1044_v54 = vadd.f32 %v1043_v7, %v1014_v44 }
 0x13d   : > { %v855_v41 = vpop.f32.mrf.mxu2 }
 0x13e   : > { %v856_v2 = vadd.f32 %v855_v41, %v731_v8 }
 0x13f   : > { %v706_v30 = vpop.f32.mrf.mxu0  ;;  %v1017_v58 = vpop.f32.mrf.mxu1 }
 0x140   : > { %v885_v43 = vadd.f32 %v884_v15, %v856_v2  ;;  %v736_v59 = vadd.f32 %v735_v21, %v706_v30  ;;  %v1047_v5 = vadd.f32 %v1046_v57, %v1017_v58  ;;  %v1032_v30 = vadd.f32 %v1815_v24, %v1819_v25 }
 0x142   : > { %v1055_v47 = vadd.f32 %v1042_v42, %v885_v43 }
 0x144   : > { %v1067_v49 = vadd.f32 %v1850_v17, %v1055_v47 }
 0x145   : > { %v857_v50 = vpop.f32.mrf.mxu2 }
 0x146   : > { %v1075_v51 = vmax.f32 %v1067_v49, 0.0  ;;  %v858_v52 = vadd.f32 %v857_v50, %v733_v48  ;;  %v1037_v49 = vadd.f32 %v1831_v31, %v1833_v32 }
 0x147   : > { %v708_v53 = vpop.f32.mrf.mxu0  ;;  %v1019_v16 = vpop.f32.mrf.mxu1 }
 0x148   : > { %v1083_v55 = vpack.c.bf16 %v1075_v51, %v1075_v51  ;;  %v887_v56 = vadd.f32 %v886_v18, %v858_v52  ;;  %v738_v12 = vadd.f32 %v737_v23, %v708_v53  ;;  %v1049_v38 = vadd.f32 %v1048_v14, %v1019_v16 }
 0x14a   : > { %1092 = vst.msk [vmem:[%s1857_s11 + $0x10] sm:$0xf] %vm1087_vm1, %v1083_v55  ;;  %v1056_v46 = vadd.f32 %v1044_v54, %v887_v56 }
 0x14c   : > { %v1068_v60 = vadd.f32 %v1850_v17, %v1056_v46 }
 0x14d   : > { %v860_v61 = vpop.f32.mrf.mxu2 }
 0x14e   : > { %v1076_v62 = vmax.f32 %v1068_v60, 0.0  ;;  %v861_v63 = vadd.f32 %v860_v61, %v736_v59 }
 0x14f   : > { %v720_v4 = vpop.f32.mrf.mxu0 }
 0x150   : > { %v1084_v6 = vpack.c.bf16 %v1076_v62, %v1076_v62  ;;  %v890_v9 = vadd.f32 %v889_v20, %v861_v63  ;;  %v721_v0 = vadd.f32 %v720_v4, %v1817_v45 }
 0x152   : > { %1093 = vst.msk [vmem:[%s1857_s11 + $0x14] sm:$0xf] %vm1087_vm1, %v1084_v6  ;;  %v1057_v10 = vadd.f32 %v1047_v5, %v890_v9  ;;  %v846_v41 = vadd.f32 %v1827_v28, %v721_v0 }
 0x154   : > { %v1069_v15 = vadd.f32 %v1850_v17, %v1057_v10 }
 0x155   : > { %v862_v18 = vpop.f32.mrf.mxu2 }
 0x156   : > { %v1077_v19 = vmax.f32 %v1069_v15, 0.0  ;;  %v863_v21 = vadd.f32 %v862_v18, %v738_v12 }
 0x157   : > { %v722_v36 = vpop.f32.mrf.mxu0 }
 0x158   : > { %v1085_v40 = vpack.c.bf16 %v1077_v19, %v1077_v19  ;;  %v892_v8 = vadd.f32 %v1813_v22, %v863_v21  ;;  %v723_v47 = vadd.f32 %v722_v36, %v1821_v26  ;;  %v1034_v26 = vadd.f32 %v1823_v39, %v1825_v27 }
 0x159   : > { %v1039_v39 = vadd.f32 %v1839_v35, %v1841_v1 }
 0x15a   : > { %1094 = vst.msk [vmem:[%s1857_s11 + $0x18] sm:$0xf] %vm1087_vm1, %v1085_v40  ;;  %v1058_v20 = vadd.f32 %v1049_v38, %v892_v8  ;;  %v848_v50 = vadd.f32 %v1835_v33, %v723_v47 }
 0x15c   : > { %v1070_v23 = vadd.f32 %v1850_v17, %v1058_v20 }
 0x15d   : > { %v874_v2 = vpop.f32.mrf.mxu2 }
 0x15e   : > { %v1078_v42 = vmax.f32 %v1070_v23, 0.0  ;;  %v875_v7 = vadd.f32 %v874_v2, %v846_v41 }
 0x15f   : > { %v725_v43 = vpop.f32.mrf.mxu0 }
 0x160   : > { %v1086_v44 = vpack.c.bf16 %v1078_v42, %v1078_v42  ;;  %v1051_v45 = vadd.f32 %v1032_v30, %v875_v7  ;;  %v726_v22 = vadd.f32 %v725_v43, %v1829_v29 }
 0x162   : > { %1095 = vst.msk [vmem:[%s1857_s11 + $0x1c] sm:$0xf] %vm1087_vm1, %v1086_v44  ;;  %v1063_v48 = vadd.f32 %v1850_v17, %v1051_v45  ;;  %v851_v28 = vadd.f32 %v1843_v3, %v726_v22 }
 0x164   : > { %v1071_v24 = vmax.f32 %v1063_v48, 0.0  ;;  %v880_v25 = vadd.f32 %v1804_v11, %v851_v28 }
 0x165   : > { %v876_v51 = vpop.f32.mrf.mxu2 }
 0x166   : > { %v1079_v29 = vpack.c.bf16 %v1071_v24, %v1071_v24  ;;  %v1053_v52 = vadd.f32 %v1037_v49, %v880_v25  ;;  %v877_v53 = vadd.f32 %v876_v51, %v848_v50 }
 0x167   : > { %v727_v54 = vpop.f32.mrf.mxu0 }
 0x168   : > { %1088 = vst.msk [vmem:[%s1857_s11] sm:$0xf] %vm1087_vm1, %v1079_v29  ;;  %v1065_v3 = vadd.f32 %v1850_v17, %v1053_v52  ;;  %v1052_v31 = vadd.f32 %v1034_v26, %v877_v53  ;;  %v728_v11 = vadd.f32 %v727_v54, %v1837_v34 }
 0x16a   : > { %v1073_v32 = vmax.f32 %v1065_v3, 0.0  ;;  %v1064_v33 = vadd.f32 %v1850_v17, %v1052_v31  ;;  %v853_v55 = vadd.f32 %v1845_v37, %v728_v11 }
 0x16c   : > { %v1081_v27 = vpack.c.bf16 %v1073_v32, %v1073_v32  ;;  %v1072_v56 = vmax.f32 %v1064_v33, 0.0  ;;  %v882_v57 = vadd.f32 %v1808_v13, %v853_v55 }
 0x16e   : > { %1090 = vst.msk [vmem:[%s1857_s11 + $0x8] sm:$0xf] %vm1087_vm1, %v1081_v27  ;;  %v1080_v46 = vpack.c.bf16 %v1072_v56, %v1072_v56  ;;  %v1054_v58 = vadd.f32 %v1039_v39, %v882_v57 }
 0x170   : > { %1089 = vst.msk [vmem:[%s1857_s11 + $0x4] sm:$0xf] %vm1087_vm1, %v1080_v46  ;;  %v1066_v34 = vadd.f32 %v1850_v17, %v1054_v58 }
 0x172   : > { %v1074_v59 = vmax.f32 %v1066_v34, 0.0 }
 0x174   : > { %v1082_v60 = vpack.c.bf16 %v1074_v59, %v1074_v59 }
 0x176   : > { %1091 = vst.msk [vmem:[%s1857_s11 + $0xc] sm:$0xf] %vm1087_vm1, %v1082_v60 }
 0x177 PF: > { %s15_s20 = sadd.s32 1, %s1526_s20   ;;  %s1916_s18 = smov %s1522_s19 }
 0x178   : > { %p12_p5 = scmp.ge.s32.totalorder %s15_s20, 4   ;;  %s1917_s19 = smov %s1919_s21 }
 0x17a   :  { %14 = sbr.rel (!%p12_p5) target bundleno = 2 (0x2), region = 76 }

// kernel: ae_network_forward.11
= control target key start
LH: loop header
LB: loop body
LE: loop exit
PB: predicated region body
PF: predicated region fallthrough
CT: control target
= control target key end

     0   :  { %s5313_s18 = smov 0   ;;  %s5315_s19 = smov 0   ;;  %s6478_s0 = inlined_call_operand.vmem [shape: bf16[2,4,6,512], index: 0, kind: input, shape index: {}, may-alias: {0,1,2}]   ;;  %s6479_s1 = inlined_call_operand.vmem [shape: bf16[2,4,6,512], index: 1, kind: input, shape index: {}, may-alias: {0,1,2}]   ;;  %s6480_s2 = inlined_call_operand.vmem [shape: bf16[2,4,6,512], index: 2, kind: input, shape index: {}, may-alias: {0,1,2}]   ;;  %s6481_s3 = inlined_call_operand.vmem [shape: bf16[3,1536,64], index: 3, kind: input, shape index: {}]   ;;  %s6482_s4 = inlined_call_operand.vmem [shape: f32[1,64], index: 4, kind: input, shape index: {}]   ;;  %s6483_s5 = inlined_call_operand.vmem [shape: bf16[2,4,4,64], index: 5, kind: output, shape index: {}]  }
   0x1   :  { %s5317_s20 = smov 0  }
   0x2 LB: > { %s27_s21 = sadd.s32 1, %s5277_s19  ;;  %p3763_p0 = scmp.ge.s32.totalorder %s5281_s20, 1  ;;  %s5281_s20 = sphi %s5317_s20, %s15_s20   ;;  %s5277_s19 = sphi %s5315_s19, %s6485_s19   ;;  %s5273_s18 = sphi %s5313_s18, %s6484_s18  }
   0x3   : > { %p29_p1 = scmp.ge.s32.totalorder %s27_s21, 2  ;;  %p261_p2 = scmp.lt.s32.totalorder %s5281_s20, 3 }
   0x5   : > { %s6487_s21 = smov (%p29_p1, %s27_s21), 0  ;;  %p262_p3 = pnand %p3763_p0, %p261_p2 }
   0x6   : > { %p322_p4 = scmp.lt.s32.totalorder (!%p262_p3), %s5273_s18, 1 }
   0x7   : > { %265 = sbr.rel (%p262_p3) target bundleno = 457 (0x1c9), region = 40 }
   0xc   : > { %v5047_v0 = vld [vmem:[%s6481_s3 + $0x338] sm:$0xff]  ;;  %v5046_v4 = vld [vmem:[%s6481_s3 + $0x330] sm:$0xff]  ;;  %s6489_s18 = smov (!%p322_p4, %s5273_s18), 1  ;;  %v5045_v8 = vld [vmem:[%s6481_s3 + $0x328] sm:$0xff]  ;;  %vm1107_vm0 = vcmask 1041408   ;;  %vm1110_vm1 = vcmask 1045508  }
   0xd   : > { %v5055_v1 = vld [vmem:[%s6481_s3 + $0x378] sm:$0xff]  ;;  %1789 = vmatpush.bf16.msra.mxu0 %v5047_v0  ;;  %v5054_v5 = vld [vmem:[%s6481_s3 + $0x370] sm:$0xff]  ;;  %v5053_v9 = vld [vmem:[%s6481_s3 + $0x368] sm:$0xff]  ;;  %s5370_s25 = sshll.u32 %s6489_s18, 6  ;;  %vm1114_vm2 = vcmask 1043456   ;;  %s4943_s22 = sshll.u32 %s6489_s18, 3 }
   0xe   : > { %v5063_v2 = vld [vmem:[%s6481_s3 + $0x3b8] sm:$0xff]  ;;  %1803 = vmatpush.bf16.msra.mxu1 %v5055_v1  ;;  %v5062_v6 = vld [vmem:[%s6481_s3 + $0x3b0] sm:$0xff]  ;;  %v5061_v10 = vld [vmem:[%s6481_s3 + $0x3a8] sm:$0xff]  ;;  %s4940_s30 = sadd.s32 32, %s5370_s25  ;;  %s5389_s12 = scalar_lea.vmem %s6478_s0, %s5370_s25  ;;  %vm3622_vm3 = vcmask 517120  }
   0xf   : > { %v5071_v3 = vld [vmem:[%s6481_s3 + $0x3f8] sm:$0xff]  ;;  %1817 = vmatpush.bf16.msra.mxu2 %v5063_v2  ;;  %v5070_v7 = vld [vmem:[%s6481_s3 + $0x3f0] sm:$0xff]  ;;  %v5069_v11 = vld [vmem:[%s6481_s3 + $0x3e8] sm:$0xff]  ;;  %s342_s15 = scalar_lea.vmem %s6479_s1, %s4940_s30  ;;  %s4942_s10 = sadd.s32 48, %s5370_s25 }
  0x10   : > { %1831 = vmatpush.bf16.msra.mxu3 %v5071_v3  ;;  %v5044_v12 = vld [vmem:[%s6481_s3 + $0x320] sm:$0xff]  ;;  %v5043_v16 = vld [vmem:[%s6481_s3 + $0x318] sm:$0xff]  ;;  %v372_v20 = vld [vmem:[%s5389_s12 + $0x10] sm:$0x77]  ;;  %s356_s25 = scalar_lea.vmem %s6480_s2, %s4942_s10  ;;  %s368_s24 = scalar_lea.vmem %s6483_s5, %s4943_s22 }
  0x11   : > { %1790 = vmatpush.bf16.msra.mxu0 %v5046_v4  ;;  %v5052_v13 = vld [vmem:[%s6481_s3 + $0x360] sm:$0xff]  ;;  %v5051_v17 = vld [vmem:[%s6481_s3 + $0x358] sm:$0xff]  ;;  %v375_v23 = vld [vmem:[%s342_s15 + $0x8] sm:$0x77]  ;;  %v964_v24 = vunpack.c.l.b16 %v372_v20  ;;  %v965_v25 = vunpack.c.h.b16 %v372_v20 }
  0x12   : > { %1804 = vmatpush.bf16.msra.mxu1 %v5054_v5  ;;  %v5060_v14 = vld [vmem:[%s6481_s3 + $0x3a0] sm:$0xff]  ;;  %v5059_v18 = vld [vmem:[%s6481_s3 + $0x398] sm:$0xff]  ;;  %v5042_v28 = vld [vmem:[%s6481_s3 + $0x310] sm:$0xff]  ;;  %v970_v32 = vunpack.c.l.b16 %v375_v23  ;;  %v971_v33 = vunpack.c.h.b16 %v375_v23 }
  0x13   : > { %1818 = vmatpush.bf16.msra.mxu2 %v5062_v6  ;;  %v5068_v15 = vld [vmem:[%s6481_s3 + $0x3e0] sm:$0xff]  ;;  %v5067_v19 = vld [vmem:[%s6481_s3 + $0x3d8] sm:$0xff]  ;;  %v5050_v29 = vld [vmem:[%s6481_s3 + $0x350] sm:$0xff]  ;;  %v5420_v36 = vpack.c.b16 %v964_v24, %v964_v24  ;;  %v5422_v37 = vpack.c.b16 %v965_v25, %v965_v25 }
  0x14   : > { %1832 = vmatpush.bf16.msra.mxu3 %v5070_v7  ;;  %v373_v21 = vld [vmem:[%s5389_s12 + $0x18] sm:$0x77]  ;;  %v374_v22 = vld [vmem:[%s342_s15] sm:$0x77]  ;;  %v5058_v34 = vld [vmem:[%s6481_s3 + $0x390] sm:$0xff]  ;;  %v5432_v42 = vpack.c.b16 %v970_v32, %v970_v32  ;;  %v5434_v43 = vpack.c.b16 %v971_v33, %v971_v33 }
  0x15   : > { %1791 = vmatpush.bf16.msra.mxu0 %v5045_v8  ;;  %v966_v26 = vunpack.c.l.b16 %v373_v21  ;;  %v967_v27 = vunpack.c.h.b16 %v373_v21  ;;  %v968_v30 = vunpack.c.l.b16 %v374_v22  ;;  %v969_v31 = vunpack.c.h.b16 %v374_v22  ;;  %v5066_v35 = vld [vmem:[%s6481_s3 + $0x3d0] sm:$0xff]  ;;  %v5041_v47 = vld [vmem:[%s6481_s3 + $0x308] sm:$0xff]  ;;  %v5040_v3 = vld [vmem:[%s6481_s3 + $0x300] sm:$0xff] }
  0x16   : > { %1805 = vmatpush.bf16.msra.mxu1 %v5053_v9  ;;  %v1089_v44 = vrot.slane %v5422_v37, 6  ;;  %v1013_v46 = vshrl.u32 %v5420_v36, 16  ;;  %v5049_v48 = vld [vmem:[%s6481_s3 + $0x348] sm:$0xff]  ;;  %v1099_v51 = vrot.slane %v5432_v42, 4  ;;  %v1015_v52 = vshll.u32 %v5420_v36, 16  ;;  %v5048_v4 = vld [vmem:[%s6481_s3 + $0x340] sm:$0xff] }
  0x17   : > { %1819 = vmatpush.bf16.msra.mxu2 %v5061_v10  ;;  %v5424_v38 = vpack.c.b16 %v966_v26, %v966_v26  ;;  %v5426_v39 = vpack.c.b16 %v967_v27, %v967_v27  ;;  %v5428_v40 = vpack.c.b16 %v968_v30, %v968_v30  ;;  %v5430_v41 = vpack.c.b16 %v969_v31, %v969_v31  ;;  %v5057_v53 = vld [vmem:[%s6481_s3 + $0x388] sm:$0xff]  ;;  %v5056_v8 = vld [vmem:[%s6481_s3 + $0x380] sm:$0xff]  ;;  %v5078_v30 = vld [vmem:[%s6481_s3 + $0x430] sm:$0xff] }
  0x18   : > { %1833 = vmatpush.bf16.msra.mxu3 %v5069_v11  ;;  %v5065_v54 = vld [vmem:[%s6481_s3 + $0x3c8] sm:$0xff]  ;;  %v1100_v55 = vrot.slane %v5434_v43, 2  ;;  %v1131_v56 = vsel %vm1107_vm0, %v5420_v36, %v1089_v44  ;;  %v1020_v57 = vshrl.u32 %v5422_v37, 16  ;;  %v1022_v58 = vshll.u32 %v5422_v37, 16  ;;  %v5064_v9 = vld [vmem:[%s6481_s3 + $0x3c0] sm:$0xff]  ;;  %v5086_v31 = vld [vmem:[%s6481_s3 + $0x470] sm:$0xff] }
  0x19   : > { %1792 = vmatpush.bf16.msra.mxu0 %v5044_v12  ;;  %v1090_v45 = vrot.slane %v5424_v38, 4  ;;  %v1091_v49 = vrot.slane %v5426_v39, 2  ;;  %v1098_v50 = vrot.slane %v5430_v41, 6  ;;  %v1017_v61 = vrot.slane %v1015_v52, 1  ;;  %v5079_v12 = vld [vmem:[%s6481_s3 + $0x438] sm:$0xff]  ;;  %v5094_v44 = vld [vmem:[%s6481_s3 + $0x4b0] sm:$0xff] }
  0x1a   : > { %1806 = vmatpush.bf16.msra.mxu1 %v5052_v13  ;;  %v1027_v62 = vshrl.u32 %v5424_v38, 16  ;;  %v1154_v0 = vsel %vm1110_vm1, %v1099_v51, %v1100_v55  ;;  %v1024_v1 = vrot.slane %v1022_v58, 1  ;;  %v1029_v2 = vshll.u32 %v5424_v38, 16  ;;  %v5087_v13 = vld [vmem:[%s6481_s3 + $0x478] sm:$0xff]  ;;  %v5085_v52 = vld [vmem:[%s6481_s3 + $0x468] sm:$0xff] }
  0x1b   : > { %1820 = vmatpush.bf16.msra.mxu2 %v5060_v14  ;;  %v1134_v59 = vsel %vm1110_vm1, %v1090_v45, %v1091_v49  ;;  %v1151_v60 = vsel %vm1107_vm0, %v5428_v40, %v1098_v50  ;;  %v1034_v6 = vshrl.u32 %v5426_v39, 16  ;;  %v1036_v7 = vshll.u32 %v5426_v39, 16  ;;  %v5095_v14 = vld [vmem:[%s6481_s3 + $0x4b8] sm:$0xff]  ;;  %v5102_v45 = vld [vmem:[%s6481_s3 + $0x4f0] sm:$0xff] }
  0x1c   : > { %1834 = vmatpush.bf16.msra.mxu3 %v5068_v15  ;;  %v5465_v63 = vsel %vm1114_vm2, %v1131_v56, %v1134_v59  ;;  %v5476_v5 = vsel %vm1114_vm2, %v1151_v60, %v1154_v0  ;;  %v1025_v10 = vor.u32 %v1024_v1, %v1020_v57  ;;  %v1031_v11 = vrot.slane %v1029_v2, 1  ;;  %v5076_v2 = vld [vmem:[%s6481_s3 + $0x420] sm:$0xff] }
  0x1d   : > { %1793 = vmatpush.bf16.msra.mxu0 %v5043_v16  ;;  %1170 = vst [vmem:[#allocation1] ss:$4 sm:$0xff] %v5465_v63  ;;  %v1018_v15 = vor.u32 %v1017_v61, %v1013_v46  ;;  %v1038_v16 = vrot.slane %v1036_v7, 1  ;;  %v1043_v20 = vshll.u32 %v5428_v40, 16  ;;  %v1048_v21 = vshrl.u32 %v5430_v41, 16  ;;  %v5092_v7 = vld [vmem:[%s6481_s3 + $0x4a0] sm:$0xff] }
  0x1e   : > { %1807 = vmatpush.bf16.msra.mxu1 %v5051_v17  ;;  %1172 = vst [vmem:[#allocation1 + $0x1] ss:$4 sm:$0xff] %v5465_v63  ;;  %v5103_v17 = vld [vmem:[%s6481_s3 + $0x4f8] sm:$0xff]  ;;  %v1050_v23 = vshll.u32 %v5430_v41, 16  ;;  %v1055_v24 = vshrl.u32 %v5432_v42, 16  ;;  %v1057_v25 = vshll.u32 %v5432_v42, 16 }
  0x1f   : > { %1821 = vmatpush.bf16.msra.mxu2 %v5059_v18  ;;  %1174 = vst [vmem:[#allocation1 + $0x2] ss:$4 sm:$0xff] %v5476_v5  ;;  %v1032_v18 = vor.u32 %v1031_v11, %v1027_v62  ;;  %v1039_v22 = vor.u32 %v1038_v16, %v1034_v6  ;;  %v1045_v26 = vrot.slane %v1043_v20, 1  ;;  %v1062_v27 = vshrl.u32 %v5434_v43, 16  ;;  %v5083_v11 = vld [vmem:[%s6481_s3 + $0x458] sm:$0xff]  ;;  %v5090_v16 = vld [vmem:[%s6481_s3 + $0x490] sm:$0xff] }
  0x20   : > { %1835 = vmatpush.bf16.msra.mxu3 %v5067_v19  ;;  %1176 = vst [vmem:[#allocation1 + $0x3] ss:$4 sm:$0xff] %v5476_v5  ;;  %v1041_v19 = vshrl.u32 %v5428_v40, 16  ;;  %v1052_v32 = vrot.slane %v1050_v23, 1  ;;  %v1059_v33 = vrot.slane %v1057_v25, 1  ;;  %v5081_v23 = vld [vmem:[%s6481_s3 + $0x448] sm:$0xff] }
  0x21   : > { %1794 = vmatpush.bf16.msra.mxu0 %v5042_v28  ;;  %v1064_v28 = vshll.u32 %v5434_v43, 16  ;;  %v1076_v25 = vrot.slane %v5428_v40, 1  ;;  %v3779_v40 = vrot.slane %v5432_v42, 5 }
  0x22   : > { %1808 = vmatpush.bf16.msra.mxu1 %v5050_v29  ;;  %v1092_v29 = vrot.slane %v1025_v10, 6  ;;  %v1053_v49 = vor.u32 %v1052_v32, %v1048_v21  ;;  %v1060_v50 = vor.u32 %v1059_v33, %v1055_v24  ;;  %v1046_v59 = vor.u32 %v1045_v26, %v1041_v19  ;;  %v5075_v10 = vld [vmem:[%s6481_s3 + $0x418] sm:$0xff]  ;;  %v5072_v32 = vld [vmem:[%s6481_s3 + $0x400] sm:$0xff] }
  0x23   : > { %1822 = vmatpush.bf16.msra.mxu2 %v5058_v34  ;;  %v1093_v34 = vrot.slane %v1032_v18, 4  ;;  %v1066_v46 = vrot.slane %v1064_v28, 1  ;;  %v5073_v18 = vld [vmem:[%s6481_s3 + $0x408] sm:$0xff]  ;;  %v1072_v24 = vrot.slane %v5420_v36, 1  ;;  %v3775_v26 = vrot.slane %v5422_v37, 7  ;;  %v5096_v33 = vld [vmem:[%s6481_s3 + $0x4c0] sm:$0xff] }
  0x24   : > { %1836 = vmatpush.bf16.msra.mxu3 %v5066_v35  ;;  %v1094_v35 = vrot.slane %v1039_v22, 2  ;;  %v1101_v62 = vrot.slane %v1053_v49, 6  ;;  %v1102_v0 = vrot.slane %v1060_v50, 4  ;;  %v5097_v28 = vld [vmem:[%s6481_s3 + $0x4c8] sm:$0xff]  ;;  %v3777_v36 = vrot.slane %v5426_v39, 3  ;;  %v5118_v49 = vld [vmem:[%s6481_s3 + $0x570] sm:$0xff] }
  0x25   : > { %1795 = vmatpush.bf16.msra.mxu0 %v5041_v47  ;;  %v1138_v47 = vsel %vm1107_vm0, %v1018_v15, %v1092_v29  ;;  %v1067_v55 = vor.u32 %v1066_v46, %v1062_v27  ;;  %v5082_v15 = vld [vmem:[%s6481_s3 + $0x450] sm:$0xff]  ;;  %v5089_v27 = vld [vmem:[%s6481_s3 + $0x488] sm:$0xff]  ;;  %v3776_v29 = vrot.slane %v5424_v38, 5  ;;  %v3778_v37 = vrot.slane %v5430_v41, 7  ;;  %v5080_v38 = vld [vmem:[%s6481_s3 + $0x440] sm:$0xff] }
  0x26   : > { %1809 = vmatpush.bf16.msra.mxu1 %v5049_v48  ;;  %v5077_v48 = vld [vmem:[%s6481_s3 + $0x428] sm:$0xff]  ;;  %v1141_v51 = vsel %vm1110_vm1, %v1093_v34, %v1094_v35  ;;  %v5127_v46 = vld [vmem:[%s6481_s3 + $0x5b8] sm:$0xff]  ;;  %v5126_v50 = vld [vmem:[%s6481_s3 + $0x5b0] sm:$0xff] }
  0x27   : > { %1823 = vmatpush.bf16.msra.mxu2 %v5057_v53  ;;  %v5093_v53 = vld [vmem:[%s6481_s3 + $0x4a8] sm:$0xff]  ;;  %v5537_v56 = vsel %vm1114_vm2, %v1138_v47, %v1141_v51  ;;  %v1185_v57 = vld.sshfl [vmem:[#allocation1] sm:$0xff pattern:$0x73625140]  ;;  %v1103_v1 = vrot.slane %v1067_v55, 2  ;;  %v1148_v39 = vsel %vm1110_vm1, %v3776_v29, %v3777_v36  ;;  %v1165_v41 = vsel %vm1107_vm0, %v1076_v25, %v3778_v37  ;;  %v5135_v47 = vld [vmem:[%s6481_s3 + $0x5f8] sm:$0xff] }
  0x28   : > { %1837 = vmatpush.bf16.msra.mxu3 %v5065_v54  ;;  %v5101_v54 = vld [vmem:[%s6481_s3 + $0x4e8] sm:$0xff]  ;;  %v1187_v58 = vld.sshfl [vmem:[#allocation1 + $0x10] sm:$0xff pattern:$0x73625140]  ;;  %1178 = vst [vmem:[#allocation1 + $0x20] ss:$4 sm:$0xff] %v5537_v56 }
  0x29   : > { %1796 = vmatpush.bf16.msra.mxu0 %v5040_v3  ;;  %v1186_v60 = vld.sshfl [vmem:[#allocation1 + $0x8] sm:$0xff pattern:$0x73625140]  ;;  %v1188_v61 = vld.sshfl [vmem:[#allocation1 + $0x18] sm:$0xff pattern:$0x73625140]  ;;  %v1161_v6 = vsel %vm1110_vm1, %v1102_v0, %v1103_v1 }
  0x2a   : > { %1810 = vmatpush.bf16.msra.mxu1 %v5048_v4  ;;  %1180 = vst [vmem:[#allocation1 + $0x21] ss:$4 sm:$0xff] %v5537_v56  ;;  %v5084_v3 = vld [vmem:[%s6481_s3 + $0x460] sm:$0xff]  ;;  %v1158_v4 = vsel %vm1107_vm0, %v1046_v59, %v1101_v62  ;;  %v5134_v51 = vld [vmem:[%s6481_s3 + $0x5f0] sm:$0xff]  ;;  %v5133_v55 = vld [vmem:[%s6481_s3 + $0x5e8] sm:$0xff] }
  0x2b   : > { %1824 = vmatpush.bf16.msra.mxu2 %v5056_v8  ;;  %v5100_v8 = vld [vmem:[%s6481_s3 + $0x4e0] sm:$0xff]  ;;  %v5105_v25 = vld [vmem:[%s6481_s3 + $0x508] sm:$0xff] }
  0x2c   : > { %1838 = vmatpush.bf16.msra.mxu3 %v5064_v9  ;;  %1797 = vmatmul.bf16.vlgmr.msra.gmra.mxu0 %v1185_v57  ;;  %v5556_v9 = vsel %vm1114_vm2, %v1158_v4, %v1161_v6  ;;  %v5116_v62 = vld [vmem:[%s6481_s3 + $0x560] sm:$0xff]  ;;  %v5123_v4 = vld [vmem:[%s6481_s3 + $0x598] sm:$0xff] }
  0x2d   : > { %1845 = vmatpush.bf16.msrb.mxu0 %v5079_v12  ;;  %1811 = vmatmul.bf16.vlgmr.msra.gmra.mxu1 %v1186_v60  ;;  %1182 = vst [vmem:[#allocation1 + $0x22] ss:$4 sm:$0xff] %v5556_v9  ;;  %v5091_v12 = vld [vmem:[%s6481_s3 + $0x498] sm:$0xff]  ;;  %v5124_v0 = vld [vmem:[%s6481_s3 + $0x5a0] sm:$0xff] }
  0x2e   : > { %1859 = vmatpush.bf16.msrb.mxu1 %v5087_v13  ;;  %1825 = vmatmul.bf16.vlgmr.msra.gmra.mxu2 %v1187_v58  ;;  %1184 = vst [vmem:[#allocation1 + $0x23] ss:$4 sm:$0xff] %v5556_v9  ;;  %v5099_v13 = vld [vmem:[%s6481_s3 + $0x4d8] sm:$0xff]  ;;  %v5132_v1 = vld [vmem:[%s6481_s3 + $0x5e0] sm:$0xff] }
  0x2f   : > { %1873 = vmatpush.bf16.msrb.mxu2 %v5095_v14  ;;  %1839 = vmatmul.bf16.vlgmr.msra.gmra.mxu3 %v1188_v61  ;;  %v5074_v14 = vld [vmem:[%s6481_s3 + $0x410] sm:$0xff]  ;;  %v5108_v61 = vld [vmem:[%s6481_s3 + $0x520] sm:$0xff]  ;;  %v5131_v6 = vld [vmem:[%s6481_s3 + $0x5d8] sm:$0xff] }
  0x30   : > { %1887 = vmatpush.bf16.msrb.mxu3 %v5103_v17  ;;  %v5098_v17 = vld [vmem:[%s6481_s3 + $0x4d0] sm:$0xff] }
  0x31   : > { %1846 = vmatpush.bf16.msrb.mxu0 %v5078_v30  ;;  %v3780_v30 = vrot.slane %v5434_v43, 3  ;;  %v5088_v43 = vld [vmem:[%s6481_s3 + $0x480] sm:$0xff] }
  0x32   : > { %1860 = vmatpush.bf16.msrb.mxu1 %v5086_v31  ;;  %v1145_v31 = vsel %vm1107_vm0, %v1072_v24, %v3775_v26  ;;  %v5113_v26 = vld [vmem:[%s6481_s3 + $0x548] sm:$0xff] }
  0x33   : > { %1874 = vmatpush.bf16.msrb.mxu2 %v5094_v44  ;;  %v1168_v42 = vsel %vm1110_vm1, %v3779_v40, %v3780_v30  ;;  %v5624_v34 = vsel %vm1114_vm2, %v1145_v31, %v1148_v39  ;;  %v5111_v44 = vld [vmem:[%s6481_s3 + $0x538] sm:$0xff]  ;;  %v5104_v40 = vld [vmem:[%s6481_s3 + $0x500] sm:$0xff] }
  0x34   : > { %1888 = vmatpush.bf16.msrb.mxu3 %v5102_v45  ;;  %v5627_v35 = vsel %vm1114_vm2, %v1165_v41, %v1168_v42  ;;  %v5119_v45 = vld [vmem:[%s6481_s3 + $0x578] sm:$0xff]  ;;  %1193 = vst [vmem:[#allocation1] ss:$4 sm:$0xff] %v5624_v34  ;;  %v5112_v30 = vld [vmem:[%s6481_s3 + $0x540] sm:$0xff] }
  0x35   : > { %1847 = vmatpush.bf16.msrb.mxu0 %v5077_v48  ;;  %v1189_v19 = vld.sshfl [vmem:[#allocation1 + $0x20] sm:$0xff pattern:$0x73625140]  ;;  %v1191_v20 = vld.sshfl [vmem:[#allocation1 + $0x30] sm:$0xff pattern:$0x73625140] }
  0x36   : > { %1861 = vmatpush.bf16.msrb.mxu1 %v5085_v52  ;;  %v1190_v21 = vld.sshfl [vmem:[#allocation1 + $0x28] sm:$0xff pattern:$0x73625140]  ;;  %v1192_v22 = vld.sshfl [vmem:[#allocation1 + $0x38] sm:$0xff pattern:$0x73625140] }
  0x37   : > { %1875 = vmatpush.bf16.msrb.mxu2 %v5093_v53  ;;  %1967 = vst [vmem:[#allocation1 + $0x21] ss:$4 sm:$0xff] %v5537_v56  ;;  %v5110_v48 = vld [vmem:[%s6481_s3 + $0x530] sm:$0xff]  ;;  %v5109_v52 = vld [vmem:[%s6481_s3 + $0x528] sm:$0xff]  ;;  %v5120_v31 = vld [vmem:[%s6481_s3 + $0x580] sm:$0xff] }
  0x38   : > { %1889 = vmatpush.bf16.msrb.mxu3 %v5101_v54  ;;  %1969 = vst [vmem:[#allocation1 + $0x22] ss:$4 sm:$0xff] %v5537_v56  ;;  %v5117_v53 = vld [vmem:[%s6481_s3 + $0x568] sm:$0xff]  ;;  %v4959_v39 = vld [vmem:[%s6481_s3 + $0x78] sm:$0xff] }
  0x39   : > { %1848 = vmatpush.bf16.msrb.mxu0 %v5076_v2  ;;  %1971 = vst [vmem:[#allocation1 + $0x23] ss:$4 sm:$0xff] %v5556_v9  ;;  %v5125_v54 = vld [vmem:[%s6481_s3 + $0x5a8] sm:$0xff]  ;;  %v5107_v2 = vld [vmem:[%s6481_s3 + $0x518] sm:$0xff] }
  0x3a   : > { %1862 = vmatpush.bf16.msrb.mxu1 %v5084_v3  ;;  %1194 = vst [vmem:[#allocation1 + $0x1] ss:$4 sm:$0xff] %v5624_v34  ;;  %v5115_v3 = vld [vmem:[%s6481_s3 + $0x558] sm:$0xff] }
  0x3b   : > { %1876 = vmatpush.bf16.msrb.mxu2 %v5092_v7  ;;  %1195 = vst [vmem:[#allocation1 + $0x2] ss:$4 sm:$0xff] %v5627_v35  ;;  %v370_v7 = vld [vmem:[%s5389_s12] sm:$0x77]  ;;  %v4967_v41 = vld [vmem:[%s6481_s3 + $0xb8] sm:$0xff] }
  0x3c   : > { %1890 = vmatpush.bf16.msrb.mxu3 %v5100_v8  ;;  %1196 = vst [vmem:[#allocation1 + $0x3] ss:$4 sm:$0xff] %v5627_v35  ;;  %v371_v8 = vld [vmem:[%s5389_s12 + $0x8] sm:$0x77]  ;;  %v4975_v42 = vld [vmem:[%s6481_s3 + $0xf8] sm:$0xff] }
  0x3d   : > { %1849 = vmatpush.bf16.msrb.mxu0 %v5075_v10  ;;  %v961_v10 = vunpack.c.h.b16 %v370_v7 }
  0x3e   : > { %1863 = vmatpush.bf16.msrb.mxu1 %v5083_v11  ;;  %v962_v11 = vunpack.c.l.b16 %v371_v8 }
  0x3f   : > { %1877 = vmatpush.bf16.msrb.mxu2 %v5091_v12  ;;  %v963_v12 = vunpack.c.h.b16 %v371_v8  ;;  %v4946_v8 = vld [vmem:[%s6481_s3 + $0x10] sm:$0xff] }
  0x40   : > { %1891 = vmatpush.bf16.msrb.mxu3 %v5099_v13  ;;  %v5106_v13 = vld [vmem:[%s6481_s3 + $0x510] sm:$0xff] }
  0x41   : > { %1850 = vmatpush.bf16.msrb.mxu0 %v5074_v14  ;;  %v5114_v14 = vld [vmem:[%s6481_s3 + $0x550] sm:$0xff] }
  0x42   : > { %1864 = vmatpush.bf16.msrb.mxu1 %v5082_v15  ;;  %v5122_v15 = vld [vmem:[%s6481_s3 + $0x590] sm:$0xff] }
  0x43   : > { %1878 = vmatpush.bf16.msrb.mxu2 %v5090_v16  ;;  %v5669_v57 = vld.sshfl [vmem:[#allocation1] sm:$0xff pattern:$0x73625140]  ;;  %v5671_v58 = vld.sshfl [vmem:[#allocation1 + $0x10] sm:$0xff pattern:$0x73625140] }
  0x44   : > { %1892 = vmatpush.bf16.msrb.mxu3 %v5098_v17  ;;  %v5673_v59 = vld.sshfl [vmem:[#allocation1 + $0x8] sm:$0xff pattern:$0x73625140]  ;;  %v5675_v60 = vld.sshfl [vmem:[#allocation1 + $0x18] sm:$0xff pattern:$0x73625140]  ;;  %v960_v17 = vunpack.c.l.b16 %v370_v7 }
  0x45   : > { %1851 = vmatpush.bf16.msrb.mxu0 %v5073_v18  ;;  %1959 = vst [vmem:[#allocation1 + $0x1] ss:$4 sm:$0xff] %v5465_v63  ;;  %v5130_v16 = vld [vmem:[%s6481_s3 + $0x5d0] sm:$0xff]  ;;  %v5718_v18 = vpack.c.b16 %v961_v10, %v961_v10 }
  0x46   : > { %1865 = vmatpush.bf16.msrb.mxu1 %v5081_v23  ;;  %1961 = vst [vmem:[#allocation1 + $0x2] ss:$4 sm:$0xff] %v5465_v63  ;;  %v4954_v10 = vld [vmem:[%s6481_s3 + $0x50] sm:$0xff] }
  0x47   : > { %1879 = vmatpush.bf16.msrb.mxu2 %v5089_v27  ;;  %1963 = vst [vmem:[#allocation1 + $0x3] ss:$4 sm:$0xff] %v5476_v5  ;;  %v5121_v27 = vld [vmem:[%s6481_s3 + $0x588] sm:$0xff] }
  0x48   : > { %1893 = vmatpush.bf16.msrb.mxu3 %v5097_v28  ;;  %v5129_v28 = vld [vmem:[%s6481_s3 + $0x5c8] sm:$0xff] }
  0x49   : > { %1852 = vmatpush.bf16.msrb.mxu0 %v5072_v32  ;;  %v5128_v32 = vld [vmem:[%s6481_s3 + $0x5c0] sm:$0xff] }
  0x4a   : > { %1866 = vmatpush.bf16.msrb.mxu1 %v5080_v38  ;;  %v4951_v38 = vld [vmem:[%s6481_s3 + $0x38] sm:$0xff] }
  0x4b   : > { %1880 = vmatpush.bf16.msrb.mxu2 %v5088_v43  ;;  %v4950_v43 = vld [vmem:[%s6481_s3 + $0x30] sm:$0xff] }
  0x4c   : > { %1894 = vmatpush.bf16.msrb.mxu3 %v5096_v33  ;;  %1853 = vmatmul.bf16.vlgmr.msrb.gmra.mxu0 %v1189_v19  ;;  %v5720_v19 = vpack.c.b16 %v962_v11, %v962_v11  ;;  %v4958_v33 = vld [vmem:[%s6481_s3 + $0x70] sm:$0xff] }
  0x4d   : > { %1901 = vmatpush.bf16.msra.mxu0 %v5111_v44  ;;  %1867 = vmatmul.bf16.vlgmr.msrb.gmra.mxu1 %v1190_v21  ;;  %v5724_v21 = vpack.c.b16 %v960_v17, %v960_v17  ;;  %v4966_v44 = vld [vmem:[%s6481_s3 + $0xb0] sm:$0xff] }
  0x4e   : > { %1915 = vmatpush.bf16.msra.mxu1 %v5119_v45  ;;  %1881 = vmatmul.bf16.vlgmr.msrb.gmra.mxu2 %v1191_v20  ;;  %v5722_v20 = vpack.c.b16 %v963_v12, %v963_v12  ;;  %v1081_v23 = vrot.slane %v5720_v19, 4  ;;  %v4974_v45 = vld [vmem:[%s6481_s3 + $0xf0] sm:$0xff]  ;;  %v999_v7 = vshrl.u32 %v5720_v19, 16 }
  0x4f   : > { %1929 = vmatpush.bf16.msra.mxu2 %v5127_v46  ;;  %1895 = vmatmul.bf16.vlgmr.msrb.gmra.mxu3 %v1192_v22  ;;  %v1080_v22 = vrot.slane %v5718_v18, 6 }
  0x50   : > { %1943 = vmatpush.bf16.msra.mxu3 %v5135_v47  ;;  %v1082_v24 = vrot.slane %v5722_v20, 2  ;;  %v1006_v12 = vshrl.u32 %v5722_v20, 16 }
  0x51   : > { %1902 = vmatpush.bf16.msra.mxu0 %v5110_v48  ;;  %v1109_v29 = vsel %vm1107_vm0, %v5724_v21, %v1080_v22 }
  0x52   : > { %1916 = vmatpush.bf16.msra.mxu1 %v5118_v49  ;;  %v1113_v36 = vsel %vm1110_vm1, %v1081_v23, %v1082_v24 }
  0x53   : > { %1930 = vmatpush.bf16.msra.mxu2 %v5126_v50  ;;  %v1115_v37 = vsel %vm1114_vm2, %v1109_v29, %v1113_v36  ;;  %v4949_v50 = vld [vmem:[%s6481_s3 + $0x28] sm:$0xff] }
  0x54   : > { %1944 = vmatpush.bf16.msra.mxu3 %v5134_v51  ;;  %1957 = vst [vmem:[#allocation1] ss:$4 sm:$0xff] %v1115_v37  ;;  %v4957_v51 = vld [vmem:[%s6481_s3 + $0x68] sm:$0xff] }
  0x55   : > { %1903 = vmatpush.bf16.msra.mxu0 %v5109_v52  ;;  %v4965_v52 = vld [vmem:[%s6481_s3 + $0xa8] sm:$0xff] }
  0x56   : > { %1917 = vmatpush.bf16.msra.mxu1 %v5117_v53  ;;  %v4973_v53 = vld [vmem:[%s6481_s3 + $0xe8] sm:$0xff] }
  0x57   : > { %1931 = vmatpush.bf16.msra.mxu2 %v5125_v54  ;;  %v4948_v54 = vld [vmem:[%s6481_s3 + $0x20] sm:$0xff]  ;;  %v4961_v37 = vld [vmem:[%s6481_s3 + $0x88] sm:$0xff] }
  0x58   : > { %1945 = vmatpush.bf16.msra.mxu3 %v5133_v55  ;;  %v4956_v55 = vld [vmem:[%s6481_s3 + $0x60] sm:$0xff] }
  0x59   : > { %1904 = vmatpush.bf16.msra.mxu0 %v5108_v61  ;;  %v4963_v61 = vld [vmem:[%s6481_s3 + $0x98] sm:$0xff] }
  0x5a   : > { %1918 = vmatpush.bf16.msra.mxu1 %v5116_v62  ;;  %v4971_v62 = vld [vmem:[%s6481_s3 + $0xd8] sm:$0xff] }
  0x5b   : > { %1932 = vmatpush.bf16.msra.mxu2 %v5124_v0  ;;  %v5781_v46 = vld.sshfl [vmem:[#allocation1] sm:$0xff pattern:$0x73625140]  ;;  %v5783_v47 = vld.sshfl [vmem:[#allocation1 + $0x10] sm:$0xff pattern:$0x73625140] }
  0x5c   : > { %1946 = vmatpush.bf16.msra.mxu3 %v5132_v1  ;;  %v5785_v48 = vld.sshfl [vmem:[#allocation1 + $0x8] sm:$0xff pattern:$0x73625140]  ;;  %v5787_v49 = vld.sshfl [vmem:[#allocation1 + $0x18] sm:$0xff pattern:$0x73625140] }
  0x5d   : > { %1905 = vmatpush.bf16.msra.mxu0 %v5107_v2  ;;  %1981 = vst [vmem:[#allocation1 + $0x1] ss:$4 sm:$0xff] %v5624_v34  ;;  %v994_v0 = vshll.u32 %v5718_v18, 16  ;;  %v1001_v1 = vshll.u32 %v5720_v19, 16  ;;  %v1008_v2 = vshll.u32 %v5722_v20, 16 }
  0x5e   : > { %1919 = vmatpush.bf16.msra.mxu1 %v5115_v3  ;;  %1982 = vst [vmem:[#allocation1 + $0x2] ss:$4 sm:$0xff] %v5624_v34  ;;  %v987_v3 = vshll.u32 %v5724_v21, 16 }
  0x5f   : > { %1933 = vmatpush.bf16.msra.mxu2 %v5123_v4  ;;  %1983 = vst [vmem:[#allocation1 + $0x3] ss:$4 sm:$0xff] %v5627_v35  ;;  %v992_v4 = vshrl.u32 %v5718_v18, 16  ;;  %v1003_v11 = vrot.slane %v1001_v1, 1 }
  0x60   : > { %1947 = vmatpush.bf16.msra.mxu3 %v5131_v6  ;;  %v996_v6 = vrot.slane %v994_v0, 1  ;;  %v989_v17 = vrot.slane %v987_v3, 1 }
  0x61   : > { %1906 = vmatpush.bf16.msra.mxu0 %v5106_v13  ;;  %v1010_v13 = vrot.slane %v1008_v2, 1  ;;  %v1004_v23 = vor.u32 %v1003_v11, %v999_v7  ;;  %v4980_v11 = vld [vmem:[%s6481_s3 + $0x120] sm:$0xff] }
  0x62   : > { %1920 = vmatpush.bf16.msra.mxu1 %v5114_v14  ;;  %v4962_v14 = vld [vmem:[%s6481_s3 + $0x90] sm:$0xff]  ;;  %v997_v22 = vor.u32 %v996_v6, %v992_v4 }
  0x63   : > { %1934 = vmatpush.bf16.msra.mxu2 %v5122_v15  ;;  %v4970_v15 = vld [vmem:[%s6481_s3 + $0xd0] sm:$0xff]  ;;  %v1011_v24 = vor.u32 %v1010_v13, %v1006_v12  ;;  %v1084_v29 = vrot.slane %v1004_v23, 4  ;;  %v4988_v12 = vld [vmem:[%s6481_s3 + $0x160] sm:$0xff] }
  0x64   : > { %1948 = vmatpush.bf16.msra.mxu3 %v5130_v16  ;;  %v985_v16 = vshrl.u32 %v5724_v21, 16 }
  0x65   : > { %1907 = vmatpush.bf16.msra.mxu0 %v5105_v25  ;;  %v1085_v36 = vrot.slane %v1011_v24, 2 }
  0x66   : > { %1921 = vmatpush.bf16.msra.mxu1 %v5113_v26  ;;  %v990_v25 = vor.u32 %v989_v17, %v985_v16  ;;  %v1083_v26 = vrot.slane %v997_v22, 6  ;;  %v4996_v16 = vld [vmem:[%s6481_s3 + $0x1a0] sm:$0xff] }
  0x67   : > { %1935 = vmatpush.bf16.msra.mxu2 %v5121_v27  ;;  %v4945_v27 = vld [vmem:[%s6481_s3 + $0x8] sm:$0xff]  ;;  %v5004_v17 = vld [vmem:[%s6481_s3 + $0x1e0] sm:$0xff] }
  0x68   : > { %1949 = vmatpush.bf16.msra.mxu3 %v5129_v28  ;;  %v4953_v28 = vld [vmem:[%s6481_s3 + $0x48] sm:$0xff] }
  0x69   : > { %1908 = vmatpush.bf16.msra.mxu0 %v5104_v40  ;;  %v4969_v40 = vld [vmem:[%s6481_s3 + $0xc8] sm:$0xff] }
  0x6a   : > { %1922 = vmatpush.bf16.msra.mxu1 %v5112_v30  ;;  %v1118_v30 = vsel %vm1107_vm0, %v990_v25, %v1083_v26 }
  0x6b   : > { %1936 = vmatpush.bf16.msra.mxu2 %v5120_v31  ;;  %v1121_v31 = vsel %vm1110_vm1, %v1084_v29, %v1085_v36 }
  0x6c   : > { %1950 = vmatpush.bf16.msra.mxu3 %v5128_v32  ;;  %1909 = vmatmul.bf16.vlgmr.msra.gmra.mxu0 %v5669_v57  ;;  %v4964_v57 = vld [vmem:[%s6481_s3 + $0xa0] sm:$0xff]  ;;  %v1122_v32 = vsel %vm1114_vm2, %v1118_v30, %v1121_v31 }
  0x6d   : > { %2576 = vmatpush.bf16.msrb.mxu0 %v4951_v38  ;;  %1923 = vmatmul.bf16.vlgmr.msra.gmra.mxu1 %v5673_v59  ;;  %v4947_v59 = vld [vmem:[%s6481_s3 + $0x18] sm:$0xff]  ;;  %v4944_v38 = vld [vmem:[%s6481_s3] sm:$0xff]  ;;  %1965 = vst [vmem:[#allocation1 + $0x20] ss:$4 sm:$0xff] %v1122_v32 }
  0x6e   : > { %2590 = vmatpush.bf16.msrb.mxu1 %v4959_v39  ;;  %1937 = vmatmul.bf16.vlgmr.msra.gmra.mxu2 %v5671_v58  ;;  %v4972_v58 = vld [vmem:[%s6481_s3 + $0xe0] sm:$0xff] }
  0x6f   : > { %2604 = vmatpush.bf16.msrb.mxu2 %v4967_v41  ;;  %1951 = vmatmul.bf16.vlgmr.msra.gmra.mxu3 %v5675_v60  ;;  %v4955_v60 = vld [vmem:[%s6481_s3 + $0x58] sm:$0xff]  ;;  %v4952_v39 = vld [vmem:[%s6481_s3 + $0x40] sm:$0xff] }
  0x70   : > { %2618 = vmatpush.bf16.msrb.mxu3 %v4975_v42  ;;  %v4960_v41 = vld [vmem:[%s6481_s3 + $0x80] sm:$0xff] }
  0x71   : > { %2577 = vmatpush.bf16.msrb.mxu0 %v4950_v43  ;;  %v4968_v42 = vld [vmem:[%s6481_s3 + $0xc0] sm:$0xff]  ;;  %v4983_v43 = vld [vmem:[%s6481_s3 + $0x138] sm:$0xff] }
  0x72   : > { %2591 = vmatpush.bf16.msrb.mxu1 %v4958_v33  ;;  %v4991_v33 = vld [vmem:[%s6481_s3 + $0x178] sm:$0xff] }
  0x73   : > { %2605 = vmatpush.bf16.msrb.mxu2 %v4966_v44  ;;  %v4999_v44 = vld [vmem:[%s6481_s3 + $0x1b8] sm:$0xff] }
  0x74   : > { %2619 = vmatpush.bf16.msrb.mxu3 %v4974_v45  ;;  %v5007_v45 = vld [vmem:[%s6481_s3 + $0x1f8] sm:$0xff] }
  0x75   : > { %2578 = vmatpush.bf16.msrb.mxu0 %v4949_v50  ;;  %v4982_v50 = vld [vmem:[%s6481_s3 + $0x130] sm:$0xff] }
  0x76   : > { %2592 = vmatpush.bf16.msrb.mxu1 %v4957_v51  ;;  %v4990_v51 = vld [vmem:[%s6481_s3 + $0x170] sm:$0xff] }
  0x77   : > { %2606 = vmatpush.bf16.msrb.mxu2 %v4965_v52  ;;  %v4998_v52 = vld [vmem:[%s6481_s3 + $0x1b0] sm:$0xff] }
  0x78   : > { %2620 = vmatpush.bf16.msrb.mxu3 %v4973_v53  ;;  %v5006_v53 = vld [vmem:[%s6481_s3 + $0x1f0] sm:$0xff] }
  0x79   : > { %2579 = vmatpush.bf16.msrb.mxu0 %v4948_v54  ;;  %v5907_v54 = vld.sshfl [vmem:[#allocation1 + $0x20] sm:$0xff pattern:$0x73625140] }
  0x7a   : > { %2593 = vmatpush.bf16.msrb.mxu1 %v4956_v55  ;;  %v5909_v55 = vld.sshfl [vmem:[#allocation1 + $0x30] sm:$0xff pattern:$0x73625140] }
  0x7b   : > { %2607 = vmatpush.bf16.msrb.mxu2 %v4964_v57  ;;  %v5913_v57 = vld.sshfl [vmem:[#allocation1 + $0x28] sm:$0xff pattern:$0x73625140] }
  0x7c   : > { %2621 = vmatpush.bf16.msrb.mxu3 %v4972_v58  ;;  %v376_v58 = vld [vmem:[%s356_s25] sm:$0x77] }
  0x7d   : > { %2580 = vmatpush.bf16.msrb.mxu0 %v4947_v59  ;;  %v377_v59 = vld [vmem:[%s356_s25 + $0x8] sm:$0x77] }
  0x7e   : > { %2594 = vmatpush.bf16.msrb.mxu1 %v4955_v60  ;;  %v5917_v60 = vld.sshfl [vmem:[#allocation1 + $0x38] sm:$0xff pattern:$0x73625140]  ;;  %v2748_v0 = vunpack.c.l.b16 %v377_v59  ;;  %v2749_v1 = vunpack.c.h.b16 %v377_v59  ;;  %v5002_v59 = vld [vmem:[%s6481_s3 + $0x1d0] sm:$0xff] }
  0x7f   : > { %2608 = vmatpush.bf16.msrb.mxu2 %v4963_v61  ;;  %v2746_v61 = vunpack.c.l.b16 %v376_v58  ;;  %2823 = vst [vmem:[#allocation1 + $0x20] ss:$4 sm:$0xff] %v5537_v56 }
  0x80   : > { %2622 = vmatpush.bf16.msrb.mxu3 %v4971_v62  ;;  %v2747_v62 = vunpack.c.h.b16 %v376_v58  ;;  %2825 = vst [vmem:[#allocation1 + $0x21] ss:$4 sm:$0xff] %v5556_v9  ;;  %v5937_v4 = vpack.c.b16 %v2748_v0, %v2748_v0  ;;  %v5939_v6 = vpack.c.b16 %v2749_v1, %v2749_v1  ;;  %v4994_v58 = vld [vmem:[%s6481_s3 + $0x190] sm:$0xff]  ;;  %v3774_v0 = vrot.slane %v5722_v20, 3  ;;  %v4977_v1 = vld [vmem:[%s6481_s3 + $0x108] sm:$0xff] }
  0x81   : > { %2581 = vmatpush.bf16.msrb.mxu0 %v4946_v8  ;;  %v5932_v2 = vpack.c.b16 %v2746_v61, %v2746_v61  ;;  %2827 = vst [vmem:[#allocation1 + $0x22] ss:$4 sm:$0xff] %v5556_v9 }
  0x82   : > { %2595 = vmatpush.bf16.msrb.mxu1 %v4954_v10  ;;  %v5934_v3 = vpack.c.b16 %v2747_v62, %v2747_v62  ;;  %v2769_v9 = vshrl.u32 %v5937_v4, 16  ;;  %v2771_v13 = vshll.u32 %v5937_v4, 16  ;;  %v4550_v36 = vrot.slane %v5937_v4, 5 }
  0x83   : > { %2609 = vmatpush.bf16.msrb.mxu2 %v4962_v14  ;;  %v2755_v56 = vshrl.u32 %v5932_v2, 16  ;;  %v2757_v7 = vshll.u32 %v5932_v2, 16  ;;  %v2776_v14 = vshrl.u32 %v5939_v6, 16  ;;  %v2782_v24 = vrot.slane %v5932_v2, 1 }
  0x84   : > { %2623 = vmatpush.bf16.msrb.mxu3 %v4970_v15  ;;  %v2762_v8 = vshrl.u32 %v5934_v3, 16  ;;  %v2764_v10 = vshll.u32 %v5934_v3, 16  ;;  %v2778_v15 = vshll.u32 %v5939_v6, 16  ;;  %v2773_v25 = vrot.slane %v2771_v13, 1  ;;  %v5015_v13 = vld [vmem:[%s6481_s3 + $0x238] sm:$0xff] }
  0x85   : > { %2582 = vmatpush.bf16.msrb.mxu0 %v4945_v27  ;;  %v2759_v22 = vrot.slane %v2757_v7, 1  ;;  %v4549_v29 = vrot.slane %v5934_v3, 7  ;;  %v4551_v32 = vrot.slane %v5939_v6, 3  ;;  %v1068_v62 = vrot.slane %v5724_v21, 1  ;;  %v4984_v7 = vld [vmem:[%s6481_s3 + $0x140] sm:$0xff] }
  0x86   : > { %2596 = vmatpush.bf16.msrb.mxu1 %v4953_v28  ;;  %v2766_v23 = vrot.slane %v2764_v10, 1  ;;  %v2780_v26 = vrot.slane %v2778_v15, 1  ;;  %v2774_v30 = vor.u32 %v2773_v25, %v2769_v9  ;;  %v5000_v10 = vld [vmem:[%s6481_s3 + $0x1c0] sm:$0xff]  ;;  %v2788_v9 = vrot.slane %v5939_v6, 2  ;;  %v5031_v15 = vld [vmem:[%s6481_s3 + $0x2b8] sm:$0xff] }
  0x87   : > { %2610 = vmatpush.bf16.msrb.mxu2 %v4961_v37  ;;  %v2760_v27 = vor.u32 %v2759_v22, %v2755_v56  ;;  %v4979_v37 = vld [vmem:[%s6481_s3 + $0x118] sm:$0xff]  ;;  %v4976_v56 = vld [vmem:[%s6481_s3 + $0x100] sm:$0xff]  ;;  %v5030_v22 = vld [vmem:[%s6481_s3 + $0x2b0] sm:$0xff] }
  0x88   : > { %2624 = vmatpush.bf16.msrb.mxu3 %v4969_v40  ;;  %v2767_v28 = vor.u32 %v2766_v23, %v2762_v8  ;;  %v4987_v40 = vld [vmem:[%s6481_s3 + $0x158] sm:$0xff]  ;;  %v2781_v31 = vor.u32 %v2780_v26, %v2776_v14  ;;  %v4992_v8 = vld [vmem:[%s6481_s3 + $0x180] sm:$0xff]  ;;  %v5038_v23 = vld [vmem:[%s6481_s3 + $0x2f0] sm:$0xff] }
  0x89   : > { %2583 = vmatpush.bf16.msrb.mxu0 %v4944_v38  ;;  %v4995_v38 = vld [vmem:[%s6481_s3 + $0x198] sm:$0xff] }
  0x8a   : > { %2597 = vmatpush.bf16.msrb.mxu1 %v4952_v39  ;;  %v5003_v39 = vld [vmem:[%s6481_s3 + $0x1d8] sm:$0xff] }
  0x8b   : > { %2611 = vmatpush.bf16.msrb.mxu2 %v4960_v41  ;;  %v2789_v41 = vrot.slane %v2767_v28, 6  ;;  %v5023_v14 = vld [vmem:[%s6481_s3 + $0x278] sm:$0xff]  ;;  %v5013_v28 = vld [vmem:[%s6481_s3 + $0x228] sm:$0xff] }
  0x8c   : > { %2625 = vmatpush.bf16.msrb.mxu3 %v4968_v42  ;;  %2584 = vmatmul.bf16.vlgmr.msrb.gmra.mxu0 %v5781_v46  ;;  %v4981_v46 = vld [vmem:[%s6481_s3 + $0x128] sm:$0xff]  ;;  %v2810_v42 = vsel %vm1107_vm0, %v2782_v24, %v4549_v29  ;;  %v5036_v29 = vld [vmem:[%s6481_s3 + $0x2e0] sm:$0xff] }
  0x8d   : > { %2632 = vmatpush.bf16.msra.mxu0 %v4983_v43  ;;  %2598 = vmatmul.bf16.vlgmr.msrb.gmra.mxu1 %v5785_v48  ;;  %v4997_v48 = vld [vmem:[%s6481_s3 + $0x1a8] sm:$0xff]  ;;  %v2790_v43 = vrot.slane %v2774_v30, 4 }
  0x8e   : > { %2646 = vmatpush.bf16.msra.mxu1 %v4991_v33  ;;  %2612 = vmatmul.bf16.vlgmr.msrb.gmra.mxu2 %v5783_v47  ;;  %v4989_v47 = vld [vmem:[%s6481_s3 + $0x168] sm:$0xff]  ;;  %v2791_v33 = vrot.slane %v2781_v31, 2  ;;  %v5027_v31 = vld [vmem:[%s6481_s3 + $0x298] sm:$0xff] }
  0x8f   : > { %2660 = vmatpush.bf16.msra.mxu2 %v4999_v44  ;;  %2626 = vmatmul.bf16.vlgmr.msrb.gmra.mxu3 %v5787_v49  ;;  %v5005_v49 = vld [vmem:[%s6481_s3 + $0x1e8] sm:$0xff]  ;;  %v2813_v44 = vsel %vm1110_vm1, %v4550_v36, %v4551_v32  ;;  %v5035_v32 = vld [vmem:[%s6481_s3 + $0x2d8] sm:$0xff] }
  0x90   : > { %2674 = vmatpush.bf16.msra.mxu3 %v5007_v45  ;;  %v2803_v45 = vsel %vm1107_vm0, %v2760_v27, %v2789_v41  ;;  %v5018_v41 = vld [vmem:[%s6481_s3 + $0x250] sm:$0xff] }
  0x91   : > { %2633 = vmatpush.bf16.msra.mxu0 %v4982_v50  ;;  %v5982_v50 = vsel %vm1114_vm2, %v2810_v42, %v2813_v44  ;;  %v5026_v42 = vld [vmem:[%s6481_s3 + $0x290] sm:$0xff] }
  0x92   : > { %2647 = vmatpush.bf16.msra.mxu1 %v4990_v51  ;;  %v4978_v51 = vld [vmem:[%s6481_s3 + $0x110] sm:$0xff] }
  0x93   : > { %2661 = vmatpush.bf16.msra.mxu2 %v4998_v52  ;;  %v4986_v52 = vld [vmem:[%s6481_s3 + $0x150] sm:$0xff] }
  0x94   : > { %2675 = vmatpush.bf16.msra.mxu3 %v5006_v53  ;;  %v2806_v53 = vsel %vm1110_vm1, %v2790_v43, %v2791_v33  ;;  %v5034_v43 = vld [vmem:[%s6481_s3 + $0x2d0] sm:$0xff] }
  0x95   : > { %2634 = vmatpush.bf16.msra.mxu0 %v4981_v46  ;;  %v2807_v61 = vsel %vm1114_vm2, %v2803_v45, %v2806_v53  ;;  %v3772_v46 = vrot.slane %v5718_v18, 7  ;;  %v4993_v18 = vld [vmem:[%s6481_s3 + $0x188] sm:$0xff] }
  0x96   : > { %2648 = vmatpush.bf16.msra.mxu1 %v4989_v47  ;;  %2829 = vst [vmem:[#allocation1 + $0x23] ss:$4 sm:$0xff] %v2807_v61  ;;  %v3773_v47 = vrot.slane %v5720_v19, 5  ;;  %v5001_v19 = vld [vmem:[%s6481_s3 + $0x1c8] sm:$0xff] }
  0x97   : > { %2662 = vmatpush.bf16.msra.mxu2 %v4997_v48  ;;  %v4985_v48 = vld [vmem:[%s6481_s3 + $0x148] sm:$0xff]  ;;  %v1125_v20 = vsel %vm1107_vm0, %v1068_v62, %v3772_v46 }
  0x98   : > { %2676 = vmatpush.bf16.msra.mxu3 %v5005_v49  ;;  %v1128_v21 = vsel %vm1110_vm1, %v3773_v47, %v3774_v0  ;;  %v5025_v61 = vld [vmem:[%s6481_s3 + $0x288] sm:$0xff]  ;;  %v5008_v47 = vld [vmem:[%s6481_s3 + $0x200] sm:$0xff] }
  0x99   : > { %2635 = vmatpush.bf16.msra.mxu0 %v4980_v11  ;;  %v1129_v49 = vsel %vm1114_vm2, %v1125_v20, %v1128_v21  ;;  %v2786_v11 = vrot.slane %v5934_v3, 6  ;;  %v5039_v3 = vld [vmem:[%s6481_s3 + $0x2f8] sm:$0xff]  ;;  %v5033_v62 = vld [vmem:[%s6481_s3 + $0x2c8] sm:$0xff]  ;;  %v5016_v0 = vld [vmem:[%s6481_s3 + $0x240] sm:$0xff] }
  0x9a   : > { %2649 = vmatpush.bf16.msra.mxu1 %v4988_v12  ;;  %1980 = vst [vmem:[#allocation1] ss:$4 sm:$0xff] %v1129_v49  ;;  %v2787_v12 = vrot.slane %v5937_v4, 4  ;;  %v5014_v4 = vld [vmem:[%s6481_s3 + $0x230] sm:$0xff]  ;;  %v5151_v20 = vld [vmem:[%s6481_s3 + $0x678] sm:$0xff] }
  0x9b   : > { %2663 = vmatpush.bf16.msra.mxu2 %v4996_v16  ;;  %v2796_v6 = vsel %vm1107_vm0, %v5932_v2, %v2786_v11  ;;  %v5159_v49 = vld [vmem:[%s6481_s3 + $0x6b8] sm:$0xff]  ;;  %v5150_v11 = vld [vmem:[%s6481_s3 + $0x670] sm:$0xff] }
  0x9c   : > { %2677 = vmatpush.bf16.msra.mxu3 %v5004_v17  ;;  %v2799_v16 = vsel %vm1110_vm1, %v2787_v12, %v2788_v9  ;;  %v5022_v17 = vld [vmem:[%s6481_s3 + $0x270] sm:$0xff] }
  0x9d   : > { %2636 = vmatpush.bf16.msra.mxu0 %v4979_v37  ;;  %v2800_v27 = vsel %vm1114_vm2, %v2796_v6, %v2799_v16  ;;  %v5011_v37 = vld [vmem:[%s6481_s3 + $0x218] sm:$0xff]  ;;  %v5158_v12 = vld [vmem:[%s6481_s3 + $0x6b0] sm:$0xff]  ;;  %v5140_v16 = vld [vmem:[%s6481_s3 + $0x620] sm:$0xff] }
  0x9e   : > { %2650 = vmatpush.bf16.msra.mxu1 %v4987_v40  ;;  %v5019_v40 = vld [vmem:[%s6481_s3 + $0x258] sm:$0xff]  ;;  %v5166_v9 = vld [vmem:[%s6481_s3 + $0x6f0] sm:$0xff] }
  0x9f   : > { %2664 = vmatpush.bf16.msra.mxu2 %v4995_v38 }
  0xa0   : > { %2678 = vmatpush.bf16.msra.mxu3 %v5003_v39  ;;  %v5010_v39 = vld [vmem:[%s6481_s3 + $0x210] sm:$0xff] }
  0xa1   : > { %2637 = vmatpush.bf16.msra.mxu0 %v4978_v51  ;;  %v6059_v24 = vld.sshfl [vmem:[#allocation1] sm:$0xff pattern:$0x73625140]  ;;  %v6061_v25 = vld.sshfl [vmem:[#allocation1 + $0x10] sm:$0xff pattern:$0x73625140] }
  0xa2   : > { %2651 = vmatpush.bf16.msra.mxu1 %v4986_v52  ;;  %v6063_v2 = vld.sshfl [vmem:[#allocation1 + $0x8] sm:$0xff pattern:$0x73625140]  ;;  %v6065_v26 = vld.sshfl [vmem:[#allocation1 + $0x18] sm:$0xff pattern:$0x73625140] }
  0xa3   : > { %2665 = vmatpush.bf16.msra.mxu2 %v4994_v58  ;;  %2815 = vst [vmem:[#allocation1] ss:$4 sm:$0xff] %v5465_v63  ;;  %v5029_v63 = vld [vmem:[%s6481_s3 + $0x2a8] sm:$0xff] }
  0xa4   : > { %2679 = vmatpush.bf16.msra.mxu3 %v5002_v59  ;;  %2817 = vst [vmem:[#allocation1 + $0x1] ss:$4 sm:$0xff] %v5476_v5  ;;  %v5009_v51 = vld [vmem:[%s6481_s3 + $0x208] sm:$0xff] }
  0xa5   : > { %2638 = vmatpush.bf16.msra.mxu0 %v4977_v1  ;;  %2819 = vst [vmem:[#allocation1 + $0x2] ss:$4 sm:$0xff] %v5476_v5  ;;  %v5020_v5 = vld [vmem:[%s6481_s3 + $0x260] sm:$0xff]  ;;  %v5017_v52 = vld [vmem:[%s6481_s3 + $0x248] sm:$0xff] }
  0xa6   : > { %2652 = vmatpush.bf16.msra.mxu1 %v4985_v48  ;;  %2821 = vst [vmem:[#allocation1 + $0x3] ss:$4 sm:$0xff] %v2800_v27  ;;  %v5024_v1 = vld [vmem:[%s6481_s3 + $0x280] sm:$0xff]  ;;  %v5155_v27 = vld [vmem:[%s6481_s3 + $0x698] sm:$0xff] }
  0xa7   : > { %2666 = vmatpush.bf16.msra.mxu2 %v4993_v18  ;;  %v5032_v48 = vld [vmem:[%s6481_s3 + $0x2c0] sm:$0xff] }
  0xa8   : > { %2680 = vmatpush.bf16.msra.mxu3 %v5001_v19  ;;  %v5143_v19 = vld [vmem:[%s6481_s3 + $0x638] sm:$0xff] }
  0xa9   : > { %2639 = vmatpush.bf16.msra.mxu0 %v4976_v56  ;;  %v1798_v36 = vpop.f32.mrf.mxu0  ;;  %v5167_v56 = vld [vmem:[%s6481_s3 + $0x6f8] sm:$0xff] }
  0xaa   : > { %2653 = vmatpush.bf16.msra.mxu1 %v4984_v7  ;;  %v1812_v30 = vpop.f32.mrf.mxu1 }
  0xab   : > { %2667 = vmatpush.bf16.msra.mxu2 %v4992_v8  ;;  %v1813_v38 = vadd.f32 %v1812_v30, %v1798_v36  ;;  %v5138_v30 = vld [vmem:[%s6481_s3 + $0x610] sm:$0xff] }
  0xac   : > { %2681 = vmatpush.bf16.msra.mxu3 %v5000_v10  ;;  %2640 = vmatmul.bf16.vlgmr.msra.gmra.mxu0 %v5907_v54  ;;  %v5021_v54 = vld [vmem:[%s6481_s3 + $0x268] sm:$0xff]  ;;  %v5142_v10 = vld [vmem:[%s6481_s3 + $0x630] sm:$0xff] }
  0xad   : > { %2688 = vmatpush.bf16.msrb.mxu0 %v5015_v13  ;;  %2654 = vmatmul.bf16.vlgmr.msra.gmra.mxu1 %v5913_v57  ;;  %v5012_v57 = vld [vmem:[%s6481_s3 + $0x220] sm:$0xff]  ;;  %v5141_v13 = vld [vmem:[%s6481_s3 + $0x628] sm:$0xff]  ;;  %v2833_v36 = vld.sshfl [vmem:[#allocation1 + $0x18] sm:$0xff pattern:$0x73625140] }
  0xae   : > { %2702 = vmatpush.bf16.msrb.mxu1 %v5023_v14  ;;  %2668 = vmatmul.bf16.vlgmr.msra.gmra.mxu2 %v5909_v55  ;;  %v5037_v55 = vld [vmem:[%s6481_s3 + $0x2e8] sm:$0xff] }
  0xaf   : > { %2716 = vmatpush.bf16.msrb.mxu2 %v5031_v15  ;;  %2682 = vmatmul.bf16.vlgmr.msra.gmra.mxu3 %v5917_v60  ;;  %v5028_v60 = vld [vmem:[%s6481_s3 + $0x2a0] sm:$0xff]  ;;  %v5149_v14 = vld [vmem:[%s6481_s3 + $0x668] sm:$0xff] }
  0xb0   : > { %2730 = vmatpush.bf16.msrb.mxu3 %v5039_v3  ;;  %v5157_v15 = vld [vmem:[%s6481_s3 + $0x6a8] sm:$0xff] }
  0xb1   : > { %2689 = vmatpush.bf16.msrb.mxu0 %v5014_v4  ;;  %v1826_v33 = vpop.f32.mrf.mxu2  ;;  %v1800_v53 = vpop.f32.mrf.mxu0  ;;  %v5165_v3 = vld [vmem:[%s6481_s3 + $0x6e8] sm:$0xff] }
  0xb2   : > { %2703 = vmatpush.bf16.msrb.mxu1 %v5022_v17  ;;  %v1827_v44 = vadd.f32 %v1826_v33, %v1813_v38  ;;  %v1840_v45 = vpop.f32.mrf.mxu3  ;;  %v1814_v59 = vpop.f32.mrf.mxu1  ;;  %v5148_v17 = vld [vmem:[%s6481_s3 + $0x660] sm:$0xff]  ;;  %v5154_v38 = vld [vmem:[%s6481_s3 + $0x690] sm:$0xff] }
  0xb3   : > { %2717 = vmatpush.bf16.msrb.mxu2 %v5030_v22  ;;  %v1815_v46 = vadd.f32 %v1814_v59, %v1800_v53  ;;  %v5152_v53 = vld [vmem:[%s6481_s3 + $0x680] sm:$0xff]  ;;  %v5175_v59 = vld [vmem:[%s6481_s3 + $0x738] sm:$0xff] }
  0xb4   : > { %2731 = vmatpush.bf16.msrb.mxu3 %v5038_v23  ;;  %v1841_v58 = vadd.f32 %v1840_v45, %v1827_v44  ;;  %v5156_v23 = vld [vmem:[%s6481_s3 + $0x6a0] sm:$0xff] }
  0xb5   : > { %2690 = vmatpush.bf16.msrb.mxu0 %v5013_v28  ;;  %v5163_v28 = vld [vmem:[%s6481_s3 + $0x6d8] sm:$0xff] }
  0xb6   : > { %2704 = vmatpush.bf16.msrb.mxu1 %v5021_v54 }
  0xb7   : > { %2718 = vmatpush.bf16.msrb.mxu2 %v5029_v63 }
  0xb8   : > { %2732 = vmatpush.bf16.msrb.mxu3 %v5037_v55 }
  0xb9   : > { %2691 = vmatpush.bf16.msrb.mxu0 %v5012_v57  ;;  %v1828_v18 = vpop.f32.mrf.mxu2  ;;  %v2830_v57 = vld.sshfl [vmem:[#allocation1] sm:$0xff pattern:$0x73625140] }
  0xba   : > { %2705 = vmatpush.bf16.msrb.mxu1 %v5020_v5  ;;  %v1829_v21 = vadd.f32 %v1828_v18, %v1815_v46  ;;  %v1842_v7 = vpop.f32.mrf.mxu3  ;;  %v2832_v5 = vld.sshfl [vmem:[#allocation1 + $0x10] sm:$0xff pattern:$0x73625140]  ;;  %v5199_v46 = vld [vmem:[%s6481_s3 + $0x7f8] sm:$0xff]  ;;  %v5173_v18 = vld [vmem:[%s6481_s3 + $0x728] sm:$0xff] }
  0xbb   : > { %2719 = vmatpush.bf16.msrb.mxu2 %v5028_v60 }
  0xbc   : > { %2733 = vmatpush.bf16.msrb.mxu3 %v5036_v29  ;;  %v1843_v8 = vadd.f32 %v1842_v7, %v1829_v21  ;;  %v2831_v29 = vld.sshfl [vmem:[#allocation1 + $0x8] sm:$0xff pattern:$0x73625140]  ;;  %v5172_v7 = vld [vmem:[%s6481_s3 + $0x720] sm:$0xff] }
  0xbd   : > { %2692 = vmatpush.bf16.msrb.mxu0 %v5011_v37  ;;  %2838 = vst [vmem:[#allocation1] ss:$4 sm:$0xff] %v5624_v34  ;;  %v5137_v34 = vld [vmem:[%s6481_s3 + $0x608] sm:$0xff] }
  0xbe   : > { %2706 = vmatpush.bf16.msrb.mxu1 %v5019_v40  ;;  %2839 = vst [vmem:[#allocation1 + $0x1] ss:$4 sm:$0xff] %v5627_v35  ;;  %v5197_v21 = vld [vmem:[%s6481_s3 + $0x7e8] sm:$0xff] }
  0xbf   : > { %2720 = vmatpush.bf16.msrb.mxu2 %v5027_v31  ;;  %v5146_v31 = vld [vmem:[%s6481_s3 + $0x650] sm:$0xff]  ;;  %2840 = vst [vmem:[#allocation1 + $0x2] ss:$4 sm:$0xff] %v5627_v35  ;;  %v5161_v35 = vld [vmem:[%s6481_s3 + $0x6c8] sm:$0xff] }
  0xc0   : > { %2734 = vmatpush.bf16.msrb.mxu3 %v5035_v32  ;;  %2841 = vst [vmem:[#allocation1 + $0x3] ss:$4 sm:$0xff] %v5982_v50 }
  0xc1   : > { %2693 = vmatpush.bf16.msrb.mxu0 %v5010_v39  ;;  %v5162_v39 = vld [vmem:[%s6481_s3 + $0x6d0] sm:$0xff] }
  0xc2   : > { %2707 = vmatpush.bf16.msrb.mxu1 %v5018_v41 }
  0xc3   : > { %2721 = vmatpush.bf16.msrb.mxu2 %v5026_v42  ;;  %v5145_v42 = vld [vmem:[%s6481_s3 + $0x648] sm:$0xff] }
  0xc4   : > { %2735 = vmatpush.bf16.msrb.mxu3 %v5034_v43  ;;  %v5153_v43 = vld [vmem:[%s6481_s3 + $0x688] sm:$0xff] }
  0xc5   : > { %2694 = vmatpush.bf16.msrb.mxu0 %v5009_v51  ;;  %v5136_v51 = vld [vmem:[%s6481_s3 + $0x600] sm:$0xff] }
  0xc6   : > { %2708 = vmatpush.bf16.msrb.mxu1 %v5017_v52  ;;  %v5144_v52 = vld [vmem:[%s6481_s3 + $0x640] sm:$0xff] }
  0xc7   : > { %2722 = vmatpush.bf16.msrb.mxu2 %v5025_v61  ;;  %v5183_v61 = vld [vmem:[%s6481_s3 + $0x778] sm:$0xff] }
  0xc8   : > { %2736 = vmatpush.bf16.msrb.mxu3 %v5033_v62  ;;  %v5191_v62 = vld [vmem:[%s6481_s3 + $0x7b8] sm:$0xff] }
  0xc9   : > { %2695 = vmatpush.bf16.msrb.mxu0 %v5008_v47  ;;  %v1854_v4 = vpop.f32.mrf.mxu0  ;;  %v5174_v47 = vld [vmem:[%s6481_s3 + $0x730] sm:$0xff] }
  0xca   : > { %2709 = vmatpush.bf16.msrb.mxu1 %v5016_v0  ;;  %v1855_v6 = vadd.f32 %v1854_v4, %v1841_v58  ;;  %v1868_v22 = vpop.f32.mrf.mxu1  ;;  %v5160_v58 = vld [vmem:[%s6481_s3 + $0x6c0] sm:$0xff]  ;;  %v5182_v0 = vld [vmem:[%s6481_s3 + $0x770] sm:$0xff] }
  0xcb   : > { %2723 = vmatpush.bf16.msrb.mxu2 %v5024_v1  ;;  %v5190_v1 = vld [vmem:[%s6481_s3 + $0x7b0] sm:$0xff] }
  0xcc   : > { %2737 = vmatpush.bf16.msrb.mxu3 %v5032_v48  ;;  %2696 = vmatmul.bf16.vlgmr.msrb.gmra.mxu0 %v6059_v24  ;;  %v5164_v24 = vld [vmem:[%s6481_s3 + $0x6e0] sm:$0xff]  ;;  %v5198_v48 = vld [vmem:[%s6481_s3 + $0x7f0] sm:$0xff] }
  0xcd   : > { %3434 = vmatpush.bf16.msra.mxu0 %v5143_v19  ;;  %2710 = vmatmul.bf16.vlgmr.msrb.gmra.mxu1 %v6063_v2  ;;  %v5139_v2 = vld [vmem:[%s6481_s3 + $0x618] sm:$0xff]  ;;  %v5181_v19 = vld [vmem:[%s6481_s3 + $0x768] sm:$0xff] }
  0xce   : > { %3448 = vmatpush.bf16.msra.mxu1 %v5151_v20  ;;  %2724 = vmatmul.bf16.vlgmr.msrb.gmra.mxu2 %v6061_v25  ;;  %v1869_v25 = vadd.f32 %v1868_v22, %v1855_v6  ;;  %v5189_v20 = vld [vmem:[%s6481_s3 + $0x7a8] sm:$0xff] }
  0xcf   : > { %3462 = vmatpush.bf16.msra.mxu2 %v5159_v49  ;;  %2738 = vmatmul.bf16.vlgmr.msrb.gmra.mxu3 %v6065_v26  ;;  %v5147_v26 = vld [vmem:[%s6481_s3 + $0x658] sm:$0xff] }
  0xd0   : > { %3476 = vmatpush.bf16.msra.mxu3 %v5167_v56 }
  0xd1   : > { %3435 = vmatpush.bf16.msra.mxu0 %v5142_v10  ;;  %v1882_v54 = vpop.f32.mrf.mxu2  ;;  %v1856_v60 = vpop.f32.mrf.mxu0 }
  0xd2   : > { %3449 = vmatpush.bf16.msra.mxu1 %v5150_v11  ;;  %v1883_v63 = vadd.f32 %v1882_v54, %v1869_v25  ;;  %v1896_v55 = vpop.f32.mrf.mxu3  ;;  %v1857_v37 = vadd.f32 %v1856_v60, %v1843_v8  ;;  %v1870_v32 = vpop.f32.mrf.mxu1  ;;  %v5180_v8 = vld [vmem:[%s6481_s3 + $0x760] sm:$0xff]  ;;  %v5178_v25 = vld [vmem:[%s6481_s3 + $0x750] sm:$0xff]  ;;  %v5169_v54 = vld [vmem:[%s6481_s3 + $0x708] sm:$0xff] }
  0xd3   : > { %3463 = vmatpush.bf16.msra.mxu2 %v5158_v12  ;;  %v5188_v11 = vld [vmem:[%s6481_s3 + $0x7a0] sm:$0xff] }
  0xd4   : > { %3477 = vmatpush.bf16.msra.mxu3 %v5166_v9  ;;  %v6211_v40 = vadd.f32 %v1896_v55, %v1883_v63  ;;  %v1871_v41 = vadd.f32 %v1870_v32, %v1857_v37  ;;  %v5196_v12 = vld [vmem:[%s6481_s3 + $0x7e0] sm:$0xff]  ;;  %v5177_v63 = vld [vmem:[%s6481_s3 + $0x748] sm:$0xff]  ;;  %v5207_v32 = vld [vmem:[%s6481_s3 + $0x838] sm:$0xff] }
  0xd5   : > { %3436 = vmatpush.bf16.msra.mxu0 %v5141_v13  ;;  %v5171_v13 = vld [vmem:[%s6481_s3 + $0x718] sm:$0xff]  ;;  %v5185_v55 = vld [vmem:[%s6481_s3 + $0x788] sm:$0xff]  ;;  %v5168_v37 = vld [vmem:[%s6481_s3 + $0x700] sm:$0xff] }
  0xd6   : > { %3450 = vmatpush.bf16.msra.mxu1 %v5149_v14  ;;  %v5179_v14 = vld [vmem:[%s6481_s3 + $0x758] sm:$0xff] }
  0xd7   : > { %3464 = vmatpush.bf16.msra.mxu2 %v5157_v15  ;;  %v5187_v15 = vld [vmem:[%s6481_s3 + $0x798] sm:$0xff] }
  0xd8   : > { %3478 = vmatpush.bf16.msra.mxu3 %v5165_v3  ;;  %v5195_v3 = vld [vmem:[%s6481_s3 + $0x7d8] sm:$0xff] }
  0xd9   : > { %3437 = vmatpush.bf16.msra.mxu0 %v5140_v16  ;;  %v1884_v50 = vpop.f32.mrf.mxu2 }
  0xda   : > { %3451 = vmatpush.bf16.msra.mxu1 %v5148_v17  ;;  %v1885_v33 = vadd.f32 %v1884_v50, %v1871_v41  ;;  %v1898_v44 = vpop.f32.mrf.mxu3  ;;  %v5231_v41 = vld [vmem:[%s6481_s3 + $0x8f8] sm:$0xff]  ;;  %v5206_v50 = vld [vmem:[%s6481_s3 + $0x830] sm:$0xff] }
  0xdb   : > { %3465 = vmatpush.bf16.msra.mxu2 %v5156_v23 }
  0xdc   : > { %3479 = vmatpush.bf16.msra.mxu3 %v5164_v24  ;;  %v1899_v45 = vadd.f32 %v1898_v44, %v1885_v33  ;;  %v5170_v24 = vld [vmem:[%s6481_s3 + $0x710] sm:$0xff] }
  0xdd   : > { %3438 = vmatpush.bf16.msra.mxu0 %v5139_v2  ;;  %v5214_v33 = vld [vmem:[%s6481_s3 + $0x870] sm:$0xff] }
  0xde   : > { %3452 = vmatpush.bf16.msra.mxu1 %v5147_v26  ;;  %v5186_v26 = vld [vmem:[%s6481_s3 + $0x790] sm:$0xff] }
  0xdf   : > { %3466 = vmatpush.bf16.msra.mxu2 %v5155_v27  ;;  %v5194_v27 = vld [vmem:[%s6481_s3 + $0x7d0] sm:$0xff] }
  0xe0   : > { %3480 = vmatpush.bf16.msra.mxu3 %v5163_v28  ;;  %v5222_v44 = vld [vmem:[%s6481_s3 + $0x8b0] sm:$0xff] }
  0xe1   : > { %3439 = vmatpush.bf16.msra.mxu0 %v5138_v30  ;;  %v5184_v30 = vld [vmem:[%s6481_s3 + $0x780] sm:$0xff] }
  0xe2   : > { %3453 = vmatpush.bf16.msra.mxu1 %v5146_v31  ;;  %v5192_v31 = vld [vmem:[%s6481_s3 + $0x7c0] sm:$0xff] }
  0xe3   : > { %3467 = vmatpush.bf16.msra.mxu2 %v5154_v38  ;;  %v5215_v38 = vld [vmem:[%s6481_s3 + $0x878] sm:$0xff] }
  0xe4   : > { %3481 = vmatpush.bf16.msra.mxu3 %v5162_v39  ;;  %v5223_v39 = vld [vmem:[%s6481_s3 + $0x8b8] sm:$0xff] }
  0xe5   : > { %3440 = vmatpush.bf16.msra.mxu0 %v5137_v34  ;;  %v2834_v34 = vld.sshfl [vmem:[#allocation1 + $0x20] sm:$0xff pattern:$0x73625140] }
  0xe6   : > { %3454 = vmatpush.bf16.msra.mxu1 %v5145_v42  ;;  %v2836_v42 = vld.sshfl [vmem:[#allocation1 + $0x30] sm:$0xff pattern:$0x73625140] }
  0xe7   : > { %3468 = vmatpush.bf16.msra.mxu2 %v5153_v43  ;;  %v2835_v43 = vld.sshfl [vmem:[#allocation1 + $0x28] sm:$0xff pattern:$0x73625140] }
  0xe8   : > { %3482 = vmatpush.bf16.msra.mxu3 %v5161_v35  ;;  %v2837_v35 = vld.sshfl [vmem:[#allocation1 + $0x38] sm:$0xff pattern:$0x73625140] }
  0xe9   : > { %3441 = vmatpush.bf16.msra.mxu0 %v5136_v51  ;;  %v1910_v49 = vpop.f32.mrf.mxu0  ;;  %v5205_v51 = vld [vmem:[%s6481_s3 + $0x828] sm:$0xff] }
  0xea   : > { %3455 = vmatpush.bf16.msra.mxu1 %v5144_v52  ;;  %v1911_v56 = vadd.f32 %v1910_v49, %v6211_v40  ;;  %v1924_v10 = vpop.f32.mrf.mxu1  ;;  %v5176_v40 = vld [vmem:[%s6481_s3 + $0x740] sm:$0xff]  ;;  %v5213_v52 = vld [vmem:[%s6481_s3 + $0x868] sm:$0xff] }
  0xeb   : > { %3469 = vmatpush.bf16.msra.mxu2 %v5152_v53  ;;  %v5221_v53 = vld [vmem:[%s6481_s3 + $0x8a8] sm:$0xff] }
  0xec   : > { %3483 = vmatpush.bf16.msra.mxu3 %v5160_v58  ;;  %3442 = vmatmul.bf16.vlgmr.msra.gmra.mxu0 %v2830_v57  ;;  %v1925_v9 = vadd.f32 %v1924_v10, %v1911_v56  ;;  %v5193_v57 = vld [vmem:[%s6481_s3 + $0x7c8] sm:$0xff] }
  0xed   : > { %3490 = vmatpush.bf16.msrb.mxu0 %v5175_v59  ;;  %3456 = vmatmul.bf16.vlgmr.msra.gmra.mxu1 %v2831_v29  ;;  %v5229_v58 = vld [vmem:[%s6481_s3 + $0x8e8] sm:$0xff] }
  0xee   : > { %3504 = vmatpush.bf16.msrb.mxu1 %v5183_v61  ;;  %3470 = vmatmul.bf16.vlgmr.msra.gmra.mxu2 %v2832_v5 }
  0xef   : > { %3518 = vmatpush.bf16.msrb.mxu2 %v5191_v62  ;;  %3484 = vmatmul.bf16.vlgmr.msra.gmra.mxu3 %v2833_v36  ;;  %v5204_v62 = vld [vmem:[%s6481_s3 + $0x820] sm:$0xff] }
  0xf0   : > { %3532 = vmatpush.bf16.msrb.mxu3 %v5199_v46  ;;  %v5212_v46 = vld [vmem:[%s6481_s3 + $0x860] sm:$0xff] }
  0xf1   : > { %3491 = vmatpush.bf16.msrb.mxu0 %v5174_v47  ;;  %v1938_v4 = vpop.f32.mrf.mxu2  ;;  %v1912_v17 = vpop.f32.mrf.mxu0 }
  0xf2   : > { %3505 = vmatpush.bf16.msrb.mxu1 %v5182_v0  ;;  %v1939_v6 = vadd.f32 %v1938_v4, %v1925_v9  ;;  %v1952_v16 = vpop.f32.mrf.mxu3  ;;  %v1913_v22 = vadd.f32 %v1912_v17, %v1899_v45  ;;  %v1926_v2 = vpop.f32.mrf.mxu1  ;;  %v5230_v45 = vld [vmem:[%s6481_s3 + $0x8f0] sm:$0xff]  ;;  %v5220_v0 = vld [vmem:[%s6481_s3 + $0x8a0] sm:$0xff]  ;;  %v5201_v4 = vld [vmem:[%s6481_s3 + $0x808] sm:$0xff] }
  0xf3   : > { %3519 = vmatpush.bf16.msrb.mxu2 %v5190_v1  ;;  %v5228_v1 = vld [vmem:[%s6481_s3 + $0x8e0] sm:$0xff]  ;;  %v5210_v9 = vld [vmem:[%s6481_s3 + $0x850] sm:$0xff]  ;;  %v5225_v17 = vld [vmem:[%s6481_s3 + $0x8c8] sm:$0xff] }
  0xf4   : > { %3533 = vmatpush.bf16.msrb.mxu3 %v5198_v48  ;;  %v6314_v23 = vadd.f32 %v1952_v16, %v1939_v6  ;;  %v1927_v28 = vadd.f32 %v1926_v2, %v1913_v22  ;;  %v5209_v6 = vld [vmem:[%s6481_s3 + $0x848] sm:$0xff]  ;;  %v5200_v2 = vld [vmem:[%s6481_s3 + $0x800] sm:$0xff] }
  0xf5   : > { %3492 = vmatpush.bf16.msrb.mxu0 %v5173_v18  ;;  %v5203_v18 = vld [vmem:[%s6481_s3 + $0x818] sm:$0xff]  ;;  %v5217_v16 = vld [vmem:[%s6481_s3 + $0x888] sm:$0xff] }
  0xf6   : > { %3506 = vmatpush.bf16.msrb.mxu1 %v5181_v19  ;;  %v5211_v19 = vld [vmem:[%s6481_s3 + $0x858] sm:$0xff] }
  0xf7   : > { %3520 = vmatpush.bf16.msrb.mxu2 %v5189_v20  ;;  %v5219_v20 = vld [vmem:[%s6481_s3 + $0x898] sm:$0xff] }
  0xf8   : > { %3534 = vmatpush.bf16.msrb.mxu3 %v5197_v21  ;;  %v5227_v21 = vld [vmem:[%s6481_s3 + $0x8d8] sm:$0xff] }
  0xf9   : > { %3493 = vmatpush.bf16.msrb.mxu0 %v5172_v7  ;;  %v1940_v5 = vpop.f32.mrf.mxu2 }
  0xfa   : > { %3507 = vmatpush.bf16.msrb.mxu1 %v5180_v8  ;;  %v1941_v60 = vadd.f32 %v1940_v5, %v1927_v28  ;;  %v1954_v29 = vpop.f32.mrf.mxu3  ;;  %v5224_v28 = vld [vmem:[%s6481_s3 + $0x8c0] sm:$0xff] }
  0xfb   : > { %3521 = vmatpush.bf16.msrb.mxu2 %v5188_v11 }
  0xfc   : > { %3535 = vmatpush.bf16.msrb.mxu3 %v5196_v12  ;;  %v6340_v36 = vadd.f32 %v1954_v29, %v1941_v60  ;;  %v5202_v12 = vld [vmem:[%s6481_s3 + $0x810] sm:$0xff] }
  0xfd   : > { %3494 = vmatpush.bf16.msrb.mxu0 %v5171_v13 }
  0xfe   : > { %3508 = vmatpush.bf16.msrb.mxu1 %v5179_v14  ;;  %v5218_v14 = vld [vmem:[%s6481_s3 + $0x890] sm:$0xff] }
  0xff   : > { %3522 = vmatpush.bf16.msrb.mxu2 %v5187_v15  ;;  %v5226_v15 = vld [vmem:[%s6481_s3 + $0x8d0] sm:$0xff] }
 0x100   : > { %3536 = vmatpush.bf16.msrb.mxu3 %v5195_v3 }
 0x101   : > { %3495 = vmatpush.bf16.msrb.mxu0 %v5170_v24 }
 0x102   : > { %3509 = vmatpush.bf16.msrb.mxu1 %v5178_v25 }
 0x103   : > { %3523 = vmatpush.bf16.msrb.mxu2 %v5186_v26  ;;  %v5208_v26 = vld [vmem:[%s6481_s3 + $0x840] sm:$0xff] }
 0x104   : > { %3537 = vmatpush.bf16.msrb.mxu3 %v5194_v27  ;;  %v5216_v27 = vld [vmem:[%s6481_s3 + $0x880] sm:$0xff] }
 0x105   : > { %3496 = vmatpush.bf16.msrb.mxu0 %v5169_v54  ;;  %v2842_v54 = vld.sshfl [vmem:[#allocation1] sm:$0xff pattern:$0x73625140] }
 0x106   : > { %3510 = vmatpush.bf16.msrb.mxu1 %v5177_v63  ;;  %v2843_v63 = vld.sshfl [vmem:[#allocation1 + $0x8] sm:$0xff pattern:$0x73625140] }
 0x107   : > { %3524 = vmatpush.bf16.msrb.mxu2 %v5185_v55  ;;  %v2844_v55 = vld.sshfl [vmem:[#allocation1 + $0x10] sm:$0xff pattern:$0x73625140] }
 0x108   : > { %3538 = vmatpush.bf16.msrb.mxu3 %v5193_v57  ;;  %v2845_v57 = vld.sshfl [vmem:[#allocation1 + $0x18] sm:$0xff pattern:$0x73625140] }
 0x109   : > { %3497 = vmatpush.bf16.msrb.mxu0 %v5168_v37  ;;  %v2585_v59 = vpop.f32.mrf.mxu0 }
 0x10a   : > { %3511 = vmatpush.bf16.msrb.mxu1 %v5176_v40  ;;  %v2586_v61 = vadd.f32 %v2585_v59, %v6314_v23  ;;  %v2599_v47 = vpop.f32.mrf.mxu1 }
 0x10b   : > { %3525 = vmatpush.bf16.msrb.mxu2 %v5184_v30 }
 0x10c   : > { %3539 = vmatpush.bf16.msrb.mxu3 %v5192_v31  ;;  %3498 = vmatmul.bf16.vlgmr.msrb.gmra.mxu0 %v2834_v34  ;;  %v2600_v48 = vadd.f32 %v2599_v47, %v2586_v61 }
 0x10d   : > { %3546 = vmatpush.bf16.msra.mxu0 %v5207_v32  ;;  %3512 = vmatmul.bf16.vlgmr.msrb.gmra.mxu1 %v2835_v43 }
 0x10e   : > { %3560 = vmatpush.bf16.msra.mxu1 %v5215_v38  ;;  %3526 = vmatmul.bf16.vlgmr.msrb.gmra.mxu2 %v2836_v42 }
 0x10f   : > { %3574 = vmatpush.bf16.msra.mxu2 %v5223_v39  ;;  %3540 = vmatmul.bf16.vlgmr.msrb.gmra.mxu3 %v2837_v35 }
 0x110   : > { %3588 = vmatpush.bf16.msra.mxu3 %v5231_v41 }
 0x111   : > { %3547 = vmatpush.bf16.msra.mxu0 %v5206_v50  ;;  %v2613_v49 = vpop.f32.mrf.mxu2  ;;  %v2587_v8 = vpop.f32.mrf.mxu0 }
 0x112   : > { %3561 = vmatpush.bf16.msra.mxu1 %v5214_v33  ;;  %v2614_v56 = vadd.f32 %v2613_v49, %v2600_v48  ;;  %v2627_v7 = vpop.f32.mrf.mxu3  ;;  %v2588_v10 = vadd.f32 %v2587_v8, %v6340_v36  ;;  %v2601_v13 = vpop.f32.mrf.mxu1 }
 0x113   : > { %3575 = vmatpush.bf16.msra.mxu2 %v5222_v44 }
 0x114   : > { %3589 = vmatpush.bf16.msra.mxu3 %v5230_v45  ;;  %v6416_v11 = vadd.f32 %v2627_v7, %v2614_v56  ;;  %v2602_v3 = vadd.f32 %v2601_v13, %v2588_v10 }
 0x115   : > { %3548 = vmatpush.bf16.msra.mxu0 %v5205_v51 }
 0x116   : > { %3562 = vmatpush.bf16.msra.mxu1 %v5213_v52 }
 0x117   : > { %3576 = vmatpush.bf16.msra.mxu2 %v5221_v53 }
 0x118   : > { %3590 = vmatpush.bf16.msra.mxu3 %v5229_v58 }
 0x119   : > { %3549 = vmatpush.bf16.msra.mxu0 %v5204_v62  ;;  %v2615_v22 = vpop.f32.mrf.mxu2 }
 0x11a   : > { %3563 = vmatpush.bf16.msra.mxu1 %v5212_v46  ;;  %v2616_v23 = vadd.f32 %v2615_v22, %v2602_v3  ;;  %v2629_v24 = vpop.f32.mrf.mxu3 }
 0x11b   : > { %3577 = vmatpush.bf16.msra.mxu2 %v5220_v0 }
 0x11c   : > { %3591 = vmatpush.bf16.msra.mxu3 %v5228_v1  ;;  %v2630_v25 = vadd.f32 %v2629_v24, %v2616_v23 }
 0x11d   : > { %3550 = vmatpush.bf16.msra.mxu0 %v5203_v18 }
 0x11e   : > { %3564 = vmatpush.bf16.msra.mxu1 %v5211_v19 }
 0x11f   : > { %3578 = vmatpush.bf16.msra.mxu2 %v5219_v20 }
 0x120   : > { %3592 = vmatpush.bf16.msra.mxu3 %v5227_v21 }
 0x121   : > { %3551 = vmatpush.bf16.msra.mxu0 %v5202_v12 }
 0x122   : > { %3565 = vmatpush.bf16.msra.mxu1 %v5210_v9 }
 0x123   : > { %3579 = vmatpush.bf16.msra.mxu2 %v5218_v14 }
 0x124   : > { %3593 = vmatpush.bf16.msra.mxu3 %v5226_v15 }
 0x125   : > { %3552 = vmatpush.bf16.msra.mxu0 %v5201_v4 }
 0x126   : > { %3566 = vmatpush.bf16.msra.mxu1 %v5209_v6 }
 0x127   : > { %3580 = vmatpush.bf16.msra.mxu2 %v5217_v16 }
 0x128   : > { %3594 = vmatpush.bf16.msra.mxu3 %v5225_v17 }
 0x129   : > { %3553 = vmatpush.bf16.msra.mxu0 %v5200_v2  ;;  %v2641_v5 = vpop.f32.mrf.mxu0 }
 0x12a   : > { %3567 = vmatpush.bf16.msra.mxu1 %v5208_v26  ;;  %v2655_v60 = vpop.f32.mrf.mxu1  ;;  %v2642_v0 = vadd.f32 %v2641_v5, %v6416_v11 }
 0x12b   : > { %3581 = vmatpush.bf16.msra.mxu2 %v5216_v27 }
 0x12c   : > { %3595 = vmatpush.bf16.msra.mxu3 %v5224_v28  ;;  %3554 = vmatmul.bf16.vlgmr.msra.gmra.mxu0 %v2842_v54  ;;  %v2656_v20 = vadd.f32 %v2655_v60, %v2642_v0 }
 0x12d   : > { %3568 = vmatmul.bf16.vlgmr.msra.gmra.mxu1 %v2843_v63 }
 0x12e   : > { %3582 = vmatmul.bf16.vlgmr.msra.gmra.mxu2 %v2844_v55 }
 0x12f   : > { %3596 = vmatmul.bf16.vlgmr.msra.gmra.mxu3 %v2845_v57 }
 0x131   : > { %v2669_v29 = vpop.f32.mrf.mxu2  ;;  %v2643_v37 = vpop.f32.mrf.mxu0 }
 0x132   : > { %v2683_v36 = vpop.f32.mrf.mxu3  ;;  %v2657_v40 = vpop.f32.mrf.mxu1  ;;  %v2670_v7 = vadd.f32 %v2669_v29, %v2656_v20  ;;  %v2644_v10 = vadd.f32 %v2643_v37, %v2630_v25  ;;  %v5258_v37 = vld [vmem:[%s6482_s4] ss:$0 sm:$0xff] }
 0x134   : > { %v2684_v13 = vadd.f32 %v2683_v36, %v2670_v7  ;;  %v2658_v4 = vadd.f32 %v2657_v40, %v2644_v10 }
 0x139   : > { %v2671_v30 = vpop.f32.mrf.mxu2 }
 0x13a   : > { %v2685_v31 = vpop.f32.mrf.mxu3  ;;  %v2672_v17 = vadd.f32 %v2671_v30, %v2658_v4 }
 0x13c   : > { %v2686_v27 = vadd.f32 %v2685_v31, %v2672_v17 }
 0x149   : > { %v2697_v32 = vpop.f32.mrf.mxu0 }
 0x14a   : > { %v2711_v38 = vpop.f32.mrf.mxu1  ;;  %v2698_v6 = vadd.f32 %v2697_v32, %v2684_v13 }
 0x14c   : > { %v2712_v2 = vadd.f32 %v2711_v38, %v2698_v6 }
 0x151   : > { %v2725_v39 = vpop.f32.mrf.mxu2  ;;  %v2699_v34 = vpop.f32.mrf.mxu0 }
 0x152   : > { %v2739_v41 = vpop.f32.mrf.mxu3  ;;  %v2713_v42 = vpop.f32.mrf.mxu1  ;;  %v2726_v28 = vadd.f32 %v2725_v39, %v2712_v2  ;;  %v2700_v55 = vadd.f32 %v2699_v34, %v2686_v27 }
 0x154   : > { %v2740_v29 = vadd.f32 %v2739_v41, %v2726_v28  ;;  %v2714_v30 = vadd.f32 %v2713_v42, %v2700_v55 }
 0x159   : > { %v2727_v43 = vpop.f32.mrf.mxu2 }
 0x15a   : > { %v6454_v35 = vpop.f32.mrf.mxu3  ;;  %v2728_v31 = vadd.f32 %v2727_v43, %v2714_v30 }
 0x169   : > { %v3443_v50 = vpop.f32.mrf.mxu0 }
 0x16a   : > { %v3457_v33 = vpop.f32.mrf.mxu1 }
 0x16b   : > { %v3458_v53 = vadd.f32 %v3457_v33, %v3443_v50 }
 0x171   : > { %v3471_v44 = vpop.f32.mrf.mxu2  ;;  %v3445_v51 = vpop.f32.mrf.mxu0 }
 0x172   : > { %v3485_v45 = vpop.f32.mrf.mxu3  ;;  %v3459_v52 = vpop.f32.mrf.mxu1  ;;  %v3472_v61 = vadd.f32 %v3471_v44, %v3458_v53 }
 0x173   : > { %v3460_v1 = vadd.f32 %v3459_v52, %v3445_v51 }
 0x174   : > { %v3486_v46 = vadd.f32 %v3485_v45, %v3472_v61  ;;  %v2742_v45 = vadd.f32 %v6454_v35, %v2728_v31 }
 0x179   : > { %v3473_v58 = vpop.f32.mrf.mxu2 }
 0x17a   : > { %v3487_v59 = vpop.f32.mrf.mxu3  ;;  %v3474_v21 = vadd.f32 %v3473_v58, %v3460_v1 }
 0x17c   : > { %v3488_v12 = vadd.f32 %v3487_v59, %v3474_v21 }
 0x189   : > { %v3499_v62 = vpop.f32.mrf.mxu0 }
 0x18a   : > { %v3513_v47 = vpop.f32.mrf.mxu1  ;;  %v3500_v48 = vadd.f32 %v3499_v62, %v3486_v46 }
 0x18c   : > { %v3514_v49 = vadd.f32 %v3513_v47, %v3500_v48 }
 0x191   : > { %v3527_v18 = vpop.f32.mrf.mxu2  ;;  %v3501_v56 = vpop.f32.mrf.mxu0 }
 0x192   : > { %v3541_v19 = vpop.f32.mrf.mxu3  ;;  %v3515_v8 = vpop.f32.mrf.mxu1  ;;  %v3528_v9 = vadd.f32 %v3527_v18, %v3514_v49  ;;  %v3502_v14 = vadd.f32 %v3501_v56, %v3488_v12 }
 0x194   : > { %v3542_v11 = vadd.f32 %v3541_v19, %v3528_v9  ;;  %v3516_v22 = vadd.f32 %v3515_v8, %v3502_v14 }
 0x199   : > { %v3529_v15 = vpop.f32.mrf.mxu2 }
 0x19a   : > { %v3543_v3 = vpop.f32.mrf.mxu3  ;;  %v3530_v26 = vadd.f32 %v3529_v15, %v3516_v22 }
 0x19c   : > { %v3544_v57 = vadd.f32 %v3543_v3, %v3530_v26 }
 0x1a9   : > { %v3555_v16 = vpop.f32.mrf.mxu0 }
 0x1aa   : > { %v3556_v23 = vadd.f32 %v3555_v16, %v3542_v11  ;;  %v3569_v24 = vpop.f32.mrf.mxu1 }
 0x1ac   : > { %v3570_v25 = vadd.f32 %v3569_v24, %v3556_v23 }
 0x1b1   : > { %v3583_v54 = vpop.f32.mrf.mxu2  ;;  %v3557_v60 = vpop.f32.mrf.mxu0 }
 0x1b2   : > { %v3597_v63 = vpop.f32.mrf.mxu3  ;;  %v3584_v5 = vadd.f32 %v3583_v54, %v3570_v25  ;;  %v3558_v40 = vadd.f32 %v3557_v60, %v3544_v57  ;;  %v3571_v38 = vpop.f32.mrf.mxu1 }
 0x1b4   : > { %v3598_v36 = vadd.f32 %v3597_v63, %v3584_v5  ;;  %v3572_v50 = vadd.f32 %v3571_v38, %v3558_v40 }
 0x1b6   : > { %v3602_v32 = vadd.f32 %v3598_v36, %v2740_v29 }
 0x1b8   : > { %v3608_v39 = vadd.f32 %v5258_v37, %v3602_v32 }
 0x1b9   : > { %v3585_v33 = vpop.f32.mrf.mxu2 }
 0x1ba   : > { %v3610_v44 = vmax.f32 %v3608_v39, 0.0  ;;  %v3586_v34 = vadd.f32 %v3585_v33, %v3572_v50  ;;  %v3599_v41 = vpop.f32.mrf.mxu3 }
 0x1bc   : > { %v3614_v51 = vrot.slane %v3610_v44, 4  ;;  %v3618_v52 = vpack.c.bf16 %v3610_v44, %v3610_v44  ;;  %v3600_v42 = vadd.f32 %v3599_v41, %v3586_v34 }
 0x1be   : > { %v3619_v53 = vpack.c.bf16 %v3614_v51, %v3614_v51  ;;  %3623 = vst.msk [vmem:[%s368_s24] sm:$0x3] %vm3622_vm3, %v3618_v52  ;;  %v3603_v43 = vadd.f32 %v3600_v42, %v2742_v45 }
 0x1c0   : > { %3624 = vst.msk [vmem:[%s368_s24 + $0x2] sm:$0x3] %vm3622_vm3, %v3619_v53  ;;  %v3609_v58 = vadd.f32 %v5258_v37, %v3603_v43 }
 0x1c2   : > { %v3611_v59 = vmax.f32 %v3609_v58, 0.0 }
 0x1c4   : > { %v3615_v61 = vrot.slane %v3611_v59, 4  ;;  %v3620_v62 = vpack.c.bf16 %v3611_v59, %v3611_v59 }
 0x1c6   : > { %v3621_v46 = vpack.c.bf16 %v3615_v61, %v3615_v61  ;;  %3625 = vst.msk [vmem:[%s368_s24 + $0x4] sm:$0x3] %vm3622_vm3, %v3620_v62 }
 0x1c8   : > { %3626 = vst.msk [vmem:[%s368_s24 + $0x6] sm:$0x3] %vm3622_vm3, %v3621_v46 }
 0x1c9 PF: > { %s15_s20 = sadd.s32 1, %s5281_s20   ;;  %s6484_s18 = smov %s5277_s19 }
 0x1ca   : > { %p12_p5 = scmp.ge.s32.totalorder %s15_s20, 4   ;;  %s6485_s19 = smov %s6487_s21 }
 0x1cc   :  { %14 = sbr.rel (!%p12_p5) target bundleno = 2 (0x2), region = 97 }

// kernel: ae_network_forward.14
= control target key start
LH: loop header
LB: loop body
LE: loop exit
PB: predicated region body
PF: predicated region fallthrough
CT: control target
= control target key end

     0   :  { %s2438_s30 = smov 0   ;;  %s2440_s10 = smov 0   ;;  %s2880_s0 = inlined_call_operand.vmem [shape: bf16[2,10,10,32], index: 0, kind: input, shape index: {}, may-alias: {0,1,2}]   ;;  %s2881_s1 = inlined_call_operand.vmem [shape: bf16[2,10,10,32], index: 1, kind: input, shape index: {}, may-alias: {0,1,2}]   ;;  %s2882_s2 = inlined_call_operand.vmem [shape: bf16[2,10,10,32], index: 2, kind: input, shape index: {}, may-alias: {0,1,2}]   ;;  %s2883_s3 = inlined_call_operand.vmem [shape: bf16[2,10,10,32], index: 3, kind: input, shape index: {}, may-alias: {3,4,5}]   ;;  %s2884_s4 = inlined_call_operand.vmem [shape: bf16[2,10,10,32], index: 4, kind: input, shape index: {}, may-alias: {3,4,5}]   ;;  %s2885_s5 = inlined_call_operand.vmem [shape: bf16[2,10,10,32], index: 5, kind: input, shape index: {}, may-alias: {3,4,5}]   ;;  %s2886_s6 = inlined_call_operand.vmem [shape: bf16[3,96,32], index: 6, kind: input, shape index: {}]   ;;  %s2887_s7 = inlined_call_operand.vmem [shape: bf16[3,96,32], index: 7, kind: input, shape index: {}]   ;;  %s2888_s8 = inlined_call_operand.vmem [shape: f32[1,32], index: 8, kind: input, shape index: {}]   ;;  %s2889_s9 = inlined_call_operand.vmem [shape: bf16[2,8,8,32], index: 9, kind: output, shape index: {}]  }
   0x1   :  { %s2442_s11 = smov 0  }
   0x2 LB: > { %s31_s12 = sadd.s32 1, %s2380_s10  ;;  %p1996_p0 = scmp.ge.s32.totalorder %s2384_s11, 1  ;;  %s2384_s11 = sphi %s2442_s11, %s19_s11   ;;  %s2380_s10 = sphi %s2440_s10, %s2891_s10   ;;  %s2376_s30 = sphi %s2438_s30, %s2890_s30  }
   0x3   : > { %p33_p1 = scmp.ge.s32.totalorder %s31_s12, 2  ;;  %p451_p2 = scmp.lt.s32.totalorder %s2384_s11, 3 }
   0x5   : > { %s2893_s12 = smov (%p33_p1, %s31_s12), 0  ;;  %p452_p3 = pnand %p1996_p0, %p451_p2 }
   0x6   : > { %p568_p4 = scmp.lt.s32.totalorder (!%p452_p3), %s2376_s30, 1  ;;  %s2386_s17 = smov (!%p452_p3), 64  }
   0x7   : > { %455 = sbr.rel (%p452_p3) target bundleno = 404 (0x194), region = 56  ;;  %s2387_s18 = smov (!%p452_p3), 32  }
   0xc   : > { %s2895_s30 = smov (!%p568_p4, %s2376_s30), 1  ;;  %vm863_vm0 = vcmask 261120   ;;  %vm888_vm1 = vcmask 523264   ;;  %vm983_vm2 = vcmask 785408   ;;  %vm1788_vm3 = vcmask 257024  }
   0xd   : > { %s2459_s13 = smul.u32 80, %s2895_s30 }
   0xf   : > { %s2465_s16 = scalar_lea.vmem %s2880_s0, %s2459_s13  ;;  %s2256_s19 = sadd.s32 64, %s2459_s13 }
  0x10   : > { %v2027_v0 = vld [vmem:[%s2465_s16 + $0x28] sm:$0xf]  ;;  %v2269_v1 = vld [vmem:[%s2465_s16 + $0x28] sm:$0x10]  ;;  %v2031_v2 = vld [vmem:[%s2465_s16 + $0x30] sm:$0xf]  ;;  %s2490_s22 = scalar_lea.vmem %s2881_s1, %s2256_s19  ;;  %s2508_s25 = scalar_lea.vmem %s2883_s3, %s2459_s13 }
  0x11   : > { %v2028_v3 = vor.u32 %v2269_v1, %v2027_v0  ;;  %v2270_v4 = vld [vmem:[%s2465_s16 + $0x30] sm:$0x10]  ;;  %v2023_v5 = vld [vmem:[%s2465_s16 + $0x20] sm:$0xf]  ;;  %v2268_v6 = vld [vmem:[%s2465_s16 + $0x20] sm:$0x10]  ;;  %s2579_s23 = scalar_lea.vmem %s2884_s4, %s2256_s19 }
  0x12   : > { %v2032_v7 = vor.u32 %v2270_v4, %v2031_v2  ;;  %v2024_v8 = vor.u32 %v2268_v6, %v2023_v5  ;;  %v2015_v9 = vld [vmem:[%s2465_s16 + $0x10] sm:$0xf]  ;;  %v2266_v10 = vld [vmem:[%s2465_s16 + $0x10] sm:$0x10]  ;;  %v2011_v18 = vld [vmem:[%s2465_s16 + $0x8] sm:$0xf] }
  0x13   : > { %v844_v11 = vrot.slane %v2028_v3, 1  ;;  %v803_v12 = vshrl.u32 %v2028_v3, 16  ;;  %v805_v13 = vshll.u32 %v2028_v3, 16  ;;  %v2016_v17 = vor.u32 %v2266_v10, %v2015_v9  ;;  %v2265_v19 = vld [vmem:[%s2465_s16 + $0x8] sm:$0x10]  ;;  %s2258_s26 = sadd.s32 72, %s2459_s13 }
  0x14   : > { %v843_v14 = vrot.slane %v2024_v8, 1  ;;  %v812_v16 = vshll.u32 %v2032_v7, 16  ;;  %v2012_v21 = vor.u32 %v2265_v19, %v2011_v18  ;;  %v845_v22 = vrot.slane %v2032_v7, 1  ;;  %v2007_v27 = vld [vmem:[%s2465_s16] sm:$0xf]  ;;  %s2547_s29 = scalar_lea.vmem %s2882_s2, %s2258_s26  ;;  %s2609_s14 = scalar_lea.vmem %s2885_s5, %s2258_s26 }
  0x15   : > { %857 = vrot.lane.b32.xlu1 %v844_v11, %s2386_s17  ;;  %v807_v15 = vrot.slane %v805_v13, 1  ;;  %v810_v23 = vshrl.u32 %v2032_v7, 16  ;;  %v784_v25 = vshll.u32 %v2016_v17, 16  ;;  %v2264_v28 = vld [vmem:[%s2465_s16] sm:$0x10]  ;;  %v798_v29 = vshll.u32 %v2024_v8, 16 }
  0x16   : > { %855 = vrot.lane.b32.xlu2 %v843_v14, %s2386_s17  ;;  %v814_v24 = vrot.slane %v812_v16, 1  ;;  %v840_v26 = vrot.slane %v2012_v21, 1  ;;  %v782_v30 = vshrl.u32 %v2016_v17, 16  ;;  %v777_v33 = vshll.u32 %v2012_v21, 16  ;;  %v2039_v42 = vld [vmem:[%s2490_s22] sm:$0xf] }
  0x17   : > { %v808_v20 = vor.u32 %v807_v15, %v803_v12  ;;  %v786_v32 = vrot.slane %v784_v25, 1  ;;  %v2008_v34 = vor.u32 %v2264_v28, %v2007_v27  ;;  %v796_v35 = vshrl.u32 %v2024_v8, 16  ;;  %v2272_v43 = vld [vmem:[%s2490_s22] sm:$0x10]  ;;  %v2035_v48 = vld [vmem:[%s2465_s16 + $0x38] sm:$0xf] }
  0x18   : > { %v815_v31 = vor.u32 %v814_v24, %v810_v23  ;;  %v800_v36 = vrot.slane %v798_v29, 1  ;;  %v775_v38 = vshrl.u32 %v2012_v21, 16  ;;  %v779_v39 = vrot.slane %v777_v33, 1  ;;  %v2271_v49 = vld [vmem:[%s2465_s16 + $0x38] sm:$0x10] }
  0x19   : > { %833 = vrot.lane.b32.xlu0 %v808_v20, %s2387_s18  ;;  %v787_v37 = vor.u32 %v786_v32, %v782_v30  ;;  %v770_v40 = vshll.u32 %v2008_v34, 16  ;;  %v768_v45 = vshrl.u32 %v2008_v34, 16  ;;  %v2040_v47 = vor.u32 %v2272_v43, %v2039_v42  ;;  %v2019_v53 = vld [vmem:[%s2465_s16 + $0x18] sm:$0xf]  ;;  %v2267_v54 = vld [vmem:[%s2465_s16 + $0x18] sm:$0x10] }
  0x1a   : > { %v801_v41 = vor.u32 %v800_v36, %v796_v35  ;;  %v780_v44 = vor.u32 %v779_v39, %v775_v38  ;;  %v2036_v52 = vor.u32 %v2271_v49, %v2035_v48  ;;  %v839_v55 = vrot.slane %v2008_v34, 1  ;;  %v2135_v1 = vld [vmem:[%s2508_s25 + $0x8] sm:$0xf]  ;;  %v2293_v2 = vld [vmem:[%s2508_s25 + $0x8] sm:$0x10] }
  0x1b   : > { %v772_v46 = vrot.slane %v770_v40, 1  ;;  %v913_v51 = vshll.u32 %v2040_v47, 16  ;;  %v841_v56 = vrot.slane %v2016_v17, 1  ;;  %v911_v57 = vshrl.u32 %v2040_v47, 16  ;;  %v2131_v8 = vld [vmem:[%s2508_s25] sm:$0xf] }
  0x1c   : > { %v819_v59 = vshll.u32 %v2036_v52, 16  ;;  %v2020_v60 = vor.u32 %v2267_v54, %v2019_v53  ;;  %v817_v62 = vshrl.u32 %v2036_v52, 16  ;;  %v846_v3 = vrot.slane %v2036_v52, 1  ;;  %v2292_v9 = vld [vmem:[%s2508_s25] sm:$0x10] }
  0x1d   : > { %859 = vrot.lane.b32.xlu1 %v845_v22, %s2386_s17  ;;  %v773_v50 = vor.u32 %v772_v46, %v768_v45  ;;  %v915_v58 = vrot.slane %v913_v51, 1  ;;  %v2136_v7 = vor.u32 %v2293_v2, %v2135_v1  ;;  %v2132_v12 = vor.u32 %v2292_v9, %v2131_v8  ;;  %v2139_v13 = vld [vmem:[%s2508_s25 + $0x10] sm:$0xf]  ;;  %v2294_v14 = vld [vmem:[%s2508_s25 + $0x10] sm:$0x10]  ;;  %v2278_v2 = vld [vmem:[%s2886_s6 + $0x20] sm:$0xff] }
  0x1e   : > { %849 = vrot.lane.b32.xlu2 %v840_v26, %s2386_s17  ;;  %v821_v63 = vrot.slane %v819_v59, 1  ;;  %v791_v0 = vshll.u32 %v2020_v60, 16  ;;  %v789_v5 = vshrl.u32 %v2020_v60, 16  ;;  %v842_v15 = vrot.slane %v2020_v60, 1  ;;  %v2147_v29 = vld [vmem:[%s2508_s25 + $0x20] sm:$0xf] }
  0x1f   : > { %v916_v61 = vor.u32 %v915_v58, %v911_v57  ;;  %v1315_v11 = vshll.u32 %v2136_v7, 16  ;;  %v919_v16 = vrot.slane %v2040_v47, 1  ;;  %v1313_v17 = vshrl.u32 %v2136_v7, 16  ;;  %v2296_v30 = vld [vmem:[%s2508_s25 + $0x20] sm:$0x10]  ;;  %v2279_v60 = vld [vmem:[%s2886_s6 + $0x28] sm:$0xff] }
  0x20   : > { %v822_v4 = vor.u32 %v821_v63, %v817_v62  ;;  %v793_v6 = vrot.slane %v791_v0, 1  ;;  %v1308_v19 = vshll.u32 %v2132_v12, 16  ;;  %v2140_v20 = vor.u32 %v2294_v14, %v2139_v13  ;;  %v2295_v32 = vld [vmem:[%s2508_s25 + $0x18] sm:$0x10]  ;;  %v2151_v36 = vld [vmem:[%s2508_s25 + $0x28] sm:$0xf]  ;;  %2326 = vmatpush.bf16.msra.mxu3 %v2279_v60  ;;  %1081 = vmatpush.bf16.msra.mxu1 %v2279_v60 }
  0x21   : > { %835 = vrot.lane.b32.xlu0 %v815_v31, %s2387_s18  ;;  %v1317_v18 = vrot.slane %v1315_v11, 1  ;;  %v1306_v22 = vshrl.u32 %v2132_v12, 16  ;;  %v1377_v25 = vrot.slane %v2132_v12, 1  ;;  %v2143_v31 = vld [vmem:[%s2508_s25 + $0x18] sm:$0xf]  ;;  %v2148_v33 = vor.u32 %v2296_v30, %v2147_v29  ;;  %v2284_v13 = vld [vmem:[%s2886_s6 + $0x50] sm:$0xff] }
  0x22   : > { %v794_v10 = vor.u32 %v793_v6, %v789_v5  ;;  %v1310_v23 = vrot.slane %v1308_v19, 1  ;;  %v1322_v24 = vshll.u32 %v2140_v20, 16  ;;  %v1320_v27 = vshrl.u32 %v2140_v20, 16  ;;  %v2159_v53 = vld [vmem:[%s2508_s25 + $0x38] sm:$0xf]  ;;  %v2274_v29 = vld [vmem:[%s2886_s6] sm:$0xff] }
  0x23   : > { %v1318_v21 = vor.u32 %v1317_v18, %v1313_v17  ;;  %v2144_v35 = vor.u32 %v2295_v32, %v2143_v31  ;;  %v1379_v38 = vrot.slane %v2140_v20, 1  ;;  %v1336_v39 = vshll.u32 %v2148_v33, 16  ;;  %v2299_v54 = vld [vmem:[%s2508_s25 + $0x38] sm:$0x10]  ;;  %v2099_v62 = vld [vmem:[%s2547_s29] sm:$0xf] }
  0x24   : > { %v1311_v26 = vor.u32 %v1310_v23, %v1306_v22  ;;  %v1324_v28 = vrot.slane %v1322_v24, 1  ;;  %v1378_v40 = vrot.slane %v2136_v7, 1  ;;  %v1334_v43 = vshrl.u32 %v2148_v33, 16  ;;  %v2273_v63 = vld [vmem:[%s2547_s29] sm:$0x10]  ;;  %2327 = vmatpush.bf16.msra.mxu3 %v2278_v2  ;;  %v2277_v8 = vld [vmem:[%s2886_s6 + $0x18] sm:$0xff]  ;;  %1082 = vmatpush.bf16.msra.mxu1 %v2278_v2 }
  0x25   : > { %827 = vrot.lane.b32.xlu1 %v787_v37, %s2387_s18  ;;  %v2297_v37 = vld [vmem:[%s2508_s25 + $0x28] sm:$0x10]  ;;  %v1380_v45 = vrot.slane %v2144_v35, 1  ;;  %v1327_v46 = vshrl.u32 %v2144_v35, 16  ;;  %v2549_v57 = vor.u32 %v2299_v54, %v2159_v53  ;;  %v2100_v5 = vor.u32 %v2273_v63, %v2099_v62  ;;  %v2191_v19 = vld [vmem:[%s2579_s23] sm:$0xf] }
  0x26   : > { %831 = vrot.lane.b32.xlu2 %v801_v41, %s2387_s18  ;;  %v1325_v34 = vor.u32 %v1324_v28, %v1320_v27  ;;  %v1329_v41 = vshll.u32 %v2144_v35, 16  ;;  %v2152_v42 = vor.u32 %v2297_v37, %v2151_v36  ;;  %v2300_v20 = vld [vmem:[%s2579_s23] sm:$0x10]  ;;  %v2275_v22 = vld [vmem:[%s2886_s6 + $0x8] sm:$0xff]  ;;  %v2223_v35 = vld [vmem:[%s2609_s14] sm:$0xf] }
  0x27   : > { %v1357_v1 = vshll.u32 %v2549_v57, 16  ;;  %v1355_v6 = vshrl.u32 %v2549_v57, 16  ;;  %v1116_v12 = vshll.u32 %v2100_v5, 16  ;;  %v1114_v17 = vshrl.u32 %v2100_v5, 16  ;;  %v2282_v28 = vld [vmem:[%s2886_s6 + $0x40] sm:$0xff]  ;;  %v2307_v53 = vld [vmem:[%s2887_s7 + $0x28] sm:$0xff] }
  0x28   : > { %v1331_v47 = vrot.slane %v1329_v41, 1  ;;  %v1343_v48 = vshll.u32 %v2152_v42, 16  ;;  %v1341_v51 = vshrl.u32 %v2152_v42, 16  ;;  %v1382_v0 = vrot.slane %v2152_v42, 1  ;;  %2328 = vmatpush.bf16.msra.mxu3 %v2277_v8  ;;  %1083 = vmatpush.bf16.msra.mxu1 %v2277_v8  ;;  %v2301_v36 = vld [vmem:[%s2609_s14] sm:$0x10] }
  0x29   : > { %825 = vrot.lane.b32.xlu0 %v780_v44, %s2387_s18  ;;  %v1338_v44 = vrot.slane %v1336_v39, 1  ;;  %v1359_v7 = vrot.slane %v1357_v1, 1  ;;  %v1118_v18 = vrot.slane %v1116_v12, 1  ;;  %v2192_v24 = vor.u32 %v2300_v20, %v2191_v19  ;;  %v2280_v39 = vld [vmem:[%s2886_s6 + $0x30] sm:$0xff]  ;;  %v2313_v62 = vld [vmem:[%s2887_s7 + $0x58] sm:$0xff]  ;;  %v2310_v19 = vld [vmem:[%s2887_s7 + $0x40] sm:$0xff] }
  0x2a   : > { %v1345_v52 = vrot.slane %v1343_v48, 1  ;;  %v683_v63 = vld [vmem:[%s2465_s16 + $0x30] sm:$0xf]  ;;  %v2305_v8 = vld [vmem:[%s2887_s7 + $0x18] sm:$0xff]  ;;  %v671_v20 = vld [vmem:[%s2465_s16] sm:$0xf] }
  0x2b   : > { %v1339_v49 = vor.u32 %v1338_v44, %v1334_v43  ;;  %v1360_v14 = vor.u32 %v1359_v7, %v1355_v6  ;;  %v1119_v23 = vor.u32 %v1118_v18, %v1114_v17  ;;  %v1554_v27 = vshll.u32 %v2192_v24, 16  ;;  %v2319_v6 = vld [vmem:[%s2887_s7 + $0x88] sm:$0xff] }
  0x2c   : > { %v1346_v58 = vor.u32 %v1345_v52, %v1341_v51  ;;  %v1552_v31 = vshrl.u32 %v2192_v24, 16  ;;  %v2291_v52 = vld [vmem:[%s2886_s6 + $0x88] sm:$0xff] }
  0x2d   : > { %823 = vrot.lane.b32.xlu1 %v773_v50, %s2387_s18  ;;  %v1332_v50 = vor.u32 %v1331_v47, %v1327_v46  ;;  %v1556_v32 = vrot.slane %v1554_v27, 1  ;;  %v679_v46 = vld [vmem:[%s2465_s16 + $0x20] sm:$0xf]  ;;  %v2303_v27 = vld [vmem:[%s2887_s7 + $0x8] sm:$0xff] }
  0x2e   : > { %847 = vrot.lane.b32.xlu2 %v839_v55, %s2386_s17  ;;  %v2155_v55 = vld [vmem:[%s2508_s25 + $0x30] sm:$0xf] }
  0x2f   : > { %v1557_v37 = vor.u32 %v1556_v32, %v1552_v31 }
  0x31   : > { %851 = vrot.lane.b32.xlu0 %v841_v56, %s2386_s17  ;;  %v2298_v56 = vld [vmem:[%s2508_s25 + $0x30] sm:$0x10] }
  0x32   : > { %v2156_v59 = vor.u32 %v2298_v56, %v2155_v55 }
  0x34   : > { %v1383_v9 = vrot.slane %v2156_v59, 1 }
  0x35   : > { %917 = vrot.lane.b32.xlu1 %v916_v61, %s2387_s18  ;;  %v2285_v61 = vld [vmem:[%s2886_s6 + $0x58] sm:$0xff] }
  0x36   : > { %861 = vrot.lane.b32.xlu2 %v846_v3, %s2386_s17  ;;  %2320 = vmatpush.bf16.msra.mxu2 %v2285_v61  ;;  %v1381_v3 = vrot.slane %v2148_v33, 1  ;;  %v1560_v33 = vrot.slane %v2192_v24, 1 }
  0x37   : > { %998 = vmatpush.bf16.msra.mxu0 %v2285_v61 }
  0x39   : > { %837 = vrot.lane.b32.xlu0 %v822_v4, %s2387_s18  ;;  %v1350_v4 = vshll.u32 %v2156_v59, 16 }
  0x3a   : > { %2321 = vmatpush.bf16.msra.mxu2 %v2284_v13 }
  0x3b   : > { %v1352_v11 = vrot.slane %v1350_v4, 1  ;;  %999 = vmatpush.bf16.msra.mxu0 %v2284_v13  ;;  %v2311_v13 = vld [vmem:[%s2887_s7 + $0x48] sm:$0xff] }
  0x3d   : > { %829 = vrot.lane.b32.xlu1 %v794_v10, %s2387_s18  ;;  %v1348_v10 = vshrl.u32 %v2156_v59, 16  ;;  %v2290_v59 = vld [vmem:[%s2886_s6 + $0x80] sm:$0xff] }
  0x3e   : > { %853 = vrot.lane.b32.xlu2 %v842_v15, %s2386_s17  ;;  %v2276_v15 = vld [vmem:[%s2886_s6 + $0x10] sm:$0xff] }
  0x3f   : > { %2329 = vmatpush.bf16.msra.mxu3 %v2276_v15  ;;  %1084 = vmatpush.bf16.msra.mxu1 %v2276_v15  ;;  %v2304_v15 = vld [vmem:[%s2887_s7 + $0x10] sm:$0xff] }
  0x41   : > { %920 = vrot.lane.b32.xlu0 %v919_v16, %s2386_s17  ;;  %v1353_v16 = vor.u32 %v1352_v11, %v1348_v10  ;;  %v673_v11 = vld [vmem:[%s2465_s16 + $0x8] sm:$0xf] }
  0x43   : > { %2330 = vmatpush.bf16.msra.mxu3 %v2275_v22  ;;  %1085 = vmatpush.bf16.msra.mxu1 %v2275_v22  ;;  %v675_v22 = vld [vmem:[%s2465_s16 + $0x10] sm:$0xf] }
  0x45   : > { %1363 = vrot.lane.b32.xlu1 %v1318_v21, %s2387_s18  ;;  %v2283_v21 = vld [vmem:[%s2886_s6 + $0x48] sm:$0xff] }
  0x46   : > { %1385 = vrot.lane.b32.xlu2 %v1377_v25, %s2386_s17  ;;  %2322 = vmatpush.bf16.msra.mxu2 %v2283_v21  ;;  %v1122_v25 = vrot.slane %v2100_v5, 1  ;;  %v2289_v5 = vld [vmem:[%s2886_s6 + $0x78] sm:$0xff] }
  0x47   : > { %1000 = vmatpush.bf16.msra.mxu0 %v2283_v21  ;;  %2331 = vmatpush.bf16.msra.mxu3 %v2274_v29  ;;  %v2287_v21 = vld [vmem:[%s2886_s6 + $0x68] sm:$0xff] }
  0x48   : > { %1086 = vmatpush.bf16.msra.mxu1 %v2274_v29 }
  0x49   : > { %1361 = vrot.lane.b32.xlu0 %v1311_v26, %s2387_s18  ;;  %v1384_v26 = vrot.slane %v2549_v57, 1 }
  0x4a   : > { %2323 = vmatpush.bf16.msra.mxu2 %v2282_v28 }
  0x4b   : > { %1001 = vmatpush.bf16.msra.mxu0 %v2282_v28  ;;  %1511 = vmatpush.bf16.msrb.mxu3 %v2307_v53  ;;  %v2309_v28 = vld [vmem:[%s2887_s7 + $0x38] sm:$0xff]  ;;  %v2314_v53 = vld [vmem:[%s2887_s7 + $0x60] sm:$0xff] }
  0x4c   : > { %1725 = vmatpush.bf16.msrb.mxu1 %v2319_v6 }
  0x4d   : > { %1365 = vrot.lane.b32.xlu1 %v1325_v34, %s2387_s18  ;;  %v2281_v34 = vld [vmem:[%s2886_s6 + $0x38] sm:$0xff] }
  0x4e   : > { %1389 = vrot.lane.b32.xlu2 %v1379_v38, %s2386_s17  ;;  %2324 = vmatpush.bf16.msra.mxu2 %v2281_v34  ;;  %v2224_v38 = vor.u32 %v2301_v36, %v2223_v35 }
  0x4f   : > { %1002 = vmatpush.bf16.msra.mxu0 %v2281_v34 }
  0x50   : > { %v1665_v42 = vshrl.u32 %v2224_v38, 16 }
  0x51   : > { %1387 = vrot.lane.b32.xlu0 %v1378_v40, %s2386_s17  ;;  %v1667_v40 = vshll.u32 %v2224_v38, 16 }
  0x52   : > { %2325 = vmatpush.bf16.msra.mxu2 %v2280_v39 }
  0x53   : > { %1003 = vmatpush.bf16.msra.mxu0 %v2280_v39  ;;  %v1669_v43 = vrot.slane %v1667_v40, 1  ;;  %v2308_v39 = vld [vmem:[%s2887_s7 + $0x30] sm:$0xff] }
  0x55   : > { %1391 = vrot.lane.b32.xlu1 %v1380_v45, %s2386_s17  ;;  %v1670_v44 = vor.u32 %v1669_v43, %v1665_v42  ;;  %v1673_v45 = vrot.slane %v2224_v38, 1  ;;  %v2302_v38 = vld [vmem:[%s2887_s7] sm:$0xff] }
  0x56   : > { %1369 = vrot.lane.b32.xlu2 %v1339_v49, %s2387_s18  ;;  %1174 = vmatpush.bf16.msrb.mxu2 %v2291_v52 }
  0x57   : > { %1624 = vmatpush.bf16.msrb.mxu0 %v2313_v62 }
  0x59   : > { %1367 = vrot.lane.b32.xlu0 %v1332_v50, %s2387_s18  ;;  %v681_v50 = vld [vmem:[%s2465_s16 + $0x28] sm:$0xf] }
  0x5a   : > { %1175 = vmatpush.bf16.msrb.mxu2 %v2290_v59 }
  0x5d   : > { %1371 = vrot.lane.b32.xlu1 %v1346_v58, %s2387_s18 }
  0x5e   : > { %1395 = vrot.lane.b32.xlu2 %v1382_v0, %s2386_s17  ;;  %v2306_v0 = vld [vmem:[%s2887_s7 + $0x20] sm:$0xff]  ;;  %1176 = vmatpush.bf16.msrb.mxu2 %v2289_v5 }
  0x5f   : > { %1512 = vmatpush.bf16.msrb.mxu3 %v2306_v0 }
  0x61   : > { %1393 = vrot.lane.b32.xlu0 %v1381_v3, %s2386_s17  ;;  %v2312_v3 = vld [vmem:[%s2887_s7 + $0x50] sm:$0xff] }
  0x62   : > { %1625 = vmatpush.bf16.msrb.mxu0 %v2312_v3 }
  0x63   : > { %1513 = vmatpush.bf16.msrb.mxu3 %v2305_v8  ;;  %v1209_v8 = vld [vmem:[%s2508_s25] sm:$0xf] }
  0x65   : > { %1397 = vrot.lane.b32.xlu1 %v1383_v9, %s2386_s17 }
  0x66   : > { %1375 = vrot.lane.b32.xlu2 %v1360_v14, %s2387_s18  ;;  %v2288_v14 = vld [vmem:[%s2886_s6 + $0x70] sm:$0xff]  ;;  %1626 = vmatpush.bf16.msrb.mxu0 %v2311_v13 }
  0x67   : > { %1177 = vmatpush.bf16.msrb.mxu2 %v2288_v14  ;;  %1514 = vmatpush.bf16.msrb.mxu3 %v2304_v15 }
  0x69   : > { %1373 = vrot.lane.b32.xlu0 %v1353_v16, %s2387_s18  ;;  %v2318_v16 = vld [vmem:[%s2887_s7 + $0x80] sm:$0xff] }
  0x6a   : > { %1726 = vmatpush.bf16.msrb.mxu1 %v2318_v16  ;;  %1627 = vmatpush.bf16.msrb.mxu0 %v2310_v19 }
  0x6b   : > { %1178 = vmatpush.bf16.msrb.mxu2 %v2287_v21  ;;  %1515 = vmatpush.bf16.msrb.mxu3 %v2303_v27 }
  0x6d   : > { %1120 = vrot.lane.b32.xlu1 %v1119_v23, %s2387_s18 }
  0x6e   : > { %1123 = vrot.lane.b32.xlu2 %v1122_v25, %s2386_s17  ;;  %1628 = vmatpush.bf16.msrb.mxu0 %v2309_v28 }
  0x6f   : > { %1516 = vmatpush.bf16.msrb.mxu3 %v2302_v38 }
  0x70   : > { %v856_v30 = vpop.permute.xlu2 %855 }
  0x71   : > { %1399 = vrot.lane.b32.xlu0 %v1384_v26, %s2386_s17  ;;  %v2317_v26 = vld [vmem:[%s2887_s7 + $0x78] sm:$0xff] }
  0x72   : > { %1727 = vmatpush.bf16.msrb.mxu1 %v2317_v26  ;;  %1629 = vmatpush.bf16.msrb.mxu0 %v2308_v39 }
  0x75   : > { %1561 = vrot.lane.b32.xlu1 %v1560_v33, %s2386_s17 }
  0x76   : > { %1671 = vrot.lane.b32.xlu2 %v1670_v44, %s2387_s18  ;;  %v685_v44 = vld [vmem:[%s2465_s16 + $0x38] sm:$0xf] }
  0x78   : > { %v2622_v41 = vpop.permute.xlu2 %849 }
  0x79   : > { %1558 = vrot.lane.b32.xlu0 %v1557_v37, %s2387_s18  ;;  %v2286_v37 = vld [vmem:[%s2886_s6 + $0x60] sm:$0xff] }
  0x7a   : > { %1179 = vmatpush.bf16.msrb.mxu2 %v2286_v37 }
  0x80   : > { %v832_v47 = vpop.permute.xlu2 %831 }
  0x81   : > { %1674 = vrot.lane.b32.xlu0 %v1673_v45, %s2386_s17  ;;  %v878_v48 = vsel %vm863_vm0, %v679_v46, %v832_v47  ;;  %v2315_v45 = vld [vmem:[%s2887_s7 + $0x68] sm:$0xff] }
  0x82   : > { %v2630_v51 = vsel %vm888_vm1, %v878_v48, %v856_v30 }
  0x83   : > { %v938_v56 = vunpack.c.l.b16 %v2630_v51 }
  0x87   : > { %v858_v49 = vpop.permute.xlu1 %857 }
  0x88   : > { %v848_v12 = vpop.permute.xlu2 %847 }
  0x8b   : > { %v834_v54 = vpop.permute.xlu0 %833 }
  0x8c   : > { %v881_v55 = vsel %vm863_vm0, %v681_v50, %v834_v54  ;;  %v677_v50 = vld [vmem:[%s2465_s16 + $0x18] sm:$0xf] }
  0x8d   : > { %v900_v57 = vsel %vm888_vm1, %v881_v55, %v858_v49  ;;  %v687_v55 = vld [vmem:[%s2490_s22] sm:$0xf] }
  0x8e   : > { %v939_v58 = vunpack.c.l.b16 %v900_v57 }
  0x8f   : > { %v860_v60 = vpop.permute.xlu1 %859 }
  0x90   : > { %v2646_v61 = vpack.c.b16 %v939_v58, %v938_v56  ;;  %v862_v32 = vpop.permute.xlu2 %861 }
  0x92   : > { %2095 = vmatmul.msk.bf16.vlgmr.msra.gmra.mxu3 %vm983_vm2, %v2646_v61 }
  0x93   : > { %v836_v1 = vpop.permute.xlu0 %835 }
  0x94   : > { %v884_v2 = vsel %vm863_vm0, %v683_v63, %v836_v1 }
  0x95   : > { %v2662_v4 = vsel %vm888_vm1, %v884_v2, %v860_v60 }
  0x96   : > { %v940_v7 = vunpack.c.l.b16 %v2662_v4 }
  0x97   : > { %v828_v9 = vpop.permute.xlu1 %827 }
  0x98   : > { %v945_v10 = vpack.c.b16 %v940_v7, %v939_v58  ;;  %v872_v33 = vsel %vm863_vm0, %v675_v22, %v828_v9  ;;  %v854_v48 = vpop.permute.xlu2 %853  ;;  %v1213_v9 = vld [vmem:[%s2508_s25 + $0x10] sm:$0xf] }
  0x9a   : > { %2067 = vmatmul.msk.bf16.vlgmr.msra.gmra.mxu2 %vm983_vm2, %v945_v10 }
  0x9b   : > { %v826_v17 = vpop.permute.xlu0 %825 }
  0x9c   : > { %v869_v18 = vsel %vm863_vm0, %v673_v11, %v826_v17 }
  0x9d   : > { %v892_v23 = vsel %vm888_vm1, %v869_v18, %v2622_v41  ;;  %v2316_v41 = vld [vmem:[%s2887_s7 + $0x70] sm:$0xff] }
  0x9e   : > { %v935_v30 = vunpack.c.l.b16 %v892_v23  ;;  %1728 = vmatpush.bf16.msrb.mxu1 %v2316_v41 }
  0x9f   : > { %v824_v24 = vpop.permute.xlu1 %823 }
  0xa0   : > { %v866_v25 = vsel %vm863_vm0, %v671_v20, %v824_v24  ;;  %v1386_v3 = vpop.permute.xlu2 %1385  ;;  %v1215_v24 = vld [vmem:[%s2508_s25 + $0x18] sm:$0xf] }
  0xa1   : > { %v890_v29 = vsel %vm888_vm1, %v866_v25, %v848_v12  ;;  %v1211_v12 = vld [vmem:[%s2508_s25 + $0x8] sm:$0xf] }
  0xa2   : > { %v1026_v31 = vunpack.c.l.b16 %v890_v29  ;;  %1729 = vmatpush.bf16.msrb.mxu1 %v2315_v45  ;;  %v1217_v29 = vld [vmem:[%s2508_s25 + $0x20] sm:$0xf] }
  0xa3   : > { %v852_v34 = vpop.permute.xlu0 %851 }
  0xa4   : > { %v894_v35 = vsel %vm888_vm1, %v872_v33, %v852_v34  ;;  %v1027_v36 = vpack.c.b16 %v935_v30, %v1026_v31  ;;  %v1219_v34 = vld [vmem:[%s2508_s25 + $0x28] sm:$0xf] }
  0xa5   : > { %v936_v40 = vunpack.c.l.b16 %v894_v35 }
  0xa6   : > { %2093 = vmatmul.msk.bf16.vlgmr.msra.gmra.mxu1 %vm983_vm2, %v1027_v36 }
  0xa7   : > { %v918_v42 = vpop.permute.xlu1 %917  ;;  %v943_v43 = vpack.c.b16 %v936_v40, %v935_v30  ;;  %1730 = vmatpush.bf16.msrb.mxu1 %v2314_v53 }
  0xa8   : > { %v924_v62 = vsel %vm863_vm0, %v687_v55, %v918_v42  ;;  %v1390_v14 = vpop.permute.xlu2 %1389  ;;  %v1221_v42 = vld [vmem:[%s2508_s25 + $0x30] sm:$0xf] }
  0xa9   : > { %2065 = vmatmul.msk.bf16.vlgmr.msra.gmra.mxu0 %vm983_vm2, %v943_v43 }
  0xab   : > { %v838_v46 = vpop.permute.xlu0 %837 }
  0xac   : > { %v887_v47 = vsel %vm863_vm0, %v685_v44, %v838_v46 }
  0xad   : > { %v904_v49 = vsel %vm888_vm1, %v887_v47, %v862_v32 }
  0xae   : > { %v941_v52 = vunpack.c.l.b16 %v904_v49 }
  0xaf   : > { %v830_v54 = vpop.permute.xlu1 %829 }
  0xb0   : > { %v875_v57 = vsel %vm863_vm0, %v677_v50, %v830_v54  ;;  %v2742_v58 = vpack.c.b16 %v941_v52, %v940_v7  ;;  %v1370_v27 = vpop.permute.xlu2 %1369  ;;  %v1223_v50 = vld [vmem:[%s2508_s25 + $0x38] sm:$0xf]  ;;  %s2263_s25 = sshll.u32 %s2895_s30, 5 }
  0xb1   : > { %v896_v59 = vsel %vm888_vm1, %v875_v57, %v854_v48  ;;  %v1415_v32 = vsel %vm863_vm0, %v1217_v29, %v1370_v27 }
  0xb2   : > { %v937_v60 = vunpack.c.l.b16 %v896_v59  ;;  %2096 = vmatmul.msk.bf16.gmra.mxu3 %vm983_vm2, %v2742_v58  ;;  %v689_v59 = vld [vmem:[%s2547_s29] sm:$0xf] }
  0xb3   : > { %v921_v63 = vpop.permute.xlu0 %920 }
  0xb4   : > { %v2749_v0 = vsel %vm888_vm1, %v924_v62, %v921_v63  ;;  %v1028_v1 = vpack.c.b16 %v937_v60, %v936_v40  ;;  %v944_v5 = vpack.c.b16 %v938_v56, %v937_v60  ;;  %v1225_v62 = vld [vmem:[%s2579_s23] sm:$0xf] }
  0xb5   : > { %v942_v2 = vunpack.c.l.b16 %v2749_v0 }
  0xb6   : > { %2094 = vmatmul.msk.bf16.gmra.mxu1 %vm983_vm2, %v1028_v1 }
  0xb7   : > { %v1364_v4 = vpop.permute.xlu1 %1363  ;;  %v946_v6 = vpack.c.b16 %v942_v2, %v941_v52 }
  0xb8   : > { %v1406_v15 = vsel %vm863_vm0, %v1211_v12, %v1364_v4  ;;  %v1396_v39 = vpop.permute.xlu2 %1395 }
  0xb9   : > { %2066 = vmatmul.msk.bf16.gmra.mxu0 %vm983_vm2, %v944_v5  ;;  %2068 = vmatmul.msk.bf16.gmra.mxu2 %vm983_vm2, %v946_v6 }
  0xbb   : > { %v1362_v7 = vpop.permute.xlu0 %1361 }
  0xbc   : > { %v1403_v10 = vsel %vm863_vm0, %v1209_v8, %v1362_v7 }
  0xbd   : > { %v1426_v56 = vsel %vm888_vm1, %v1403_v10, %v1386_v3 }
  0xbe   : > { %v1449_v19 = vunpack.c.l.b16 %v1426_v56 }
  0xbf   : > { %v1366_v11 = vpop.permute.xlu1 %1365 }
  0xc0   : > { %v1409_v13 = vsel %vm863_vm0, %v1213_v9, %v1366_v11  ;;  %v1376_v48 = vpop.permute.xlu2 %1375  ;;  %v1227_v9 = vld [vmem:[%s2609_s14] sm:$0xf]  ;;  %s2838_s14 = scalar_lea.vmem %s2889_s9, %s2263_s25 }
  0xc1   : > { %v1430_v51 = vsel %vm888_vm1, %v1409_v13, %v1390_v14  ;;  %v1424_v53 = vsel %vm863_vm0, %v1223_v50, %v1376_v48 }
  0xc2   : > { %v1451_v16 = vunpack.c.l.b16 %v1430_v51 }
  0xc3   : > { %v1388_v17 = vpop.permute.xlu0 %1387 }
  0xc4   : > { %v1428_v18 = vsel %vm888_vm1, %v1406_v15, %v1388_v17 }
  0xc5   : > { %v1450_v20 = vunpack.c.l.b16 %v1428_v18 }
  0xc7   : > { %v1457_v21 = vpack.c.b16 %v1450_v20, %v1449_v19  ;;  %v1570_v22 = vpack.c.b16 %v1451_v16, %v1450_v20  ;;  %v1392_v23 = vpop.permute.xlu1 %1391 }
  0xc8   : > { %v1124_v60 = vpop.permute.xlu2 %1123 }
  0xc9   : > { %2125 = vmatmul.msk.bf16.vlgmr.msrb.gmra.mxu2 %vm983_vm2, %v1028_v1  ;;  %2185 = vmatmul.msk.bf16.vlgmr.msrb.gmra.mxu3 %vm983_vm2, %v1457_v21 }
  0xca   : > { %2217 = vmatmul.msk.bf16.vlgmr.msrb.gmra.mxu0 %vm983_vm2, %v1570_v22 }
  0xcb   : > { %v1368_v25 = vpop.permute.xlu0 %1367 }
  0xcc   : > { %v1412_v26 = vsel %vm863_vm0, %v1215_v24, %v1368_v25 }
  0xcd   : > { %v1432_v28 = vsel %vm888_vm1, %v1412_v26, %v1392_v23 }
  0xce   : > { %v1452_v30 = vunpack.c.l.b16 %v1432_v28 }
  0xcf   : > { %v1372_v33 = vpop.permute.xlu1 %1371 }
  0xd0   : > { %v1458_v31 = vpack.c.b16 %v1452_v30, %v1451_v16  ;;  %v1418_v38 = vsel %vm863_vm0, %v1219_v34, %v1372_v33  ;;  %v1672_v10 = vpop.permute.xlu2 %1671 }
  0xd1   : > { %v1436_v41 = vsel %vm888_vm1, %v1418_v38, %v1396_v39  ;;  %v1678_v12 = vsel %vm863_vm0, %v1227_v9, %v1672_v10 }
  0xd2   : > { %2249 = vmatmul.msk.bf16.vlgmr.msrb.gmra.mxu1 %vm983_vm2, %v1458_v31  ;;  %v1454_v44 = vunpack.c.l.b16 %v1436_v41 }
  0xd3   : > { %v1394_v35 = vpop.permute.xlu0 %1393 }
  0xd4   : > { %v1434_v36 = vsel %vm888_vm1, %v1415_v32, %v1394_v35 }
  0xd5   : > { %v1453_v37 = vunpack.c.l.b16 %v1434_v36 }
  0xd7   : > { %v1571_v40 = vpack.c.b16 %v1453_v37, %v1452_v30  ;;  %v1398_v45 = vpop.permute.xlu1 %1397  ;;  %v1459_v47 = vpack.c.b16 %v1454_v44, %v1453_v37 }
  0xd9   : > { %2126 = vmatmul.msk.bf16.gmra.mxu2 %vm983_vm2, %v2646_v61  ;;  %2186 = vmatmul.msk.bf16.gmra.mxu3 %vm983_vm2, %v1458_v31 }
  0xda   : > { %2218 = vmatmul.msk.bf16.gmra.mxu0 %vm983_vm2, %v1571_v40  ;;  %v2831_v40 = vld [vmem:[%s2888_s8] ss:$0 sm:$0xff] }
  0xdb   : > { %v1374_v43 = vpop.permute.xlu0 %1373 }
  0xdc   : > { %v1421_v46 = vsel %vm863_vm0, %v1221_v42, %v1374_v43 }
  0xdd   : > { %v1438_v49 = vsel %vm888_vm1, %v1421_v46, %v1398_v45 }
  0xde   : > { %v1455_v52 = vunpack.c.l.b16 %v1438_v49 }
  0xdf   : > { %v1121_v54 = vpop.permute.xlu1 %1120 }
  0xe0   : > { %v1572_v55 = vpack.c.b16 %v1455_v52, %v1454_v44  ;;  %v1127_v3 = vsel %vm863_vm0, %v689_v59, %v1121_v54 }
  0xe1   : > { %v1129_v6 = vsel %vm888_vm1, %v1127_v3, %v1124_v60 }
  0xe2   : > { %2250 = vmatmul.msk.bf16.gmra.mxu1 %vm983_vm2, %v1459_v47  ;;  %v1131_v8 = vunpack.c.l.b16 %v1129_v6 }
  0xe3   : > { %v1400_v61 = vpop.permute.xlu0 %1399 }
  0xe4   : > { %v1440_v57 = vsel %vm888_vm1, %v1424_v53, %v1400_v61  ;;  %v1132_v14 = vpack.c.b16 %v1131_v8, %v942_v2 }
  0xe5   : > { %v1456_v1 = vunpack.c.l.b16 %v1440_v57 }
  0xe7   : > { %v1562_v5 = vpop.permute.xlu1 %1561  ;;  %v1460_v7 = vpack.c.b16 %v1456_v1, %v1455_v52 }
  0xe9   : > { %2127 = vmatmul.msk.bf16.gmra.mxu2 %vm983_vm2, %v2742_v58  ;;  %2187 = vmatmul.msk.bf16.gmra.mxu3 %vm983_vm2, %v1459_v47 }
  0xea   : > { %2219 = vmatmul.msk.bf16.gmra.mxu0 %vm983_vm2, %v1572_v55 }
  0xeb   : > { %v1559_v63 = vpop.permute.xlu0 %1558 }
  0xec   : > { %v1565_v4 = vsel %vm863_vm0, %v1225_v62, %v1559_v63 }
  0xed   : > { %v1567_v58 = vsel %vm888_vm1, %v1565_v4, %v1562_v5 }
  0xee   : > { %v1569_v11 = vunpack.c.l.b16 %v1567_v58 }
  0xf0   : > { %v1573_v51 = vpack.c.b16 %v1569_v11, %v1456_v1 }
  0xf2   : > { %2251 = vmatmul.msk.bf16.gmra.mxu1 %vm983_vm2, %v1460_v7 }
  0xf3   : > { %v1675_v13 = vpop.permute.xlu0 %1674 }
  0xf4   : > { %v1680_v56 = vsel %vm888_vm1, %v1678_v12, %v1675_v13 }
  0xf5   : > { %v1682_v15 = vunpack.c.l.b16 %v1680_v56 }
  0xf7   : > { %v1683_v16 = vpack.c.b16 %v1682_v15, %v1569_v11 }
  0xf9   : > { %2128 = vmatmul.msk.bf16.gmra.mxu2 %vm983_vm2, %v1132_v14  ;;  %2188 = vmatmul.msk.bf16.gmra.mxu3 %vm983_vm2, %v1460_v7 }
  0xfa   : > { %2220 = vmatmul.msk.bf16.gmra.mxu0 %vm983_vm2, %v1573_v51 }
 0x102   : > { %2252 = vmatmul.msk.bf16.gmra.mxu1 %vm983_vm2, %v1683_v16 }
 0x115   : > { %v2812_v18 = vpop.f32.mrf.mxu3 }
 0x11d   : > { %v2814_v20 = vpop.f32.mrf.mxu2  ;;  %v2816_v2 = vpop.f32.mrf.mxu3 }
 0x11e   : > { %v1099_v15 = vadd.f32 %v2812_v18, %v2814_v20 }
 0x123   : > { %v1088_v19 = vpop.f32.mrf.mxu1 }
 0x125   : > { %v2818_v22 = vpop.f32.mrf.mxu2 }
 0x126   : > { %v1005_v17 = vpop.f32.mrf.mxu0 }
 0x127   : > { %v1089_v32 = vadd.f32 %v1088_v19, %v1005_v17 }
 0x12b   : > { %v1090_v21 = vpop.f32.mrf.mxu1 }
 0x12e   : > { %v1007_v0 = vpop.f32.mrf.mxu0 }
 0x12f   : > { %v1091_v41 = vadd.f32 %v1090_v21, %v1007_v0 }
 0x133   : > { %v1093_v26 = vpop.f32.mrf.mxu1 }
 0x135   : > { %v2820_v24 = vpop.f32.mrf.mxu3 }
 0x136   : > { %v1010_v23 = vpop.f32.mrf.mxu0 }
 0x137   : > { %v1094_v53 = vadd.f32 %v1093_v26, %v1010_v23 }
 0x13b   : > { %v1095_v30 = vpop.f32.mrf.mxu1 }
 0x13c   : > { %v2822_v25 = vpop.f32.mrf.mxu2 }
 0x13d   : > { %v2824_v28 = vpop.f32.mrf.mxu3 }
 0x13e   : > { %v1012_v27 = vpop.f32.mrf.mxu0 }
 0x13f   : > { %v1096_v6 = vadd.f32 %v1095_v30, %v1012_v27 }
 0x144   : > { %v2826_v29 = vpop.f32.mrf.mxu2 }
 0x147   : > { %v1631_v31 = vpop.f32.mrf.mxu0 }
 0x14c   : > { %v1181_v33 = vpop.f32.mrf.mxu2  ;;  %v1518_v34 = vpop.f32.mrf.mxu3 }
 0x14d   : > { %v1201_v35 = vadd.f32 %v1181_v33, %v1089_v32  ;;  %v1101_v32 = vadd.f32 %v2816_v2, %v2818_v22 }
 0x14f   : > { %v1538_v36 = vadd.f32 %v1518_v34, %v1201_v35  ;;  %v1633_v37 = vpop.f32.mrf.mxu0  ;;  %v1732_v38 = vpop.f32.mrf.mxu1 }
 0x151   : > { %v1651_v39 = vadd.f32 %v1631_v31, %v1538_v36 }
 0x153   : > { %v1752_v42 = vadd.f32 %v1732_v38, %v1651_v39 }
 0x154   : > { %v1183_v43 = vpop.f32.mrf.mxu2  ;;  %v1520_v44 = vpop.f32.mrf.mxu3 }
 0x155   : > { %v1764_v45 = vadd.f32 %v2831_v40, %v1752_v42  ;;  %v1202_v46 = vadd.f32 %v1183_v43, %v1091_v41  ;;  %v1104_v43 = vadd.f32 %v2820_v24, %v2822_v25 }
 0x157   : > { %v1772_v47 = vmax.f32 %v1764_v45, 0.0  ;;  %v1539_v48 = vadd.f32 %v1520_v44, %v1202_v46  ;;  %v1636_v49 = vpop.f32.mrf.mxu0  ;;  %v1734_v50 = vpop.f32.mrf.mxu1 }
 0x159   : > { %v1780_v61 = vpack.c.bf16 %v1772_v47, %v1772_v47  ;;  %v1652_v52 = vadd.f32 %v1633_v37, %v1539_v48 }
 0x15b   : > { %1789 = vst.msk [vmem:[%s2838_s14] sm:$0xf] %vm1788_vm3, %v1780_v61  ;;  %v1753_v54 = vadd.f32 %v1734_v50, %v1652_v52 }
 0x15c   : > { %v1186_v55 = vpop.f32.mrf.mxu2  ;;  %v1523_v57 = vpop.f32.mrf.mxu3 }
 0x15d   : > { %v1765_v59 = vadd.f32 %v2831_v40, %v1753_v54  ;;  %v1203_v60 = vadd.f32 %v1186_v55, %v1094_v53  ;;  %v1106_v53 = vadd.f32 %v2824_v28, %v2826_v29 }
 0x15f   : > { %v1773_v62 = vmax.f32 %v1765_v59, 0.0  ;;  %v1540_v63 = vadd.f32 %v1523_v57, %v1203_v60  ;;  %v1638_v1 = vpop.f32.mrf.mxu0  ;;  %v1737_v3 = vpop.f32.mrf.mxu1 }
 0x161   : > { %v1781_v4 = vpack.c.bf16 %v1773_v62, %v1773_v62  ;;  %v1653_v5 = vadd.f32 %v1636_v49, %v1540_v63 }
 0x163   : > { %1790 = vst.msk [vmem:[%s2838_s14 + $0x4] sm:$0xf] %vm1788_vm3, %v1781_v4  ;;  %v1754_v7 = vadd.f32 %v1737_v3, %v1653_v5 }
 0x164   : > { %v1188_v58 = vpop.f32.mrf.mxu2  ;;  %v1525_v8 = vpop.f32.mrf.mxu3 }
 0x165   : > { %v1766_v9 = vadd.f32 %v2831_v40, %v1754_v7  ;;  %v1204_v10 = vadd.f32 %v1188_v58, %v1096_v6 }
 0x167   : > { %v1774_v11 = vmax.f32 %v1766_v9, 0.0  ;;  %v1541_v12 = vadd.f32 %v1525_v8, %v1204_v10  ;;  %v1739_v13 = vpop.f32.mrf.mxu1  ;;  %v1641_v51 = vpop.f32.mrf.mxu0 }
 0x169   : > { %v1782_v14 = vpack.c.bf16 %v1774_v11, %v1774_v11  ;;  %v1654_v56 = vadd.f32 %v1638_v1, %v1541_v12 }
 0x16b   : > { %1791 = vst.msk [vmem:[%s2838_s14 + $0x8] sm:$0xf] %vm1788_vm3, %v1782_v14  ;;  %v1755_v16 = vadd.f32 %v1739_v13, %v1654_v56 }
 0x16c   : > { %v1191_v17 = vpop.f32.mrf.mxu2  ;;  %v1528_v19 = vpop.f32.mrf.mxu3 }
 0x16d   : > { %v1767_v0 = vadd.f32 %v2831_v40, %v1755_v16  ;;  %v1205_v21 = vadd.f32 %v1191_v17, %v1099_v15 }
 0x16f   : > { %v1775_v23 = vmax.f32 %v1767_v0, 0.0  ;;  %v1542_v26 = vadd.f32 %v1528_v19, %v1205_v21  ;;  %v1742_v27 = vpop.f32.mrf.mxu1  ;;  %v1643_v18 = vpop.f32.mrf.mxu0 }
 0x171   : > { %v1783_v30 = vpack.c.bf16 %v1775_v23, %v1775_v23  ;;  %v1655_v31 = vadd.f32 %v1641_v51, %v1542_v26 }
 0x173   : > { %1792 = vst.msk [vmem:[%s2838_s14 + $0xc] sm:$0xf] %vm1788_vm3, %v1783_v30  ;;  %v1756_v20 = vadd.f32 %v1742_v27, %v1655_v31 }
 0x174   : > { %v1193_v33 = vpop.f32.mrf.mxu2  ;;  %v1530_v34 = vpop.f32.mrf.mxu3 }
 0x175   : > { %v1768_v35 = vadd.f32 %v2831_v40, %v1756_v20  ;;  %v1206_v36 = vadd.f32 %v1193_v33, %v1101_v32 }
 0x177   : > { %v1776_v37 = vmax.f32 %v1768_v35, 0.0  ;;  %v1543_v38 = vadd.f32 %v1530_v34, %v1206_v36  ;;  %v1744_v39 = vpop.f32.mrf.mxu1  ;;  %v1646_v47 = vpop.f32.mrf.mxu0 }
 0x179   : > { %v1784_v41 = vpack.c.bf16 %v1776_v37, %v1776_v37  ;;  %v1656_v42 = vadd.f32 %v1643_v18, %v1543_v38 }
 0x17b   : > { %1793 = vst.msk [vmem:[%s2838_s14 + $0x10] sm:$0xf] %vm1788_vm3, %v1784_v41  ;;  %v1757_v2 = vadd.f32 %v1744_v39, %v1656_v42 }
 0x17c   : > { %v1196_v22 = vpop.f32.mrf.mxu2  ;;  %v1533_v44 = vpop.f32.mrf.mxu3 }
 0x17d   : > { %v1769_v45 = vadd.f32 %v2831_v40, %v1757_v2  ;;  %v1207_v46 = vadd.f32 %v1196_v22, %v1104_v43 }
 0x17f   : > { %v1777_v48 = vmax.f32 %v1769_v45, 0.0  ;;  %v1544_v49 = vadd.f32 %v1533_v44, %v1207_v46  ;;  %v1747_v50 = vpop.f32.mrf.mxu1  ;;  %v1648_v62 = vpop.f32.mrf.mxu0 }
 0x181   : > { %v1785_v61 = vpack.c.bf16 %v1777_v48, %v1777_v48  ;;  %v1657_v52 = vadd.f32 %v1646_v47, %v1544_v49 }
 0x183   : > { %1794 = vst.msk [vmem:[%s2838_s14 + $0x14] sm:$0xf] %vm1788_vm3, %v1785_v61  ;;  %v1758_v24 = vadd.f32 %v1747_v50, %v1657_v52 }
 0x184   : > { %v1198_v25 = vpop.f32.mrf.mxu2  ;;  %v1535_v57 = vpop.f32.mrf.mxu3 }
 0x185   : > { %v1770_v54 = vadd.f32 %v2831_v40, %v1758_v24  ;;  %v1208_v55 = vadd.f32 %v1198_v25, %v1106_v53 }
 0x187   : > { %v1778_v59 = vmax.f32 %v1770_v54, 0.0  ;;  %v1545_v60 = vadd.f32 %v1535_v57, %v1208_v55  ;;  %v1749_v3 = vpop.f32.mrf.mxu1 }
 0x189   : > { %v1786_v63 = vpack.c.bf16 %v1778_v59, %v1778_v59  ;;  %v1658_v1 = vadd.f32 %v1648_v62, %v1545_v60 }
 0x18b   : > { %1795 = vst.msk [vmem:[%s2838_s14 + $0x18] sm:$0xf] %vm1788_vm3, %v1786_v63  ;;  %v1759_v4 = vadd.f32 %v1749_v3, %v1658_v1 }
 0x18d   : > { %v1771_v28 = vadd.f32 %v2831_v40, %v1759_v4 }
 0x18f   : > { %v1779_v29 = vmax.f32 %v1771_v28, 0.0 }
 0x191   : > { %v1787_v5 = vpack.c.bf16 %v1779_v29, %v1779_v29 }
 0x193   : > { %1796 = vst.msk [vmem:[%s2838_s14 + $0x1c] sm:$0xf] %vm1788_vm3, %v1787_v5 }
 0x194 PF: > { %s19_s11 = sadd.s32 1, %s2384_s11   ;;  %s2890_s30 = smov %s2380_s10 }
 0x195   : > { %p16_p5 = scmp.ge.s32.totalorder %s19_s11, 4   ;;  %s2891_s10 = smov %s2893_s12 }
 0x197   :  { %18 = sbr.rel (!%p16_p5) target bundleno = 2 (0x2), region = 101 }

// kernel: ae_network_forward.15
= control target key start
LH: loop header
LB: loop body
LE: loop exit
PB: predicated region body
PF: predicated region fallthrough
CT: control target
= control target key end

     0   :  { %s1802_s18 = smov 0   ;;  %s1804_s19 = smov 0   ;;  %s2198_s0 = inlined_call_operand.vmem [shape: bf16[2,10,18,32], index: 0, kind: input, shape index: {}, may-alias: {0,1,2}]   ;;  %s2199_s1 = inlined_call_operand.vmem [shape: bf16[2,10,18,32], index: 1, kind: input, shape index: {}, may-alias: {0,1,2}]   ;;  %s2200_s2 = inlined_call_operand.vmem [shape: bf16[2,10,18,32], index: 2, kind: input, shape index: {}, may-alias: {0,1,2}]   ;;  %s2201_s3 = inlined_call_operand.vmem [shape: bf16[3,96,3], index: 3, kind: input, shape index: {}]   ;;  %s2202_s4 = inlined_call_operand.vmem [shape: f32[1,3], index: 4, kind: input, shape index: {}]   ;;  %s2203_s5 = inlined_call_operand.vmem [shape: f32[2,16,16,3], index: 5, kind: output, shape index: {}]  }
   0x1   :  { %s1806_s20 = smov 0   ;;  %s1808_s21 = smov 0  }
   0x2   :  { %s1810_s22 = smov 0  }
   0x3 LB: > { %s24_s23 = sadd.s32 1, %s1760_s20  ;;  %s27_s24 = sadd.s32 1, %s1764_s21  ;;  %s1768_s22 = sphi %s1810_s22, %s15_s22   ;;  %s1764_s21 = sphi %s1808_s21, %s2208_s21   ;;  %s1760_s20 = sphi %s1806_s20, %s2207_s20   ;;  %s1756_s19 = sphi %s1804_s19, %s2206_s19   ;;  %s1752_s18 = sphi %s1802_s18, %s2205_s18  }
   0x4   : > { %p25_p0 = scmp.ge.s32.totalorder %s24_s23, 2  ;;  %p1416_p1 = scmp.ge.s32.totalorder %s1768_s22, 1 }
   0x5   : > { %p271_p2 = scmp.lt.s32.totalorder %s1768_s22, 5 }
   0x6   : > { %s2210_s23 = smov (%p25_p0, %s24_s23), 0  ;;  %s2212_s24 = smov (!%p25_p0, %s27_s24), %s1764_s21 }
   0x7   : > { %p272_p3 = pnand %p1416_p1, %p271_p2  ;;  %p29_p4 = scmp.ge.s32.totalorder %s2212_s24, 2 }
   0x8   : > { %s1417_s25 = sshll.u32 (!%p272_p3), %s1752_s18, 2  ;;  %p343_p5 = scmp.lt.s32.totalorder (!%p272_p3), %s1756_s19, 1 }
   0x9   : > { %s2214_s24 = smov (%p29_p4, %s2212_s24), 0  ;;  %275 = sbr.rel (%p272_p3) target bundleno = 416 (0x1a0), region = 40 }
   0xa   : > { %p345_p6 = scmp.lt.s32.totalorder (!%p272_p3), %s1417_s25, 9  ;;  %s1854_s9 = sadd.s32 (!%p272_p3), 4, %s1417_s25 }
   0xb   : > { %p362_p7 = scmp.lt.s32.totalorder (!%p272_p3), %s1854_s9, 9  ;;  %s373_s10 = sadd.s32 (!%p272_p3), 1, %s1854_s9 }
   0xc   : > { %p1863_p8 = scmp.lt.s32.totalorder (!%p272_p3), %s373_s10, 9  ;;  %s1770_s17 = smov (!%p272_p3), 64  }
   0xd   : > { %s1423_s12 = sshll.u32 (!%p272_p3), %s1752_s18, 3 }
   0xe   : > { %s2216_s19 = smov (!%p343_p5, %s1756_s19), 1  ;;  %vm492_vm0 = vsmask.f32 7424  ;;  %vm563_vm1 = vcmask 1046528   ;;  %s2218_s9 = smov (!%p362_p7, %s1854_s9), 9  ;;  %v1871_v17 = vld [vmem:[%s2201_s3 + $0x28] sm:$0xff] }
   0xf   : > { %s346_s26 = scalar_select %p345_p6, %s1417_s25, 9  ;;  %745 = vmatpush.bf16.msra.mxu1 %v1871_v17  ;;  %v1880_v25 = vld [vmem:[%s2201_s3 + $0x20] sm:$0xff]  ;;  %v1907_v38 = vld [vmem:[%s2201_s3 + $0x18] sm:$0xff]  ;;  %v1925_v57 = vld [vmem:[%s2201_s3 + $0x10] sm:$0xff]  ;;  %vm589_vm2 = vcmask 261120   ;;  %vm600_vm3 = vcmask 523264  }
  0x10   : > { %s1838_s27 = smul.u32 30, %s2216_s19  ;;  %s2220_s10 = smov (!%p1863_p8, %s373_s10), 9  ;;  %vm647_vm4 = vcmask 785408   ;;  %vm1250_vm8 = vcmask 23552  }
  0x11   : > { %s1619_s28 = smul.u32 3, %s346_s26  ;;  %p389_p9 = scmp.lt.s32.totalorder %s1423_s12, 15 }
  0x12   : > { %s1621_s14 = smul.u32 3, %s2218_s9  ;;  %s1425_s13 = sshll.u32 %s2216_s19, 5 }
  0x13   : > { %s349_s29 = sadd.s32 %s1838_s27, %s1619_s28  ;;  %s1622_s28 = smul.u32 3, %s2220_s10  ;;  %746 = vmatpush.bf16.msra.mxu1 %v1880_v25 }
  0x14   : > { %s1418_s30 = sshll.u32 %s349_s29, 2  ;;  %s366_s25 = sadd.s32 %s1621_s14, %s1838_s27 }
  0x15   : > { %s1844_s8 = scalar_lea.vmem %s2198_s0, %s1418_s30  ;;  %s1420_s26 = sshll.u32 %s366_s25, 2 }
  0x16   : > { %v1847_v0 = vld [vmem:[%s1844_s8 + $0xc] sm:$0xff]  ;;  %v403_v1 = vld [vmem:[%s1844_s8 + $0x14] sm:$0x1]  ;;  %v1851_v2 = vld [vmem:[%s1844_s8] sm:$0xff]  ;;  %s1771_s29 = smov 32   ;;  %s368_s7 = scalar_lea.vmem %s2199_s1, %s1420_s26 }
  0x17   : > { %v483_v3 = vunpack.c.l.b16 %v403_v1  ;;  %v400_v4 = vld [vmem:[%s1844_s8 + $0x8] sm:$0x1]  ;;  %v506_v5 = vshrl.u32 %v1847_v0, 16  ;;  %v508_v6 = vshll.u32 %v1847_v0, 16  ;;  %v567_v9 = vrot.slane %v1847_v0, 1  ;;  %v1888_v28 = vld [vmem:[%s1844_s8 + $0x18] sm:$0xff]  ;;  %s380_s10 = sadd.s32 %s1622_s28, %s1838_s27  ;;  %747 = vmatpush.bf16.msra.mxu1 %v1907_v38 }
  0x18   : > { %v482_v7 = vunpack.c.l.b16 %v400_v4  ;;  %v494_v10 = vshrl.u32 %v1851_v2, 16  ;;  %v496_v11 = vshll.u32 %v1851_v2, 16  ;;  %v406_v20 = vld [vmem:[%s1844_s8 + $0x20] sm:$0x1]  ;;  %v409_v24 = vld [vmem:[%s1844_s8 + $0x2c] sm:$0x1] }
  0x19   : > { %v488_v8 = vpack.c.b16 %v483_v3, %v483_v3  ;;  %v510_v12 = vrot.slane %v508_v6, 1  ;;  %v1891_v29 = vld [vmem:[%s1844_s8 + $0x24] sm:$0xff]  ;;  %v564_v31 = vrot.slane %v1851_v2, 1  ;;  %v484_v32 = vunpack.c.l.b16 %v406_v20  ;;  %s1422_s11 = sshll.u32 %s380_s10, 2  ;;  %s2222_s12 = smov (!%p389_p9, %s1423_s12), 15 }
  0x1a   : > { %v487_v13 = vpack.c.b16 %v482_v7, %v482_v7  ;;  %v498_v16 = vrot.slane %v496_v11, 1  ;;  %v485_v33 = vunpack.c.l.b16 %v409_v24  ;;  %v1900_v34 = vld [vmem:[%s368_s7] sm:$0xff]  ;;  %v412_v35 = vld [vmem:[%s368_s7 + $0x8] sm:$0x1]  ;;  %v532_v37 = vshll.u32 %v1891_v29, 16  ;;  %s382_s14 = scalar_lea.vmem %s2200_s2, %s1422_s11  ;;  %v1594_v24 = vld [vmem:[%s2201_s3 + $0x58] sm:$0xff] }
  0x1b   : > { %v513_v14 = vshll.u32 %v488_v8, 16  ;;  %v568_v15 = vrot.slane %v488_v8, 1  ;;  %v511_v18 = vor.u32 %v510_v12, %v506_v5  ;;  %v486_v39 = vunpack.c.l.b16 %v412_v35  ;;  %v415_v47 = vld [vmem:[%s382_s14 + $0x8] sm:$0x1]  ;;  %v1920_v55 = vld [vmem:[%s382_s14] sm:$0xff]  ;;  %748 = vmatpush.bf16.msra.mxu1 %v1925_v57  ;;  %658 = vmatpush.bf16.msra.mxu0 %v1594_v24  ;;  %v1598_v35 = vld [vmem:[%s2201_s3 + $0x78] sm:$0xff] }
  0x1c   : > { %v501_v19 = vshll.u32 %v487_v13, 16  ;;  %v499_v23 = vor.u32 %v498_v16, %v494_v10  ;;  %v565_v36 = vrot.slane %v487_v13, 1  ;;  %v542_v40 = vshrl.u32 %v1900_v34, 16  ;;  %1601 = vmatpush.bf16.msra.mxu3 %v1594_v24  ;;  %s1424_s18 = sshll.u32 %s2222_s12, 1 }
  0x1d   : > { %v515_v21 = vrot.slane %v513_v14, 1  ;;  %v569_v22 = vsel %vm563_vm1, %v567_v9, %v568_v15  ;;  %v544_v41 = vshll.u32 %v1900_v34, 16  ;;  %v520_v42 = vshll.u32 %v1888_v28, 16  ;;  %s393_s14 = sadd.s32 %s1425_s13, %s1424_s18 }
  0x1e   : > { %581 = vrot.lane.b32.xlu1 %v569_v22, %s1770_s17  ;;  %v503_v26 = vrot.slane %v501_v19, 1  ;;  %v491_v43 = vpack.c.b16 %v486_v39, %v486_v39  ;;  %v576_v44 = vrot.slane %v1900_v34, 1  ;;  %v489_v45 = vpack.c.b16 %v484_v32, %v484_v32  ;;  %v1966_v32 = vld [vmem:[%s2201_s3 + $0x80] sm:$0xff]  ;;  %s1426_s27 = sshll.u32 %s393_s14, 3 }
  0x1f   : > { %v516_v27 = vsel %vm492_vm0, %v511_v18, %v515_v21  ;;  %v490_v46 = vpack.c.b16 %v485_v33, %v485_v33  ;;  %v546_v48 = vrot.slane %v544_v41, 1  ;;  %v566_v49 = vsel %vm563_vm1, %v564_v31, %v565_v36  ;;  %v1583_v31 = vld [vmem:[%s2201_s3] sm:$0xff]  ;;  %v1592_v33 = vld [vmem:[%s2201_s3 + $0x48] sm:$0xff]  ;;  %s2063_s16 = scalar_lea.vmem %s2203_s5, %s1426_s27 }
  0x20   : > { %555 = vrot.lane.b32.xlu0 %v516_v27, %s1771_s29  ;;  %v504_v30 = vsel %vm492_vm0, %v499_v23, %v503_v26  ;;  %v530_v50 = vshrl.u32 %v1891_v29, 16  ;;  %v534_v51 = vrot.slane %v532_v37, 1  ;;  %v549_v52 = vshll.u32 %v491_v43, 16  ;;  %v1584_v26 = vld [vmem:[%s2201_s3 + $0x8] sm:$0xff]  ;;  %v1591_v39 = vld [vmem:[%s2201_s3 + $0x40] sm:$0xff] }
  0x21   : > { %553 = vrot.lane.b32.xlu2 %v504_v30, %s1771_s29  ;;  %v577_v53 = vrot.slane %v491_v43, 1  ;;  %v537_v54 = vshll.u32 %v490_v46, 16  ;;  %v798_v56 = vunpack.c.l.b16 %v415_v47  ;;  %v547_v58 = vor.u32 %v546_v48, %v542_v40  ;;  %v1600_v27 = vld [vmem:[%s2201_s3 + $0x88] sm:$0xff]  ;;  %749 = vmatpush.bf16.msra.mxu1 %v1584_v26  ;;  %v1593_v30 = vld [vmem:[%s2201_s3 + $0x50] sm:$0xff] }
  0x22   : > { %v518_v59 = vshrl.u32 %v1888_v28, 16  ;;  %v551_v60 = vrot.slane %v549_v52, 1  ;;  %v522_v62 = vrot.slane %v520_v42, 1  ;;  %v525_v63 = vshll.u32 %v489_v45, 16  ;;  %863 = vmatpush.bf16.msra.mxu2 %v1600_v27  ;;  %659 = vmatpush.bf16.msra.mxu0 %v1593_v30  ;;  %v1597_v40 = vld [vmem:[%s2201_s3 + $0x70] sm:$0xff]  ;;  %v1590_v42 = vld [vmem:[%s2201_s3 + $0x38] sm:$0xff] }
  0x23   : > { %v578_v61 = vsel %vm563_vm1, %v576_v44, %v577_v53  ;;  %v570_v1 = vrot.slane %v1888_v28, 1  ;;  %v571_v3 = vrot.slane %v489_v45, 1  ;;  %v535_v4 = vor.u32 %v534_v51, %v530_v50  ;;  %1602 = vmatpush.bf16.msra.mxu3 %v1593_v30  ;;  %v1596_v43 = vld [vmem:[%s2201_s3 + $0x68] sm:$0xff]  ;;  %v1589_v44 = vld [vmem:[%s2201_s3 + $0x30] sm:$0xff]  ;;  %v1595_v45 = vld [vmem:[%s2201_s3 + $0x60] sm:$0xff] }
  0x24   : > { %v552_v5 = vsel %vm492_vm0, %v547_v58, %v551_v60  ;;  %v539_v6 = vrot.slane %v537_v54, 1  ;;  %v799_v7 = vpack.c.b16 %v798_v56, %v798_v56  ;;  %v803_v8 = vshll.u32 %v1920_v55, 16 }
  0x25   : > { %v523_v9 = vor.u32 %v522_v62, %v518_v59  ;;  %v527_v10 = vrot.slane %v525_v63, 1  ;;  %v572_v11 = vsel %vm563_vm1, %v570_v1, %v571_v3  ;;  %v801_v13 = vshrl.u32 %v1920_v55, 16  ;;  %750 = vmatpush.bf16.msra.mxu1 %v1583_v31 }
  0x26   : > { %587 = vrot.lane.b32.xlu1 %v578_v61, %s1770_s17  ;;  %v540_v12 = vsel %vm492_vm0, %v535_v4, %v539_v6  ;;  %v805_v14 = vrot.slane %v803_v8, 1  ;;  %v808_v15 = vshll.u32 %v799_v7, 16  ;;  %v573_v20 = vrot.slane %v1891_v29, 1  ;;  %864 = vmatpush.bf16.msra.mxu2 %v1966_v32  ;;  %v2046_v6 = vld [vmem:[%s2202_s4] ss:$0 sm:$0xff] }
  0x27   : > { %v528_v16 = vsel %vm492_vm0, %v523_v9, %v527_v10  ;;  %v574_v21 = vrot.slane %v490_v46, 1  ;;  %v814_v36 = vrot.slane %v1920_v55, 1  ;;  %v815_v37 = vrot.slane %v799_v7, 1  ;;  %660 = vmatpush.bf16.msra.mxu0 %v1592_v33  ;;  %1603 = vmatpush.bf16.msra.mxu3 %v1592_v33 }
  0x28   : > { %561 = vrot.lane.b32.xlu0 %v552_v5, %s1771_s29  ;;  %v806_v18 = vor.u32 %v805_v14, %v801_v13  ;;  %v810_v19 = vrot.slane %v808_v15, 1 }
  0x29   : > { %579 = vrot.lane.b32.xlu2 %v566_v49, %s1770_s17  ;;  %v575_v23 = vsel %vm563_vm1, %v573_v20, %v574_v21  ;;  %v816_v41 = vsel %vm563_vm1, %v814_v36, %v815_v37 }
  0x2a   : > { %v811_v22 = vsel %vm492_vm0, %v806_v18, %v810_v19  ;;  %865 = vmatpush.bf16.msra.mxu2 %v1598_v35 }
  0x2b   : > { %661 = vmatpush.bf16.msra.mxu0 %v1591_v39  ;;  %1604 = vmatpush.bf16.msra.mxu3 %v1591_v39 }
  0x2e   : > { %583 = vrot.lane.b32.xlu1 %v572_v11, %s1770_s17  ;;  %866 = vmatpush.bf16.msra.mxu2 %v1597_v40 }
  0x2f   : > { %662 = vmatpush.bf16.msra.mxu0 %v1590_v42  ;;  %1605 = vmatpush.bf16.msra.mxu3 %v1590_v42 }
  0x30   : > { %557 = vrot.lane.b32.xlu0 %v528_v16, %s1771_s29 }
  0x31   : > { %559 = vrot.lane.b32.xlu2 %v540_v12, %s1771_s29 }
  0x32   : > { %867 = vmatpush.bf16.msra.mxu2 %v1596_v43 }
  0x33   : > { %663 = vmatpush.bf16.msra.mxu0 %v1589_v44  ;;  %1606 = vmatpush.bf16.msra.mxu3 %v1589_v44 }
  0x36   : > { %812 = vrot.lane.b32.xlu1 %v811_v22, %s1771_s29  ;;  %868 = vmatpush.bf16.msra.mxu2 %v1595_v45 }
  0x37   : > { %1607 = vmatpush.bf16.msrb.mxu3 %v1871_v17 }
  0x38   : > { %585 = vrot.lane.b32.xlu0 %v575_v23, %s1770_s17 }
  0x39   : > { %817 = vrot.lane.b32.xlu2 %v816_v41, %s1770_s17 }
  0x3b   : > { %1608 = vmatpush.bf16.msrb.mxu3 %v1880_v25 }
  0x3f   : > { %1609 = vmatpush.bf16.msrb.mxu3 %v1907_v38 }
  0x43   : > { %1610 = vmatpush.bf16.msrb.mxu3 %v1925_v57 }
  0x47   : > { %1611 = vmatpush.bf16.msrb.mxu3 %v1584_v26 }
  0x4b   : > { %1612 = vmatpush.bf16.msrb.mxu3 %v1583_v31 }
  0x7b   : > { %v554_v46 = vpop.permute.xlu2 %553 }
  0x7c   : > { %v591_v47 = vsel %vm589_vm2, %v1851_v2, %v554_v46 }
  0x83   : > { %v580_v48 = vpop.permute.xlu2 %579 }
  0x84   : > { %v602_v49 = vsel %vm600_vm3, %v591_v47, %v580_v48 }
  0x85   : > { %1503 = vmatmul.msk.bf16.vlgmr.msra.gmra.mxu1 %vm647_vm4, %v602_v49 }
  0x90   : > { %v582_v17 = vpop.permute.xlu1 %581 }
  0x92   : > { %v556_v25 = vpop.permute.xlu0 %555 }
  0x93   : > { %v593_v38 = vsel %vm589_vm2, %v1847_v0, %v556_v25 }
  0x94   : > { %v604_v50 = vsel %vm600_vm3, %v593_v38, %v582_v17 }
  0x95   : > { %1471 = vmatmul.msk.bf16.vlgmr.msra.gmra.mxu0 %vm647_vm4, %v604_v50  ;;  %1504 = vmatmul.msk.bf16.gmra.mxu1 %vm647_vm4, %v604_v50 }
  0x96   : > { %1539 = vmatmul.msk.bf16.vlgmr.msra.gmra.mxu2 %vm647_vm4, %v604_v50 }
  0x98   : > { %v588_v2 = vpop.permute.xlu1 %587 }
  0x9a   : > { %v562_v51 = vpop.permute.xlu0 %561 }
  0x9b   : > { %v599_v52 = vsel %vm589_vm2, %v1900_v34, %v562_v51  ;;  %v560_v34 = vpop.permute.xlu2 %559 }
  0x9c   : > { %v610_v53 = vsel %vm600_vm3, %v599_v52, %v588_v2 }
  0x9d   : > { %1477 = vmatmul.msk.bf16.vlgmr.msra.gmra.mxu3 %vm647_vm4, %v610_v53 }
  0x9e   : > { %1613 = vmatpush.bf16.msra.mxu3 %v1600_v27 }
  0xa0   : > { %v584_v54 = vpop.permute.xlu1 %583 }
  0xa2   : > { %v558_v0 = vpop.permute.xlu0 %557  ;;  %1614 = vmatpush.bf16.msra.mxu3 %v1966_v32 }
  0xa3   : > { %v595_v56 = vsel %vm589_vm2, %v1888_v28, %v558_v0  ;;  %v597_v28 = vsel %vm589_vm2, %v1891_v29, %v560_v34  ;;  %v818_v61 = vpop.permute.xlu2 %817 }
  0xa4   : > { %v606_v57 = vsel %vm600_vm3, %v595_v56, %v584_v54 }
  0xa5   : > { %1472 = vmatmul.msk.bf16.gmra.mxu0 %vm647_vm4, %v604_v50  ;;  %1505 = vmatmul.msk.bf16.gmra.mxu1 %vm647_vm4, %v604_v50 }
  0xa6   : > { %1540 = vmatmul.msk.bf16.gmra.mxu2 %vm647_vm4, %v606_v57  ;;  %1615 = vmatpush.bf16.msra.mxu3 %v1598_v35 }
  0xa8   : > { %v813_v29 = vpop.permute.xlu1 %812 }
  0xa9   : > { %v820_v60 = vsel %vm589_vm2, %v1920_v55, %v813_v29 }
  0xaa   : > { %1616 = vmatpush.bf16.msra.mxu3 %v1597_v40  ;;  %v586_v58 = vpop.permute.xlu0 %585  ;;  %v822_v62 = vsel %vm600_vm3, %v820_v60, %v818_v61 }
  0xab   : > { %v608_v59 = vsel %vm600_vm3, %v597_v28, %v586_v58 }
  0xad   : > { %1478 = vmatmul.msk.bf16.gmra.mxu3 %vm647_vm4, %v610_v53 }
  0xae   : > { %1617 = vmatpush.bf16.msra.mxu3 %v1596_v43 }
  0xb2   : > { %1618 = vmatpush.bf16.msra.mxu3 %v1595_v45 }
  0xb5   : > { %1473 = vmatmul.msk.bf16.gmra.mxu0 %vm647_vm4, %v606_v57  ;;  %1506 = vmatmul.msk.bf16.gmra.mxu1 %vm647_vm4, %v606_v57 }
  0xb6   : > { %1541 = vmatmul.msk.bf16.gmra.mxu2 %vm647_vm4, %v606_v57 }
  0xbd   : > { %1509 = vmatmul.msk.bf16.vlgmr.msrb.gmra.mxu3 %vm647_vm4, %v608_v59 }
  0xc5   : > { %1474 = vmatmul.msk.bf16.gmra.mxu0 %vm647_vm4, %v606_v57  ;;  %1507 = vmatmul.msk.bf16.gmra.mxu1 %vm647_vm4, %v606_v57 }
  0xc6   : > { %1542 = vmatmul.msk.bf16.gmra.mxu2 %vm647_vm4, %v608_v59 }
  0xcd   : > { %1510 = vmatmul.msk.bf16.gmra.mxu3 %vm647_vm4, %v610_v53 }
  0xd5   : > { %1475 = vmatmul.msk.bf16.gmra.mxu0 %vm647_vm4, %v608_v59  ;;  %1508 = vmatmul.msk.bf16.gmra.mxu1 %vm647_vm4, %v608_v59 }
  0xd6   : > { %1543 = vmatmul.msk.bf16.gmra.mxu2 %vm647_vm4, %v608_v59 }
  0xdd   : > { %1545 = vmatmul.msk.bf16.vlgmr.msra.gmra.mxu3 %vm647_vm4, %v610_v53 }
  0xe5   : > { %1476 = vmatmul.msk.bf16.gmra.mxu0 %vm647_vm4, %v608_v59 }
  0xe6   : > { %1544 = vmatmul.msk.bf16.gmra.mxu2 %vm647_vm4, %v610_v53 }
  0xed   : > { %1546 = vmatmul.msk.bf16.gmra.mxu3 %vm647_vm4, %v822_v62 }
 0x102   : > { %v752_v63 = vpop.f32.mrf.mxu1 }
 0x10a   : > { %v754_v1 = vpop.f32.mrf.mxu1 }
 0x112   : > { %v665_v3 = vpop.f32.mrf.mxu0  ;;  %v757_v5 = vpop.f32.mrf.mxu1 }
 0x113   : > { %v753_v4 = vadd.f32 %v752_v63, %v665_v3 }
 0x119   : > { %v870_v7 = vpop.f32.mrf.mxu2 }
 0x11a   : > { %v910_v8 = vadd.f32 %v870_v7, %v753_v4  ;;  %v667_v9 = vpop.f32.mrf.mxu0  ;;  %v759_v13 = vpop.f32.mrf.mxu1 }
 0x11b   : > { %v755_v11 = vadd.f32 %v754_v1, %v667_v9 }
 0x11c   : > { %v930_v55 = vadd.f32 %v2046_v6, %v910_v8 }
 0x11e   : > { %v1547_v10 = vmul.f32 -1.442695, %v930_v55 }
 0x120   : > { %1666 = vpow2.f32 %v1547_v10  ;;  %v2050_v16 = vpop.f32.mrf.mxu3 }
 0x121   : > { %v872_v12 = vpop.f32.mrf.mxu2 }
 0x122   : > { %v911_v14 = vadd.f32 %v872_v12, %v755_v11  ;;  %v670_v15 = vpop.f32.mrf.mxu0  ;;  %v762_v27 = vpop.f32.mrf.mxu1 }
 0x123   : > { %v758_v22 = vadd.f32 %v757_v5, %v670_v15 }
 0x124   : > { %v931_v18 = vadd.f32 %v2046_v6, %v911_v14 }
 0x126   : > { %v1667_v19 = vpop.eup %1666  ;;  %v1548_v20 = vmul.f32 -1.442695, %v931_v18 }
 0x127   : > { %v994_v21 = vadd.f32 1.0, %v1667_v19 }
 0x128   : > { %1668 = vpow2.f32 %v1548_v20  ;;  %v2053_v24 = vpop.f32.mrf.mxu3 }
 0x129   : > { %1670 = vrcp.f32 %v994_v21  ;;  %v875_v26 = vpop.f32.mrf.mxu2  ;;  %v1021_v42 = vand.u32 2147483648, %v994_v21  ;;  %v1019_v46 = vand.u32 2147483647, %v994_v21  ;;  %vm1015_vm6 = vweird.f32 %v994_v21 }
 0x12a   : > { %v672_v23 = vpop.f32.mrf.mxu0  ;;  %v912_v30 = vadd.f32 %v875_v26, %v758_v22  ;;  %v764_v49 = vpop.f32.mrf.mxu1 }
 0x12b   : > { %v760_v40 = vadd.f32 %v759_v13, %v672_v23  ;;  %v1022_v38 = vor.u32 1.1754944e-38, %v1021_v42  ;;  %vm1020_vm9 = vcmp.eq.f32.partialorder %v1019_v46, 8.507059e+37 }
 0x12c   : > { %v932_v32 = vadd.f32 %v2046_v6, %v912_v30 }
 0x12e   : > { %v1669_v31 = vpop.eup %1668  ;;  %v1549_v37 = vmul.f32 -1.442695, %v932_v32 }
 0x12f   : > { %v1671_v33 = vpop.eup %1670  ;;  %v995_v35 = vadd.f32 1.0, %v1669_v31 }
 0x130   : > { %v1011_v36 = vmul.f32 %v1671_v33, %v994_v21  ;;  %v2057_v43 = vpop.f32.mrf.mxu3  ;;  %vm1016_vm5 = vweird.f32 %v1671_v33 }
 0x131   : > { %1672 = vrcp.f32 %v995_v35  ;;  %v877_v44 = vpop.f32.mrf.mxu2  ;;  %vm1017_vm7 = vmor %vm1015_vm6, %vm1016_vm5  ;;  %v1036_v34 = vand.u32 2147483648, %v995_v35  ;;  %v1034_v29 = vand.u32 2147483647, %v995_v35  ;;  %vm1030_vm11 = vweird.f32 %v995_v35 }
 0x132   : > { %v1012_v39 = vsub.f32 1.0, %v1011_v36  ;;  %1674 = vpow2.f32 %v1549_v37  ;;  %v675_v41 = vpop.f32.mrf.mxu0  ;;  %v913_v47 = vadd.f32 %v877_v44, %v760_v40  ;;  %v767_v4 = vpop.f32.mrf.mxu1 }
 0x133   : > { %v763_v56 = vadd.f32 %v762_v27, %v675_v41  ;;  %v1037_v63 = vor.u32 1.1754944e-38, %v1036_v34  ;;  %vm1035_vm13 = vcmp.eq.f32.partialorder %v1034_v29, 8.507059e+37 }
 0x134   : > { %v1013_v45 = vmul.f32 %v1671_v33, %v1012_v39  ;;  %v933_v17 = vadd.f32 %v2046_v6, %v913_v47 }
 0x136   : > { %v1014_v48 = vadd.f32 %v1671_v33, %v1013_v45  ;;  %v1550_v52 = vmul.f32 -1.442695, %v933_v17 }
 0x137   : > { %v1673_v25 = vpop.eup %1672 }
 0x138   : > { %v1675_v50 = vpop.eup %1674  ;;  %v1018_v2 = vsel %vm1017_vm7, %v1671_v33, %v1014_v48  ;;  %v1026_v51 = vmul.f32 %v1673_v25, %v995_v35  ;;  %1676 = vpow2.f32 %v1550_v52  ;;  %v2067_v28 = vpop.f32.mrf.mxu3  ;;  %vm1031_vm10 = vweird.f32 %v1673_v25 }
 0x139   : > { %v1023_v53 = vsel %vm1020_vm9, %v1022_v38, %v1018_v2  ;;  %v996_v54 = vadd.f32 1.0, %v1675_v50  ;;  %v880_v58 = vpop.f32.mrf.mxu2  ;;  %vm1032_vm12 = vmor %vm1030_vm11, %vm1031_vm10 }
 0x13a   : > { %1251 = vst.msk [vmem:[%s2063_s16] sm:$0xff] %vm1250_vm8, %v1023_v53  ;;  %v1027_v0 = vsub.f32 1.0, %v1026_v51  ;;  %v677_v57 = vpop.f32.mrf.mxu0  ;;  %v914_v60 = vadd.f32 %v880_v58, %v763_v56  ;;  %v769_v35 = vpop.f32.mrf.mxu1 }
 0x13b   : > { %1678 = vrcp.f32 %v996_v54  ;;  %v765_v10 = vadd.f32 %v764_v49, %v677_v57  ;;  %v1049_v18 = vand.u32 2147483647, %v996_v54  ;;  %v1051_v19 = vand.u32 2147483648, %v996_v54 }
 0x13c   : > { %v1028_v59 = vmul.f32 %v1673_v25, %v1027_v0  ;;  %v934_v62 = vadd.f32 %v2046_v6, %v914_v60  ;;  %vm1045_vm15 = vweird.f32 %v996_v54 }
 0x13d   : > { %vm1050_vm1 = vcmp.eq.f32.partialorder %v1049_v18, 8.507059e+37  ;;  %v1052_v30 = vor.u32 1.1754944e-38, %v1051_v19 }
 0x13e   : > { %v1029_v61 = vadd.f32 %v1673_v25, %v1028_v59  ;;  %v1677_v1 = vpop.eup %1676  ;;  %v1551_v5 = vmul.f32 -1.442695, %v934_v62 }
 0x13f   : > { %v997_v9 = vadd.f32 1.0, %v1677_v1 }
 0x140   : > { %v1033_v3 = vsel %vm1032_vm12, %v1673_v25, %v1029_v61  ;;  %1680 = vpow2.f32 %v1551_v5  ;;  %v2072_v12 = vpop.f32.mrf.mxu3 }
 0x141   : > { %v1679_v7 = vpop.eup %1678  ;;  %v1038_v8 = vsel %vm1035_vm13, %v1037_v63, %v1033_v3  ;;  %1682 = vrcp.f32 %v997_v9  ;;  %v882_v13 = vpop.f32.mrf.mxu2  ;;  %v1064_v45 = vand.u32 2147483647, %v997_v9  ;;  %v1066_v46 = vand.u32 2147483648, %v997_v9 }
 0x142   : > { %1252 = vst.msk [vmem:[%s2063_s16 + $0x8] sm:$0xff] %vm1250_vm8, %v1038_v8  ;;  %v1041_v55 = vmul.f32 %v1679_v7, %v996_v54  ;;  %v680_v11 = vpop.f32.mrf.mxu0  ;;  %v915_v15 = vadd.f32 %v882_v13, %v765_v10  ;;  %vm1046_vm14 = vweird.f32 %v1679_v7  ;;  %vm1060_vm3 = vweird.f32 %v997_v9  ;;  %v772_v58 = vpop.f32.mrf.mxu1 }
 0x143   : > { %vm1047_vm0 = vmor %vm1045_vm15, %vm1046_vm14  ;;  %v768_v36 = vadd.f32 %v767_v4, %v680_v11  ;;  %vm1065_vm5 = vcmp.eq.f32.partialorder %v1064_v45, 8.507059e+37  ;;  %v1067_v50 = vor.u32 1.1754944e-38, %v1066_v46 }
 0x144   : > { %v1042_v14 = vsub.f32 1.0, %v1041_v55  ;;  %v935_v21 = vadd.f32 %v2046_v6, %v915_v15 }
 0x146   : > { %v1043_v20 = vmul.f32 %v1679_v7, %v1042_v14  ;;  %v1681_v22 = vpop.eup %1680  ;;  %v1552_v26 = vmul.f32 -1.442695, %v935_v21 }
 0x147   : > { %v1683_v27 = vpop.eup %1682  ;;  %v998_v31 = vadd.f32 1.0, %v1681_v22 }
 0x148   : > { %v1044_v23 = vadd.f32 %v1679_v7, %v1043_v20  ;;  %v1056_v33 = vmul.f32 %v1683_v27, %v997_v9  ;;  %1684 = vpow2.f32 %v1552_v26  ;;  %v2075_v40 = vpop.f32.mrf.mxu3  ;;  %vm1061_vm2 = vweird.f32 %v1683_v27 }
 0x149   : > { %1686 = vrcp.f32 %v998_v31  ;;  %v885_v41 = vpop.f32.mrf.mxu2  ;;  %vm1062_vm4 = vmor %vm1060_vm3, %vm1061_vm2  ;;  %v1079_v29 = vand.u32 2147483647, %v998_v31  ;;  %v1081_v60 = vand.u32 2147483648, %v998_v31  ;;  %vm1075_vm7 = vweird.f32 %v998_v31 }
 0x14a   : > { %v1048_v32 = vsel %vm1047_vm0, %v1679_v7, %v1044_v23  ;;  %v682_v37 = vpop.f32.mrf.mxu0  ;;  %v1057_v42 = vsub.f32 1.0, %v1056_v33  ;;  %v916_v44 = vadd.f32 %v885_v41, %v768_v36  ;;  %v774_v22 = vpop.f32.mrf.mxu1 }
 0x14b   : > { %v1053_v39 = vsel %vm1050_vm1, %v1052_v30, %v1048_v32  ;;  %v770_v53 = vadd.f32 %v769_v35, %v682_v37  ;;  %vm1080_vm10 = vcmp.eq.f32.partialorder %v1079_v29, 8.507059e+37  ;;  %v1082_v5 = vor.u32 1.1754944e-38, %v1081_v60 }
 0x14c   : > { %1253 = vst.msk [vmem:[%s2063_s16 + $0x10] sm:$0xff] %vm1250_vm8, %v1053_v39  ;;  %v1058_v47 = vmul.f32 %v1683_v27, %v1057_v42  ;;  %v936_v48 = vadd.f32 %v2046_v6, %v916_v44  ;;  %v783_v32 = vadd.f32 %v2072_v12, %v2050_v16 }
 0x14e   : > { %v1685_v49 = vpop.eup %1684  ;;  %v1059_v17 = vadd.f32 %v1683_v27, %v1058_v47  ;;  %v1553_v25 = vmul.f32 -1.442695, %v936_v48 }
 0x14f   : > { %v1687_v38 = vpop.eup %1686  ;;  %v999_v2 = vadd.f32 1.0, %v1685_v49 }
 0x150   : > { %v1063_v51 = vsel %vm1062_vm4, %v1683_v27, %v1059_v17  ;;  %v1071_v52 = vmul.f32 %v1687_v38, %v998_v31  ;;  %1688 = vpow2.f32 %v1553_v25  ;;  %v2080_v56 = vpop.f32.mrf.mxu3  ;;  %vm1076_vm6 = vweird.f32 %v1687_v38 }
 0x151   : > { %v1068_v0 = vsel %vm1065_vm5, %v1067_v50, %v1063_v51  ;;  %1690 = vrcp.f32 %v999_v2  ;;  %v887_v57 = vpop.f32.mrf.mxu2  ;;  %vm1077_vm9 = vmor %vm1075_vm7, %vm1076_vm6  ;;  %v1094_v19 = vand.u32 2147483647, %v999_v2  ;;  %v1096_v20 = vand.u32 2147483648, %v999_v2 }
 0x152   : > { %v685_v54 = vpop.f32.mrf.mxu0  ;;  %1254 = vst.msk [vmem:[%s2063_s16 + $0x18] sm:$0xff] %vm1250_vm8, %v1068_v0  ;;  %v1072_v34 = vsub.f32 1.0, %v1071_v52  ;;  %v917_v59 = vadd.f32 %v887_v57, %v770_v53  ;;  %vm1090_vm12 = vweird.f32 %v999_v2 }
 0x153   : > { %v773_v55 = vadd.f32 %v772_v58, %v685_v54  ;;  %vm1095_vm14 = vcmp.eq.f32.partialorder %v1094_v19, 8.507059e+37  ;;  %v1097_v33 = vor.u32 1.1754944e-38, %v1096_v20 }
 0x154   : > { %v1073_v61 = vmul.f32 %v1687_v38, %v1072_v34  ;;  %v937_v62 = vadd.f32 %v2046_v6, %v917_v59  ;;  %v785_v59 = vadd.f32 %v2075_v40, %v2053_v24 }
 0x156   : > { %v1689_v63 = vpop.eup %1688  ;;  %v1074_v1 = vadd.f32 %v1687_v38, %v1073_v61  ;;  %v1554_v3 = vmul.f32 -1.442695, %v937_v62 }
 0x157   : > { %v1691_v4 = vpop.eup %1690  ;;  %v1000_v7 = vadd.f32 1.0, %v1689_v63 }
 0x158   : > { %v1078_v8 = vsel %vm1077_vm9, %v1687_v38, %v1074_v1  ;;  %v1086_v9 = vmul.f32 %v1691_v4, %v999_v2  ;;  %1692 = vpow2.f32 %v1554_v3  ;;  %v2085_v11 = vpop.f32.mrf.mxu3  ;;  %vm1091_vm11 = vweird.f32 %v1691_v4  ;;  %v777_v2 = vpop.f32.mrf.mxu1 }
 0x159   : > { %v1083_v10 = vsel %vm1080_vm10, %v1082_v5, %v1078_v8  ;;  %1694 = vrcp.f32 %v1000_v7  ;;  %v890_v13 = vpop.f32.mrf.mxu2  ;;  %vm1092_vm13 = vmor %vm1090_vm12, %vm1091_vm11  ;;  %v1109_v16 = vand.u32 2147483647, %v1000_v7  ;;  %v1111_v12 = vand.u32 2147483648, %v1000_v7 }
 0x15a   : > { %1255 = vst.msk [vmem:[%s2063_s16 + $0x20] sm:$0xff] %vm1250_vm8, %v1083_v10  ;;  %v1087_v14 = vsub.f32 1.0, %v1086_v9  ;;  %v918_v15 = vadd.f32 %v890_v13, %v773_v55  ;;  %v687_v18 = vpop.f32.mrf.mxu0  ;;  %vm1105_vm0 = vweird.f32 %v1000_v7 }
 0x15b   : > { %v775_v39 = vadd.f32 %v774_v22, %v687_v18  ;;  %vm1110_vm2 = vcmp.eq.f32.partialorder %v1109_v16, 8.507059e+37  ;;  %v1112_v54 = vor.u32 1.1754944e-38, %v1111_v12  ;;  %v788_v22 = vadd.f32 %v2080_v56, %v2057_v43 }
 0x15c   : > { %v1088_v21 = vmul.f32 %v1691_v4, %v1087_v14  ;;  %v938_v23 = vadd.f32 %v2046_v6, %v918_v15 }
 0x15e   : > { %v1693_v26 = vpop.eup %1692  ;;  %v1089_v27 = vadd.f32 %v1691_v4, %v1088_v21  ;;  %v1555_v30 = vmul.f32 -1.442695, %v938_v23 }
 0x15f   : > { %v1695_v31 = vpop.eup %1694  ;;  %v2092_v35 = vadd.f32 1.0, %v1693_v26 }
 0x160   : > { %v1093_v36 = vsel %vm1092_vm13, %v1691_v4, %v1089_v27  ;;  %v1101_v37 = vmul.f32 %v1695_v31, %v1000_v7  ;;  %1696 = vpow2.f32 %v1555_v30  ;;  %v900_v44 = vpop.f32.mrf.mxu3  ;;  %vm1106_vm15 = vweird.f32 %v1695_v31  ;;  %v779_v21 = vpop.f32.mrf.mxu1 }
 0x161   : > { %v1098_v41 = vsel %vm1095_vm14, %v1097_v33, %v1093_v36  ;;  %1698 = vrcp.f32 %v2092_v35  ;;  %v892_v42 = vpop.f32.mrf.mxu2  ;;  %v922_v47 = vadd.f32 %v900_v44, %v783_v32  ;;  %vm1107_vm1 = vmor %vm1105_vm0, %vm1106_vm15  ;;  %v1126_v1 = vand.u32 2147483648, %v2092_v35 }
 0x162   : > { %1256 = vst.msk [vmem:[%s2063_s16 + $0x28] sm:$0xff] %vm1250_vm8, %v1098_v41  ;;  %v1102_v45 = vsub.f32 1.0, %v1101_v37  ;;  %v919_v46 = vadd.f32 %v892_v42, %v775_v39  ;;  %v690_v25 = vpop.f32.mrf.mxu0  ;;  %v1124_v5 = vand.u32 2147483647, %v2092_v35  ;;  %vm1120_vm4 = vweird.f32 %v2092_v35 }
 0x163   : > { %v942_v17 = vadd.f32 %v2046_v6, %v922_v47  ;;  %v778_v58 = vadd.f32 %v777_v2, %v690_v25  ;;  %v1127_v13 = vor.u32 1.1754944e-38, %v1126_v1 }
 0x164   : > { %v1103_v48 = vmul.f32 %v1695_v31, %v1102_v45  ;;  %v939_v49 = vadd.f32 %v2046_v6, %v919_v46  ;;  %vm1125_vm6 = vcmp.eq.f32.partialorder %v1124_v5, 8.507059e+37 }
 0x165   : > { %v1559_v52 = vmul.f32 -1.442695, %v942_v17 }
 0x166   : > { %v1697_v38 = vpop.eup %1696  ;;  %v1104_v50 = vadd.f32 %v1695_v31, %v1103_v48  ;;  %v1556_v51 = vmul.f32 -1.442695, %v939_v49 }
 0x167   : > { %v1699_v53 = vpop.eup %1698  ;;  %v2099_v0 = vadd.f32 1.0, %v1697_v38 }
 0x168   : > { %v1108_v57 = vsel %vm1107_vm1, %v1695_v31, %v1104_v50  ;;  %v1116_v34 = vmul.f32 %v1699_v53, %v2092_v35  ;;  %1700 = vpow2.f32 %v1556_v51  ;;  %v902_v61 = vpop.f32.mrf.mxu3  ;;  %vm1121_vm3 = vweird.f32 %v1699_v53 }
 0x169   : > { %v1113_v29 = vsel %vm1110_vm2, %v1112_v54, %v1108_v57  ;;  %1702 = vrcp.f32 %v2099_v0  ;;  %v895_v60 = vpop.f32.mrf.mxu2  ;;  %v923_v3 = vadd.f32 %v902_v61, %v785_v59  ;;  %vm1122_vm5 = vmor %vm1120_vm4, %vm1121_vm3  ;;  %v1141_v33 = vand.u32 2147483648, %v2099_v0 }
 0x16a   : > { %1257 = vst.msk [vmem:[%s2063_s16 + $0x30] sm:$0xff] %vm1250_vm8, %v1113_v29  ;;  %v1117_v62 = vsub.f32 1.0, %v1116_v34  ;;  %1704 = vpow2.f32 %v1559_v52  ;;  %v920_v63 = vadd.f32 %v895_v60, %v778_v58  ;;  %v692_v55 = vpop.f32.mrf.mxu0  ;;  %v1139_v43 = vand.u32 2147483647, %v2099_v0 }
 0x16b   : > { %v943_v24 = vadd.f32 %v2046_v6, %v923_v3  ;;  %v780_v26 = vadd.f32 %v779_v21, %v692_v55  ;;  %vm1135_vm9 = vweird.f32 %v2099_v0  ;;  %v1142_v45 = vor.u32 1.1754944e-38, %v1141_v33 }
 0x16c   : > { %v1118_v4 = vmul.f32 %v1699_v53, %v1117_v62  ;;  %v940_v7 = vadd.f32 %v2046_v6, %v920_v63  ;;  %vm1140_vm11 = vcmp.eq.f32.partialorder %v1139_v43, 8.507059e+37  ;;  %v790_v51 = vadd.f32 %v2085_v11, %v2067_v28 }
 0x16d   : > { %v1560_v15 = vmul.f32 -1.442695, %v943_v24 }
 0x16e   : > { %v1701_v40 = vpop.eup %1700  ;;  %v1119_v8 = vadd.f32 %v1699_v53, %v1118_v4  ;;  %v1557_v9 = vmul.f32 -1.442695, %v940_v7 }
 0x16f   : > { %v1703_v10 = vpop.eup %1702  ;;  %v2112_v14 = vadd.f32 1.0, %v1701_v40 }
 0x170   : > { %v1705_v18 = vpop.eup %1704  ;;  %v1123_v19 = vsel %vm1122_vm5, %v1699_v53, %v1119_v8  ;;  %v1131_v20 = vmul.f32 %v1703_v10, %v2099_v0  ;;  %1706 = vpow2.f32 %v1557_v9  ;;  %v905_v30 = vpop.f32.mrf.mxu3  ;;  %vm1136_vm7 = vweird.f32 %v1703_v10 }
 0x171   : > { %v1128_v23 = vsel %vm1125_vm6, %v1127_v13, %v1123_v19  ;;  %1708 = vrcp.f32 %v2112_v14  ;;  %v897_v27 = vpop.f32.mrf.mxu2  ;;  %v2120_v32 = vadd.f32 1.0, %v1705_v18  ;;  %v924_v36 = vadd.f32 %v905_v30, %v788_v22  ;;  %vm1137_vm10 = vmor %vm1135_vm9, %vm1136_vm7 }
 0x172   : > { %1258 = vst.msk [vmem:[%s2063_s16 + $0x38] sm:$0xff] %vm1250_vm8, %v1128_v23  ;;  %v1132_v31 = vsub.f32 1.0, %v1131_v20  ;;  %1710 = vpow2.f32 %v1560_v15  ;;  %v921_v35 = vadd.f32 %v897_v27, %v780_v26  ;;  %v1156_v52 = vand.u32 2147483648, %v2112_v14 }
 0x173   : > { %1712 = vrcp.f32 %v2120_v32  ;;  %v944_v39 = vadd.f32 %v2046_v6, %v924_v36  ;;  %v1154_v0 = vand.u32 2147483647, %v2112_v14  ;;  %v1199_v34 = vand.u32 2147483647, %v2120_v32 }
 0x174   : > { %v1133_v37 = vmul.f32 %v1703_v10, %v1132_v31  ;;  %v941_v56 = vadd.f32 %v2046_v6, %v921_v35  ;;  %vm1150_vm13 = vweird.f32 %v2112_v14  ;;  %v1201_v28 = vand.u32 2147483648, %v2120_v32 }
 0x175   : > { %v1561_v49 = vmul.f32 -1.442695, %v944_v39  ;;  %v1157_v29 = vor.u32 1.1754944e-38, %v1156_v52  ;;  %vm1155_vm0 = vcmp.eq.f32.partialorder %v1154_v0, 8.507059e+37  ;;  %vm1195_vm1 = vweird.f32 %v2120_v32 }
 0x176   : > { %v1707_v41 = vpop.eup %1706  ;;  %v1134_v42 = vadd.f32 %v1703_v10, %v1133_v37  ;;  %v1558_v47 = vmul.f32 -1.442695, %v941_v56  ;;  %vm1200_vm2 = vcmp.eq.f32.partialorder %v1199_v34, 8.507059e+37  ;;  %v1202_v40 = vor.u32 1.1754944e-38, %v1201_v28 }
 0x177   : > { %v1709_v44 = vpop.eup %1708  ;;  %v2128_v46 = vadd.f32 1.0, %v1707_v41 }
 0x178   : > { %v1711_v16 = vpop.eup %1710  ;;  %v1138_v12 = vsel %vm1137_vm10, %v1703_v10, %v1134_v42  ;;  %v1146_v48 = vmul.f32 %v1709_v44, %v2112_v14  ;;  %v907_v2 = vpop.f32.mrf.mxu3  ;;  %vm1151_vm12 = vweird.f32 %v1709_v44 }
 0x179   : > { %v1143_v17 = vsel %vm1140_vm11, %v1142_v45, %v1138_v12  ;;  %1714 = vrcp.f32 %v2128_v46  ;;  %v1713_v25 = vpop.eup %1712  ;;  %v2134_v50 = vadd.f32 1.0, %v1711_v16  ;;  %v925_v58 = vadd.f32 %v907_v2, %v790_v51  ;;  %vm1152_vm14 = vmor %vm1150_vm13, %vm1151_vm12 }
 0x17a   : > { %1259 = vst.msk [vmem:[%s2063_s16 + $0x40] sm:$0xff] %vm1250_vm8, %v1143_v17  ;;  %v1147_v38 = vsub.f32 1.0, %v1146_v48  ;;  %1716 = vpow2.f32 %v1558_v47  ;;  %v1191_v53 = vmul.f32 %v1713_v25, %v2120_v32  ;;  %vm1196_vm15 = vweird.f32 %v1713_v25 }
 0x17b   : > { %1718 = vpow2.f32 %v1561_v49  ;;  %v945_v61 = vadd.f32 %v2046_v6, %v925_v58  ;;  %vm1197_vm3 = vmor %vm1195_vm1, %vm1196_vm15  ;;  %v1171_v8 = vand.u32 2147483648, %v2128_v46  ;;  %v1169_v18 = vand.u32 2147483647, %v2128_v46 }
 0x17c   : > { %v1148_v54 = vmul.f32 %v1709_v44, %v1147_v38  ;;  %1720 = vrcp.f32 %v2134_v50  ;;  %v1192_v57 = vsub.f32 1.0, %v1191_v53  ;;  %vm1165_vm5 = vweird.f32 %v2128_v46 }
 0x17d   : > { %v1562_v13 = vmul.f32 -1.442695, %v945_v61  ;;  %v1172_v21 = vor.u32 1.1754944e-38, %v1171_v8  ;;  %v1216_v22 = vand.u32 2147483648, %v2134_v50  ;;  %v1214_v26 = vand.u32 2147483647, %v2134_v50 }
 0x17e   : > { %v1149_v59 = vadd.f32 %v1709_v44, %v1148_v54  ;;  %v1193_v60 = vmul.f32 %v1713_v25, %v1192_v57  ;;  %vm1170_vm9 = vcmp.eq.f32.partialorder %v1169_v18, 8.507059e+37  ;;  %vm1210_vm10 = vweird.f32 %v2134_v50 }
 0x17f   : > { %v1715_v11 = vpop.eup %1714  ;;  %v1217_v33 = vor.u32 1.1754944e-38, %v1216_v22  ;;  %vm1215_vm12 = vcmp.eq.f32.partialorder %v1214_v26, 8.507059e+37 }
 0x180   : > { %v1717_v62 = vpop.eup %1716  ;;  %v1153_v63 = vsel %vm1152_vm14, %v1709_v44, %v1149_v59  ;;  %v1161_v1 = vmul.f32 %v1715_v11, %v2128_v46  ;;  %v1194_v5 = vadd.f32 %v1713_v25, %v1193_v60  ;;  %vm1166_vm4 = vweird.f32 %v1715_v11 }
 0x181   : > { %v1719_v3 = vpop.eup %1718  ;;  %v1158_v4 = vsel %vm1155_vm0, %v1157_v29, %v1153_v63  ;;  %v2148_v7 = vadd.f32 1.0, %v1717_v62  ;;  %vm1167_vm6 = vmor %vm1165_vm5, %vm1166_vm4 }
 0x182   : > { %v1721_v24 = vpop.eup %1720  ;;  %1260 = vst.msk [vmem:[%s2063_s16 + $0x48] sm:$0xff] %vm1250_vm8, %v1158_v4  ;;  %v1162_v6 = vsub.f32 1.0, %v1161_v1  ;;  %v2153_v9 = vadd.f32 1.0, %v1719_v3  ;;  %v1198_v55 = vsel %vm1197_vm3, %v1713_v25, %v1194_v5 }
 0x183   : > { %v1206_v10 = vmul.f32 %v1721_v24, %v2134_v50  ;;  %1722 = vrcp.f32 %v2148_v7  ;;  %v1203_v14 = vsel %vm1200_vm2, %v1202_v40, %v1198_v55  ;;  %vm1211_vm7 = vweird.f32 %v1721_v24 }
 0x184   : > { %v1163_v15 = vmul.f32 %v1715_v11, %v1162_v6  ;;  %1263 = vst.msk [vmem:[%s2063_s16 + $0x60] sm:$0xff] %vm1250_vm8, %v1203_v14  ;;  %1724 = vrcp.f32 %v2153_v9  ;;  %vm1212_vm11 = vmor %vm1210_vm10, %vm1211_vm7  ;;  %v1184_v42 = vand.u32 2147483647, %v2148_v7  ;;  %v1186_v44 = vand.u32 2147483648, %v2148_v7 }
 0x185   : > { %v1207_v19 = vsub.f32 1.0, %v1206_v10  ;;  %1726 = vpow2.f32 %v1562_v13  ;;  %vm1180_vm14 = vweird.f32 %v2148_v7  ;;  %v1229_v16 = vand.u32 2147483647, %v2153_v9 }
 0x186   : > { %v1164_v20 = vadd.f32 %v1715_v11, %v1163_v15  ;;  %v1231_v12 = vand.u32 2147483648, %v2153_v9  ;;  %v1187_v17 = vor.u32 1.1754944e-38, %v1186_v44  ;;  %vm1185_vm1 = vcmp.eq.f32.partialorder %v1184_v42, 8.507059e+37 }
 0x187   : > { %v1208_v23 = vmul.f32 %v1721_v24, %v1207_v19  ;;  %vm1225_vm2 = vweird.f32 %v2153_v9  ;;  %vm1230_vm4 = vcmp.eq.f32.partialorder %v1229_v16, 8.507059e+37 }
 0x188   : > { %v1168_v27 = vsel %vm1167_vm6, %v1715_v11, %v1164_v20  ;;  %v1232_v2 = vor.u32 1.1754944e-38, %v1231_v12 }
 0x189   : > { %v1723_v30 = vpop.eup %1722  ;;  %v1173_v31 = vsel %vm1170_vm9, %v1172_v21, %v1168_v27  ;;  %v1209_v32 = vadd.f32 %v1721_v24, %v1208_v23 }
 0x18a   : > { %1261 = vst.msk [vmem:[%s2063_s16 + $0x50] sm:$0xff] %vm1250_vm8, %v1173_v31  ;;  %v1176_v35 = vmul.f32 %v1723_v30, %v2148_v7  ;;  %v1725_v36 = vpop.eup %1724  ;;  %vm1181_vm13 = vweird.f32 %v1723_v30 }
 0x18b   : > { %v1213_v37 = vsel %vm1212_vm11, %v1721_v24, %v1209_v32  ;;  %v1221_v39 = vmul.f32 %v1725_v36, %v2153_v9  ;;  %v1727_v41 = vpop.eup %1726  ;;  %vm1226_vm15 = vweird.f32 %v1725_v36  ;;  %vm1182_vm0 = vmor %vm1180_vm14, %vm1181_vm13 }
 0x18c   : > { %v1218_v43 = vsel %vm1215_vm12, %v1217_v33, %v1213_v37  ;;  %v1177_v56 = vsub.f32 1.0, %v1176_v35  ;;  %v1009_v47 = vadd.f32 1.0, %v1727_v41  ;;  %vm1227_vm3 = vmor %vm1225_vm2, %vm1226_vm15 }
 0x18d   : > { %1264 = vst.msk [vmem:[%s2063_s16 + $0x68] sm:$0xff] %vm1250_vm8, %v1218_v43  ;;  %v1222_v46 = vsub.f32 1.0, %v1221_v39 }
 0x18e   : > { %v1178_v45 = vmul.f32 %v1723_v30, %v1177_v56  ;;  %1728 = vrcp.f32 %v1009_v47  ;;  %v1246_v57 = vand.u32 2147483648, %v1009_v47  ;;  %v1244_v58 = vand.u32 2147483647, %v1009_v47 }
 0x18f   : > { %v1223_v49 = vmul.f32 %v1725_v36, %v1222_v46  ;;  %vm1240_vm6 = vweird.f32 %v1009_v47 }
 0x190   : > { %v1179_v48 = vadd.f32 %v1723_v30, %v1178_v45  ;;  %v1247_v28 = vor.u32 1.1754944e-38, %v1246_v57  ;;  %vm1245_vm9 = vcmp.eq.f32.partialorder %v1244_v58, 8.507059e+37 }
 0x191   : > { %v1224_v38 = vadd.f32 %v1725_v36, %v1223_v49 }
 0x192   : > { %v1183_v25 = vsel %vm1182_vm0, %v1723_v30, %v1179_v48 }
 0x193   : > { %v1188_v50 = vsel %vm1185_vm1, %v1187_v17, %v1183_v25  ;;  %v1228_v51 = vsel %vm1227_vm3, %v1725_v36, %v1224_v38 }
 0x194   : > { %1262 = vst.msk [vmem:[%s2063_s16 + $0x58] sm:$0xff] %vm1250_vm8, %v1188_v50  ;;  %v1233_v52 = vsel %vm1230_vm4, %v1232_v2, %v1228_v51  ;;  %v1729_v53 = vpop.eup %1728 }
 0x195   : > { %1265 = vst.msk [vmem:[%s2063_s16 + $0x70] sm:$0xff] %vm1250_vm8, %v1233_v52  ;;  %v1236_v54 = vmul.f32 %v1729_v53, %v1009_v47  ;;  %vm1241_vm5 = vweird.f32 %v1729_v53 }
 0x196   : > { %vm1242_vm7 = vmor %vm1240_vm6, %vm1241_vm5 }
 0x197   : > { %v1237_v0 = vsub.f32 1.0, %v1236_v54 }
 0x199   : > { %v1238_v34 = vmul.f32 %v1729_v53, %v1237_v0 }
 0x19b   : > { %v1239_v59 = vadd.f32 %v1729_v53, %v1238_v34 }
 0x19d   : > { %v1243_v11 = vsel %vm1242_vm7, %v1729_v53, %v1239_v59 }
 0x19e   : > { %v1248_v29 = vsel %vm1245_vm9, %v1247_v28, %v1243_v11 }
 0x19f   : > { %1266 = vst.msk [vmem:[%s2063_s16 + $0x78] sm:$0xff] %vm1250_vm8, %v1248_v29 }
 0x1a0 PF: > { %s15_s22 = sadd.s32 1, %s1768_s22   ;;  %s2205_s18 = smov %s1760_s20 }
 0x1a1   : > { %p12_p10 = scmp.ge.s32.totalorder %s15_s22, 6   ;;  %s2206_s19 = smov %s1764_s21 }
 0x1a2   : > { %s2207_s20 = smov %s2210_s23  ;;  %s2208_s21 = smov %s2214_s24 }
 0x1a3   :  { %14 = sbr.rel (!%p12_p10) target bundleno = 3 (0x3), region = 76 }

</bundles_post_ra>
